<compile_context>
chip_gen: v7x
topology: tpu7x:2x2x1
jax: 0.10.0
libtpu: 0.0.40
codegen_flags: <defaults>
</compile_context>

<pallas_src>
import functools
import numpy as np

import jax
import jax.numpy as jnp
from jax import lax
from jax.experimental import pallas as pl
from jax.experimental.pallas import tpu as pltpu

PAD = 0
F32 = jnp.float32
BF16 = jnp.bfloat16

_LAYER_KEYS = ('wq', 'wk', 'wv', 'fc', 'aln', 'w1', 'b1', 'w2', 'b2', 'fln')


# ----------------------------- in-kernel helpers -----------------------------
def _layernorm(x, ln):
    # TODO(synk): eps=1e-6 follows ShuttleNet-style LayerNorm (PyTorch default is 1e-5).
    mu = jnp.mean(x, axis=-1, keepdims=True)
    var = jnp.mean((x - mu) ** 2, axis=-1, keepdims=True)
    return (x - mu) * lax.rsqrt(var + 1e-6) * ln[0:1, :] + ln[1:2, :]


def _sigmoid(x):
    # exact sigmoid (feeds the module output); keep f32, no approx reciprocal
    return 1.0 / (1.0 + jnp.exp(-x))


def _attn_block(x_cat, kv_cat, bias, W, sel, n_head, d_k, D):
    """Disentangled (type/area) MHA + residual + LN on the lane-concatenated [area|shot] stream.

    TODO(synk): TypeArea attention internals reconstructed ShuttleNet-style (exact MuLMINet
    source not provided); score scale = 1/(2*sqrt(d_k)); the four score terms are fused as
    (Qa+Qs)(Ka+Ks)^T via stream-stacked q/k weights.  `sel` = 0 self-attn, 1 cross-attn.
    """
    scale = 1.0 / (2.0 * (float(d_k) ** 0.5))
    dn = (((1,), (1,)), ((), ()))   # q @ k^T without transpose

    ctxs = []
    for h in range(n_head):
        q = jnp.dot(x_cat, W['wq'][sel, h], preferred_element_type=F32)    # (Lq, d_k)
        k = jnp.dot(kv_cat, W['wk'][sel, h], preferred_element_type=F32)   # (Lk, d_k)
        v = jnp.dot(kv_cat, W['wv'][sel, h], preferred_element_type=F32)   # (Lk, 2*d_k)=[v_a|v_s]
        s = lax.dot_general(q.astype(BF16), k.astype(BF16), dn,
                            preferred_element_type=F32) * scale            # (Lq, Lk) f32
        if bias is not None:
            s = s + bias                                                    # additive mask
        m = jnp.max(s, axis=-1, keepdims=True)
        p = jnp.exp(s - m)
        attn = p / jnp.sum(p, axis=-1, keepdims=True)
        ctxs.append(jnp.dot(attn.astype(BF16), v.astype(BF16),
                            preferred_element_type=F32))                   # (Lq, 2*d_k)
    ctx = jnp.concatenate(ctxs, axis=-1)                                    # (Lq, H*2*d_k)
    out = jnp.dot(ctx.astype(BF16), W['fc'][sel], preferred_element_type=F32)
    out = out + x_cat.astype(F32)                                           # residual
    a = _layernorm(out[:, :D], W['aln'][sel, 0])
    s_ = _layernorm(out[:, D:], W['aln'][sel, 1])
    return jnp.concatenate([a, s_], axis=-1).astype(BF16)


def _ffn_block(x_cat, W, D):
    h = jnp.dot(x_cat, W['w1'][...], preferred_element_type=F32) + W['b1'][...]
    h = jnp.maximum(h, 0.0)
    y = jnp.dot(h.astype(BF16), W['w2'][...], preferred_element_type=F32) + W['b2'][...]
    y = y + x_cat.astype(F32)
    a = _layernorm(y[:, :D], W['fln'][0])
    s_ = _layernorm(y[:, D:], W['fln'][1])
    return jnp.concatenate([a, s_], axis=-1).astype(BF16)


def _decoder_layer(x_cat, enc_cat, self_bias, W, n_head, d_k, D):
    x_cat = _attn_block(x_cat, x_cat, self_bias, W, 0, n_head, d_k, D)   # masked self-attn
    x_cat = _attn_block(x_cat, enc_cat, None, W, 1, n_head, d_k, D)      # dec-enc attn (no mask)
    return _ffn_block(x_cat, W, D)


def _gather_rows(x, idx):
    """Static row gather (alternatemerge); idx entry -1 -> zero row."""
    rows = [jnp.zeros_like(x[0:1]) if i < 0 else x[i:i + 1] for i in idx]
    return jnp.concatenate(rows, axis=0)


# ----------------------------- the fused kernel ------------------------------
def _decoder_kernel(*refs, n_layers, n_head, d_k, D, has_B, idx_A, idx_B):
    if has_B:
        (loc_ref, gA_ref, gB_ref, el_ref, egA_ref, egB_ref,
         b_loc_ref, b_gA_ref, b_gB_ref, *rest) = refs
    else:
        (loc_ref, gA_ref, el_ref, egA_ref, b_loc_ref, b_gA_ref, *rest) = refs
    (g_wq, g_wk, g_wv, g_fc, g_aln, g_w1, g_b1, g_w2, g_b2, g_fln,
     l_wq, l_wk, l_wv, l_fc, l_aln, l_w1, l_b1, l_w2, l_b2, l_fln,
     hid_ref, gat_ref, fw_ref, out_ref) = rest

    GW = dict(wq=g_wq, wk=g_wk, wv=g_wv, fc=g_fc, aln=g_aln,
              w1=g_w1, b1=g_b1, w2=g_w2, b2=g_b2, fln=g_fln)
    LW = dict(wq=l_wq, wk=l_wk, wv=l_wv, fc=l_fc, aln=l_aln,
              w1=l_w1, b1=l_b1, w2=l_w2, b2=l_b2, fln=l_fln)

    loc = loc_ref[0]                 # (L, 2D)  bf16
    gA = gA_ref[0]                   # (LA, 2D) bf16
    el = el_ref[0]                   # (LeL, 2D)
    egA = egA_ref[0]                 # (LeA, 2D)
    b_loc = b_loc_ref[0]             # (L, L)   f32 additive bias
    b_gA = b_gA_ref[0]               # (LA, LA)

    # The PyTorch loop reuses the SAME global / local layer weights every iteration.
    if has_B:
        gB = gB_ref[0]
        egB = egB_ref[0]
        b_gB = b_gB_ref[0]

        def body(_, carry):
            ga, gb, lc = carry
            ga = _decoder_layer(ga, egA, b_gA, GW, n_head, d_k, D)
            gb = _decoder_layer(gb, egB, b_gB, GW, n_head, d_k, D)
            lc = _decoder_layer(lc, el, b_loc, LW, n_head, d_k, D)
            return (ga, gb, lc)

        gA, gB, loc = lax.fori_loop(0, n_layers, body, (gA, gB, loc))
        merged_B = _gather_rows(gB.astype(F32), idx_B)
    else:
        def body(_, carry):
            ga, lc = carry
            ga = _decoder_layer(ga, egA, b_gA, GW, n_head, d_k, D)
            lc = _decoder_layer(lc, el, b_loc, LW, n_head, d_k, D)
            return (ga, lc)

        gA, loc = lax.fori_loop(0, n_layers, body, (gA, loc))
        merged_B = jnp.zeros(loc.shape, F32)

    # alternatemerge as a static per-batch row gather (no selection-matrix matmuls)
    merged_A = _gather_rows(gA.astype(F32), idx_A)
    loc32 = loc.astype(F32)

    # ---- gated fusion (area & shot blocks fused into one 6D-wide dot pair) ----
    # TODO(synk): GatedFusionLayer_MuLMINet_Variant2 internals reconstructed as two
    # independent ShuttleNet-style position-aware gated fusion blocks (area & shot).
    cat6 = jnp.concatenate([merged_A, merged_B, loc32], axis=-1).astype(BF16)   # (L, 6D)
    hpre = jnp.dot(cat6, hid_ref[...], preferred_element_type=F32)
    gpre = jnp.dot(cat6, gat_ref[...], preferred_element_type=F32)
    z = _sigmoid(gpre) * jnp.tanh(hpre)                                          # (L, 6D) f32
    out_area = _sigmoid(fw_ref[0] * z[:, 0 * D:1 * D]
                        + fw_ref[2] * z[:, 2 * D:3 * D]
                        + fw_ref[4] * z[:, 4 * D:5 * D])
    out_shot = _sigmoid(fw_ref[1] * z[:, 1 * D:2 * D]
                        + fw_ref[3] * z[:, 3 * D:4 * D]
                        + fw_ref[5] * z[:, 5 * D:6 * D])
    out_ref[0] = jnp.concatenate([out_area, out_shot], axis=-1)


# ----------------------------- pallas_call wrapper ---------------------------
def _batched_spec(arr):
    zeros = (0,) * (arr.ndim - 1)
    return pl.BlockSpec((1,) + tuple(arr.shape[1:]), lambda b, z=zeros: (b,) + z)


def _shared_spec(arr):
    zeros = (0,) * arr.ndim
    return pl.BlockSpec(tuple(arr.shape), lambda b, z=zeros: z)


def run_decoder(inputs, *, B, L, D, n_layers, n_head, d_k, has_B, idx_A, idx_B):
    n_batched = 9 if has_B else 6
    in_specs = ([_batched_spec(x) for x in inputs[:n_batched]]
                + [_shared_spec(x) for x in inputs[n_batched:]])
    out_spec = pl.BlockSpec((1, L, 2 * D), lambda b: (b, 0, 0))
    out_shape = jax.ShapeDtypeStruct((B, L, 2 * D), F32)

    # VMEM budget: shared weights fully resident, per-batch blocks double-buffered.
    shared_bytes = sum(int(x.size) * x.dtype.itemsize for x in inputs[n_batched:])
    block_bytes = sum(int(np.prod(x.shape[1:])) * x.dtype.itemsize for x in inputs[:n_batched])
    resident = shared_bytes + 2 * block_bytes + 2 * L * 2 * D * 4
    vmem_limit = int(min(max(8 * resident, 16 * 2 ** 20), 48 * 2 ** 20))

    kern = functools.partial(
        _decoder_kernel, n_layers=n_layers, n_head=n_head, d_k=d_k, D=D, has_B=has_B,
        idx_A=tuple(idx_A), idx_B=tuple(idx_B) if idx_B is not None else None)

    return pl.pallas_call(
        kern,
        grid=(B,),
        in_specs=in_specs,
        out_specs=out_spec,
        out_shape=out_shape,
        compiler_params=pltpu.CompilerParams(
            dimension_semantics=("parallel",),
            vmem_limit_bytes=vmem_limit),
    )(*inputs)


# ----------------------------- plain-JAX glue ---------------------------------
def make_attn_bias(seq):
    """pad & subsequent mask as an additive f32 bias (0 allowed / -1e9 masked)."""
    Lx = seq.shape[1]
    pad = (seq != PAD)[:, None, :]
    sub = jnp.tril(jnp.ones((Lx, Lx), dtype=bool))[None]
    return jnp.where(jnp.logical_and(pad, sub), 0.0, -1e9).astype(F32)


def merge_indices(src_len, merge_len, player):
    """Row-gather indices replicating alternatemerge(x, x, merge_len, player); -1 -> zero row."""
    idx = [-1] * merge_len
    if src_len * 2 == merge_len - 1:
        for j, r in enumerate(range(1, merge_len, 2)):
            idx[r] = j
        for j, r in enumerate(range(2, merge_len, 2)):
            idx[r] = j
    elif src_len * 2 - 1 == merge_len:
        for j, r in enumerate(range(0, merge_len, 2)):
            idx[r] = j
        for j, r in enumerate(range(1, merge_len, 2)):
            idx[r] = j
    elif src_len * 2 == merge_len:
        if player == 'A':
            for i in range(src_len):
                idx[2 * i] = i
                idx[2 * i + 1] = i
        else:
            for i in range(src_len):
                idx[2 * i + 1] = i
            for i in range(src_len - 1):
                idx[2 * i + 2] = i
    else:
        raise NotImplementedError
    return idx


def sinusoid_table(n_position, d_hid):
    pos = np.arange(n_position, dtype=np.float64)[:, None]
    i = np.arange(d_hid)[None, :]
    angle = pos / np.power(10000.0, 2.0 * (i // 2) / d_hid)
    tab = np.zeros((n_position, d_hid))
    tab[:, 0::2] = np.sin(angle[:, 0::2])
    tab[:, 1::2] = np.cos(angle[:, 1::2])
    return jnp.asarray(tab, F32)


# ----------------------------- parameter init + packing -----------------------
def _randn(key, shape):
    return jax.random.normal(key, shape, F32) * 0.1


def init_params(key, config):
    D = config['encode_dim']
    H, d_k = 2, config['encode_dim']
    d_inner = 2 * D
    n_position = config['max_ball_round'] + 1
    decode_len = n_position - config['encode_length']
    ks = jax.random.split(key, 12)

    def emb(k, n, d):
        return _randn(k, (n, d)).at[PAD].set(0.0)   # nn.Embedding(padding_idx=PAD)

    def attn(k):
        kk = jax.random.split(k, 8)
        HD = H * d_k
        ln = jnp.stack([jnp.ones(D, F32), jnp.zeros(D, F32)])
        return dict(wq_a=_randn(kk[0], (D, HD)), wq_s=_randn(kk[1], (D, HD)),
                    wk_a=_randn(kk[2], (D, HD)), wk_s=_randn(kk[3], (D, HD)),
                    wv_a=_randn(kk[4], (D, HD)), wv_s=_randn(kk[5], (D, HD)),
                    fc_a=_randn(kk[6], (HD, D)), fc_s=_randn(kk[7], (HD, D)),
                    ln_a=ln, ln_s=ln)

    def ffn(k):
        k1, k2 = jax.random.split(k)
        return dict(w1=_randn(k1, (D, d_inner)), b1=jnp.zeros((d_inner,), F32),
                    w2=_randn(k2, (d_inner, D)), b2=jnp.zeros((D,), F32),
                    ln=jnp.stack([jnp.ones(D, F32), jnp.zeros(D, F32)]))

    def layer(k):
        k1, k2, k3, k4 = jax.random.split(k, 4)
        return dict(slf=attn(k1), crs=attn(k2), ffn_a=ffn(k3), ffn_s=ffn(k4))

    def fusion(k):
        k1, k2, k3 = jax.random.split(k, 3)
        return dict(hidden=_randn(k1, (3, D, D)),
                    gated=_randn(k2, (3, 3 * D, D)),
                    w=_randn(k3, (3, decode_len, D)))

    return dict(
        area_w=_randn(ks[0], (2, config['area_dim'])),
        area_b=jnp.zeros((config['area_dim'],), F32),
        shot_emb=emb(ks[1], config['shot_num'], config['shot_dim']),
        player_emb=emb(ks[2], config['player_num'], config['player_dim']),
        bool_emb=emb(ks[3], 3, config['player_dim']),
        areanum_emb=emb(ks[4], 11, config['player_dim']),
        score_emb=emb(ks[5], 28, config['player_dim']),   # defined but unused (as in PyTorch)
        pos_table=sinusoid_table(n_position, config['shot_dim']),
        global_layer=layer(ks[6]),
        local_layer=layer(ks[7]),
        fusion_area=fusion(ks[8]),
        fusion_shot=fusion(ks[9]),
    )


def pack_params(params, config):
    """Host-side packing into kernel layouts (head on leading axis, block-diag stream fusion)."""
    D = config['encode_dim']
    H, d_k = 2, config['encode_dim']
    Di = 2 * D

    def pack_layer(layer):
        wq = np.zeros((2, H, 2 * D, d_k), np.float32)
        wk = np.zeros((2, H, 2 * D, d_k), np.float32)
        wv = np.zeros((2, H, 2 * D, 2 * d_k), np.float32)
        fc = np.zeros((2, H * 2 * d_k, 2 * D), np.float32)
        aln = np.zeros((2, 2, 2, D), np.float32)
        for sel, att in enumerate((layer['slf'], layer['crs'])):
            for h in range(H):
                sl = slice(h * d_k, (h + 1) * d_k)
                wq[sel, h, :D, :] = np.asarray(att['wq_a'])[:, sl]
                wq[sel, h, D:, :] = np.asarray(att['wq_s'])[:, sl]
                wk[sel, h, :D, :] = np.asarray(att['wk_a'])[:, sl]
                wk[sel, h, D:, :] = np.asarray(att['wk_s'])[:, sl]
                wv[sel, h, :D, :d_k] = np.asarray(att['wv_a'])[:, sl]
                wv[sel, h, D:, d_k:] = np.asarray(att['wv_s'])[:, sl]
                r0 = h * 2 * d_k
                fc[sel, r0:r0 + d_k, :D] = np.asarray(att['fc_a'])[sl, :]
                fc[sel, r0 + d_k:r0 + 2 * d_k, D:] = np.asarray(att['fc_s'])[sl, :]
            aln[sel, 0] = np.asarray(att['ln_a'])
            aln[sel, 1] = np.asarray(att['ln_s'])
        fa, fs = layer['ffn_a'], layer['ffn_s']
        w1 = np.zeros((2 * D, 2 * Di), np.float32)
        w1[:D, :Di] = np.asarray(fa['w1'])
        w1[D:, Di:] = np.asarray(fs['w1'])
        b1 = np.concatenate([np.asarray(fa['b1']), np.asarray(fs['b1'])])[None, :]
        w2 = np.zeros((2 * Di, 2 * D), np.float32)
        w2[:Di, :D] = np.asarray(fa['w2'])
        w2[Di:, D:] = np.asarray(fs['w2'])
        b2 = np.concatenate([np.asarray(fa['b2']), np.asarray(fs['b2'])])[None, :]
        fln = np.stack([np.asarray(fa['ln']), np.asarray(fs['ln'])])
        return dict(wq=jnp.asarray(wq, BF16), wk=jnp.asarray(wk, BF16),
                    wv=jnp.asarray(wv, BF16), fc=jnp.asarray(fc, BF16),
                    aln=jnp.asarray(aln, F32),
                    w1=jnp.asarray(w1, BF16), b1=jnp.asarray(b1, F32),
                    w2=jnp.asarray(w2, BF16), b2=jnp.asarray(b2, F32),
                    fln=jnp.asarray(fln, F32))

    def pack_fusion(fa, fs):
        # chunk order along 6D lanes: [A_area, A_shot, B_area, B_shot, L_area, L_shot]
        hid = np.zeros((6 * D, 6 * D), np.float32)
        gat = np.zeros((6 * D, 6 * D), np.float32)
        fa_hid, fs_hid = np.asarray(fa['hidden']), np.asarray(fs['hidden'])
        fa_gat, fs_gat = np.asarray(fa['gated']), np.asarray(fs['gated'])
        for inp in range(3):                     # 0=A, 1=B, 2=Local
            ca, cs = 2 * inp, 2 * inp + 1
            hid[ca * D:(ca + 1) * D, ca * D:(ca + 1) * D] = fa_hid[inp]
            hid[cs * D:(cs + 1) * D, cs * D:(cs + 1) * D] = fs_hid[inp]
        for g in range(3):                       # gate g multiplies hidden of input g
            oa, os_ = 2 * g, 2 * g + 1
            for inp in range(3):
                ra, rs = 2 * inp, 2 * inp + 1
                gat[ra * D:(ra + 1) * D, oa * D:(oa + 1) * D] = fa_gat[g, inp * D:(inp + 1) * D]
                gat[rs * D:(rs + 1) * D, os_ * D:(os_ + 1) * D] = fs_gat[g, inp * D:(inp + 1) * D]
        fw = np.stack([np.asarray(fa['w'][0]), np.asarray(fs['w'][0]),
                       np.asarray(fa['w'][1]), np.asarray(fs['w'][1]),
                       np.asarray(fa['w'][2]), np.asarray(fs['w'][2])])
        return dict(hid=jnp.asarray(hid, BF16), gat=jnp.asarray(gat, BF16),
                    w=jnp.asarray(fw, F32))

    return dict(
        area_w=params['area_w'], area_b=params['area_b'],
        shot_emb=params['shot_emb'], player_emb=params['player_emb'],
        bool_emb=params['bool_emb'], areanum_emb=params['areanum_emb'],
        pos_table=params['pos_table'],
        global_layer=pack_layer(params['global_layer']),
        local_layer=pack_layer(params['local_layer']),
        fusion=pack_fusion(params['fusion_area'], params['fusion_shot']),
    )


# ----------------------------- module forward ---------------------------------
def shotgen_decoder_forward(kp, config,
                            input_shot, input_x, input_y, input_player,
                            input_height, input_aroundhead, input_backhand,
                            input_player_location_area, input_opponent_location_area,
                            encode_local_output_area, encode_local_output_shot,
                            encode_global_area_A, encode_global_shot_A,
                            encode_global_area_B, encode_global_shot_B):
    D = config['encode_dim']
    H, d_k = 2, config['encode_dim']
    enc_len = config['encode_length']
    n_layers = config['n_layers']

    B, L = input_shot.shape
    LA = (L + 1) // 2
    LB = L // 2
    has_B = LB > 0

    # embeddings + positional encoding (gathers; plain-JAX glue, eval-mode dropout = identity)
    area = jnp.stack([input_x, input_y], axis=-1).astype(F32)
    embedded_area = jax.nn.relu(area @ kp['area_w'] + kp['area_b'])
    embedded_shot = jnp.take(kp['shot_emb'], input_shot, axis=0)
    embedded_player = jnp.take(kp['player_emb'], input_player, axis=0)
    embedded_height = jnp.take(kp['bool_emb'], input_height, axis=0)
    embedded_aroundhead = jnp.take(kp['bool_emb'], input_aroundhead, axis=0)
    embedded_backhand = jnp.take(kp['bool_emb'], input_backhand, axis=0)
    embedded_player_area = jnp.take(kp['areanum_emb'], input_player_location_area, axis=0)
    embedded_opponent_area = jnp.take(kp['areanum_emb'], input_opponent_location_area, axis=0)

    common = (embedded_player + embedded_height + embedded_aroundhead
              + embedded_backhand + embedded_player_area + embedded_opponent_area)
    h_a = embedded_area + common
    h_s = embedded_shot + common

    pos = kp['pos_table']

    def posdec(x):  # PositionalEncoding(mode='decode')
        return x + pos[enc_len:enc_len + x.shape[1]][None]

    dec_loc_cat = jnp.concatenate([posdec(h_a), posdec(h_s)], axis=-1).astype(BF16)
    dec_gA_cat = jnp.concatenate([posdec(h_a[:, ::2]), posdec(h_s[:, ::2])],
                                 axis=-1).astype(BF16)
    enc_loc_cat = jnp.concatenate([encode_local_output_area, encode_local_output_shot],
                                  axis=-1).astype(BF16)
    enc_gA_cat = jnp.concatenate([encode_global_area_A, encode_global_shot_A],
                                 axis=-1).astype(BF16)

    inputs = [dec_loc_cat, dec_gA_cat]
    if has_B:
        inputs.append(jnp.concatenate([posdec(h_a[:, 1::2]), posdec(h_s[:, 1::2])],
                                      axis=-1).astype(BF16))
    inputs += [enc_loc_cat, enc_gA_cat]
    if has_B:
        inputs.append(jnp.concatenate([encode_global_area_B, encode_global_shot_B],
                                      axis=-1).astype(BF16))
    inputs += [make_attn_bias(input_shot), make_attn_bias(input_shot[:, ::2])]
    if has_B:
        inputs.append(make_attn_bias(input_shot[:, 1::2]))

    gl, ll = kp['global_layer'], kp['local_layer']
    inputs += [gl[k] for k in _LAYER_KEYS]
    inputs += [ll[k] for k in _LAYER_KEYS]
    inputs += [kp['fusion']['hid'], kp['fusion']['gat'], kp['fusion']['w'][:, :L, :]]

    if has_B:
        idx_A = merge_indices(LA, L, 'A')
        idx_B = merge_indices(LB, L, 'B')
    else:
        idx_A = list(range(LA))   # LB==0: A stream passes through, B output is zeros
        idx_B = None

    out = run_decoder(inputs, B=B, L=L, D=D, n_layers=n_layers,
                      n_head=H, d_k=d_k, has_B=has_B, idx_A=idx_A, idx_B=idx_B)
    return out[..., :D], out[..., D:]


# ----------------------------- main --------------------------------------------
if __name__ == "__main__":
    B, S, D = 2, 4, 32
    config = dict(area_dim=D, shot_dim=D, player_dim=D, encode_dim=D,
                  shot_num=10, player_num=6, encode_length=4,
                  max_ball_round=8, n_layers=2)

    key = jax.random.PRNGKey(0)
    kp_key, kx, ky, k_enc = jax.random.split(key, 4)
    params = init_params(kp_key, config)
    kp = pack_params(params, config)

    input_shot = jnp.array([[1, 2, 3, 4], [5, 6, 7, 0]], jnp.int32)          # 0 = PAD
    input_player = jnp.array([[1, 2, 1, 2], [3, 4, 3, 4]], jnp.int32)
    input_height = jnp.array([[1, 2, 1, 2], [2, 1, 2, 1]], jnp.int32)
    input_aroundhead = jnp.array([[2, 1, 2, 1], [1, 1, 2, 2]], jnp.int32)
    input_backhand = jnp.array([[1, 1, 2, 2], [2, 2, 1, 1]], jnp.int32)
    input_player_loc = jnp.array([[1, 3, 5, 7], [2, 4, 6, 8]], jnp.int32)
    input_opponent_loc = jnp.array([[9, 7, 5, 3], [10, 8, 6, 4]], jnp.int32)
    input_x = jax.random.uniform(kx, (B, S), F32)
    input_y = jax.random.uniform(ky, (B, S), F32)

    enc_keys = jax.random.split(k_enc, 6)
    enc_len = config['encode_length']
    encode_local_output_area = jax.random.normal(enc_keys[0], (B, enc_len, D), F32) * 0.5
    encode_local_output_shot = jax.random.normal(enc_keys[1], (B, enc_len, D), F32) * 0.5
    encode_global_area_A = jax.random.normal(enc_keys[2], (B, enc_len // 2, D), F32) * 0.5
    encode_global_shot_A = jax.random.normal(enc_keys[3], (B, enc_len // 2, D), F32) * 0.5
    encode_global_area_B = jax.random.normal(enc_keys[4], (B, enc_len // 2, D), F32) * 0.5
    encode_global_shot_B = jax.random.normal(enc_keys[5], (B, enc_len // 2, D), F32) * 0.5

    fwd = jax.jit(lambda *args: shotgen_decoder_forward(kp, config, *args))

    out_area, out_shot = fwd(
        input_shot, input_x, input_y, input_player,
        input_height, input_aroundhead, input_backhand,
        input_player_loc, input_opponent_loc,
        encode_local_output_area, encode_local_output_shot,
        encode_global_area_A, encode_global_shot_A,
        encode_global_area_B, encode_global_shot_B)

    jax.block_until_ready((out_area, out_shot))
    assert out_area.shape == (B, S, D) and out_shot.shape == (B, S, D)
    assert bool(jnp.all(jnp.isfinite(out_area))) and bool(jnp.all(jnp.isfinite(out_shot)))
    print("KERNEL_OK")
</pallas_src>

<mosaic_0001>
module attributes {stable_mosaic.version = 11 : i64} {
  func.func @_decoder_kernel(%arg0: i32, %arg1: memref<1x4x64xbf16, #tpu.memory_space<vmem>>, %arg2: memref<1x2x64xbf16, #tpu.memory_space<vmem>>, %arg3: memref<1x2x64xbf16, #tpu.memory_space<vmem>>, %arg4: memref<1x4x64xbf16, #tpu.memory_space<vmem>>, %arg5: memref<1x2x64xbf16, #tpu.memory_space<vmem>>, %arg6: memref<1x2x64xbf16, #tpu.memory_space<vmem>>, %arg7: memref<1x4x4xf32, #tpu.memory_space<vmem>>, %arg8: memref<1x2x2xf32, #tpu.memory_space<vmem>>, %arg9: memref<1x2x2xf32, #tpu.memory_space<vmem>>, %arg10: memref<2x2x64x32xbf16, #tpu.memory_space<vmem>>, %arg11: memref<2x2x64x32xbf16, #tpu.memory_space<vmem>>, %arg12: memref<2x2x64x64xbf16, #tpu.memory_space<vmem>>, %arg13: memref<2x128x64xbf16, #tpu.memory_space<vmem>>, %arg14: memref<2x2x2x32xf32, #tpu.memory_space<vmem>>, %arg15: memref<64x128xbf16, #tpu.memory_space<vmem>>, %arg16: memref<1x128xf32, #tpu.memory_space<vmem>>, %arg17: memref<128x64xbf16, #tpu.memory_space<vmem>>, %arg18: memref<1x64xf32, #tpu.memory_space<vmem>>, %arg19: memref<2x2x32xf32, #tpu.memory_space<vmem>>, %arg20: memref<2x2x64x32xbf16, #tpu.memory_space<vmem>>, %arg21: memref<2x2x64x32xbf16, #tpu.memory_space<vmem>>, %arg22: memref<2x2x64x64xbf16, #tpu.memory_space<vmem>>, %arg23: memref<2x128x64xbf16, #tpu.memory_space<vmem>>, %arg24: memref<2x2x2x32xf32, #tpu.memory_space<vmem>>, %arg25: memref<64x128xbf16, #tpu.memory_space<vmem>>, %arg26: memref<1x128xf32, #tpu.memory_space<vmem>>, %arg27: memref<128x64xbf16, #tpu.memory_space<vmem>>, %arg28: memref<1x64xf32, #tpu.memory_space<vmem>>, %arg29: memref<2x2x32xf32, #tpu.memory_space<vmem>>, %arg30: memref<192x192xbf16, #tpu.memory_space<vmem>>, %arg31: memref<192x192xbf16, #tpu.memory_space<vmem>>, %arg32: memref<6x4x32xf32, #tpu.memory_space<vmem>>, %arg33: memref<1x4x64xf32, #tpu.memory_space<vmem>>) attributes {dimension_semantics = [#tpu.dimension_semantics<parallel>], iteration_bounds = array<i64: 2>, scalar_prefetch = 0 : i64, scratch_operands = 0 : i64, tpu.core_type = #tpu.core_type<tc>, window_params = [{transform_indices = @transform_0, window_bounds = array<i64: 1, 4, 64>}, {transform_indices = @transform_1, window_bounds = array<i64: 1, 2, 64>}, {transform_indices = @transform_2, window_bounds = array<i64: 1, 2, 64>}, {transform_indices = @transform_3, window_bounds = array<i64: 1, 4, 64>}, {transform_indices = @transform_4, window_bounds = array<i64: 1, 2, 64>}, {transform_indices = @transform_5, window_bounds = array<i64: 1, 2, 64>}, {transform_indices = @transform_6, window_bounds = array<i64: 1, 4, 4>}, {transform_indices = @transform_7, window_bounds = array<i64: 1, 2, 2>}, {transform_indices = @transform_8, window_bounds = array<i64: 1, 2, 2>}, {pipeline_mode = #tpu.pipeline_mode<synchronous>, transform_indices = @transform_9, window_bounds = array<i64: 2, 2, 64, 32>}, {pipeline_mode = #tpu.pipeline_mode<synchronous>, transform_indices = @transform_10, window_bounds = array<i64: 2, 2, 64, 32>}, {pipeline_mode = #tpu.pipeline_mode<synchronous>, transform_indices = @transform_11, window_bounds = array<i64: 2, 2, 64, 64>}, {pipeline_mode = #tpu.pipeline_mode<synchronous>, transform_indices = @transform_12, window_bounds = array<i64: 2, 128, 64>}, {pipeline_mode = #tpu.pipeline_mode<synchronous>, transform_indices = @transform_13, window_bounds = array<i64: 2, 2, 2, 32>}, {pipeline_mode = #tpu.pipeline_mode<synchronous>, transform_indices = @transform_14, window_bounds = array<i64: 64, 128>}, {pipeline_mode = #tpu.pipeline_mode<synchronous>, transform_indices = @transform_15, window_bounds = array<i64: 1, 128>}, {pipeline_mode = #tpu.pipeline_mode<synchronous>, transform_indices = @transform_16, window_bounds = array<i64: 128, 64>}, {pipeline_mode = #tpu.pipeline_mode<synchronous>, transform_indices = @transform_17, window_bounds = array<i64: 1, 64>}, {pipeline_mode = #tpu.pipeline_mode<synchronous>, transform_indices = @transform_18, window_bounds = array<i64: 2, 2, 32>}, {pipeline_mode = #tpu.pipeline_mode<synchronous>, transform_indices = @transform_19, window_bounds = array<i64: 2, 2, 64, 32>}, {pipeline_mode = #tpu.pipeline_mode<synchronous>, transform_indices = @transform_20, window_bounds = array<i64: 2, 2, 64, 32>}, {pipeline_mode = #tpu.pipeline_mode<synchronous>, transform_indices = @transform_21, window_bounds = array<i64: 2, 2, 64, 64>}, {pipeline_mode = #tpu.pipeline_mode<synchronous>, transform_indices = @transform_22, window_bounds = array<i64: 2, 128, 64>}, {pipeline_mode = #tpu.pipeline_mode<synchronous>, transform_indices = @transform_23, window_bounds = array<i64: 2, 2, 2, 32>}, {pipeline_mode = #tpu.pipeline_mode<synchronous>, transform_indices = @transform_24, window_bounds = array<i64: 64, 128>}, {pipeline_mode = #tpu.pipeline_mode<synchronous>, transform_indices = @transform_25, window_bounds = array<i64: 1, 128>}, {pipeline_mode = #tpu.pipeline_mode<synchronous>, transform_indices = @transform_26, window_bounds = array<i64: 128, 64>}, {pipeline_mode = #tpu.pipeline_mode<synchronous>, transform_indices = @transform_27, window_bounds = array<i64: 1, 64>}, {pipeline_mode = #tpu.pipeline_mode<synchronous>, transform_indices = @transform_28, window_bounds = array<i64: 2, 2, 32>}, {pipeline_mode = #tpu.pipeline_mode<synchronous>, transform_indices = @transform_29, window_bounds = array<i64: 192, 192>}, {pipeline_mode = #tpu.pipeline_mode<synchronous>, transform_indices = @transform_30, window_bounds = array<i64: 192, 192>}, {pipeline_mode = #tpu.pipeline_mode<synchronous>, transform_indices = @transform_31, window_bounds = array<i64: 6, 4, 32>}, {transform_indices = @transform_32, window_bounds = array<i64: 1, 4, 64>}]} {
    %c0 = arith.constant 0 : index
    %c0_0 = arith.constant 0 : index
    %c0_1 = arith.constant 0 : index
    %0 = vector.load %arg1[%c0, %c0_0, %c0_1] : memref<1x4x64xbf16, #tpu.memory_space<vmem>>, vector<1x4x64xbf16>
    %1 = vector.shape_cast %0 : vector<1x4x64xbf16> to vector<4x64xbf16>
    %c0_2 = arith.constant 0 : index
    %c0_3 = arith.constant 0 : index
    %c0_4 = arith.constant 0 : index
    %2 = vector.load %arg2[%c0_2, %c0_3, %c0_4] : memref<1x2x64xbf16, #tpu.memory_space<vmem>>, vector<1x2x64xbf16>
    %3 = vector.shape_cast %2 : vector<1x2x64xbf16> to vector<2x64xbf16>
    %c0_5 = arith.constant 0 : index
    %c0_6 = arith.constant 0 : index
    %c0_7 = arith.constant 0 : index
    %4 = vector.load %arg4[%c0_5, %c0_6, %c0_7] : memref<1x4x64xbf16, #tpu.memory_space<vmem>>, vector<1x4x64xbf16>
    %5 = vector.shape_cast %4 : vector<1x4x64xbf16> to vector<4x64xbf16>
    %c0_8 = arith.constant 0 : index
    %c0_9 = arith.constant 0 : index
    %c0_10 = arith.constant 0 : index
    %6 = vector.load %arg5[%c0_8, %c0_9, %c0_10] : memref<1x2x64xbf16, #tpu.memory_space<vmem>>, vector<1x2x64xbf16>
    %7 = vector.shape_cast %6 : vector<1x2x64xbf16> to vector<2x64xbf16>
    %c0_11 = arith.constant 0 : index
    %c0_12 = arith.constant 0 : index
    %c0_13 = arith.constant 0 : index
    %8 = vector.load %arg7[%c0_11, %c0_12, %c0_13] : memref<1x4x4xf32, #tpu.memory_space<vmem>>, vector<1x4x4xf32>
    %9 = vector.shape_cast %8 : vector<1x4x4xf32> to vector<4x4xf32>
    %c0_14 = arith.constant 0 : index
    %c0_15 = arith.constant 0 : index
    %c0_16 = arith.constant 0 : index
    %10 = vector.load %arg8[%c0_14, %c0_15, %c0_16] : memref<1x2x2xf32, #tpu.memory_space<vmem>>, vector<1x2x2xf32>
    %11 = vector.shape_cast %10 : vector<1x2x2xf32> to vector<2x2xf32>
    %c0_17 = arith.constant 0 : index
    %c0_18 = arith.constant 0 : index
    %c0_19 = arith.constant 0 : index
    %12 = vector.load %arg3[%c0_17, %c0_18, %c0_19] : memref<1x2x64xbf16, #tpu.memory_space<vmem>>, vector<1x2x64xbf16>
    %13 = vector.shape_cast %12 : vector<1x2x64xbf16> to vector<2x64xbf16>
    %c0_20 = arith.constant 0 : index
    %c0_21 = arith.constant 0 : index
    %c0_22 = arith.constant 0 : index
    %14 = vector.load %arg6[%c0_20, %c0_21, %c0_22] : memref<1x2x64xbf16, #tpu.memory_space<vmem>>, vector<1x2x64xbf16>
    %15 = vector.shape_cast %14 : vector<1x2x64xbf16> to vector<2x64xbf16>
    %c0_23 = arith.constant 0 : index
    %c0_24 = arith.constant 0 : index
    %c0_25 = arith.constant 0 : index
    %16 = vector.load %arg9[%c0_23, %c0_24, %c0_25] : memref<1x2x2xf32, #tpu.memory_space<vmem>>, vector<1x2x2xf32>
    %17 = vector.shape_cast %16 : vector<1x2x2xf32> to vector<2x2xf32>
    %c0_i32 = arith.constant 0 : i32
    %c2_i32 = arith.constant 2 : i32
    %18 = arith.addi %c0_i32, %c2_i32 : i32
    %c1_i32 = arith.constant 1 : i32
    %19:3 = scf.for %arg34 = %c0_i32 to %18 step %c1_i32 iter_args(%arg35 = %3, %arg36 = %13, %arg37 = %1) -> (vector<2x64xbf16>, vector<2x64xbf16>, vector<4x64xbf16>)  : i32 {
      %c0_57 = arith.constant 0 : index
      %c0_58 = arith.constant 0 : index
      %c0_59 = arith.constant 0 : index
      %c0_60 = arith.constant 0 : index
      %94 = vector.load %arg10[%c0_57, %c0_58, %c0_59, %c0_60] : memref<2x2x64x32xbf16, #tpu.memory_space<vmem>>, vector<1x1x64x32xbf16>
      %95 = vector.shape_cast %94 : vector<1x1x64x32xbf16> to vector<64x32xbf16>
      %cst_61 = arith.constant dense<0.000000e+00> : vector<2x32xf32>
      %96 = tpu.matmul %arg35, %95, %cst_61 {dimension_numbers = #tpu.dot_dimension_numbers<[1], [0], [0], [1], [0, 0, 1, 1], [], []>} : vector<2x64xbf16>, vector<64x32xbf16>, vector<2x32xf32> -> vector<2x32xf32>
      %c0_62 = arith.constant 0 : index
      %c0_63 = arith.constant 0 : index
      %c0_64 = arith.constant 0 : index
      %c0_65 = arith.constant 0 : index
      %97 = vector.load %arg11[%c0_62, %c0_63, %c0_64, %c0_65] : memref<2x2x64x32xbf16, #tpu.memory_space<vmem>>, vector<1x1x64x32xbf16>
      %98 = vector.shape_cast %97 : vector<1x1x64x32xbf16> to vector<64x32xbf16>
      %cst_66 = arith.constant dense<0.000000e+00> : vector<2x32xf32>
      %99 = tpu.matmul %arg35, %98, %cst_66 {dimension_numbers = #tpu.dot_dimension_numbers<[1], [0], [0], [1], [0, 0, 1, 1], [], []>} : vector<2x64xbf16>, vector<64x32xbf16>, vector<2x32xf32> -> vector<2x32xf32>
      %c0_67 = arith.constant 0 : index
      %c0_68 = arith.constant 0 : index
      %c0_69 = arith.constant 0 : index
      %c0_70 = arith.constant 0 : index
      %100 = vector.load %arg12[%c0_67, %c0_68, %c0_69, %c0_70] : memref<2x2x64x64xbf16, #tpu.memory_space<vmem>>, vector<1x1x64x64xbf16>
      %101 = vector.shape_cast %100 : vector<1x1x64x64xbf16> to vector<64x64xbf16>
      %cst_71 = arith.constant dense<0.000000e+00> : vector<2x64xf32>
      %102 = tpu.matmul %arg35, %101, %cst_71 {dimension_numbers = #tpu.dot_dimension_numbers<[1], [0], [0], [1], [0, 0, 1, 1], [], []>} : vector<2x64xbf16>, vector<64x64xbf16>, vector<2x64xf32> -> vector<2x64xf32>
      %103 = arith.truncf %96 : vector<2x32xf32> to vector<2x32xbf16>
      %104 = arith.truncf %99 : vector<2x32xf32> to vector<2x32xbf16>
      %cst_72 = arith.constant dense<0.000000e+00> : vector<2x2xf32>
      %105 = tpu.matmul %103, %104, %cst_72 {dimension_numbers = #tpu.dot_dimension_numbers<[1], [1], [0], [0], [0, 0, 1, 0], [], []>} : vector<2x32xbf16>, vector<2x32xbf16>, vector<2x2xf32> -> vector<2x2xf32>
      %cst_73 = arith.constant 0.0883883461 : f32
      %106 = vector.broadcast %cst_73 : f32 to vector<2x2xf32>
      %107 = arith.mulf %105, %106 : vector<2x2xf32>
      %108 = arith.addf %107, %11 : vector<2x2xf32>
      %cst_74 = arith.constant dense<0xFF800000> : vector<2xf32>
      %109 = vector.multi_reduction <maximumf>, %108, %cst_74 [1] : vector<2x2xf32> to vector<2xf32>
      %110 = vector.shape_cast %109 : vector<2xf32> to vector<2x1xf32>
      %111 = vector.broadcast %110 : vector<2x1xf32> to vector<2x2xf32>
      %112 = arith.subf %108, %111 : vector<2x2xf32>
      %113 = math.exp %112 : vector<2x2xf32>
      %cst_75 = arith.constant dense<0.000000e+00> : vector<2xf32>
      %114 = vector.multi_reduction <add>, %113, %cst_75 [1] : vector<2x2xf32> to vector<2xf32>
      %115 = vector.shape_cast %114 : vector<2xf32> to vector<2x1xf32>
      %116 = vector.broadcast %115 : vector<2x1xf32> to vector<2x2xf32>
      %117 = arith.divf %113, %116 : vector<2x2xf32>
      %118 = arith.truncf %117 : vector<2x2xf32> to vector<2x2xbf16>
      %119 = arith.truncf %102 : vector<2x64xf32> to vector<2x64xbf16>
      %cst_76 = arith.constant dense<0.000000e+00> : vector<2x64xf32>
      %120 = tpu.matmul %118, %119, %cst_76 {dimension_numbers = #tpu.dot_dimension_numbers<[1], [0], [0], [1], [0, 0, 1, 1], [], []>} : vector<2x2xbf16>, vector<2x64xbf16>, vector<2x64xf32> -> vector<2x64xf32>
      %c0_77 = arith.constant 0 : index
      %c1_78 = arith.constant 1 : index
      %c0_79 = arith.constant 0 : index
      %c0_80 = arith.constant 0 : index
      %121 = vector.load %arg10[%c0_77, %c1_78, %c0_79, %c0_80] : memref<2x2x64x32xbf16, #tpu.memory_space<vmem>>, vector<1x1x64x32xbf16>
      %122 = vector.shape_cast %121 : vector<1x1x64x32xbf16> to vector<64x32xbf16>
      %cst_81 = arith.constant dense<0.000000e+00> : vector<2x32xf32>
      %123 = tpu.matmul %arg35, %122, %cst_81 {dimension_numbers = #tpu.dot_dimension_numbers<[1], [0], [0], [1], [0, 0, 1, 1], [], []>} : vector<2x64xbf16>, vector<64x32xbf16>, vector<2x32xf32> -> vector<2x32xf32>
      %c0_82 = arith.constant 0 : index
      %c1_83 = arith.constant 1 : index
      %c0_84 = arith.constant 0 : index
      %c0_85 = arith.constant 0 : index
      %124 = vector.load %arg11[%c0_82, %c1_83, %c0_84, %c0_85] : memref<2x2x64x32xbf16, #tpu.memory_space<vmem>>, vector<1x1x64x32xbf16>
      %125 = vector.shape_cast %124 : vector<1x1x64x32xbf16> to vector<64x32xbf16>
      %cst_86 = arith.constant dense<0.000000e+00> : vector<2x32xf32>
      %126 = tpu.matmul %arg35, %125, %cst_86 {dimension_numbers = #tpu.dot_dimension_numbers<[1], [0], [0], [1], [0, 0, 1, 1], [], []>} : vector<2x64xbf16>, vector<64x32xbf16>, vector<2x32xf32> -> vector<2x32xf32>
      %c0_87 = arith.constant 0 : index
      %c1_88 = arith.constant 1 : index
      %c0_89 = arith.constant 0 : index
      %c0_90 = arith.constant 0 : index
      %127 = vector.load %arg12[%c0_87, %c1_88, %c0_89, %c0_90] : memref<2x2x64x64xbf16, #tpu.memory_space<vmem>>, vector<1x1x64x64xbf16>
      %128 = vector.shape_cast %127 : vector<1x1x64x64xbf16> to vector<64x64xbf16>
      %cst_91 = arith.constant dense<0.000000e+00> : vector<2x64xf32>
      %129 = tpu.matmul %arg35, %128, %cst_91 {dimension_numbers = #tpu.dot_dimension_numbers<[1], [0], [0], [1], [0, 0, 1, 1], [], []>} : vector<2x64xbf16>, vector<64x64xbf16>, vector<2x64xf32> -> vector<2x64xf32>
      %130 = arith.truncf %123 : vector<2x32xf32> to vector<2x32xbf16>
      %131 = arith.truncf %126 : vector<2x32xf32> to vector<2x32xbf16>
      %cst_92 = arith.constant dense<0.000000e+00> : vector<2x2xf32>
      %132 = tpu.matmul %130, %131, %cst_92 {dimension_numbers = #tpu.dot_dimension_numbers<[1], [1], [0], [0], [0, 0, 1, 0], [], []>} : vector<2x32xbf16>, vector<2x32xbf16>, vector<2x2xf32> -> vector<2x2xf32>
      %cst_93 = arith.constant 0.0883883461 : f32
      %133 = vector.broadcast %cst_93 : f32 to vector<2x2xf32>
      %134 = arith.mulf %132, %133 : vector<2x2xf32>
      %135 = arith.addf %134, %11 : vector<2x2xf32>
      %cst_94 = arith.constant dense<0xFF800000> : vector<2xf32>
      %136 = vector.multi_reduction <maximumf>, %135, %cst_94 [1] : vector<2x2xf32> to vector<2xf32>
      %137 = vector.shape_cast %136 : vector<2xf32> to vector<2x1xf32>
      %138 = vector.broadcast %137 : vector<2x1xf32> to vector<2x2xf32>
      %139 = arith.subf %135, %138 : vector<2x2xf32>
      %140 = math.exp %139 : vector<2x2xf32>
      %cst_95 = arith.constant dense<0.000000e+00> : vector<2xf32>
      %141 = vector.multi_reduction <add>, %140, %cst_95 [1] : vector<2x2xf32> to vector<2xf32>
      %142 = vector.shape_cast %141 : vector<2xf32> to vector<2x1xf32>
      %143 = vector.broadcast %142 : vector<2x1xf32> to vector<2x2xf32>
      %144 = arith.divf %140, %143 : vector<2x2xf32>
      %145 = arith.truncf %144 : vector<2x2xf32> to vector<2x2xbf16>
      %146 = arith.truncf %129 : vector<2x64xf32> to vector<2x64xbf16>
      %cst_96 = arith.constant dense<0.000000e+00> : vector<2x64xf32>
      %147 = tpu.matmul %145, %146, %cst_96 {dimension_numbers = #tpu.dot_dimension_numbers<[1], [0], [0], [1], [0, 0, 1, 1], [], []>} : vector<2x2xbf16>, vector<2x64xbf16>, vector<2x64xf32> -> vector<2x64xf32>
      %148 = tpu.concatenate %120, %147 in 1 : vector<2x64xf32>, vector<2x64xf32> -> vector<2x128xf32>
      %149 = arith.truncf %148 : vector<2x128xf32> to vector<2x128xbf16>
      %c0_97 = arith.constant 0 : index
      %c0_98 = arith.constant 0 : index
      %c0_99 = arith.constant 0 : index
      %150 = vector.load %arg13[%c0_97, %c0_98, %c0_99] : memref<2x128x64xbf16, #tpu.memory_space<vmem>>, vector<1x128x64xbf16>
      %151 = vector.shape_cast %150 : vector<1x128x64xbf16> to vector<128x64xbf16>
      %cst_100 = arith.constant dense<0.000000e+00> : vector<2x64xf32>
      %152 = tpu.matmul %149, %151, %cst_100 {dimension_numbers = #tpu.dot_dimension_numbers<[1], [0], [0], [1], [0, 0, 1, 1], [], []>} : vector<2x128xbf16>, vector<128x64xbf16>, vector<2x64xf32> -> vector<2x64xf32>
      %153 = arith.extf %arg35 : vector<2x64xbf16> to vector<2x64xf32>
      %154 = arith.addf %152, %153 : vector<2x64xf32>
      %155 = vector.extract_strided_slice %154 {offsets = [0, 0], sizes = [2, 32], strides = [1, 1]} : vector<2x64xf32> to vector<2x32xf32>
      %c0_101 = arith.constant 0 : index
      %c0_102 = arith.constant 0 : index
      %c0_103 = arith.constant 0 : index
      %c0_104 = arith.constant 0 : index
      %156 = vector.load %arg14[%c0_101, %c0_102, %c0_103, %c0_104] : memref<2x2x2x32xf32, #tpu.memory_space<vmem>>, vector<1x1x2x32xf32>
      %157 = vector.shape_cast %156 : vector<1x1x2x32xf32> to vector<2x32xf32>
      %cst_105 = arith.constant dense<0.000000e+00> : vector<2xf32>
      %158 = vector.multi_reduction <add>, %155, %cst_105 [1] : vector<2x32xf32> to vector<2xf32>
      %159 = vector.shape_cast %158 : vector<2xf32> to vector<2x1xf32>
      %cst_106 = arith.constant 3.200000e+01 : f32
      %160 = vector.broadcast %cst_106 : f32 to vector<2x1xf32>
      %161 = arith.divf %159, %160 : vector<2x1xf32>
      %162 = vector.broadcast %161 : vector<2x1xf32> to vector<2x32xf32>
      %163 = arith.subf %155, %162 : vector<2x32xf32>
      %164 = arith.mulf %163, %163 : vector<2x32xf32>
      %cst_107 = arith.constant dense<0.000000e+00> : vector<2xf32>
      %165 = vector.multi_reduction <add>, %164, %cst_107 [1] : vector<2x32xf32> to vector<2xf32>
      %166 = vector.shape_cast %165 : vector<2xf32> to vector<2x1xf32>
      %cst_108 = arith.constant 3.200000e+01 : f32
      %167 = vector.broadcast %cst_108 : f32 to vector<2x1xf32>
      %168 = arith.divf %166, %167 : vector<2x1xf32>
      %169 = vector.broadcast %161 : vector<2x1xf32> to vector<2x32xf32>
      %170 = arith.subf %155, %169 : vector<2x32xf32>
      %cst_109 = arith.constant 9.99999997E-7 : f32
      %171 = vector.broadcast %cst_109 : f32 to vector<2x1xf32>
      %172 = arith.addf %168, %171 : vector<2x1xf32>
      %173 = math.rsqrt %172 : vector<2x1xf32>
      %174 = vector.broadcast %173 : vector<2x1xf32> to vector<2x32xf32>
      %175 = arith.mulf %170, %174 : vector<2x32xf32>
      %176 = vector.extract_strided_slice %157 {offsets = [0, 0], sizes = [1, 32], strides = [1, 1]} : vector<2x32xf32> to vector<1x32xf32>
      %177 = vector.broadcast %176 : vector<1x32xf32> to vector<2x32xf32>
      %178 = arith.mulf %175, %177 : vector<2x32xf32>
      %179 = vector.extract_strided_slice %157 {offsets = [1, 0], sizes = [1, 32], strides = [1, 1]} : vector<2x32xf32> to vector<1x32xf32>
      %180 = vector.broadcast %179 : vector<1x32xf32> to vector<2x32xf32>
      %181 = arith.addf %178, %180 : vector<2x32xf32>
      %182 = vector.extract_strided_slice %154 {offsets = [0, 32], sizes = [2, 32], strides = [1, 1]} : vector<2x64xf32> to vector<2x32xf32>
      %c0_110 = arith.constant 0 : index
      %c1_111 = arith.constant 1 : index
      %c0_112 = arith.constant 0 : index
      %c0_113 = arith.constant 0 : index
      %183 = vector.load %arg14[%c0_110, %c1_111, %c0_112, %c0_113] : memref<2x2x2x32xf32, #tpu.memory_space<vmem>>, vector<1x1x2x32xf32>
      %184 = vector.shape_cast %183 : vector<1x1x2x32xf32> to vector<2x32xf32>
      %cst_114 = arith.constant dense<0.000000e+00> : vector<2xf32>
      %185 = vector.multi_reduction <add>, %182, %cst_114 [1] : vector<2x32xf32> to vector<2xf32>
      %186 = vector.shape_cast %185 : vector<2xf32> to vector<2x1xf32>
      %cst_115 = arith.constant 3.200000e+01 : f32
      %187 = vector.broadcast %cst_115 : f32 to vector<2x1xf32>
      %188 = arith.divf %186, %187 : vector<2x1xf32>
      %189 = vector.broadcast %188 : vector<2x1xf32> to vector<2x32xf32>
      %190 = arith.subf %182, %189 : vector<2x32xf32>
      %191 = arith.mulf %190, %190 : vector<2x32xf32>
      %cst_116 = arith.constant dense<0.000000e+00> : vector<2xf32>
      %192 = vector.multi_reduction <add>, %191, %cst_116 [1] : vector<2x32xf32> to vector<2xf32>
      %193 = vector.shape_cast %192 : vector<2xf32> to vector<2x1xf32>
      %cst_117 = arith.constant 3.200000e+01 : f32
      %194 = vector.broadcast %cst_117 : f32 to vector<2x1xf32>
      %195 = arith.divf %193, %194 : vector<2x1xf32>
      %196 = vector.broadcast %188 : vector<2x1xf32> to vector<2x32xf32>
      %197 = arith.subf %182, %196 : vector<2x32xf32>
      %cst_118 = arith.constant 9.99999997E-7 : f32
      %198 = vector.broadcast %cst_118 : f32 to vector<2x1xf32>
      %199 = arith.addf %195, %198 : vector<2x1xf32>
      %200 = math.rsqrt %199 : vector<2x1xf32>
      %201 = vector.broadcast %200 : vector<2x1xf32> to vector<2x32xf32>
      %202 = arith.mulf %197, %201 : vector<2x32xf32>
      %203 = vector.extract_strided_slice %184 {offsets = [0, 0], sizes = [1, 32], strides = [1, 1]} : vector<2x32xf32> to vector<1x32xf32>
      %204 = vector.broadcast %203 : vector<1x32xf32> to vector<2x32xf32>
      %205 = arith.mulf %202, %204 : vector<2x32xf32>
      %206 = vector.extract_strided_slice %184 {offsets = [1, 0], sizes = [1, 32], strides = [1, 1]} : vector<2x32xf32> to vector<1x32xf32>
      %207 = vector.broadcast %206 : vector<1x32xf32> to vector<2x32xf32>
      %208 = arith.addf %205, %207 : vector<2x32xf32>
      %209 = tpu.concatenate %181, %208 in 1 : vector<2x32xf32>, vector<2x32xf32> -> vector<2x64xf32>
      %210 = arith.truncf %209 : vector<2x64xf32> to vector<2x64xbf16>
      %c1_119 = arith.constant 1 : index
      %c0_120 = arith.constant 0 : index
      %c0_121 = arith.constant 0 : index
      %c0_122 = arith.constant 0 : index
      %211 = vector.load %arg10[%c1_119, %c0_120, %c0_121, %c0_122] : memref<2x2x64x32xbf16, #tpu.memory_space<vmem>>, vector<1x1x64x32xbf16>
      %212 = vector.shape_cast %211 : vector<1x1x64x32xbf16> to vector<64x32xbf16>
      %cst_123 = arith.constant dense<0.000000e+00> : vector<2x32xf32>
      %213 = tpu.matmul %210, %212, %cst_123 {dimension_numbers = #tpu.dot_dimension_numbers<[1], [0], [0], [1], [0, 0, 1, 1], [], []>} : vector<2x64xbf16>, vector<64x32xbf16>, vector<2x32xf32> -> vector<2x32xf32>
      %c1_124 = arith.constant 1 : index
      %c0_125 = arith.constant 0 : index
      %c0_126 = arith.constant 0 : index
      %c0_127 = arith.constant 0 : index
      %214 = vector.load %arg11[%c1_124, %c0_125, %c0_126, %c0_127] : memref<2x2x64x32xbf16, #tpu.memory_space<vmem>>, vector<1x1x64x32xbf16>
      %215 = vector.shape_cast %214 : vector<1x1x64x32xbf16> to vector<64x32xbf16>
      %cst_128 = arith.constant dense<0.000000e+00> : vector<2x32xf32>
      %216 = tpu.matmul %7, %215, %cst_128 {dimension_numbers = #tpu.dot_dimension_numbers<[1], [0], [0], [1], [0, 0, 1, 1], [], []>} : vector<2x64xbf16>, vector<64x32xbf16>, vector<2x32xf32> -> vector<2x32xf32>
      %c1_129 = arith.constant 1 : index
      %c0_130 = arith.constant 0 : index
      %c0_131 = arith.constant 0 : index
      %c0_132 = arith.constant 0 : index
      %217 = vector.load %arg12[%c1_129, %c0_130, %c0_131, %c0_132] : memref<2x2x64x64xbf16, #tpu.memory_space<vmem>>, vector<1x1x64x64xbf16>
      %218 = vector.shape_cast %217 : vector<1x1x64x64xbf16> to vector<64x64xbf16>
      %cst_133 = arith.constant dense<0.000000e+00> : vector<2x64xf32>
      %219 = tpu.matmul %7, %218, %cst_133 {dimension_numbers = #tpu.dot_dimension_numbers<[1], [0], [0], [1], [0, 0, 1, 1], [], []>} : vector<2x64xbf16>, vector<64x64xbf16>, vector<2x64xf32> -> vector<2x64xf32>
      %220 = arith.truncf %213 : vector<2x32xf32> to vector<2x32xbf16>
      %221 = arith.truncf %216 : vector<2x32xf32> to vector<2x32xbf16>
      %cst_134 = arith.constant dense<0.000000e+00> : vector<2x2xf32>
      %222 = tpu.matmul %220, %221, %cst_134 {dimension_numbers = #tpu.dot_dimension_numbers<[1], [1], [0], [0], [0, 0, 1, 0], [], []>} : vector<2x32xbf16>, vector<2x32xbf16>, vector<2x2xf32> -> vector<2x2xf32>
      %cst_135 = arith.constant 0.0883883461 : f32
      %223 = vector.broadcast %cst_135 : f32 to vector<2x2xf32>
      %224 = arith.mulf %222, %223 : vector<2x2xf32>
      %cst_136 = arith.constant dense<0xFF800000> : vector<2xf32>
      %225 = vector.multi_reduction <maximumf>, %224, %cst_136 [1] : vector<2x2xf32> to vector<2xf32>
      %226 = vector.shape_cast %225 : vector<2xf32> to vector<2x1xf32>
      %227 = vector.broadcast %226 : vector<2x1xf32> to vector<2x2xf32>
      %228 = arith.subf %224, %227 : vector<2x2xf32>
      %229 = math.exp %228 : vector<2x2xf32>
      %cst_137 = arith.constant dense<0.000000e+00> : vector<2xf32>
      %230 = vector.multi_reduction <add>, %229, %cst_137 [1] : vector<2x2xf32> to vector<2xf32>
      %231 = vector.shape_cast %230 : vector<2xf32> to vector<2x1xf32>
      %232 = vector.broadcast %231 : vector<2x1xf32> to vector<2x2xf32>
      %233 = arith.divf %229, %232 : vector<2x2xf32>
      %234 = arith.truncf %233 : vector<2x2xf32> to vector<2x2xbf16>
      %235 = arith.truncf %219 : vector<2x64xf32> to vector<2x64xbf16>
      %cst_138 = arith.constant dense<0.000000e+00> : vector<2x64xf32>
      %236 = tpu.matmul %234, %235, %cst_138 {dimension_numbers = #tpu.dot_dimension_numbers<[1], [0], [0], [1], [0, 0, 1, 1], [], []>} : vector<2x2xbf16>, vector<2x64xbf16>, vector<2x64xf32> -> vector<2x64xf32>
      %c1_139 = arith.constant 1 : index
      %c1_140 = arith.constant 1 : index
      %c0_141 = arith.constant 0 : index
      %c0_142 = arith.constant 0 : index
      %237 = vector.load %arg10[%c1_139, %c1_140, %c0_141, %c0_142] : memref<2x2x64x32xbf16, #tpu.memory_space<vmem>>, vector<1x1x64x32xbf16>
      %238 = vector.shape_cast %237 : vector<1x1x64x32xbf16> to vector<64x32xbf16>
      %cst_143 = arith.constant dense<0.000000e+00> : vector<2x32xf32>
      %239 = tpu.matmul %210, %238, %cst_143 {dimension_numbers = #tpu.dot_dimension_numbers<[1], [0], [0], [1], [0, 0, 1, 1], [], []>} : vector<2x64xbf16>, vector<64x32xbf16>, vector<2x32xf32> -> vector<2x32xf32>
      %c1_144 = arith.constant 1 : index
      %c1_145 = arith.constant 1 : index
      %c0_146 = arith.constant 0 : index
      %c0_147 = arith.constant 0 : index
      %240 = vector.load %arg11[%c1_144, %c1_145, %c0_146, %c0_147] : memref<2x2x64x32xbf16, #tpu.memory_space<vmem>>, vector<1x1x64x32xbf16>
      %241 = vector.shape_cast %240 : vector<1x1x64x32xbf16> to vector<64x32xbf16>
      %cst_148 = arith.constant dense<0.000000e+00> : vector<2x32xf32>
      %242 = tpu.matmul %7, %241, %cst_148 {dimension_numbers = #tpu.dot_dimension_numbers<[1], [0], [0], [1], [0, 0, 1, 1], [], []>} : vector<2x64xbf16>, vector<64x32xbf16>, vector<2x32xf32> -> vector<2x32xf32>
      %c1_149 = arith.constant 1 : index
      %c1_150 = arith.constant 1 : index
      %c0_151 = arith.constant 0 : index
      %c0_152 = arith.constant 0 : index
      %243 = vector.load %arg12[%c1_149, %c1_150, %c0_151, %c0_152] : memref<2x2x64x64xbf16, #tpu.memory_space<vmem>>, vector<1x1x64x64xbf16>
      %244 = vector.shape_cast %243 : vector<1x1x64x64xbf16> to vector<64x64xbf16>
      %cst_153 = arith.constant dense<0.000000e+00> : vector<2x64xf32>
      %245 = tpu.matmul %7, %244, %cst_153 {dimension_numbers = #tpu.dot_dimension_numbers<[1], [0], [0], [1], [0, 0, 1, 1], [], []>} : vector<2x64xbf16>, vector<64x64xbf16>, vector<2x64xf32> -> vector<2x64xf32>
      %246 = arith.truncf %239 : vector<2x32xf32> to vector<2x32xbf16>
      %247 = arith.truncf %242 : vector<2x32xf32> to vector<2x32xbf16>
      %cst_154 = arith.constant dense<0.000000e+00> : vector<2x2xf32>
      %248 = tpu.matmul %246, %247, %cst_154 {dimension_numbers = #tpu.dot_dimension_numbers<[1], [1], [0], [0], [0, 0, 1, 0], [], []>} : vector<2x32xbf16>, vector<2x32xbf16>, vector<2x2xf32> -> vector<2x2xf32>
      %cst_155 = arith.constant 0.0883883461 : f32
      %249 = vector.broadcast %cst_155 : f32 to vector<2x2xf32>
      %250 = arith.mulf %248, %249 : vector<2x2xf32>
      %cst_156 = arith.constant dense<0xFF800000> : vector<2xf32>
      %251 = vector.multi_reduction <maximumf>, %250, %cst_156 [1] : vector<2x2xf32> to vector<2xf32>
      %252 = vector.shape_cast %251 : vector<2xf32> to vector<2x1xf32>
      %253 = vector.broadcast %252 : vector<2x1xf32> to vector<2x2xf32>
      %254 = arith.subf %250, %253 : vector<2x2xf32>
      %255 = math.exp %254 : vector<2x2xf32>
      %cst_157 = arith.constant dense<0.000000e+00> : vector<2xf32>
      %256 = vector.multi_reduction <add>, %255, %cst_157 [1] : vector<2x2xf32> to vector<2xf32>
      %257 = vector.shape_cast %256 : vector<2xf32> to vector<2x1xf32>
      %258 = vector.broadcast %257 : vector<2x1xf32> to vector<2x2xf32>
      %259 = arith.divf %255, %258 : vector<2x2xf32>
      %260 = arith.truncf %259 : vector<2x2xf32> to vector<2x2xbf16>
      %261 = arith.truncf %245 : vector<2x64xf32> to vector<2x64xbf16>
      %cst_158 = arith.constant dense<0.000000e+00> : vector<2x64xf32>
      %262 = tpu.matmul %260, %261, %cst_158 {dimension_numbers = #tpu.dot_dimension_numbers<[1], [0], [0], [1], [0, 0, 1, 1], [], []>} : vector<2x2xbf16>, vector<2x64xbf16>, vector<2x64xf32> -> vector<2x64xf32>
      %263 = tpu.concatenate %236, %262 in 1 : vector<2x64xf32>, vector<2x64xf32> -> vector<2x128xf32>
      %264 = arith.truncf %263 : vector<2x128xf32> to vector<2x128xbf16>
      %c1_159 = arith.constant 1 : index
      %c0_160 = arith.constant 0 : index
      %c0_161 = arith.constant 0 : index
      %265 = vector.load %arg13[%c1_159, %c0_160, %c0_161] : memref<2x128x64xbf16, #tpu.memory_space<vmem>>, vector<1x128x64xbf16>
      %266 = vector.shape_cast %265 : vector<1x128x64xbf16> to vector<128x64xbf16>
      %cst_162 = arith.constant dense<0.000000e+00> : vector<2x64xf32>
      %267 = tpu.matmul %264, %266, %cst_162 {dimension_numbers = #tpu.dot_dimension_numbers<[1], [0], [0], [1], [0, 0, 1, 1], [], []>} : vector<2x128xbf16>, vector<128x64xbf16>, vector<2x64xf32> -> vector<2x64xf32>
      %268 = arith.extf %210 : vector<2x64xbf16> to vector<2x64xf32>
      %269 = arith.addf %267, %268 : vector<2x64xf32>
      %270 = vector.extract_strided_slice %269 {offsets = [0, 0], sizes = [2, 32], strides = [1, 1]} : vector<2x64xf32> to vector<2x32xf32>
      %c1_163 = arith.constant 1 : index
      %c0_164 = arith.constant 0 : index
      %c0_165 = arith.constant 0 : index
      %c0_166 = arith.constant 0 : index
      %271 = vector.load %arg14[%c1_163, %c0_164, %c0_165, %c0_166] : memref<2x2x2x32xf32, #tpu.memory_space<vmem>>, vector<1x1x2x32xf32>
      %272 = vector.shape_cast %271 : vector<1x1x2x32xf32> to vector<2x32xf32>
      %cst_167 = arith.constant dense<0.000000e+00> : vector<2xf32>
      %273 = vector.multi_reduction <add>, %270, %cst_167 [1] : vector<2x32xf32> to vector<2xf32>
      %274 = vector.shape_cast %273 : vector<2xf32> to vector<2x1xf32>
      %cst_168 = arith.constant 3.200000e+01 : f32
      %275 = vector.broadcast %cst_168 : f32 to vector<2x1xf32>
      %276 = arith.divf %274, %275 : vector<2x1xf32>
      %277 = vector.broadcast %276 : vector<2x1xf32> to vector<2x32xf32>
      %278 = arith.subf %270, %277 : vector<2x32xf32>
      %279 = arith.mulf %278, %278 : vector<2x32xf32>
      %cst_169 = arith.constant dense<0.000000e+00> : vector<2xf32>
      %280 = vector.multi_reduction <add>, %279, %cst_169 [1] : vector<2x32xf32> to vector<2xf32>
      %281 = vector.shape_cast %280 : vector<2xf32> to vector<2x1xf32>
      %cst_170 = arith.constant 3.200000e+01 : f32
      %282 = vector.broadcast %cst_170 : f32 to vector<2x1xf32>
      %283 = arith.divf %281, %282 : vector<2x1xf32>
      %284 = vector.broadcast %276 : vector<2x1xf32> to vector<2x32xf32>
      %285 = arith.subf %270, %284 : vector<2x32xf32>
      %cst_171 = arith.constant 9.99999997E-7 : f32
      %286 = vector.broadcast %cst_171 : f32 to vector<2x1xf32>
      %287 = arith.addf %283, %286 : vector<2x1xf32>
      %288 = math.rsqrt %287 : vector<2x1xf32>
      %289 = vector.broadcast %288 : vector<2x1xf32> to vector<2x32xf32>
      %290 = arith.mulf %285, %289 : vector<2x32xf32>
      %291 = vector.extract_strided_slice %272 {offsets = [0, 0], sizes = [1, 32], strides = [1, 1]} : vector<2x32xf32> to vector<1x32xf32>
      %292 = vector.broadcast %291 : vector<1x32xf32> to vector<2x32xf32>
      %293 = arith.mulf %290, %292 : vector<2x32xf32>
      %294 = vector.extract_strided_slice %272 {offsets = [1, 0], sizes = [1, 32], strides = [1, 1]} : vector<2x32xf32> to vector<1x32xf32>
      %295 = vector.broadcast %294 : vector<1x32xf32> to vector<2x32xf32>
      %296 = arith.addf %293, %295 : vector<2x32xf32>
      %297 = vector.extract_strided_slice %269 {offsets = [0, 32], sizes = [2, 32], strides = [1, 1]} : vector<2x64xf32> to vector<2x32xf32>
      %c1_172 = arith.constant 1 : index
      %c1_173 = arith.constant 1 : index
      %c0_174 = arith.constant 0 : index
      %c0_175 = arith.constant 0 : index
      %298 = vector.load %arg14[%c1_172, %c1_173, %c0_174, %c0_175] : memref<2x2x2x32xf32, #tpu.memory_space<vmem>>, vector<1x1x2x32xf32>
      %299 = vector.shape_cast %298 : vector<1x1x2x32xf32> to vector<2x32xf32>
      %cst_176 = arith.constant dense<0.000000e+00> : vector<2xf32>
      %300 = vector.multi_reduction <add>, %297, %cst_176 [1] : vector<2x32xf32> to vector<2xf32>
      %301 = vector.shape_cast %300 : vector<2xf32> to vector<2x1xf32>
      %cst_177 = arith.constant 3.200000e+01 : f32
      %302 = vector.broadcast %cst_177 : f32 to vector<2x1xf32>
      %303 = arith.divf %301, %302 : vector<2x1xf32>
      %304 = vector.broadcast %303 : vector<2x1xf32> to vector<2x32xf32>
      %305 = arith.subf %297, %304 : vector<2x32xf32>
      %306 = arith.mulf %305, %305 : vector<2x32xf32>
      %cst_178 = arith.constant dense<0.000000e+00> : vector<2xf32>
      %307 = vector.multi_reduction <add>, %306, %cst_178 [1] : vector<2x32xf32> to vector<2xf32>
      %308 = vector.shape_cast %307 : vector<2xf32> to vector<2x1xf32>
      %cst_179 = arith.constant 3.200000e+01 : f32
      %309 = vector.broadcast %cst_179 : f32 to vector<2x1xf32>
      %310 = arith.divf %308, %309 : vector<2x1xf32>
      %311 = vector.broadcast %303 : vector<2x1xf32> to vector<2x32xf32>
      %312 = arith.subf %297, %311 : vector<2x32xf32>
      %cst_180 = arith.constant 9.99999997E-7 : f32
      %313 = vector.broadcast %cst_180 : f32 to vector<2x1xf32>
      %314 = arith.addf %310, %313 : vector<2x1xf32>
      %315 = math.rsqrt %314 : vector<2x1xf32>
      %316 = vector.broadcast %315 : vector<2x1xf32> to vector<2x32xf32>
      %317 = arith.mulf %312, %316 : vector<2x32xf32>
      %318 = vector.extract_strided_slice %299 {offsets = [0, 0], sizes = [1, 32], strides = [1, 1]} : vector<2x32xf32> to vector<1x32xf32>
      %319 = vector.broadcast %318 : vector<1x32xf32> to vector<2x32xf32>
      %320 = arith.mulf %317, %319 : vector<2x32xf32>
      %321 = vector.extract_strided_slice %299 {offsets = [1, 0], sizes = [1, 32], strides = [1, 1]} : vector<2x32xf32> to vector<1x32xf32>
      %322 = vector.broadcast %321 : vector<1x32xf32> to vector<2x32xf32>
      %323 = arith.addf %320, %322 : vector<2x32xf32>
      %324 = tpu.concatenate %296, %323 in 1 : vector<2x32xf32>, vector<2x32xf32> -> vector<2x64xf32>
      %325 = arith.truncf %324 : vector<2x64xf32> to vector<2x64xbf16>
      %c0_181 = arith.constant 0 : index
      %c0_182 = arith.constant 0 : index
      %326 = vector.load %arg15[%c0_181, %c0_182] : memref<64x128xbf16, #tpu.memory_space<vmem>>, vector<64x128xbf16>
      %cst_183 = arith.constant dense<0.000000e+00> : vector<2x128xf32>
      %327 = tpu.matmul %325, %326, %cst_183 {dimension_numbers = #tpu.dot_dimension_numbers<[1], [0], [0], [1], [0, 0, 1, 1], [], []>} : vector<2x64xbf16>, vector<64x128xbf16>, vector<2x128xf32> -> vector<2x128xf32>
      %c0_184 = arith.constant 0 : index
      %c0_185 = arith.constant 0 : index
      %328 = vector.load %arg16[%c0_184, %c0_185] : memref<1x128xf32, #tpu.memory_space<vmem>>, vector<1x128xf32>
      %329 = vector.broadcast %328 : vector<1x128xf32> to vector<2x128xf32>
      %330 = arith.addf %327, %329 : vector<2x128xf32>
      %cst_186 = arith.constant 0.000000e+00 : f32
      %331 = vector.broadcast %cst_186 : f32 to vector<2x128xf32>
      %332 = arith.maximumf %330, %331 : vector<2x128xf32>
      %333 = arith.truncf %332 : vector<2x128xf32> to vector<2x128xbf16>
      %c0_187 = arith.constant 0 : index
      %c0_188 = arith.constant 0 : index
      %334 = vector.load %arg17[%c0_187, %c0_188] : memref<128x64xbf16, #tpu.memory_space<vmem>>, vector<128x64xbf16>
      %cst_189 = arith.constant dense<0.000000e+00> : vector<2x64xf32>
      %335 = tpu.matmul %333, %334, %cst_189 {dimension_numbers = #tpu.dot_dimension_numbers<[1], [0], [0], [1], [0, 0, 1, 1], [], []>} : vector<2x128xbf16>, vector<128x64xbf16>, vector<2x64xf32> -> vector<2x64xf32>
      %c0_190 = arith.constant 0 : index
      %c0_191 = arith.constant 0 : index
      %336 = vector.load %arg18[%c0_190, %c0_191] : memref<1x64xf32, #tpu.memory_space<vmem>>, vector<1x64xf32>
      %337 = vector.broadcast %336 : vector<1x64xf32> to vector<2x64xf32>
      %338 = arith.addf %335, %337 : vector<2x64xf32>
      %339 = arith.extf %325 : vector<2x64xbf16> to vector<2x64xf32>
      %340 = arith.addf %338, %339 : vector<2x64xf32>
      %341 = vector.extract_strided_slice %340 {offsets = [0, 0], sizes = [2, 32], strides = [1, 1]} : vector<2x64xf32> to vector<2x32xf32>
      %c0_192 = arith.constant 0 : index
      %c0_193 = arith.constant 0 : index
      %c0_194 = arith.constant 0 : index
      %342 = vector.load %arg19[%c0_192, %c0_193, %c0_194] : memref<2x2x32xf32, #tpu.memory_space<vmem>>, vector<1x2x32xf32>
      %343 = vector.shape_cast %342 : vector<1x2x32xf32> to vector<2x32xf32>
      %cst_195 = arith.constant dense<0.000000e+00> : vector<2xf32>
      %344 = vector.multi_reduction <add>, %341, %cst_195 [1] : vector<2x32xf32> to vector<2xf32>
      %345 = vector.shape_cast %344 : vector<2xf32> to vector<2x1xf32>
      %cst_196 = arith.constant 3.200000e+01 : f32
      %346 = vector.broadcast %cst_196 : f32 to vector<2x1xf32>
      %347 = arith.divf %345, %346 : vector<2x1xf32>
      %348 = vector.broadcast %347 : vector<2x1xf32> to vector<2x32xf32>
      %349 = arith.subf %341, %348 : vector<2x32xf32>
      %350 = arith.mulf %349, %349 : vector<2x32xf32>
      %cst_197 = arith.constant dense<0.000000e+00> : vector<2xf32>
      %351 = vector.multi_reduction <add>, %350, %cst_197 [1] : vector<2x32xf32> to vector<2xf32>
      %352 = vector.shape_cast %351 : vector<2xf32> to vector<2x1xf32>
      %cst_198 = arith.constant 3.200000e+01 : f32
      %353 = vector.broadcast %cst_198 : f32 to vector<2x1xf32>
      %354 = arith.divf %352, %353 : vector<2x1xf32>
      %355 = vector.broadcast %347 : vector<2x1xf32> to vector<2x32xf32>
      %356 = arith.subf %341, %355 : vector<2x32xf32>
      %cst_199 = arith.constant 9.99999997E-7 : f32
      %357 = vector.broadcast %cst_199 : f32 to vector<2x1xf32>
      %358 = arith.addf %354, %357 : vector<2x1xf32>
      %359 = math.rsqrt %358 : vector<2x1xf32>
      %360 = vector.broadcast %359 : vector<2x1xf32> to vector<2x32xf32>
      %361 = arith.mulf %356, %360 : vector<2x32xf32>
      %362 = vector.extract_strided_slice %343 {offsets = [0, 0], sizes = [1, 32], strides = [1, 1]} : vector<2x32xf32> to vector<1x32xf32>
      %363 = vector.broadcast %362 : vector<1x32xf32> to vector<2x32xf32>
      %364 = arith.mulf %361, %363 : vector<2x32xf32>
      %365 = vector.extract_strided_slice %343 {offsets = [1, 0], sizes = [1, 32], strides = [1, 1]} : vector<2x32xf32> to vector<1x32xf32>
      %366 = vector.broadcast %365 : vector<1x32xf32> to vector<2x32xf32>
      %367 = arith.addf %364, %366 : vector<2x32xf32>
      %368 = vector.extract_strided_slice %340 {offsets = [0, 32], sizes = [2, 32], strides = [1, 1]} : vector<2x64xf32> to vector<2x32xf32>
      %c1_200 = arith.constant 1 : index
      %c0_201 = arith.constant 0 : index
      %c0_202 = arith.constant 0 : index
      %369 = vector.load %arg19[%c1_200, %c0_201, %c0_202] : memref<2x2x32xf32, #tpu.memory_space<vmem>>, vector<1x2x32xf32>
      %370 = vector.shape_cast %369 : vector<1x2x32xf32> to vector<2x32xf32>
      %cst_203 = arith.constant dense<0.000000e+00> : vector<2xf32>
      %371 = vector.multi_reduction <add>, %368, %cst_203 [1] : vector<2x32xf32> to vector<2xf32>
      %372 = vector.shape_cast %371 : vector<2xf32> to vector<2x1xf32>
      %cst_204 = arith.constant 3.200000e+01 : f32
      %373 = vector.broadcast %cst_204 : f32 to vector<2x1xf32>
      %374 = arith.divf %372, %373 : vector<2x1xf32>
      %375 = vector.broadcast %374 : vector<2x1xf32> to vector<2x32xf32>
      %376 = arith.subf %368, %375 : vector<2x32xf32>
      %377 = arith.mulf %376, %376 : vector<2x32xf32>
      %cst_205 = arith.constant dense<0.000000e+00> : vector<2xf32>
      %378 = vector.multi_reduction <add>, %377, %cst_205 [1] : vector<2x32xf32> to vector<2xf32>
      %379 = vector.shape_cast %378 : vector<2xf32> to vector<2x1xf32>
      %cst_206 = arith.constant 3.200000e+01 : f32
      %380 = vector.broadcast %cst_206 : f32 to vector<2x1xf32>
      %381 = arith.divf %379, %380 : vector<2x1xf32>
      %382 = vector.broadcast %374 : vector<2x1xf32> to vector<2x32xf32>
      %383 = arith.subf %368, %382 : vector<2x32xf32>
      %cst_207 = arith.constant 9.99999997E-7 : f32
      %384 = vector.broadcast %cst_207 : f32 to vector<2x1xf32>
      %385 = arith.addf %381, %384 : vector<2x1xf32>
      %386 = math.rsqrt %385 : vector<2x1xf32>
      %387 = vector.broadcast %386 : vector<2x1xf32> to vector<2x32xf32>
      %388 = arith.mulf %383, %387 : vector<2x32xf32>
      %389 = vector.extract_strided_slice %370 {offsets = [0, 0], sizes = [1, 32], strides = [1, 1]} : vector<2x32xf32> to vector<1x32xf32>
      %390 = vector.broadcast %389 : vector<1x32xf32> to vector<2x32xf32>
      %391 = arith.mulf %388, %390 : vector<2x32xf32>
      %392 = vector.extract_strided_slice %370 {offsets = [1, 0], sizes = [1, 32], strides = [1, 1]} : vector<2x32xf32> to vector<1x32xf32>
      %393 = vector.broadcast %392 : vector<1x32xf32> to vector<2x32xf32>
      %394 = arith.addf %391, %393 : vector<2x32xf32>
      %395 = tpu.concatenate %367, %394 in 1 : vector<2x32xf32>, vector<2x32xf32> -> vector<2x64xf32>
      %396 = arith.truncf %395 : vector<2x64xf32> to vector<2x64xbf16>
      %c0_208 = arith.constant 0 : index
      %c0_209 = arith.constant 0 : index
      %c0_210 = arith.constant 0 : index
      %c0_211 = arith.constant 0 : index
      %397 = vector.load %arg10[%c0_208, %c0_209, %c0_210, %c0_211] : memref<2x2x64x32xbf16, #tpu.memory_space<vmem>>, vector<1x1x64x32xbf16>
      %398 = vector.shape_cast %397 : vector<1x1x64x32xbf16> to vector<64x32xbf16>
      %cst_212 = arith.constant dense<0.000000e+00> : vector<2x32xf32>
      %399 = tpu.matmul %arg36, %398, %cst_212 {dimension_numbers = #tpu.dot_dimension_numbers<[1], [0], [0], [1], [0, 0, 1, 1], [], []>} : vector<2x64xbf16>, vector<64x32xbf16>, vector<2x32xf32> -> vector<2x32xf32>
      %c0_213 = arith.constant 0 : index
      %c0_214 = arith.constant 0 : index
      %c0_215 = arith.constant 0 : index
      %c0_216 = arith.constant 0 : index
      %400 = vector.load %arg11[%c0_213, %c0_214, %c0_215, %c0_216] : memref<2x2x64x32xbf16, #tpu.memory_space<vmem>>, vector<1x1x64x32xbf16>
      %401 = vector.shape_cast %400 : vector<1x1x64x32xbf16> to vector<64x32xbf16>
      %cst_217 = arith.constant dense<0.000000e+00> : vector<2x32xf32>
      %402 = tpu.matmul %arg36, %401, %cst_217 {dimension_numbers = #tpu.dot_dimension_numbers<[1], [0], [0], [1], [0, 0, 1, 1], [], []>} : vector<2x64xbf16>, vector<64x32xbf16>, vector<2x32xf32> -> vector<2x32xf32>
      %c0_218 = arith.constant 0 : index
      %c0_219 = arith.constant 0 : index
      %c0_220 = arith.constant 0 : index
      %c0_221 = arith.constant 0 : index
      %403 = vector.load %arg12[%c0_218, %c0_219, %c0_220, %c0_221] : memref<2x2x64x64xbf16, #tpu.memory_space<vmem>>, vector<1x1x64x64xbf16>
      %404 = vector.shape_cast %403 : vector<1x1x64x64xbf16> to vector<64x64xbf16>
      %cst_222 = arith.constant dense<0.000000e+00> : vector<2x64xf32>
      %405 = tpu.matmul %arg36, %404, %cst_222 {dimension_numbers = #tpu.dot_dimension_numbers<[1], [0], [0], [1], [0, 0, 1, 1], [], []>} : vector<2x64xbf16>, vector<64x64xbf16>, vector<2x64xf32> -> vector<2x64xf32>
      %406 = arith.truncf %399 : vector<2x32xf32> to vector<2x32xbf16>
      %407 = arith.truncf %402 : vector<2x32xf32> to vector<2x32xbf16>
      %cst_223 = arith.constant dense<0.000000e+00> : vector<2x2xf32>
      %408 = tpu.matmul %406, %407, %cst_223 {dimension_numbers = #tpu.dot_dimension_numbers<[1], [1], [0], [0], [0, 0, 1, 0], [], []>} : vector<2x32xbf16>, vector<2x32xbf16>, vector<2x2xf32> -> vector<2x2xf32>
      %cst_224 = arith.constant 0.0883883461 : f32
      %409 = vector.broadcast %cst_224 : f32 to vector<2x2xf32>
      %410 = arith.mulf %408, %409 : vector<2x2xf32>
      %411 = arith.addf %410, %17 : vector<2x2xf32>
      %cst_225 = arith.constant dense<0xFF800000> : vector<2xf32>
      %412 = vector.multi_reduction <maximumf>, %411, %cst_225 [1] : vector<2x2xf32> to vector<2xf32>
      %413 = vector.shape_cast %412 : vector<2xf32> to vector<2x1xf32>
      %414 = vector.broadcast %413 : vector<2x1xf32> to vector<2x2xf32>
      %415 = arith.subf %411, %414 : vector<2x2xf32>
      %416 = math.exp %415 : vector<2x2xf32>
      %cst_226 = arith.constant dense<0.000000e+00> : vector<2xf32>
      %417 = vector.multi_reduction <add>, %416, %cst_226 [1] : vector<2x2xf32> to vector<2xf32>
      %418 = vector.shape_cast %417 : vector<2xf32> to vector<2x1xf32>
      %419 = vector.broadcast %418 : vector<2x1xf32> to vector<2x2xf32>
      %420 = arith.divf %416, %419 : vector<2x2xf32>
      %421 = arith.truncf %420 : vector<2x2xf32> to vector<2x2xbf16>
      %422 = arith.truncf %405 : vector<2x64xf32> to vector<2x64xbf16>
      %cst_227 = arith.constant dense<0.000000e+00> : vector<2x64xf32>
      %423 = tpu.matmul %421, %422, %cst_227 {dimension_numbers = #tpu.dot_dimension_numbers<[1], [0], [0], [1], [0, 0, 1, 1], [], []>} : vector<2x2xbf16>, vector<2x64xbf16>, vector<2x64xf32> -> vector<2x64xf32>
      %c0_228 = arith.constant 0 : index
      %c1_229 = arith.constant 1 : index
      %c0_230 = arith.constant 0 : index
      %c0_231 = arith.constant 0 : index
      %424 = vector.load %arg10[%c0_228, %c1_229, %c0_230, %c0_231] : memref<2x2x64x32xbf16, #tpu.memory_space<vmem>>, vector<1x1x64x32xbf16>
      %425 = vector.shape_cast %424 : vector<1x1x64x32xbf16> to vector<64x32xbf16>
      %cst_232 = arith.constant dense<0.000000e+00> : vector<2x32xf32>
      %426 = tpu.matmul %arg36, %425, %cst_232 {dimension_numbers = #tpu.dot_dimension_numbers<[1], [0], [0], [1], [0, 0, 1, 1], [], []>} : vector<2x64xbf16>, vector<64x32xbf16>, vector<2x32xf32> -> vector<2x32xf32>
      %c0_233 = arith.constant 0 : index
      %c1_234 = arith.constant 1 : index
      %c0_235 = arith.constant 0 : index
      %c0_236 = arith.constant 0 : index
      %427 = vector.load %arg11[%c0_233, %c1_234, %c0_235, %c0_236] : memref<2x2x64x32xbf16, #tpu.memory_space<vmem>>, vector<1x1x64x32xbf16>
      %428 = vector.shape_cast %427 : vector<1x1x64x32xbf16> to vector<64x32xbf16>
      %cst_237 = arith.constant dense<0.000000e+00> : vector<2x32xf32>
      %429 = tpu.matmul %arg36, %428, %cst_237 {dimension_numbers = #tpu.dot_dimension_numbers<[1], [0], [0], [1], [0, 0, 1, 1], [], []>} : vector<2x64xbf16>, vector<64x32xbf16>, vector<2x32xf32> -> vector<2x32xf32>
      %c0_238 = arith.constant 0 : index
      %c1_239 = arith.constant 1 : index
      %c0_240 = arith.constant 0 : index
      %c0_241 = arith.constant 0 : index
      %430 = vector.load %arg12[%c0_238, %c1_239, %c0_240, %c0_241] : memref<2x2x64x64xbf16, #tpu.memory_space<vmem>>, vector<1x1x64x64xbf16>
      %431 = vector.shape_cast %430 : vector<1x1x64x64xbf16> to vector<64x64xbf16>
      %cst_242 = arith.constant dense<0.000000e+00> : vector<2x64xf32>
      %432 = tpu.matmul %arg36, %431, %cst_242 {dimension_numbers = #tpu.dot_dimension_numbers<[1], [0], [0], [1], [0, 0, 1, 1], [], []>} : vector<2x64xbf16>, vector<64x64xbf16>, vector<2x64xf32> -> vector<2x64xf32>
      %433 = arith.truncf %426 : vector<2x32xf32> to vector<2x32xbf16>
      %434 = arith.truncf %429 : vector<2x32xf32> to vector<2x32xbf16>
      %cst_243 = arith.constant dense<0.000000e+00> : vector<2x2xf32>
      %435 = tpu.matmul %433, %434, %cst_243 {dimension_numbers = #tpu.dot_dimension_numbers<[1], [1], [0], [0], [0, 0, 1, 0], [], []>} : vector<2x32xbf16>, vector<2x32xbf16>, vector<2x2xf32> -> vector<2x2xf32>
      %cst_244 = arith.constant 0.0883883461 : f32
      %436 = vector.broadcast %cst_244 : f32 to vector<2x2xf32>
      %437 = arith.mulf %435, %436 : vector<2x2xf32>
      %438 = arith.addf %437, %17 : vector<2x2xf32>
      %cst_245 = arith.constant dense<0xFF800000> : vector<2xf32>
      %439 = vector.multi_reduction <maximumf>, %438, %cst_245 [1] : vector<2x2xf32> to vector<2xf32>
      %440 = vector.shape_cast %439 : vector<2xf32> to vector<2x1xf32>
      %441 = vector.broadcast %440 : vector<2x1xf32> to vector<2x2xf32>
      %442 = arith.subf %438, %441 : vector<2x2xf32>
      %443 = math.exp %442 : vector<2x2xf32>
      %cst_246 = arith.constant dense<0.000000e+00> : vector<2xf32>
      %444 = vector.multi_reduction <add>, %443, %cst_246 [1] : vector<2x2xf32> to vector<2xf32>
      %445 = vector.shape_cast %444 : vector<2xf32> to vector<2x1xf32>
      %446 = vector.broadcast %445 : vector<2x1xf32> to vector<2x2xf32>
      %447 = arith.divf %443, %446 : vector<2x2xf32>
      %448 = arith.truncf %447 : vector<2x2xf32> to vector<2x2xbf16>
      %449 = arith.truncf %432 : vector<2x64xf32> to vector<2x64xbf16>
      %cst_247 = arith.constant dense<0.000000e+00> : vector<2x64xf32>
      %450 = tpu.matmul %448, %449, %cst_247 {dimension_numbers = #tpu.dot_dimension_numbers<[1], [0], [0], [1], [0, 0, 1, 1], [], []>} : vector<2x2xbf16>, vector<2x64xbf16>, vector<2x64xf32> -> vector<2x64xf32>
      %451 = tpu.concatenate %423, %450 in 1 : vector<2x64xf32>, vector<2x64xf32> -> vector<2x128xf32>
      %452 = arith.truncf %451 : vector<2x128xf32> to vector<2x128xbf16>
      %c0_248 = arith.constant 0 : index
      %c0_249 = arith.constant 0 : index
      %c0_250 = arith.constant 0 : index
      %453 = vector.load %arg13[%c0_248, %c0_249, %c0_250] : memref<2x128x64xbf16, #tpu.memory_space<vmem>>, vector<1x128x64xbf16>
      %454 = vector.shape_cast %453 : vector<1x128x64xbf16> to vector<128x64xbf16>
      %cst_251 = arith.constant dense<0.000000e+00> : vector<2x64xf32>
      %455 = tpu.matmul %452, %454, %cst_251 {dimension_numbers = #tpu.dot_dimension_numbers<[1], [0], [0], [1], [0, 0, 1, 1], [], []>} : vector<2x128xbf16>, vector<128x64xbf16>, vector<2x64xf32> -> vector<2x64xf32>
      %456 = arith.extf %arg36 : vector<2x64xbf16> to vector<2x64xf32>
      %457 = arith.addf %455, %456 : vector<2x64xf32>
      %458 = vector.extract_strided_slice %457 {offsets = [0, 0], sizes = [2, 32], strides = [1, 1]} : vector<2x64xf32> to vector<2x32xf32>
      %c0_252 = arith.constant 0 : index
      %c0_253 = arith.constant 0 : index
      %c0_254 = arith.constant 0 : index
      %c0_255 = arith.constant 0 : index
      %459 = vector.load %arg14[%c0_252, %c0_253, %c0_254, %c0_255] : memref<2x2x2x32xf32, #tpu.memory_space<vmem>>, vector<1x1x2x32xf32>
      %460 = vector.shape_cast %459 : vector<1x1x2x32xf32> to vector<2x32xf32>
      %cst_256 = arith.constant dense<0.000000e+00> : vector<2xf32>
      %461 = vector.multi_reduction <add>, %458, %cst_256 [1] : vector<2x32xf32> to vector<2xf32>
      %462 = vector.shape_cast %461 : vector<2xf32> to vector<2x1xf32>
      %cst_257 = arith.constant 3.200000e+01 : f32
      %463 = vector.broadcast %cst_257 : f32 to vector<2x1xf32>
      %464 = arith.divf %462, %463 : vector<2x1xf32>
      %465 = vector.broadcast %464 : vector<2x1xf32> to vector<2x32xf32>
      %466 = arith.subf %458, %465 : vector<2x32xf32>
      %467 = arith.mulf %466, %466 : vector<2x32xf32>
      %cst_258 = arith.constant dense<0.000000e+00> : vector<2xf32>
      %468 = vector.multi_reduction <add>, %467, %cst_258 [1] : vector<2x32xf32> to vector<2xf32>
      %469 = vector.shape_cast %468 : vector<2xf32> to vector<2x1xf32>
      %cst_259 = arith.constant 3.200000e+01 : f32
      %470 = vector.broadcast %cst_259 : f32 to vector<2x1xf32>
      %471 = arith.divf %469, %470 : vector<2x1xf32>
      %472 = vector.broadcast %464 : vector<2x1xf32> to vector<2x32xf32>
      %473 = arith.subf %458, %472 : vector<2x32xf32>
      %cst_260 = arith.constant 9.99999997E-7 : f32
      %474 = vector.broadcast %cst_260 : f32 to vector<2x1xf32>
      %475 = arith.addf %471, %474 : vector<2x1xf32>
      %476 = math.rsqrt %475 : vector<2x1xf32>
      %477 = vector.broadcast %476 : vector<2x1xf32> to vector<2x32xf32>
      %478 = arith.mulf %473, %477 : vector<2x32xf32>
      %479 = vector.extract_strided_slice %460 {offsets = [0, 0], sizes = [1, 32], strides = [1, 1]} : vector<2x32xf32> to vector<1x32xf32>
      %480 = vector.broadcast %479 : vector<1x32xf32> to vector<2x32xf32>
      %481 = arith.mulf %478, %480 : vector<2x32xf32>
      %482 = vector.extract_strided_slice %460 {offsets = [1, 0], sizes = [1, 32], strides = [1, 1]} : vector<2x32xf32> to vector<1x32xf32>
      %483 = vector.broadcast %482 : vector<1x32xf32> to vector<2x32xf32>
      %484 = arith.addf %481, %483 : vector<2x32xf32>
      %485 = vector.extract_strided_slice %457 {offsets = [0, 32], sizes = [2, 32], strides = [1, 1]} : vector<2x64xf32> to vector<2x32xf32>
      %c0_261 = arith.constant 0 : index
      %c1_262 = arith.constant 1 : index
      %c0_263 = arith.constant 0 : index
      %c0_264 = arith.constant 0 : index
      %486 = vector.load %arg14[%c0_261, %c1_262, %c0_263, %c0_264] : memref<2x2x2x32xf32, #tpu.memory_space<vmem>>, vector<1x1x2x32xf32>
      %487 = vector.shape_cast %486 : vector<1x1x2x32xf32> to vector<2x32xf32>
      %cst_265 = arith.constant dense<0.000000e+00> : vector<2xf32>
      %488 = vector.multi_reduction <add>, %485, %cst_265 [1] : vector<2x32xf32> to vector<2xf32>
      %489 = vector.shape_cast %488 : vector<2xf32> to vector<2x1xf32>
      %cst_266 = arith.constant 3.200000e+01 : f32
      %490 = vector.broadcast %cst_266 : f32 to vector<2x1xf32>
      %491 = arith.divf %489, %490 : vector<2x1xf32>
      %492 = vector.broadcast %491 : vector<2x1xf32> to vector<2x32xf32>
      %493 = arith.subf %485, %492 : vector<2x32xf32>
      %494 = arith.mulf %493, %493 : vector<2x32xf32>
      %cst_267 = arith.constant dense<0.000000e+00> : vector<2xf32>
      %495 = vector.multi_reduction <add>, %494, %cst_267 [1] : vector<2x32xf32> to vector<2xf32>
      %496 = vector.shape_cast %495 : vector<2xf32> to vector<2x1xf32>
      %cst_268 = arith.constant 3.200000e+01 : f32
      %497 = vector.broadcast %cst_268 : f32 to vector<2x1xf32>
      %498 = arith.divf %496, %497 : vector<2x1xf32>
      %499 = vector.broadcast %491 : vector<2x1xf32> to vector<2x32xf32>
      %500 = arith.subf %485, %499 : vector<2x32xf32>
      %cst_269 = arith.constant 9.99999997E-7 : f32
      %501 = vector.broadcast %cst_269 : f32 to vector<2x1xf32>
      %502 = arith.addf %498, %501 : vector<2x1xf32>
      %503 = math.rsqrt %502 : vector<2x1xf32>
      %504 = vector.broadcast %503 : vector<2x1xf32> to vector<2x32xf32>
      %505 = arith.mulf %500, %504 : vector<2x32xf32>
      %506 = vector.extract_strided_slice %487 {offsets = [0, 0], sizes = [1, 32], strides = [1, 1]} : vector<2x32xf32> to vector<1x32xf32>
      %507 = vector.broadcast %506 : vector<1x32xf32> to vector<2x32xf32>
      %508 = arith.mulf %505, %507 : vector<2x32xf32>
      %509 = vector.extract_strided_slice %487 {offsets = [1, 0], sizes = [1, 32], strides = [1, 1]} : vector<2x32xf32> to vector<1x32xf32>
      %510 = vector.broadcast %509 : vector<1x32xf32> to vector<2x32xf32>
      %511 = arith.addf %508, %510 : vector<2x32xf32>
      %512 = tpu.concatenate %484, %511 in 1 : vector<2x32xf32>, vector<2x32xf32> -> vector<2x64xf32>
      %513 = arith.truncf %512 : vector<2x64xf32> to vector<2x64xbf16>
      %c1_270 = arith.constant 1 : index
      %c0_271 = arith.constant 0 : index
      %c0_272 = arith.constant 0 : index
      %c0_273 = arith.constant 0 : index
      %514 = vector.load %arg10[%c1_270, %c0_271, %c0_272, %c0_273] : memref<2x2x64x32xbf16, #tpu.memory_space<vmem>>, vector<1x1x64x32xbf16>
      %515 = vector.shape_cast %514 : vector<1x1x64x32xbf16> to vector<64x32xbf16>
      %cst_274 = arith.constant dense<0.000000e+00> : vector<2x32xf32>
      %516 = tpu.matmul %513, %515, %cst_274 {dimension_numbers = #tpu.dot_dimension_numbers<[1], [0], [0], [1], [0, 0, 1, 1], [], []>} : vector<2x64xbf16>, vector<64x32xbf16>, vector<2x32xf32> -> vector<2x32xf32>
      %c1_275 = arith.constant 1 : index
      %c0_276 = arith.constant 0 : index
      %c0_277 = arith.constant 0 : index
      %c0_278 = arith.constant 0 : index
      %517 = vector.load %arg11[%c1_275, %c0_276, %c0_277, %c0_278] : memref<2x2x64x32xbf16, #tpu.memory_space<vmem>>, vector<1x1x64x32xbf16>
      %518 = vector.shape_cast %517 : vector<1x1x64x32xbf16> to vector<64x32xbf16>
      %cst_279 = arith.constant dense<0.000000e+00> : vector<2x32xf32>
      %519 = tpu.matmul %15, %518, %cst_279 {dimension_numbers = #tpu.dot_dimension_numbers<[1], [0], [0], [1], [0, 0, 1, 1], [], []>} : vector<2x64xbf16>, vector<64x32xbf16>, vector<2x32xf32> -> vector<2x32xf32>
      %c1_280 = arith.constant 1 : index
      %c0_281 = arith.constant 0 : index
      %c0_282 = arith.constant 0 : index
      %c0_283 = arith.constant 0 : index
      %520 = vector.load %arg12[%c1_280, %c0_281, %c0_282, %c0_283] : memref<2x2x64x64xbf16, #tpu.memory_space<vmem>>, vector<1x1x64x64xbf16>
      %521 = vector.shape_cast %520 : vector<1x1x64x64xbf16> to vector<64x64xbf16>
      %cst_284 = arith.constant dense<0.000000e+00> : vector<2x64xf32>
      %522 = tpu.matmul %15, %521, %cst_284 {dimension_numbers = #tpu.dot_dimension_numbers<[1], [0], [0], [1], [0, 0, 1, 1], [], []>} : vector<2x64xbf16>, vector<64x64xbf16>, vector<2x64xf32> -> vector<2x64xf32>
      %523 = arith.truncf %516 : vector<2x32xf32> to vector<2x32xbf16>
      %524 = arith.truncf %519 : vector<2x32xf32> to vector<2x32xbf16>
      %cst_285 = arith.constant dense<0.000000e+00> : vector<2x2xf32>
      %525 = tpu.matmul %523, %524, %cst_285 {dimension_numbers = #tpu.dot_dimension_numbers<[1], [1], [0], [0], [0, 0, 1, 0], [], []>} : vector<2x32xbf16>, vector<2x32xbf16>, vector<2x2xf32> -> vector<2x2xf32>
      %cst_286 = arith.constant 0.0883883461 : f32
      %526 = vector.broadcast %cst_286 : f32 to vector<2x2xf32>
      %527 = arith.mulf %525, %526 : vector<2x2xf32>
      %cst_287 = arith.constant dense<0xFF800000> : vector<2xf32>
      %528 = vector.multi_reduction <maximumf>, %527, %cst_287 [1] : vector<2x2xf32> to vector<2xf32>
      %529 = vector.shape_cast %528 : vector<2xf32> to vector<2x1xf32>
      %530 = vector.broadcast %529 : vector<2x1xf32> to vector<2x2xf32>
      %531 = arith.subf %527, %530 : vector<2x2xf32>
      %532 = math.exp %531 : vector<2x2xf32>
      %cst_288 = arith.constant dense<0.000000e+00> : vector<2xf32>
      %533 = vector.multi_reduction <add>, %532, %cst_288 [1] : vector<2x2xf32> to vector<2xf32>
      %534 = vector.shape_cast %533 : vector<2xf32> to vector<2x1xf32>
      %535 = vector.broadcast %534 : vector<2x1xf32> to vector<2x2xf32>
      %536 = arith.divf %532, %535 : vector<2x2xf32>
      %537 = arith.truncf %536 : vector<2x2xf32> to vector<2x2xbf16>
      %538 = arith.truncf %522 : vector<2x64xf32> to vector<2x64xbf16>
      %cst_289 = arith.constant dense<0.000000e+00> : vector<2x64xf32>
      %539 = tpu.matmul %537, %538, %cst_289 {dimension_numbers = #tpu.dot_dimension_numbers<[1], [0], [0], [1], [0, 0, 1, 1], [], []>} : vector<2x2xbf16>, vector<2x64xbf16>, vector<2x64xf32> -> vector<2x64xf32>
      %c1_290 = arith.constant 1 : index
      %c1_291 = arith.constant 1 : index
      %c0_292 = arith.constant 0 : index
      %c0_293 = arith.constant 0 : index
      %540 = vector.load %arg10[%c1_290, %c1_291, %c0_292, %c0_293] : memref<2x2x64x32xbf16, #tpu.memory_space<vmem>>, vector<1x1x64x32xbf16>
      %541 = vector.shape_cast %540 : vector<1x1x64x32xbf16> to vector<64x32xbf16>
      %cst_294 = arith.constant dense<0.000000e+00> : vector<2x32xf32>
      %542 = tpu.matmul %513, %541, %cst_294 {dimension_numbers = #tpu.dot_dimension_numbers<[1], [0], [0], [1], [0, 0, 1, 1], [], []>} : vector<2x64xbf16>, vector<64x32xbf16>, vector<2x32xf32> -> vector<2x32xf32>
      %c1_295 = arith.constant 1 : index
      %c1_296 = arith.constant 1 : index
      %c0_297 = arith.constant 0 : index
      %c0_298 = arith.constant 0 : index
      %543 = vector.load %arg11[%c1_295, %c1_296, %c0_297, %c0_298] : memref<2x2x64x32xbf16, #tpu.memory_space<vmem>>, vector<1x1x64x32xbf16>
      %544 = vector.shape_cast %543 : vector<1x1x64x32xbf16> to vector<64x32xbf16>
      %cst_299 = arith.constant dense<0.000000e+00> : vector<2x32xf32>
      %545 = tpu.matmul %15, %544, %cst_299 {dimension_numbers = #tpu.dot_dimension_numbers<[1], [0], [0], [1], [0, 0, 1, 1], [], []>} : vector<2x64xbf16>, vector<64x32xbf16>, vector<2x32xf32> -> vector<2x32xf32>
      %c1_300 = arith.constant 1 : index
      %c1_301 = arith.constant 1 : index
      %c0_302 = arith.constant 0 : index
      %c0_303 = arith.constant 0 : index
      %546 = vector.load %arg12[%c1_300, %c1_301, %c0_302, %c0_303] : memref<2x2x64x64xbf16, #tpu.memory_space<vmem>>, vector<1x1x64x64xbf16>
      %547 = vector.shape_cast %546 : vector<1x1x64x64xbf16> to vector<64x64xbf16>
      %cst_304 = arith.constant dense<0.000000e+00> : vector<2x64xf32>
      %548 = tpu.matmul %15, %547, %cst_304 {dimension_numbers = #tpu.dot_dimension_numbers<[1], [0], [0], [1], [0, 0, 1, 1], [], []>} : vector<2x64xbf16>, vector<64x64xbf16>, vector<2x64xf32> -> vector<2x64xf32>
      %549 = arith.truncf %542 : vector<2x32xf32> to vector<2x32xbf16>
      %550 = arith.truncf %545 : vector<2x32xf32> to vector<2x32xbf16>
      %cst_305 = arith.constant dense<0.000000e+00> : vector<2x2xf32>
      %551 = tpu.matmul %549, %550, %cst_305 {dimension_numbers = #tpu.dot_dimension_numbers<[1], [1], [0], [0], [0, 0, 1, 0], [], []>} : vector<2x32xbf16>, vector<2x32xbf16>, vector<2x2xf32> -> vector<2x2xf32>
      %cst_306 = arith.constant 0.0883883461 : f32
      %552 = vector.broadcast %cst_306 : f32 to vector<2x2xf32>
      %553 = arith.mulf %551, %552 : vector<2x2xf32>
      %cst_307 = arith.constant dense<0xFF800000> : vector<2xf32>
      %554 = vector.multi_reduction <maximumf>, %553, %cst_307 [1] : vector<2x2xf32> to vector<2xf32>
      %555 = vector.shape_cast %554 : vector<2xf32> to vector<2x1xf32>
      %556 = vector.broadcast %555 : vector<2x1xf32> to vector<2x2xf32>
      %557 = arith.subf %553, %556 : vector<2x2xf32>
      %558 = math.exp %557 : vector<2x2xf32>
      %cst_308 = arith.constant dense<0.000000e+00> : vector<2xf32>
      %559 = vector.multi_reduction <add>, %558, %cst_308 [1] : vector<2x2xf32> to vector<2xf32>
      %560 = vector.shape_cast %559 : vector<2xf32> to vector<2x1xf32>
      %561 = vector.broadcast %560 : vector<2x1xf32> to vector<2x2xf32>
      %562 = arith.divf %558, %561 : vector<2x2xf32>
      %563 = arith.truncf %562 : vector<2x2xf32> to vector<2x2xbf16>
      %564 = arith.truncf %548 : vector<2x64xf32> to vector<2x64xbf16>
      %cst_309 = arith.constant dense<0.000000e+00> : vector<2x64xf32>
      %565 = tpu.matmul %563, %564, %cst_309 {dimension_numbers = #tpu.dot_dimension_numbers<[1], [0], [0], [1], [0, 0, 1, 1], [], []>} : vector<2x2xbf16>, vector<2x64xbf16>, vector<2x64xf32> -> vector<2x64xf32>
      %566 = tpu.concatenate %539, %565 in 1 : vector<2x64xf32>, vector<2x64xf32> -> vector<2x128xf32>
      %567 = arith.truncf %566 : vector<2x128xf32> to vector<2x128xbf16>
      %c1_310 = arith.constant 1 : index
      %c0_311 = arith.constant 0 : index
      %c0_312 = arith.constant 0 : index
      %568 = vector.load %arg13[%c1_310, %c0_311, %c0_312] : memref<2x128x64xbf16, #tpu.memory_space<vmem>>, vector<1x128x64xbf16>
      %569 = vector.shape_cast %568 : vector<1x128x64xbf16> to vector<128x64xbf16>
      %cst_313 = arith.constant dense<0.000000e+00> : vector<2x64xf32>
      %570 = tpu.matmul %567, %569, %cst_313 {dimension_numbers = #tpu.dot_dimension_numbers<[1], [0], [0], [1], [0, 0, 1, 1], [], []>} : vector<2x128xbf16>, vector<128x64xbf16>, vector<2x64xf32> -> vector<2x64xf32>
      %571 = arith.extf %513 : vector<2x64xbf16> to vector<2x64xf32>
      %572 = arith.addf %570, %571 : vector<2x64xf32>
      %573 = vector.extract_strided_slice %572 {offsets = [0, 0], sizes = [2, 32], strides = [1, 1]} : vector<2x64xf32> to vector<2x32xf32>
      %c1_314 = arith.constant 1 : index
      %c0_315 = arith.constant 0 : index
      %c0_316 = arith.constant 0 : index
      %c0_317 = arith.constant 0 : index
      %574 = vector.load %arg14[%c1_314, %c0_315, %c0_316, %c0_317] : memref<2x2x2x32xf32, #tpu.memory_space<vmem>>, vector<1x1x2x32xf32>
      %575 = vector.shape_cast %574 : vector<1x1x2x32xf32> to vector<2x32xf32>
      %cst_318 = arith.constant dense<0.000000e+00> : vector<2xf32>
      %576 = vector.multi_reduction <add>, %573, %cst_318 [1] : vector<2x32xf32> to vector<2xf32>
      %577 = vector.shape_cast %576 : vector<2xf32> to vector<2x1xf32>
      %cst_319 = arith.constant 3.200000e+01 : f32
      %578 = vector.broadcast %cst_319 : f32 to vector<2x1xf32>
      %579 = arith.divf %577, %578 : vector<2x1xf32>
      %580 = vector.broadcast %579 : vector<2x1xf32> to vector<2x32xf32>
      %581 = arith.subf %573, %580 : vector<2x32xf32>
      %582 = arith.mulf %581, %581 : vector<2x32xf32>
      %cst_320 = arith.constant dense<0.000000e+00> : vector<2xf32>
      %583 = vector.multi_reduction <add>, %582, %cst_320 [1] : vector<2x32xf32> to vector<2xf32>
      %584 = vector.shape_cast %583 : vector<2xf32> to vector<2x1xf32>
      %cst_321 = arith.constant 3.200000e+01 : f32
      %585 = vector.broadcast %cst_321 : f32 to vector<2x1xf32>
      %586 = arith.divf %584, %585 : vector<2x1xf32>
      %587 = vector.broadcast %579 : vector<2x1xf32> to vector<2x32xf32>
      %588 = arith.subf %573, %587 : vector<2x32xf32>
      %cst_322 = arith.constant 9.99999997E-7 : f32
      %589 = vector.broadcast %cst_322 : f32 to vector<2x1xf32>
      %590 = arith.addf %586, %589 : vector<2x1xf32>
      %591 = math.rsqrt %590 : vector<2x1xf32>
      %592 = vector.broadcast %591 : vector<2x1xf32> to vector<2x32xf32>
      %593 = arith.mulf %588, %592 : vector<2x32xf32>
      %594 = vector.extract_strided_slice %575 {offsets = [0, 0], sizes = [1, 32], strides = [1, 1]} : vector<2x32xf32> to vector<1x32xf32>
      %595 = vector.broadcast %594 : vector<1x32xf32> to vector<2x32xf32>
      %596 = arith.mulf %593, %595 : vector<2x32xf32>
      %597 = vector.extract_strided_slice %575 {offsets = [1, 0], sizes = [1, 32], strides = [1, 1]} : vector<2x32xf32> to vector<1x32xf32>
      %598 = vector.broadcast %597 : vector<1x32xf32> to vector<2x32xf32>
      %599 = arith.addf %596, %598 : vector<2x32xf32>
      %600 = vector.extract_strided_slice %572 {offsets = [0, 32], sizes = [2, 32], strides = [1, 1]} : vector<2x64xf32> to vector<2x32xf32>
      %c1_323 = arith.constant 1 : index
      %c1_324 = arith.constant 1 : index
      %c0_325 = arith.constant 0 : index
      %c0_326 = arith.constant 0 : index
      %601 = vector.load %arg14[%c1_323, %c1_324, %c0_325, %c0_326] : memref<2x2x2x32xf32, #tpu.memory_space<vmem>>, vector<1x1x2x32xf32>
      %602 = vector.shape_cast %601 : vector<1x1x2x32xf32> to vector<2x32xf32>
      %cst_327 = arith.constant dense<0.000000e+00> : vector<2xf32>
      %603 = vector.multi_reduction <add>, %600, %cst_327 [1] : vector<2x32xf32> to vector<2xf32>
      %604 = vector.shape_cast %603 : vector<2xf32> to vector<2x1xf32>
      %cst_328 = arith.constant 3.200000e+01 : f32
      %605 = vector.broadcast %cst_328 : f32 to vector<2x1xf32>
      %606 = arith.divf %604, %605 : vector<2x1xf32>
      %607 = vector.broadcast %606 : vector<2x1xf32> to vector<2x32xf32>
      %608 = arith.subf %600, %607 : vector<2x32xf32>
      %609 = arith.mulf %608, %608 : vector<2x32xf32>
      %cst_329 = arith.constant dense<0.000000e+00> : vector<2xf32>
      %610 = vector.multi_reduction <add>, %609, %cst_329 [1] : vector<2x32xf32> to vector<2xf32>
      %611 = vector.shape_cast %610 : vector<2xf32> to vector<2x1xf32>
      %cst_330 = arith.constant 3.200000e+01 : f32
      %612 = vector.broadcast %cst_330 : f32 to vector<2x1xf32>
      %613 = arith.divf %611, %612 : vector<2x1xf32>
      %614 = vector.broadcast %606 : vector<2x1xf32> to vector<2x32xf32>
      %615 = arith.subf %600, %614 : vector<2x32xf32>
      %cst_331 = arith.constant 9.99999997E-7 : f32
      %616 = vector.broadcast %cst_331 : f32 to vector<2x1xf32>
      %617 = arith.addf %613, %616 : vector<2x1xf32>
      %618 = math.rsqrt %617 : vector<2x1xf32>
      %619 = vector.broadcast %618 : vector<2x1xf32> to vector<2x32xf32>
      %620 = arith.mulf %615, %619 : vector<2x32xf32>
      %621 = vector.extract_strided_slice %602 {offsets = [0, 0], sizes = [1, 32], strides = [1, 1]} : vector<2x32xf32> to vector<1x32xf32>
      %622 = vector.broadcast %621 : vector<1x32xf32> to vector<2x32xf32>
      %623 = arith.mulf %620, %622 : vector<2x32xf32>
      %624 = vector.extract_strided_slice %602 {offsets = [1, 0], sizes = [1, 32], strides = [1, 1]} : vector<2x32xf32> to vector<1x32xf32>
      %625 = vector.broadcast %624 : vector<1x32xf32> to vector<2x32xf32>
      %626 = arith.addf %623, %625 : vector<2x32xf32>
      %627 = tpu.concatenate %599, %626 in 1 : vector<2x32xf32>, vector<2x32xf32> -> vector<2x64xf32>
      %628 = arith.truncf %627 : vector<2x64xf32> to vector<2x64xbf16>
      %c0_332 = arith.constant 0 : index
      %c0_333 = arith.constant 0 : index
      %629 = vector.load %arg15[%c0_332, %c0_333] : memref<64x128xbf16, #tpu.memory_space<vmem>>, vector<64x128xbf16>
      %cst_334 = arith.constant dense<0.000000e+00> : vector<2x128xf32>
      %630 = tpu.matmul %628, %629, %cst_334 {dimension_numbers = #tpu.dot_dimension_numbers<[1], [0], [0], [1], [0, 0, 1, 1], [], []>} : vector<2x64xbf16>, vector<64x128xbf16>, vector<2x128xf32> -> vector<2x128xf32>
      %c0_335 = arith.constant 0 : index
      %c0_336 = arith.constant 0 : index
      %631 = vector.load %arg16[%c0_335, %c0_336] : memref<1x128xf32, #tpu.memory_space<vmem>>, vector<1x128xf32>
      %632 = vector.broadcast %631 : vector<1x128xf32> to vector<2x128xf32>
      %633 = arith.addf %630, %632 : vector<2x128xf32>
      %cst_337 = arith.constant 0.000000e+00 : f32
      %634 = vector.broadcast %cst_337 : f32 to vector<2x128xf32>
      %635 = arith.maximumf %633, %634 : vector<2x128xf32>
      %636 = arith.truncf %635 : vector<2x128xf32> to vector<2x128xbf16>
      %c0_338 = arith.constant 0 : index
      %c0_339 = arith.constant 0 : index
      %637 = vector.load %arg17[%c0_338, %c0_339] : memref<128x64xbf16, #tpu.memory_space<vmem>>, vector<128x64xbf16>
      %cst_340 = arith.constant dense<0.000000e+00> : vector<2x64xf32>
      %638 = tpu.matmul %636, %637, %cst_340 {dimension_numbers = #tpu.dot_dimension_numbers<[1], [0], [0], [1], [0, 0, 1, 1], [], []>} : vector<2x128xbf16>, vector<128x64xbf16>, vector<2x64xf32> -> vector<2x64xf32>
      %c0_341 = arith.constant 0 : index
      %c0_342 = arith.constant 0 : index
      %639 = vector.load %arg18[%c0_341, %c0_342] : memref<1x64xf32, #tpu.memory_space<vmem>>, vector<1x64xf32>
      %640 = vector.broadcast %639 : vector<1x64xf32> to vector<2x64xf32>
      %641 = arith.addf %638, %640 : vector<2x64xf32>
      %642 = arith.extf %628 : vector<2x64xbf16> to vector<2x64xf32>
      %643 = arith.addf %641, %642 : vector<2x64xf32>
      %644 = vector.extract_strided_slice %643 {offsets = [0, 0], sizes = [2, 32], strides = [1, 1]} : vector<2x64xf32> to vector<2x32xf32>
      %c0_343 = arith.constant 0 : index
      %c0_344 = arith.constant 0 : index
      %c0_345 = arith.constant 0 : index
      %645 = vector.load %arg19[%c0_343, %c0_344, %c0_345] : memref<2x2x32xf32, #tpu.memory_space<vmem>>, vector<1x2x32xf32>
      %646 = vector.shape_cast %645 : vector<1x2x32xf32> to vector<2x32xf32>
      %cst_346 = arith.constant dense<0.000000e+00> : vector<2xf32>
      %647 = vector.multi_reduction <add>, %644, %cst_346 [1] : vector<2x32xf32> to vector<2xf32>
      %648 = vector.shape_cast %647 : vector<2xf32> to vector<2x1xf32>
      %cst_347 = arith.constant 3.200000e+01 : f32
      %649 = vector.broadcast %cst_347 : f32 to vector<2x1xf32>
      %650 = arith.divf %648, %649 : vector<2x1xf32>
      %651 = vector.broadcast %650 : vector<2x1xf32> to vector<2x32xf32>
      %652 = arith.subf %644, %651 : vector<2x32xf32>
      %653 = arith.mulf %652, %652 : vector<2x32xf32>
      %cst_348 = arith.constant dense<0.000000e+00> : vector<2xf32>
      %654 = vector.multi_reduction <add>, %653, %cst_348 [1] : vector<2x32xf32> to vector<2xf32>
      %655 = vector.shape_cast %654 : vector<2xf32> to vector<2x1xf32>
      %cst_349 = arith.constant 3.200000e+01 : f32
      %656 = vector.broadcast %cst_349 : f32 to vector<2x1xf32>
      %657 = arith.divf %655, %656 : vector<2x1xf32>
      %658 = vector.broadcast %650 : vector<2x1xf32> to vector<2x32xf32>
      %659 = arith.subf %644, %658 : vector<2x32xf32>
      %cst_350 = arith.constant 9.99999997E-7 : f32
      %660 = vector.broadcast %cst_350 : f32 to vector<2x1xf32>
      %661 = arith.addf %657, %660 : vector<2x1xf32>
      %662 = math.rsqrt %661 : vector<2x1xf32>
      %663 = vector.broadcast %662 : vector<2x1xf32> to vector<2x32xf32>
      %664 = arith.mulf %659, %663 : vector<2x32xf32>
      %665 = vector.extract_strided_slice %646 {offsets = [0, 0], sizes = [1, 32], strides = [1, 1]} : vector<2x32xf32> to vector<1x32xf32>
      %666 = vector.broadcast %665 : vector<1x32xf32> to vector<2x32xf32>
      %667 = arith.mulf %664, %666 : vector<2x32xf32>
      %668 = vector.extract_strided_slice %646 {offsets = [1, 0], sizes = [1, 32], strides = [1, 1]} : vector<2x32xf32> to vector<1x32xf32>
      %669 = vector.broadcast %668 : vector<1x32xf32> to vector<2x32xf32>
      %670 = arith.addf %667, %669 : vector<2x32xf32>
      %671 = vector.extract_strided_slice %643 {offsets = [0, 32], sizes = [2, 32], strides = [1, 1]} : vector<2x64xf32> to vector<2x32xf32>
      %c1_351 = arith.constant 1 : index
      %c0_352 = arith.constant 0 : index
      %c0_353 = arith.constant 0 : index
      %672 = vector.load %arg19[%c1_351, %c0_352, %c0_353] : memref<2x2x32xf32, #tpu.memory_space<vmem>>, vector<1x2x32xf32>
      %673 = vector.shape_cast %672 : vector<1x2x32xf32> to vector<2x32xf32>
      %cst_354 = arith.constant dense<0.000000e+00> : vector<2xf32>
      %674 = vector.multi_reduction <add>, %671, %cst_354 [1] : vector<2x32xf32> to vector<2xf32>
      %675 = vector.shape_cast %674 : vector<2xf32> to vector<2x1xf32>
      %cst_355 = arith.constant 3.200000e+01 : f32
      %676 = vector.broadcast %cst_355 : f32 to vector<2x1xf32>
      %677 = arith.divf %675, %676 : vector<2x1xf32>
      %678 = vector.broadcast %677 : vector<2x1xf32> to vector<2x32xf32>
      %679 = arith.subf %671, %678 : vector<2x32xf32>
      %680 = arith.mulf %679, %679 : vector<2x32xf32>
      %cst_356 = arith.constant dense<0.000000e+00> : vector<2xf32>
      %681 = vector.multi_reduction <add>, %680, %cst_356 [1] : vector<2x32xf32> to vector<2xf32>
      %682 = vector.shape_cast %681 : vector<2xf32> to vector<2x1xf32>
      %cst_357 = arith.constant 3.200000e+01 : f32
      %683 = vector.broadcast %cst_357 : f32 to vector<2x1xf32>
      %684 = arith.divf %682, %683 : vector<2x1xf32>
      %685 = vector.broadcast %677 : vector<2x1xf32> to vector<2x32xf32>
      %686 = arith.subf %671, %685 : vector<2x32xf32>
      %cst_358 = arith.constant 9.99999997E-7 : f32
      %687 = vector.broadcast %cst_358 : f32 to vector<2x1xf32>
      %688 = arith.addf %684, %687 : vector<2x1xf32>
      %689 = math.rsqrt %688 : vector<2x1xf32>
      %690 = vector.broadcast %689 : vector<2x1xf32> to vector<2x32xf32>
      %691 = arith.mulf %686, %690 : vector<2x32xf32>
      %692 = vector.extract_strided_slice %673 {offsets = [0, 0], sizes = [1, 32], strides = [1, 1]} : vector<2x32xf32> to vector<1x32xf32>
      %693 = vector.broadcast %692 : vector<1x32xf32> to vector<2x32xf32>
      %694 = arith.mulf %691, %693 : vector<2x32xf32>
      %695 = vector.extract_strided_slice %673 {offsets = [1, 0], sizes = [1, 32], strides = [1, 1]} : vector<2x32xf32> to vector<1x32xf32>
      %696 = vector.broadcast %695 : vector<1x32xf32> to vector<2x32xf32>
      %697 = arith.addf %694, %696 : vector<2x32xf32>
      %698 = tpu.concatenate %670, %697 in 1 : vector<2x32xf32>, vector<2x32xf32> -> vector<2x64xf32>
      %699 = arith.truncf %698 : vector<2x64xf32> to vector<2x64xbf16>
      %c0_359 = arith.constant 0 : index
      %c0_360 = arith.constant 0 : index
      %c0_361 = arith.constant 0 : index
      %c0_362 = arith.constant 0 : index
      %700 = vector.load %arg20[%c0_359, %c0_360, %c0_361, %c0_362] : memref<2x2x64x32xbf16, #tpu.memory_space<vmem>>, vector<1x1x64x32xbf16>
      %701 = vector.shape_cast %700 : vector<1x1x64x32xbf16> to vector<64x32xbf16>
      %cst_363 = arith.constant dense<0.000000e+00> : vector<4x32xf32>
      %702 = tpu.matmul %arg37, %701, %cst_363 {dimension_numbers = #tpu.dot_dimension_numbers<[1], [0], [0], [1], [0, 0, 1, 1], [], []>} : vector<4x64xbf16>, vector<64x32xbf16>, vector<4x32xf32> -> vector<4x32xf32>
      %c0_364 = arith.constant 0 : index
      %c0_365 = arith.constant 0 : index
      %c0_366 = arith.constant 0 : index
      %c0_367 = arith.constant 0 : index
      %703 = vector.load %arg21[%c0_364, %c0_365, %c0_366, %c0_367] : memref<2x2x64x32xbf16, #tpu.memory_space<vmem>>, vector<1x1x64x32xbf16>
      %704 = vector.shape_cast %703 : vector<1x1x64x32xbf16> to vector<64x32xbf16>
      %cst_368 = arith.constant dense<0.000000e+00> : vector<4x32xf32>
      %705 = tpu.matmul %arg37, %704, %cst_368 {dimension_numbers = #tpu.dot_dimension_numbers<[1], [0], [0], [1], [0, 0, 1, 1], [], []>} : vector<4x64xbf16>, vector<64x32xbf16>, vector<4x32xf32> -> vector<4x32xf32>
      %c0_369 = arith.constant 0 : index
      %c0_370 = arith.constant 0 : index
      %c0_371 = arith.constant 0 : index
      %c0_372 = arith.constant 0 : index
      %706 = vector.load %arg22[%c0_369, %c0_370, %c0_371, %c0_372] : memref<2x2x64x64xbf16, #tpu.memory_space<vmem>>, vector<1x1x64x64xbf16>
      %707 = vector.shape_cast %706 : vector<1x1x64x64xbf16> to vector<64x64xbf16>
      %cst_373 = arith.constant dense<0.000000e+00> : vector<4x64xf32>
      %708 = tpu.matmul %arg37, %707, %cst_373 {dimension_numbers = #tpu.dot_dimension_numbers<[1], [0], [0], [1], [0, 0, 1, 1], [], []>} : vector<4x64xbf16>, vector<64x64xbf16>, vector<4x64xf32> -> vector<4x64xf32>
      %709 = arith.truncf %702 : vector<4x32xf32> to vector<4x32xbf16>
      %710 = arith.truncf %705 : vector<4x32xf32> to vector<4x32xbf16>
      %cst_374 = arith.constant dense<0.000000e+00> : vector<4x4xf32>
      %711 = tpu.matmul %709, %710, %cst_374 {dimension_numbers = #tpu.dot_dimension_numbers<[1], [1], [0], [0], [0, 0, 1, 0], [], []>} : vector<4x32xbf16>, vector<4x32xbf16>, vector<4x4xf32> -> vector<4x4xf32>
      %cst_375 = arith.constant 0.0883883461 : f32
      %712 = vector.broadcast %cst_375 : f32 to vector<4x4xf32>
      %713 = arith.mulf %711, %712 : vector<4x4xf32>
      %714 = arith.addf %713, %9 : vector<4x4xf32>
      %cst_376 = arith.constant dense<0xFF800000> : vector<4xf32>
      %715 = vector.multi_reduction <maximumf>, %714, %cst_376 [1] : vector<4x4xf32> to vector<4xf32>
      %716 = vector.shape_cast %715 : vector<4xf32> to vector<4x1xf32>
      %717 = vector.broadcast %716 : vector<4x1xf32> to vector<4x4xf32>
      %718 = arith.subf %714, %717 : vector<4x4xf32>
      %719 = math.exp %718 : vector<4x4xf32>
      %cst_377 = arith.constant dense<0.000000e+00> : vector<4xf32>
      %720 = vector.multi_reduction <add>, %719, %cst_377 [1] : vector<4x4xf32> to vector<4xf32>
      %721 = vector.shape_cast %720 : vector<4xf32> to vector<4x1xf32>
      %722 = vector.broadcast %721 : vector<4x1xf32> to vector<4x4xf32>
      %723 = arith.divf %719, %722 : vector<4x4xf32>
      %724 = arith.truncf %723 : vector<4x4xf32> to vector<4x4xbf16>
      %725 = arith.truncf %708 : vector<4x64xf32> to vector<4x64xbf16>
      %cst_378 = arith.constant dense<0.000000e+00> : vector<4x64xf32>
      %726 = tpu.matmul %724, %725, %cst_378 {dimension_numbers = #tpu.dot_dimension_numbers<[1], [0], [0], [1], [0, 0, 1, 1], [], []>} : vector<4x4xbf16>, vector<4x64xbf16>, vector<4x64xf32> -> vector<4x64xf32>
      %c0_379 = arith.constant 0 : index
      %c1_380 = arith.constant 1 : index
      %c0_381 = arith.constant 0 : index
      %c0_382 = arith.constant 0 : index
      %727 = vector.load %arg20[%c0_379, %c1_380, %c0_381, %c0_382] : memref<2x2x64x32xbf16, #tpu.memory_space<vmem>>, vector<1x1x64x32xbf16>
      %728 = vector.shape_cast %727 : vector<1x1x64x32xbf16> to vector<64x32xbf16>
      %cst_383 = arith.constant dense<0.000000e+00> : vector<4x32xf32>
      %729 = tpu.matmul %arg37, %728, %cst_383 {dimension_numbers = #tpu.dot_dimension_numbers<[1], [0], [0], [1], [0, 0, 1, 1], [], []>} : vector<4x64xbf16>, vector<64x32xbf16>, vector<4x32xf32> -> vector<4x32xf32>
      %c0_384 = arith.constant 0 : index
      %c1_385 = arith.constant 1 : index
      %c0_386 = arith.constant 0 : index
      %c0_387 = arith.constant 0 : index
      %730 = vector.load %arg21[%c0_384, %c1_385, %c0_386, %c0_387] : memref<2x2x64x32xbf16, #tpu.memory_space<vmem>>, vector<1x1x64x32xbf16>
      %731 = vector.shape_cast %730 : vector<1x1x64x32xbf16> to vector<64x32xbf16>
      %cst_388 = arith.constant dense<0.000000e+00> : vector<4x32xf32>
      %732 = tpu.matmul %arg37, %731, %cst_388 {dimension_numbers = #tpu.dot_dimension_numbers<[1], [0], [0], [1], [0, 0, 1, 1], [], []>} : vector<4x64xbf16>, vector<64x32xbf16>, vector<4x32xf32> -> vector<4x32xf32>
      %c0_389 = arith.constant 0 : index
      %c1_390 = arith.constant 1 : index
      %c0_391 = arith.constant 0 : index
      %c0_392 = arith.constant 0 : index
      %733 = vector.load %arg22[%c0_389, %c1_390, %c0_391, %c0_392] : memref<2x2x64x64xbf16, #tpu.memory_space<vmem>>, vector<1x1x64x64xbf16>
      %734 = vector.shape_cast %733 : vector<1x1x64x64xbf16> to vector<64x64xbf16>
      %cst_393 = arith.constant dense<0.000000e+00> : vector<4x64xf32>
      %735 = tpu.matmul %arg37, %734, %cst_393 {dimension_numbers = #tpu.dot_dimension_numbers<[1], [0], [0], [1], [0, 0, 1, 1], [], []>} : vector<4x64xbf16>, vector<64x64xbf16>, vector<4x64xf32> -> vector<4x64xf32>
      %736 = arith.truncf %729 : vector<4x32xf32> to vector<4x32xbf16>
      %737 = arith.truncf %732 : vector<4x32xf32> to vector<4x32xbf16>
      %cst_394 = arith.constant dense<0.000000e+00> : vector<4x4xf32>
      %738 = tpu.matmul %736, %737, %cst_394 {dimension_numbers = #tpu.dot_dimension_numbers<[1], [1], [0], [0], [0, 0, 1, 0], [], []>} : vector<4x32xbf16>, vector<4x32xbf16>, vector<4x4xf32> -> vector<4x4xf32>
      %cst_395 = arith.constant 0.0883883461 : f32
      %739 = vector.broadcast %cst_395 : f32 to vector<4x4xf32>
      %740 = arith.mulf %738, %739 : vector<4x4xf32>
      %741 = arith.addf %740, %9 : vector<4x4xf32>
      %cst_396 = arith.constant dense<0xFF800000> : vector<4xf32>
      %742 = vector.multi_reduction <maximumf>, %741, %cst_396 [1] : vector<4x4xf32> to vector<4xf32>
      %743 = vector.shape_cast %742 : vector<4xf32> to vector<4x1xf32>
      %744 = vector.broadcast %743 : vector<4x1xf32> to vector<4x4xf32>
      %745 = arith.subf %741, %744 : vector<4x4xf32>
      %746 = math.exp %745 : vector<4x4xf32>
      %cst_397 = arith.constant dense<0.000000e+00> : vector<4xf32>
      %747 = vector.multi_reduction <add>, %746, %cst_397 [1] : vector<4x4xf32> to vector<4xf32>
      %748 = vector.shape_cast %747 : vector<4xf32> to vector<4x1xf32>
      %749 = vector.broadcast %748 : vector<4x1xf32> to vector<4x4xf32>
      %750 = arith.divf %746, %749 : vector<4x4xf32>
      %751 = arith.truncf %750 : vector<4x4xf32> to vector<4x4xbf16>
      %752 = arith.truncf %735 : vector<4x64xf32> to vector<4x64xbf16>
      %cst_398 = arith.constant dense<0.000000e+00> : vector<4x64xf32>
      %753 = tpu.matmul %751, %752, %cst_398 {dimension_numbers = #tpu.dot_dimension_numbers<[1], [0], [0], [1], [0, 0, 1, 1], [], []>} : vector<4x4xbf16>, vector<4x64xbf16>, vector<4x64xf32> -> vector<4x64xf32>
      %754 = tpu.concatenate %726, %753 in 1 : vector<4x64xf32>, vector<4x64xf32> -> vector<4x128xf32>
      %755 = arith.truncf %754 : vector<4x128xf32> to vector<4x128xbf16>
      %c0_399 = arith.constant 0 : index
      %c0_400 = arith.constant 0 : index
      %c0_401 = arith.constant 0 : index
      %756 = vector.load %arg23[%c0_399, %c0_400, %c0_401] : memref<2x128x64xbf16, #tpu.memory_space<vmem>>, vector<1x128x64xbf16>
      %757 = vector.shape_cast %756 : vector<1x128x64xbf16> to vector<128x64xbf16>
      %cst_402 = arith.constant dense<0.000000e+00> : vector<4x64xf32>
      %758 = tpu.matmul %755, %757, %cst_402 {dimension_numbers = #tpu.dot_dimension_numbers<[1], [0], [0], [1], [0, 0, 1, 1], [], []>} : vector<4x128xbf16>, vector<128x64xbf16>, vector<4x64xf32> -> vector<4x64xf32>
      %759 = arith.extf %arg37 : vector<4x64xbf16> to vector<4x64xf32>
      %760 = arith.addf %758, %759 : vector<4x64xf32>
      %761 = vector.extract_strided_slice %760 {offsets = [0, 0], sizes = [4, 32], strides = [1, 1]} : vector<4x64xf32> to vector<4x32xf32>
      %c0_403 = arith.constant 0 : index
      %c0_404 = arith.constant 0 : index
      %c0_405 = arith.constant 0 : index
      %c0_406 = arith.constant 0 : index
      %762 = vector.load %arg24[%c0_403, %c0_404, %c0_405, %c0_406] : memref<2x2x2x32xf32, #tpu.memory_space<vmem>>, vector<1x1x2x32xf32>
      %763 = vector.shape_cast %762 : vector<1x1x2x32xf32> to vector<2x32xf32>
      %cst_407 = arith.constant dense<0.000000e+00> : vector<4xf32>
      %764 = vector.multi_reduction <add>, %761, %cst_407 [1] : vector<4x32xf32> to vector<4xf32>
      %765 = vector.shape_cast %764 : vector<4xf32> to vector<4x1xf32>
      %cst_408 = arith.constant 3.200000e+01 : f32
      %766 = vector.broadcast %cst_408 : f32 to vector<4x1xf32>
      %767 = arith.divf %765, %766 : vector<4x1xf32>
      %768 = vector.broadcast %767 : vector<4x1xf32> to vector<4x32xf32>
      %769 = arith.subf %761, %768 : vector<4x32xf32>
      %770 = arith.mulf %769, %769 : vector<4x32xf32>
      %cst_409 = arith.constant dense<0.000000e+00> : vector<4xf32>
      %771 = vector.multi_reduction <add>, %770, %cst_409 [1] : vector<4x32xf32> to vector<4xf32>
      %772 = vector.shape_cast %771 : vector<4xf32> to vector<4x1xf32>
      %cst_410 = arith.constant 3.200000e+01 : f32
      %773 = vector.broadcast %cst_410 : f32 to vector<4x1xf32>
      %774 = arith.divf %772, %773 : vector<4x1xf32>
      %775 = vector.broadcast %767 : vector<4x1xf32> to vector<4x32xf32>
      %776 = arith.subf %761, %775 : vector<4x32xf32>
      %cst_411 = arith.constant 9.99999997E-7 : f32
      %777 = vector.broadcast %cst_411 : f32 to vector<4x1xf32>
      %778 = arith.addf %774, %777 : vector<4x1xf32>
      %779 = math.rsqrt %778 : vector<4x1xf32>
      %780 = vector.broadcast %779 : vector<4x1xf32> to vector<4x32xf32>
      %781 = arith.mulf %776, %780 : vector<4x32xf32>
      %782 = vector.extract_strided_slice %763 {offsets = [0, 0], sizes = [1, 32], strides = [1, 1]} : vector<2x32xf32> to vector<1x32xf32>
      %783 = vector.broadcast %782 : vector<1x32xf32> to vector<4x32xf32>
      %784 = arith.mulf %781, %783 : vector<4x32xf32>
      %785 = vector.extract_strided_slice %763 {offsets = [1, 0], sizes = [1, 32], strides = [1, 1]} : vector<2x32xf32> to vector<1x32xf32>
      %786 = vector.broadcast %785 : vector<1x32xf32> to vector<4x32xf32>
      %787 = arith.addf %784, %786 : vector<4x32xf32>
      %788 = vector.extract_strided_slice %760 {offsets = [0, 32], sizes = [4, 32], strides = [1, 1]} : vector<4x64xf32> to vector<4x32xf32>
      %c0_412 = arith.constant 0 : index
      %c1_413 = arith.constant 1 : index
      %c0_414 = arith.constant 0 : index
      %c0_415 = arith.constant 0 : index
      %789 = vector.load %arg24[%c0_412, %c1_413, %c0_414, %c0_415] : memref<2x2x2x32xf32, #tpu.memory_space<vmem>>, vector<1x1x2x32xf32>
      %790 = vector.shape_cast %789 : vector<1x1x2x32xf32> to vector<2x32xf32>
      %cst_416 = arith.constant dense<0.000000e+00> : vector<4xf32>
      %791 = vector.multi_reduction <add>, %788, %cst_416 [1] : vector<4x32xf32> to vector<4xf32>
      %792 = vector.shape_cast %791 : vector<4xf32> to vector<4x1xf32>
      %cst_417 = arith.constant 3.200000e+01 : f32
      %793 = vector.broadcast %cst_417 : f32 to vector<4x1xf32>
      %794 = arith.divf %792, %793 : vector<4x1xf32>
      %795 = vector.broadcast %794 : vector<4x1xf32> to vector<4x32xf32>
      %796 = arith.subf %788, %795 : vector<4x32xf32>
      %797 = arith.mulf %796, %796 : vector<4x32xf32>
      %cst_418 = arith.constant dense<0.000000e+00> : vector<4xf32>
      %798 = vector.multi_reduction <add>, %797, %cst_418 [1] : vector<4x32xf32> to vector<4xf32>
      %799 = vector.shape_cast %798 : vector<4xf32> to vector<4x1xf32>
      %cst_419 = arith.constant 3.200000e+01 : f32
      %800 = vector.broadcast %cst_419 : f32 to vector<4x1xf32>
      %801 = arith.divf %799, %800 : vector<4x1xf32>
      %802 = vector.broadcast %794 : vector<4x1xf32> to vector<4x32xf32>
      %803 = arith.subf %788, %802 : vector<4x32xf32>
      %cst_420 = arith.constant 9.99999997E-7 : f32
      %804 = vector.broadcast %cst_420 : f32 to vector<4x1xf32>
      %805 = arith.addf %801, %804 : vector<4x1xf32>
      %806 = math.rsqrt %805 : vector<4x1xf32>
      %807 = vector.broadcast %806 : vector<4x1xf32> to vector<4x32xf32>
      %808 = arith.mulf %803, %807 : vector<4x32xf32>
      %809 = vector.extract_strided_slice %790 {offsets = [0, 0], sizes = [1, 32], strides = [1, 1]} : vector<2x32xf32> to vector<1x32xf32>
      %810 = vector.broadcast %809 : vector<1x32xf32> to vector<4x32xf32>
      %811 = arith.mulf %808, %810 : vector<4x32xf32>
      %812 = vector.extract_strided_slice %790 {offsets = [1, 0], sizes = [1, 32], strides = [1, 1]} : vector<2x32xf32> to vector<1x32xf32>
      %813 = vector.broadcast %812 : vector<1x32xf32> to vector<4x32xf32>
      %814 = arith.addf %811, %813 : vector<4x32xf32>
      %815 = tpu.concatenate %787, %814 in 1 : vector<4x32xf32>, vector<4x32xf32> -> vector<4x64xf32>
      %816 = arith.truncf %815 : vector<4x64xf32> to vector<4x64xbf16>
      %c1_421 = arith.constant 1 : index
      %c0_422 = arith.constant 0 : index
      %c0_423 = arith.constant 0 : index
      %c0_424 = arith.constant 0 : index
      %817 = vector.load %arg20[%c1_421, %c0_422, %c0_423, %c0_424] : memref<2x2x64x32xbf16, #tpu.memory_space<vmem>>, vector<1x1x64x32xbf16>
      %818 = vector.shape_cast %817 : vector<1x1x64x32xbf16> to vector<64x32xbf16>
      %cst_425 = arith.constant dense<0.000000e+00> : vector<4x32xf32>
      %819 = tpu.matmul %816, %818, %cst_425 {dimension_numbers = #tpu.dot_dimension_numbers<[1], [0], [0], [1], [0, 0, 1, 1], [], []>} : vector<4x64xbf16>, vector<64x32xbf16>, vector<4x32xf32> -> vector<4x32xf32>
      %c1_426 = arith.constant 1 : index
      %c0_427 = arith.constant 0 : index
      %c0_428 = arith.constant 0 : index
      %c0_429 = arith.constant 0 : index
      %820 = vector.load %arg21[%c1_426, %c0_427, %c0_428, %c0_429] : memref<2x2x64x32xbf16, #tpu.memory_space<vmem>>, vector<1x1x64x32xbf16>
      %821 = vector.shape_cast %820 : vector<1x1x64x32xbf16> to vector<64x32xbf16>
      %cst_430 = arith.constant dense<0.000000e+00> : vector<4x32xf32>
      %822 = tpu.matmul %5, %821, %cst_430 {dimension_numbers = #tpu.dot_dimension_numbers<[1], [0], [0], [1], [0, 0, 1, 1], [], []>} : vector<4x64xbf16>, vector<64x32xbf16>, vector<4x32xf32> -> vector<4x32xf32>
      %c1_431 = arith.constant 1 : index
      %c0_432 = arith.constant 0 : index
      %c0_433 = arith.constant 0 : index
      %c0_434 = arith.constant 0 : index
      %823 = vector.load %arg22[%c1_431, %c0_432, %c0_433, %c0_434] : memref<2x2x64x64xbf16, #tpu.memory_space<vmem>>, vector<1x1x64x64xbf16>
      %824 = vector.shape_cast %823 : vector<1x1x64x64xbf16> to vector<64x64xbf16>
      %cst_435 = arith.constant dense<0.000000e+00> : vector<4x64xf32>
      %825 = tpu.matmul %5, %824, %cst_435 {dimension_numbers = #tpu.dot_dimension_numbers<[1], [0], [0], [1], [0, 0, 1, 1], [], []>} : vector<4x64xbf16>, vector<64x64xbf16>, vector<4x64xf32> -> vector<4x64xf32>
      %826 = arith.truncf %819 : vector<4x32xf32> to vector<4x32xbf16>
      %827 = arith.truncf %822 : vector<4x32xf32> to vector<4x32xbf16>
      %cst_436 = arith.constant dense<0.000000e+00> : vector<4x4xf32>
      %828 = tpu.matmul %826, %827, %cst_436 {dimension_numbers = #tpu.dot_dimension_numbers<[1], [1], [0], [0], [0, 0, 1, 0], [], []>} : vector<4x32xbf16>, vector<4x32xbf16>, vector<4x4xf32> -> vector<4x4xf32>
      %cst_437 = arith.constant 0.0883883461 : f32
      %829 = vector.broadcast %cst_437 : f32 to vector<4x4xf32>
      %830 = arith.mulf %828, %829 : vector<4x4xf32>
      %cst_438 = arith.constant dense<0xFF800000> : vector<4xf32>
      %831 = vector.multi_reduction <maximumf>, %830, %cst_438 [1] : vector<4x4xf32> to vector<4xf32>
      %832 = vector.shape_cast %831 : vector<4xf32> to vector<4x1xf32>
      %833 = vector.broadcast %832 : vector<4x1xf32> to vector<4x4xf32>
      %834 = arith.subf %830, %833 : vector<4x4xf32>
      %835 = math.exp %834 : vector<4x4xf32>
      %cst_439 = arith.constant dense<0.000000e+00> : vector<4xf32>
      %836 = vector.multi_reduction <add>, %835, %cst_439 [1] : vector<4x4xf32> to vector<4xf32>
      %837 = vector.shape_cast %836 : vector<4xf32> to vector<4x1xf32>
      %838 = vector.broadcast %837 : vector<4x1xf32> to vector<4x4xf32>
      %839 = arith.divf %835, %838 : vector<4x4xf32>
      %840 = arith.truncf %839 : vector<4x4xf32> to vector<4x4xbf16>
      %841 = arith.truncf %825 : vector<4x64xf32> to vector<4x64xbf16>
      %cst_440 = arith.constant dense<0.000000e+00> : vector<4x64xf32>
      %842 = tpu.matmul %840, %841, %cst_440 {dimension_numbers = #tpu.dot_dimension_numbers<[1], [0], [0], [1], [0, 0, 1, 1], [], []>} : vector<4x4xbf16>, vector<4x64xbf16>, vector<4x64xf32> -> vector<4x64xf32>
      %c1_441 = arith.constant 1 : index
      %c1_442 = arith.constant 1 : index
      %c0_443 = arith.constant 0 : index
      %c0_444 = arith.constant 0 : index
      %843 = vector.load %arg20[%c1_441, %c1_442, %c0_443, %c0_444] : memref<2x2x64x32xbf16, #tpu.memory_space<vmem>>, vector<1x1x64x32xbf16>
      %844 = vector.shape_cast %843 : vector<1x1x64x32xbf16> to vector<64x32xbf16>
      %cst_445 = arith.constant dense<0.000000e+00> : vector<4x32xf32>
      %845 = tpu.matmul %816, %844, %cst_445 {dimension_numbers = #tpu.dot_dimension_numbers<[1], [0], [0], [1], [0, 0, 1, 1], [], []>} : vector<4x64xbf16>, vector<64x32xbf16>, vector<4x32xf32> -> vector<4x32xf32>
      %c1_446 = arith.constant 1 : index
      %c1_447 = arith.constant 1 : index
      %c0_448 = arith.constant 0 : index
      %c0_449 = arith.constant 0 : index
      %846 = vector.load %arg21[%c1_446, %c1_447, %c0_448, %c0_449] : memref<2x2x64x32xbf16, #tpu.memory_space<vmem>>, vector<1x1x64x32xbf16>
      %847 = vector.shape_cast %846 : vector<1x1x64x32xbf16> to vector<64x32xbf16>
      %cst_450 = arith.constant dense<0.000000e+00> : vector<4x32xf32>
      %848 = tpu.matmul %5, %847, %cst_450 {dimension_numbers = #tpu.dot_dimension_numbers<[1], [0], [0], [1], [0, 0, 1, 1], [], []>} : vector<4x64xbf16>, vector<64x32xbf16>, vector<4x32xf32> -> vector<4x32xf32>
      %c1_451 = arith.constant 1 : index
      %c1_452 = arith.constant 1 : index
      %c0_453 = arith.constant 0 : index
      %c0_454 = arith.constant 0 : index
      %849 = vector.load %arg22[%c1_451, %c1_452, %c0_453, %c0_454] : memref<2x2x64x64xbf16, #tpu.memory_space<vmem>>, vector<1x1x64x64xbf16>
      %850 = vector.shape_cast %849 : vector<1x1x64x64xbf16> to vector<64x64xbf16>
      %cst_455 = arith.constant dense<0.000000e+00> : vector<4x64xf32>
      %851 = tpu.matmul %5, %850, %cst_455 {dimension_numbers = #tpu.dot_dimension_numbers<[1], [0], [0], [1], [0, 0, 1, 1], [], []>} : vector<4x64xbf16>, vector<64x64xbf16>, vector<4x64xf32> -> vector<4x64xf32>
      %852 = arith.truncf %845 : vector<4x32xf32> to vector<4x32xbf16>
      %853 = arith.truncf %848 : vector<4x32xf32> to vector<4x32xbf16>
      %cst_456 = arith.constant dense<0.000000e+00> : vector<4x4xf32>
      %854 = tpu.matmul %852, %853, %cst_456 {dimension_numbers = #tpu.dot_dimension_numbers<[1], [1], [0], [0], [0, 0, 1, 0], [], []>} : vector<4x32xbf16>, vector<4x32xbf16>, vector<4x4xf32> -> vector<4x4xf32>
      %cst_457 = arith.constant 0.0883883461 : f32
      %855 = vector.broadcast %cst_457 : f32 to vector<4x4xf32>
      %856 = arith.mulf %854, %855 : vector<4x4xf32>
      %cst_458 = arith.constant dense<0xFF800000> : vector<4xf32>
      %857 = vector.multi_reduction <maximumf>, %856, %cst_458 [1] : vector<4x4xf32> to vector<4xf32>
      %858 = vector.shape_cast %857 : vector<4xf32> to vector<4x1xf32>
      %859 = vector.broadcast %858 : vector<4x1xf32> to vector<4x4xf32>
      %860 = arith.subf %856, %859 : vector<4x4xf32>
      %861 = math.exp %860 : vector<4x4xf32>
      %cst_459 = arith.constant dense<0.000000e+00> : vector<4xf32>
      %862 = vector.multi_reduction <add>, %861, %cst_459 [1] : vector<4x4xf32> to vector<4xf32>
      %863 = vector.shape_cast %862 : vector<4xf32> to vector<4x1xf32>
      %864 = vector.broadcast %863 : vector<4x1xf32> to vector<4x4xf32>
      %865 = arith.divf %861, %864 : vector<4x4xf32>
      %866 = arith.truncf %865 : vector<4x4xf32> to vector<4x4xbf16>
      %867 = arith.truncf %851 : vector<4x64xf32> to vector<4x64xbf16>
      %cst_460 = arith.constant dense<0.000000e+00> : vector<4x64xf32>
      %868 = tpu.matmul %866, %867, %cst_460 {dimension_numbers = #tpu.dot_dimension_numbers<[1], [0], [0], [1], [0, 0, 1, 1], [], []>} : vector<4x4xbf16>, vector<4x64xbf16>, vector<4x64xf32> -> vector<4x64xf32>
      %869 = tpu.concatenate %842, %868 in 1 : vector<4x64xf32>, vector<4x64xf32> -> vector<4x128xf32>
      %870 = arith.truncf %869 : vector<4x128xf32> to vector<4x128xbf16>
      %c1_461 = arith.constant 1 : index
      %c0_462 = arith.constant 0 : index
      %c0_463 = arith.constant 0 : index
      %871 = vector.load %arg23[%c1_461, %c0_462, %c0_463] : memref<2x128x64xbf16, #tpu.memory_space<vmem>>, vector<1x128x64xbf16>
      %872 = vector.shape_cast %871 : vector<1x128x64xbf16> to vector<128x64xbf16>
      %cst_464 = arith.constant dense<0.000000e+00> : vector<4x64xf32>
      %873 = tpu.matmul %870, %872, %cst_464 {dimension_numbers = #tpu.dot_dimension_numbers<[1], [0], [0], [1], [0, 0, 1, 1], [], []>} : vector<4x128xbf16>, vector<128x64xbf16>, vector<4x64xf32> -> vector<4x64xf32>
      %874 = arith.extf %816 : vector<4x64xbf16> to vector<4x64xf32>
      %875 = arith.addf %873, %874 : vector<4x64xf32>
      %876 = vector.extract_strided_slice %875 {offsets = [0, 0], sizes = [4, 32], strides = [1, 1]} : vector<4x64xf32> to vector<4x32xf32>
      %c1_465 = arith.constant 1 : index
      %c0_466 = arith.constant 0 : index
      %c0_467 = arith.constant 0 : index
      %c0_468 = arith.constant 0 : index
      %877 = vector.load %arg24[%c1_465, %c0_466, %c0_467, %c0_468] : memref<2x2x2x32xf32, #tpu.memory_space<vmem>>, vector<1x1x2x32xf32>
      %878 = vector.shape_cast %877 : vector<1x1x2x32xf32> to vector<2x32xf32>
      %cst_469 = arith.constant dense<0.000000e+00> : vector<4xf32>
      %879 = vector.multi_reduction <add>, %876, %cst_469 [1] : vector<4x32xf32> to vector<4xf32>
      %880 = vector.shape_cast %879 : vector<4xf32> to vector<4x1xf32>
      %cst_470 = arith.constant 3.200000e+01 : f32
      %881 = vector.broadcast %cst_470 : f32 to vector<4x1xf32>
      %882 = arith.divf %880, %881 : vector<4x1xf32>
      %883 = vector.broadcast %882 : vector<4x1xf32> to vector<4x32xf32>
      %884 = arith.subf %876, %883 : vector<4x32xf32>
      %885 = arith.mulf %884, %884 : vector<4x32xf32>
      %cst_471 = arith.constant dense<0.000000e+00> : vector<4xf32>
      %886 = vector.multi_reduction <add>, %885, %cst_471 [1] : vector<4x32xf32> to vector<4xf32>
      %887 = vector.shape_cast %886 : vector<4xf32> to vector<4x1xf32>
      %cst_472 = arith.constant 3.200000e+01 : f32
      %888 = vector.broadcast %cst_472 : f32 to vector<4x1xf32>
      %889 = arith.divf %887, %888 : vector<4x1xf32>
      %890 = vector.broadcast %882 : vector<4x1xf32> to vector<4x32xf32>
      %891 = arith.subf %876, %890 : vector<4x32xf32>
      %cst_473 = arith.constant 9.99999997E-7 : f32
      %892 = vector.broadcast %cst_473 : f32 to vector<4x1xf32>
      %893 = arith.addf %889, %892 : vector<4x1xf32>
      %894 = math.rsqrt %893 : vector<4x1xf32>
      %895 = vector.broadcast %894 : vector<4x1xf32> to vector<4x32xf32>
      %896 = arith.mulf %891, %895 : vector<4x32xf32>
      %897 = vector.extract_strided_slice %878 {offsets = [0, 0], sizes = [1, 32], strides = [1, 1]} : vector<2x32xf32> to vector<1x32xf32>
      %898 = vector.broadcast %897 : vector<1x32xf32> to vector<4x32xf32>
      %899 = arith.mulf %896, %898 : vector<4x32xf32>
      %900 = vector.extract_strided_slice %878 {offsets = [1, 0], sizes = [1, 32], strides = [1, 1]} : vector<2x32xf32> to vector<1x32xf32>
      %901 = vector.broadcast %900 : vector<1x32xf32> to vector<4x32xf32>
      %902 = arith.addf %899, %901 : vector<4x32xf32>
      %903 = vector.extract_strided_slice %875 {offsets = [0, 32], sizes = [4, 32], strides = [1, 1]} : vector<4x64xf32> to vector<4x32xf32>
      %c1_474 = arith.constant 1 : index
      %c1_475 = arith.constant 1 : index
      %c0_476 = arith.constant 0 : index
      %c0_477 = arith.constant 0 : index
      %904 = vector.load %arg24[%c1_474, %c1_475, %c0_476, %c0_477] : memref<2x2x2x32xf32, #tpu.memory_space<vmem>>, vector<1x1x2x32xf32>
      %905 = vector.shape_cast %904 : vector<1x1x2x32xf32> to vector<2x32xf32>
      %cst_478 = arith.constant dense<0.000000e+00> : vector<4xf32>
      %906 = vector.multi_reduction <add>, %903, %cst_478 [1] : vector<4x32xf32> to vector<4xf32>
      %907 = vector.shape_cast %906 : vector<4xf32> to vector<4x1xf32>
      %cst_479 = arith.constant 3.200000e+01 : f32
      %908 = vector.broadcast %cst_479 : f32 to vector<4x1xf32>
      %909 = arith.divf %907, %908 : vector<4x1xf32>
      %910 = vector.broadcast %909 : vector<4x1xf32> to vector<4x32xf32>
      %911 = arith.subf %903, %910 : vector<4x32xf32>
      %912 = arith.mulf %911, %911 : vector<4x32xf32>
      %cst_480 = arith.constant dense<0.000000e+00> : vector<4xf32>
      %913 = vector.multi_reduction <add>, %912, %cst_480 [1] : vector<4x32xf32> to vector<4xf32>
      %914 = vector.shape_cast %913 : vector<4xf32> to vector<4x1xf32>
      %cst_481 = arith.constant 3.200000e+01 : f32
      %915 = vector.broadcast %cst_481 : f32 to vector<4x1xf32>
      %916 = arith.divf %914, %915 : vector<4x1xf32>
      %917 = vector.broadcast %909 : vector<4x1xf32> to vector<4x32xf32>
      %918 = arith.subf %903, %917 : vector<4x32xf32>
      %cst_482 = arith.constant 9.99999997E-7 : f32
      %919 = vector.broadcast %cst_482 : f32 to vector<4x1xf32>
      %920 = arith.addf %916, %919 : vector<4x1xf32>
      %921 = math.rsqrt %920 : vector<4x1xf32>
      %922 = vector.broadcast %921 : vector<4x1xf32> to vector<4x32xf32>
      %923 = arith.mulf %918, %922 : vector<4x32xf32>
      %924 = vector.extract_strided_slice %905 {offsets = [0, 0], sizes = [1, 32], strides = [1, 1]} : vector<2x32xf32> to vector<1x32xf32>
      %925 = vector.broadcast %924 : vector<1x32xf32> to vector<4x32xf32>
      %926 = arith.mulf %923, %925 : vector<4x32xf32>
      %927 = vector.extract_strided_slice %905 {offsets = [1, 0], sizes = [1, 32], strides = [1, 1]} : vector<2x32xf32> to vector<1x32xf32>
      %928 = vector.broadcast %927 : vector<1x32xf32> to vector<4x32xf32>
      %929 = arith.addf %926, %928 : vector<4x32xf32>
      %930 = tpu.concatenate %902, %929 in 1 : vector<4x32xf32>, vector<4x32xf32> -> vector<4x64xf32>
      %931 = arith.truncf %930 : vector<4x64xf32> to vector<4x64xbf16>
      %c0_483 = arith.constant 0 : index
      %c0_484 = arith.constant 0 : index
      %932 = vector.load %arg25[%c0_483, %c0_484] : memref<64x128xbf16, #tpu.memory_space<vmem>>, vector<64x128xbf16>
      %cst_485 = arith.constant dense<0.000000e+00> : vector<4x128xf32>
      %933 = tpu.matmul %931, %932, %cst_485 {dimension_numbers = #tpu.dot_dimension_numbers<[1], [0], [0], [1], [0, 0, 1, 1], [], []>} : vector<4x64xbf16>, vector<64x128xbf16>, vector<4x128xf32> -> vector<4x128xf32>
      %c0_486 = arith.constant 0 : index
      %c0_487 = arith.constant 0 : index
      %934 = vector.load %arg26[%c0_486, %c0_487] : memref<1x128xf32, #tpu.memory_space<vmem>>, vector<1x128xf32>
      %935 = vector.broadcast %934 : vector<1x128xf32> to vector<4x128xf32>
      %936 = arith.addf %933, %935 : vector<4x128xf32>
      %cst_488 = arith.constant 0.000000e+00 : f32
      %937 = vector.broadcast %cst_488 : f32 to vector<4x128xf32>
      %938 = arith.maximumf %936, %937 : vector<4x128xf32>
      %939 = arith.truncf %938 : vector<4x128xf32> to vector<4x128xbf16>
      %c0_489 = arith.constant 0 : index
      %c0_490 = arith.constant 0 : index
      %940 = vector.load %arg27[%c0_489, %c0_490] : memref<128x64xbf16, #tpu.memory_space<vmem>>, vector<128x64xbf16>
      %cst_491 = arith.constant dense<0.000000e+00> : vector<4x64xf32>
      %941 = tpu.matmul %939, %940, %cst_491 {dimension_numbers = #tpu.dot_dimension_numbers<[1], [0], [0], [1], [0, 0, 1, 1], [], []>} : vector<4x128xbf16>, vector<128x64xbf16>, vector<4x64xf32> -> vector<4x64xf32>
      %c0_492 = arith.constant 0 : index
      %c0_493 = arith.constant 0 : index
      %942 = vector.load %arg28[%c0_492, %c0_493] : memref<1x64xf32, #tpu.memory_space<vmem>>, vector<1x64xf32>
      %943 = vector.broadcast %942 : vector<1x64xf32> to vector<4x64xf32>
      %944 = arith.addf %941, %943 : vector<4x64xf32>
      %945 = arith.extf %931 : vector<4x64xbf16> to vector<4x64xf32>
      %946 = arith.addf %944, %945 : vector<4x64xf32>
      %947 = vector.extract_strided_slice %946 {offsets = [0, 0], sizes = [4, 32], strides = [1, 1]} : vector<4x64xf32> to vector<4x32xf32>
      %c0_494 = arith.constant 0 : index
      %c0_495 = arith.constant 0 : index
      %c0_496 = arith.constant 0 : index
      %948 = vector.load %arg29[%c0_494, %c0_495, %c0_496] : memref<2x2x32xf32, #tpu.memory_space<vmem>>, vector<1x2x32xf32>
      %949 = vector.shape_cast %948 : vector<1x2x32xf32> to vector<2x32xf32>
      %cst_497 = arith.constant dense<0.000000e+00> : vector<4xf32>
      %950 = vector.multi_reduction <add>, %947, %cst_497 [1] : vector<4x32xf32> to vector<4xf32>
      %951 = vector.shape_cast %950 : vector<4xf32> to vector<4x1xf32>
      %cst_498 = arith.constant 3.200000e+01 : f32
      %952 = vector.broadcast %cst_498 : f32 to vector<4x1xf32>
      %953 = arith.divf %951, %952 : vector<4x1xf32>
      %954 = vector.broadcast %953 : vector<4x1xf32> to vector<4x32xf32>
      %955 = arith.subf %947, %954 : vector<4x32xf32>
      %956 = arith.mulf %955, %955 : vector<4x32xf32>
      %cst_499 = arith.constant dense<0.000000e+00> : vector<4xf32>
      %957 = vector.multi_reduction <add>, %956, %cst_499 [1] : vector<4x32xf32> to vector<4xf32>
      %958 = vector.shape_cast %957 : vector<4xf32> to vector<4x1xf32>
      %cst_500 = arith.constant 3.200000e+01 : f32
      %959 = vector.broadcast %cst_500 : f32 to vector<4x1xf32>
      %960 = arith.divf %958, %959 : vector<4x1xf32>
      %961 = vector.broadcast %953 : vector<4x1xf32> to vector<4x32xf32>
      %962 = arith.subf %947, %961 : vector<4x32xf32>
      %cst_501 = arith.constant 9.99999997E-7 : f32
      %963 = vector.broadcast %cst_501 : f32 to vector<4x1xf32>
      %964 = arith.addf %960, %963 : vector<4x1xf32>
      %965 = math.rsqrt %964 : vector<4x1xf32>
      %966 = vector.broadcast %965 : vector<4x1xf32> to vector<4x32xf32>
      %967 = arith.mulf %962, %966 : vector<4x32xf32>
      %968 = vector.extract_strided_slice %949 {offsets = [0, 0], sizes = [1, 32], strides = [1, 1]} : vector<2x32xf32> to vector<1x32xf32>
      %969 = vector.broadcast %968 : vector<1x32xf32> to vector<4x32xf32>
      %970 = arith.mulf %967, %969 : vector<4x32xf32>
      %971 = vector.extract_strided_slice %949 {offsets = [1, 0], sizes = [1, 32], strides = [1, 1]} : vector<2x32xf32> to vector<1x32xf32>
      %972 = vector.broadcast %971 : vector<1x32xf32> to vector<4x32xf32>
      %973 = arith.addf %970, %972 : vector<4x32xf32>
      %974 = vector.extract_strided_slice %946 {offsets = [0, 32], sizes = [4, 32], strides = [1, 1]} : vector<4x64xf32> to vector<4x32xf32>
      %c1_502 = arith.constant 1 : index
      %c0_503 = arith.constant 0 : index
      %c0_504 = arith.constant 0 : index
      %975 = vector.load %arg29[%c1_502, %c0_503, %c0_504] : memref<2x2x32xf32, #tpu.memory_space<vmem>>, vector<1x2x32xf32>
      %976 = vector.shape_cast %975 : vector<1x2x32xf32> to vector<2x32xf32>
      %cst_505 = arith.constant dense<0.000000e+00> : vector<4xf32>
      %977 = vector.multi_reduction <add>, %974, %cst_505 [1] : vector<4x32xf32> to vector<4xf32>
      %978 = vector.shape_cast %977 : vector<4xf32> to vector<4x1xf32>
      %cst_506 = arith.constant 3.200000e+01 : f32
      %979 = vector.broadcast %cst_506 : f32 to vector<4x1xf32>
      %980 = arith.divf %978, %979 : vector<4x1xf32>
      %981 = vector.broadcast %980 : vector<4x1xf32> to vector<4x32xf32>
      %982 = arith.subf %974, %981 : vector<4x32xf32>
      %983 = arith.mulf %982, %982 : vector<4x32xf32>
      %cst_507 = arith.constant dense<0.000000e+00> : vector<4xf32>
      %984 = vector.multi_reduction <add>, %983, %cst_507 [1] : vector<4x32xf32> to vector<4xf32>
      %985 = vector.shape_cast %984 : vector<4xf32> to vector<4x1xf32>
      %cst_508 = arith.constant 3.200000e+01 : f32
      %986 = vector.broadcast %cst_508 : f32 to vector<4x1xf32>
      %987 = arith.divf %985, %986 : vector<4x1xf32>
      %988 = vector.broadcast %980 : vector<4x1xf32> to vector<4x32xf32>
      %989 = arith.subf %974, %988 : vector<4x32xf32>
      %cst_509 = arith.constant 9.99999997E-7 : f32
      %990 = vector.broadcast %cst_509 : f32 to vector<4x1xf32>
      %991 = arith.addf %987, %990 : vector<4x1xf32>
      %992 = math.rsqrt %991 : vector<4x1xf32>
      %993 = vector.broadcast %992 : vector<4x1xf32> to vector<4x32xf32>
      %994 = arith.mulf %989, %993 : vector<4x32xf32>
      %995 = vector.extract_strided_slice %976 {offsets = [0, 0], sizes = [1, 32], strides = [1, 1]} : vector<2x32xf32> to vector<1x32xf32>
      %996 = vector.broadcast %995 : vector<1x32xf32> to vector<4x32xf32>
      %997 = arith.mulf %994, %996 : vector<4x32xf32>
      %998 = vector.extract_strided_slice %976 {offsets = [1, 0], sizes = [1, 32], strides = [1, 1]} : vector<2x32xf32> to vector<1x32xf32>
      %999 = vector.broadcast %998 : vector<1x32xf32> to vector<4x32xf32>
      %1000 = arith.addf %997, %999 : vector<4x32xf32>
      %1001 = tpu.concatenate %973, %1000 in 1 : vector<4x32xf32>, vector<4x32xf32> -> vector<4x64xf32>
      %1002 = arith.truncf %1001 : vector<4x64xf32> to vector<4x64xbf16>
      scf.yield %396, %699, %1002 : vector<2x64xbf16>, vector<2x64xbf16>, vector<4x64xbf16>
    }
    %20 = arith.extf %19#1 : vector<2x64xbf16> to vector<2x64xf32>
    %cst = arith.constant 0.000000e+00 : f32
    %21 = vector.broadcast %cst : f32 to vector<1x64xf32>
    %22 = vector.extract_strided_slice %20 {offsets = [0, 0], sizes = [1, 64], strides = [1, 1]} : vector<2x64xf32> to vector<1x64xf32>
    %23 = vector.extract_strided_slice %20 {offsets = [0, 0], sizes = [1, 64], strides = [1, 1]} : vector<2x64xf32> to vector<1x64xf32>
    %24 = vector.extract_strided_slice %20 {offsets = [1, 0], sizes = [1, 64], strides = [1, 1]} : vector<2x64xf32> to vector<1x64xf32>
    %25 = tpu.concatenate %21, %22, %23, %24 in 0 : vector<1x64xf32>, vector<1x64xf32>, vector<1x64xf32>, vector<1x64xf32> -> vector<4x64xf32>
    %26 = arith.extf %19#0 : vector<2x64xbf16> to vector<2x64xf32>
    %27 = vector.extract_strided_slice %26 {offsets = [0, 0], sizes = [1, 64], strides = [1, 1]} : vector<2x64xf32> to vector<1x64xf32>
    %28 = vector.extract_strided_slice %26 {offsets = [0, 0], sizes = [1, 64], strides = [1, 1]} : vector<2x64xf32> to vector<1x64xf32>
    %29 = vector.extract_strided_slice %26 {offsets = [1, 0], sizes = [1, 64], strides = [1, 1]} : vector<2x64xf32> to vector<1x64xf32>
    %30 = vector.extract_strided_slice %26 {offsets = [1, 0], sizes = [1, 64], strides = [1, 1]} : vector<2x64xf32> to vector<1x64xf32>
    %31 = tpu.concatenate %27, %28, %29, %30 in 0 : vector<1x64xf32>, vector<1x64xf32>, vector<1x64xf32>, vector<1x64xf32> -> vector<4x64xf32>
    %32 = arith.extf %19#2 : vector<4x64xbf16> to vector<4x64xf32>
    %33 = tpu.concatenate %31, %25, %32 in 1 : vector<4x64xf32>, vector<4x64xf32>, vector<4x64xf32> -> vector<4x192xf32>
    %34 = arith.truncf %33 : vector<4x192xf32> to vector<4x192xbf16>
    %c0_26 = arith.constant 0 : index
    %c0_27 = arith.constant 0 : index
    %35 = vector.load %arg30[%c0_26, %c0_27] : memref<192x192xbf16, #tpu.memory_space<vmem>>, vector<192x192xbf16>
    %cst_28 = arith.constant dense<0.000000e+00> : vector<4x192xf32>
    %36 = tpu.matmul %34, %35, %cst_28 {dimension_numbers = #tpu.dot_dimension_numbers<[1], [0], [0], [1], [0, 0, 1, 1], [], []>} : vector<4x192xbf16>, vector<192x192xbf16>, vector<4x192xf32> -> vector<4x192xf32>
    %c0_29 = arith.constant 0 : index
    %c0_30 = arith.constant 0 : index
    %37 = vector.load %arg31[%c0_29, %c0_30] : memref<192x192xbf16, #tpu.memory_space<vmem>>, vector<192x192xbf16>
    %cst_31 = arith.constant dense<0.000000e+00> : vector<4x192xf32>
    %38 = tpu.matmul %34, %37, %cst_31 {dimension_numbers = #tpu.dot_dimension_numbers<[1], [0], [0], [1], [0, 0, 1, 1], [], []>} : vector<4x192xbf16>, vector<192x192xbf16>, vector<4x192xf32> -> vector<4x192xf32>
    %cst_32 = arith.constant 0.000000e+00 : f32
    %39 = vector.broadcast %cst_32 : f32 to vector<4x192xf32>
    %40 = arith.subf %39, %38 : vector<4x192xf32>
    %41 = math.exp %40 : vector<4x192xf32>
    %cst_33 = arith.constant 1.000000e+00 : f32
    %42 = vector.broadcast %cst_33 : f32 to vector<4x192xf32>
    %43 = arith.addf %42, %41 : vector<4x192xf32>
    %cst_34 = arith.constant 1.000000e+00 : f32
    %44 = vector.broadcast %cst_34 : f32 to vector<4x192xf32>
    %45 = arith.divf %44, %43 : vector<4x192xf32>
    %46 = math.tanh %36 : vector<4x192xf32>
    %47 = arith.mulf %45, %46 : vector<4x192xf32>
    %c0_35 = arith.constant 0 : index
    %c0_36 = arith.constant 0 : index
    %c0_37 = arith.constant 0 : index
    %48 = vector.load %arg32[%c0_35, %c0_36, %c0_37] : memref<6x4x32xf32, #tpu.memory_space<vmem>>, vector<1x4x32xf32>
    %49 = vector.shape_cast %48 : vector<1x4x32xf32> to vector<4x32xf32>
    %50 = vector.extract_strided_slice %47 {offsets = [0, 0], sizes = [4, 32], strides = [1, 1]} : vector<4x192xf32> to vector<4x32xf32>
    %51 = arith.mulf %49, %50 : vector<4x32xf32>
    %c2 = arith.constant 2 : index
    %c0_38 = arith.constant 0 : index
    %c0_39 = arith.constant 0 : index
    %52 = vector.load %arg32[%c2, %c0_38, %c0_39] : memref<6x4x32xf32, #tpu.memory_space<vmem>>, vector<1x4x32xf32>
    %53 = vector.shape_cast %52 : vector<1x4x32xf32> to vector<4x32xf32>
    %54 = vector.extract_strided_slice %47 {offsets = [0, 64], sizes = [4, 32], strides = [1, 1]} : vector<4x192xf32> to vector<4x32xf32>
    %55 = arith.mulf %53, %54 : vector<4x32xf32>
    %56 = arith.addf %51, %55 : vector<4x32xf32>
    %c4 = arith.constant 4 : index
    %c0_40 = arith.constant 0 : index
    %c0_41 = arith.constant 0 : index
    %57 = vector.load %arg32[%c4, %c0_40, %c0_41] : memref<6x4x32xf32, #tpu.memory_space<vmem>>, vector<1x4x32xf32>
    %58 = vector.shape_cast %57 : vector<1x4x32xf32> to vector<4x32xf32>
    %59 = vector.extract_strided_slice %47 {offsets = [0, 128], sizes = [4, 32], strides = [1, 1]} : vector<4x192xf32> to vector<4x32xf32>
    %60 = arith.mulf %58, %59 : vector<4x32xf32>
    %61 = arith.addf %56, %60 : vector<4x32xf32>
    %cst_42 = arith.constant 0.000000e+00 : f32
    %62 = vector.broadcast %cst_42 : f32 to vector<4x32xf32>
    %63 = arith.subf %62, %61 : vector<4x32xf32>
    %64 = math.exp %63 : vector<4x32xf32>
    %cst_43 = arith.constant 1.000000e+00 : f32
    %65 = vector.broadcast %cst_43 : f32 to vector<4x32xf32>
    %66 = arith.addf %65, %64 : vector<4x32xf32>
    %cst_44 = arith.constant 1.000000e+00 : f32
    %67 = vector.broadcast %cst_44 : f32 to vector<4x32xf32>
    %68 = arith.divf %67, %66 : vector<4x32xf32>
    %c1 = arith.constant 1 : index
    %c0_45 = arith.constant 0 : index
    %c0_46 = arith.constant 0 : index
    %69 = vector.load %arg32[%c1, %c0_45, %c0_46] : memref<6x4x32xf32, #tpu.memory_space<vmem>>, vector<1x4x32xf32>
    %70 = vector.shape_cast %69 : vector<1x4x32xf32> to vector<4x32xf32>
    %71 = vector.extract_strided_slice %47 {offsets = [0, 32], sizes = [4, 32], strides = [1, 1]} : vector<4x192xf32> to vector<4x32xf32>
    %72 = arith.mulf %70, %71 : vector<4x32xf32>
    %c3 = arith.constant 3 : index
    %c0_47 = arith.constant 0 : index
    %c0_48 = arith.constant 0 : index
    %73 = vector.load %arg32[%c3, %c0_47, %c0_48] : memref<6x4x32xf32, #tpu.memory_space<vmem>>, vector<1x4x32xf32>
    %74 = vector.shape_cast %73 : vector<1x4x32xf32> to vector<4x32xf32>
    %75 = vector.extract_strided_slice %47 {offsets = [0, 96], sizes = [4, 32], strides = [1, 1]} : vector<4x192xf32> to vector<4x32xf32>
    %76 = arith.mulf %74, %75 : vector<4x32xf32>
    %77 = arith.addf %72, %76 : vector<4x32xf32>
    %c5 = arith.constant 5 : index
    %c0_49 = arith.constant 0 : index
    %c0_50 = arith.constant 0 : index
    %78 = vector.load %arg32[%c5, %c0_49, %c0_50] : memref<6x4x32xf32, #tpu.memory_space<vmem>>, vector<1x4x32xf32>
    %79 = vector.shape_cast %78 : vector<1x4x32xf32> to vector<4x32xf32>
    %80 = vector.extract_strided_slice %47 {offsets = [0, 160], sizes = [4, 32], strides = [1, 1]} : vector<4x192xf32> to vector<4x32xf32>
    %81 = arith.mulf %79, %80 : vector<4x32xf32>
    %82 = arith.addf %77, %81 : vector<4x32xf32>
    %cst_51 = arith.constant 0.000000e+00 : f32
    %83 = vector.broadcast %cst_51 : f32 to vector<4x32xf32>
    %84 = arith.subf %83, %82 : vector<4x32xf32>
    %85 = math.exp %84 : vector<4x32xf32>
    %cst_52 = arith.constant 1.000000e+00 : f32
    %86 = vector.broadcast %cst_52 : f32 to vector<4x32xf32>
    %87 = arith.addf %86, %85 : vector<4x32xf32>
    %cst_53 = arith.constant 1.000000e+00 : f32
    %88 = vector.broadcast %cst_53 : f32 to vector<4x32xf32>
    %89 = arith.divf %88, %87 : vector<4x32xf32>
    %90 = tpu.concatenate %68, %89 in 1 : vector<4x32xf32>, vector<4x32xf32> -> vector<4x64xf32>
    %c0_54 = arith.constant 0 : index
    %c0_55 = arith.constant 0 : index
    %c0_56 = arith.constant 0 : index
    %91 = vector.load %arg33[%c0_54, %c0_55, %c0_56] : memref<1x4x64xf32, #tpu.memory_space<vmem>>, vector<1x4x64xf32>
    %92 = vector.shape_cast %91 : vector<1x4x64xf32> to vector<4x64xf32>
    %93 = vector.shape_cast %90 : vector<4x64xf32> to vector<1x4x64xf32>
    tpu.vector_store %arg33[%c0_54, %c0_55, %c0_56], %93 {strides = array<i32>} : memref<1x4x64xf32, #tpu.memory_space<vmem>>, vector<1x4x64xf32>,
    return
  }
  func.func @transform_0(%arg0: i32) -> (i32, i32, i32) {
    %c0_i32 = arith.constant 0 : i32
    %c0_i32_0 = arith.constant 0 : i32
    %c0_i32_1 = arith.constant 0 : i32
    return %arg0, %c0_i32, %c0_i32_0 : i32, i32, i32
  }
  func.func @transform_1(%arg0: i32) -> (i32, i32, i32) {
    %c0_i32 = arith.constant 0 : i32
    %c0_i32_0 = arith.constant 0 : i32
    %c0_i32_1 = arith.constant 0 : i32
    return %arg0, %c0_i32, %c0_i32_0 : i32, i32, i32
  }
  func.func @transform_2(%arg0: i32) -> (i32, i32, i32) {
    %c0_i32 = arith.constant 0 : i32
    %c0_i32_0 = arith.constant 0 : i32
    %c0_i32_1 = arith.constant 0 : i32
    return %arg0, %c0_i32, %c0_i32_0 : i32, i32, i32
  }
  func.func @transform_3(%arg0: i32) -> (i32, i32, i32) {
    %c0_i32 = arith.constant 0 : i32
    %c0_i32_0 = arith.constant 0 : i32
    %c0_i32_1 = arith.constant 0 : i32
    return %arg0, %c0_i32, %c0_i32_0 : i32, i32, i32
  }
  func.func @transform_4(%arg0: i32) -> (i32, i32, i32) {
    %c0_i32 = arith.constant 0 : i32
    %c0_i32_0 = arith.constant 0 : i32
    %c0_i32_1 = arith.constant 0 : i32
    return %arg0, %c0_i32, %c0_i32_0 : i32, i32, i32
  }
  func.func @transform_5(%arg0: i32) -> (i32, i32, i32) {
    %c0_i32 = arith.constant 0 : i32
    %c0_i32_0 = arith.constant 0 : i32
    %c0_i32_1 = arith.constant 0 : i32
    return %arg0, %c0_i32, %c0_i32_0 : i32, i32, i32
  }
  func.func @transform_6(%arg0: i32) -> (i32, i32, i32) {
    %c0_i32 = arith.constant 0 : i32
    %c0_i32_0 = arith.constant 0 : i32
    %c0_i32_1 = arith.constant 0 : i32
    return %arg0, %c0_i32, %c0_i32_0 : i32, i32, i32
  }
  func.func @transform_7(%arg0: i32) -> (i32, i32, i32) {
    %c0_i32 = arith.constant 0 : i32
    %c0_i32_0 = arith.constant 0 : i32
    %c0_i32_1 = arith.constant 0 : i32
    return %arg0, %c0_i32, %c0_i32_0 : i32, i32, i32
  }
  func.func @transform_8(%arg0: i32) -> (i32, i32, i32) {
    %c0_i32 = arith.constant 0 : i32
    %c0_i32_0 = arith.constant 0 : i32
    %c0_i32_1 = arith.constant 0 : i32
    return %arg0, %c0_i32, %c0_i32_0 : i32, i32, i32
  }
  func.func @transform_9(%arg0: i32) -> (i32, i32, i32, i32) {
    %c0_i32 = arith.constant 0 : i32
    %c0_i32_0 = arith.constant 0 : i32
    %c0_i32_1 = arith.constant 0 : i32
    %c0_i32_2 = arith.constant 0 : i32
    %c0_i32_3 = arith.constant 0 : i32
    return %c0_i32, %c0_i32_0, %c0_i32_1, %c0_i32_2 : i32, i32, i32, i32
  }
  func.func @transform_10(%arg0: i32) -> (i32, i32, i32, i32) {
    %c0_i32 = arith.constant 0 : i32
    %c0_i32_0 = arith.constant 0 : i32
    %c0_i32_1 = arith.constant 0 : i32
    %c0_i32_2 = arith.constant 0 : i32
    %c0_i32_3 = arith.constant 0 : i32
    return %c0_i32, %c0_i32_0, %c0_i32_1, %c0_i32_2 : i32, i32, i32, i32
  }
  func.func @transform_11(%arg0: i32) -> (i32, i32, i32, i32) {
    %c0_i32 = arith.constant 0 : i32
    %c0_i32_0 = arith.constant 0 : i32
    %c0_i32_1 = arith.constant 0 : i32
    %c0_i32_2 = arith.constant 0 : i32
    %c0_i32_3 = arith.constant 0 : i32
    return %c0_i32, %c0_i32_0, %c0_i32_1, %c0_i32_2 : i32, i32, i32, i32
  }
  func.func @transform_12(%arg0: i32) -> (i32, i32, i32) {
    %c0_i32 = arith.constant 0 : i32
    %c0_i32_0 = arith.constant 0 : i32
    %c0_i32_1 = arith.constant 0 : i32
    %c0_i32_2 = arith.constant 0 : i32
    return %c0_i32, %c0_i32_0, %c0_i32_1 : i32, i32, i32
  }
  func.func @transform_13(%arg0: i32) -> (i32, i32, i32, i32) {
    %c0_i32 = arith.constant 0 : i32
    %c0_i32_0 = arith.constant 0 : i32
    %c0_i32_1 = arith.constant 0 : i32
    %c0_i32_2 = arith.constant 0 : i32
    %c0_i32_3 = arith.constant 0 : i32
    return %c0_i32, %c0_i32_0, %c0_i32_1, %c0_i32_2 : i32, i32, i32, i32
  }
  func.func @transform_14(%arg0: i32) -> (i32, i32) {
    %c0_i32 = arith.constant 0 : i32
    %c0_i32_0 = arith.constant 0 : i32
    %c0_i32_1 = arith.constant 0 : i32
    return %c0_i32, %c0_i32_0 : i32, i32
  }
  func.func @transform_15(%arg0: i32) -> (i32, i32) {
    %c0_i32 = arith.constant 0 : i32
    %c0_i32_0 = arith.constant 0 : i32
    %c0_i32_1 = arith.constant 0 : i32
    return %c0_i32, %c0_i32_0 : i32, i32
  }
  func.func @transform_16(%arg0: i32) -> (i32, i32) {
    %c0_i32 = arith.constant 0 : i32
    %c0_i32_0 = arith.constant 0 : i32
    %c0_i32_1 = arith.constant 0 : i32
    return %c0_i32, %c0_i32_0 : i32, i32
  }
  func.func @transform_17(%arg0: i32) -> (i32, i32) {
    %c0_i32 = arith.constant 0 : i32
    %c0_i32_0 = arith.constant 0 : i32
    %c0_i32_1 = arith.constant 0 : i32
    return %c0_i32, %c0_i32_0 : i32, i32
  }
  func.func @transform_18(%arg0: i32) -> (i32, i32, i32) {
    %c0_i32 = arith.constant 0 : i32
    %c0_i32_0 = arith.constant 0 : i32
    %c0_i32_1 = arith.constant 0 : i32
    %c0_i32_2 = arith.constant 0 : i32
    return %c0_i32, %c0_i32_0, %c0_i32_1 : i32, i32, i32
  }
  func.func @transform_19(%arg0: i32) -> (i32, i32, i32, i32) {
    %c0_i32 = arith.constant 0 : i32
    %c0_i32_0 = arith.constant 0 : i32
    %c0_i32_1 = arith.constant 0 : i32
    %c0_i32_2 = arith.constant 0 : i32
    %c0_i32_3 = arith.constant 0 : i32
    return %c0_i32, %c0_i32_0, %c0_i32_1, %c0_i32_2 : i32, i32, i32, i32
  }
  func.func @transform_20(%arg0: i32) -> (i32, i32, i32, i32) {
    %c0_i32 = arith.constant 0 : i32
    %c0_i32_0 = arith.constant 0 : i32
    %c0_i32_1 = arith.constant 0 : i32
    %c0_i32_2 = arith.constant 0 : i32
    %c0_i32_3 = arith.constant 0 : i32
    return %c0_i32, %c0_i32_0, %c0_i32_1, %c0_i32_2 : i32, i32, i32, i32
  }
  func.func @transform_21(%arg0: i32) -> (i32, i32, i32, i32) {
    %c0_i32 = arith.constant 0 : i32
    %c0_i32_0 = arith.constant 0 : i32
    %c0_i32_1 = arith.constant 0 : i32
    %c0_i32_2 = arith.constant 0 : i32
    %c0_i32_3 = arith.constant 0 : i32
    return %c0_i32, %c0_i32_0, %c0_i32_1, %c0_i32_2 : i32, i32, i32, i32
  }
  func.func @transform_22(%arg0: i32) -> (i32, i32, i32) {
    %c0_i32 = arith.constant 0 : i32
    %c0_i32_0 = arith.constant 0 : i32
    %c0_i32_1 = arith.constant 0 : i32
    %c0_i32_2 = arith.constant 0 : i32
    return %c0_i32, %c0_i32_0, %c0_i32_1 : i32, i32, i32
  }
  func.func @transform_23(%arg0: i32) -> (i32, i32, i32, i32) {
    %c0_i32 = arith.constant 0 : i32
    %c0_i32_0 = arith.constant 0 : i32
    %c0_i32_1 = arith.constant 0 : i32
    %c0_i32_2 = arith.constant 0 : i32
    %c0_i32_3 = arith.constant 0 : i32
    return %c0_i32, %c0_i32_0, %c0_i32_1, %c0_i32_2 : i32, i32, i32, i32
  }
  func.func @transform_24(%arg0: i32) -> (i32, i32) {
    %c0_i32 = arith.constant 0 : i32
    %c0_i32_0 = arith.constant 0 : i32
    %c0_i32_1 = arith.constant 0 : i32
    return %c0_i32, %c0_i32_0 : i32, i32
  }
  func.func @transform_25(%arg0: i32) -> (i32, i32) {
    %c0_i32 = arith.constant 0 : i32
    %c0_i32_0 = arith.constant 0 : i32
    %c0_i32_1 = arith.constant 0 : i32
    return %c0_i32, %c0_i32_0 : i32, i32
  }
  func.func @transform_26(%arg0: i32) -> (i32, i32) {
    %c0_i32 = arith.constant 0 : i32
    %c0_i32_0 = arith.constant 0 : i32
    %c0_i32_1 = arith.constant 0 : i32
    return %c0_i32, %c0_i32_0 : i32, i32
  }
  func.func @transform_27(%arg0: i32) -> (i32, i32) {
    %c0_i32 = arith.constant 0 : i32
    %c0_i32_0 = arith.constant 0 : i32
    %c0_i32_1 = arith.constant 0 : i32
    return %c0_i32, %c0_i32_0 : i32, i32
  }
  func.func @transform_28(%arg0: i32) -> (i32, i32, i32) {
    %c0_i32 = arith.constant 0 : i32
    %c0_i32_0 = arith.constant 0 : i32
    %c0_i32_1 = arith.constant 0 : i32
    %c0_i32_2 = arith.constant 0 : i32
    return %c0_i32, %c0_i32_0, %c0_i32_1 : i32, i32, i32
  }
  func.func @transform_29(%arg0: i32) -> (i32, i32) {
    %c0_i32 = arith.constant 0 : i32
    %c0_i32_0 = arith.constant 0 : i32
    %c0_i32_1 = arith.constant 0 : i32
    return %c0_i32, %c0_i32_0 : i32, i32
  }
  func.func @transform_30(%arg0: i32) -> (i32, i32) {
    %c0_i32 = arith.constant 0 : i32
    %c0_i32_0 = arith.constant 0 : i32
    %c0_i32_1 = arith.constant 0 : i32
    return %c0_i32, %c0_i32_0 : i32, i32
  }
  func.func @transform_31(%arg0: i32) -> (i32, i32, i32) {
    %c0_i32 = arith.constant 0 : i32
    %c0_i32_0 = arith.constant 0 : i32
    %c0_i32_1 = arith.constant 0 : i32
    %c0_i32_2 = arith.constant 0 : i32
    return %c0_i32, %c0_i32_0, %c0_i32_1 : i32, i32, i32
  }
  func.func @transform_32(%arg0: i32) -> (i32, i32, i32) {
    %c0_i32 = arith.constant 0 : i32
    %c0_i32_0 = arith.constant 0 : i32
    %c0_i32_1 = arith.constant 0 : i32
    return %arg0, %c0_i32, %c0_i32_0 : i32, i32, i32
  }
}

</mosaic_0001>

<bundles_post_ra>
// kernel: _lambda_.1
= control target key start
LH: loop header
LB: loop body
LE: loop exit
PB: predicated region body
PF: predicated region fallthrough
CT: control target
= control target key end

     0   :  { %s8962_s6 = smov 1   ;;  %s8963_s10 = smov 2   ;;  %s10510_s0 = inlined_call_operand.smem [shape: u32[33], index: -1, kind: input, shape index: {}] }
   0x1   :  { %s9010_s5 = sld [smem:[%s10510_s0]]   ;;  %s8964_s14 = smov 3  }
   0x2   :  { %s9015_s9 = sld [smem:[%s10510_s0 + %s8962_s6]]   ;;  %s8965_s18 = smov 4  }
   0x3   :  { %s9020_s13 = sld [smem:[%s10510_s0 + %s8963_s10]]   ;;  %s8966_s22 = smov 5  }
   0x4   :  { %s9025_s17 = sld [smem:[%s10510_s0 + %s8964_s14]]   ;;  %s8967_s26 = smov 6  }
   0x5   :  { %s9030_s21 = sld [smem:[%s10510_s0 + %s8965_s18]]   ;;  %s8968_s30 = smov 7  }
   0x6   :  { %s9035_s25 = sld [smem:[%s10510_s0 + %s8966_s22]]   ;;  %s8969_s4 = smov 8  }
   0x7   :  { %10531 = sst [smem:[#allocation2_spill]] %s9010_s5  ;;  %s8970_s10 = smov 9  }
   0x8   :  { %10532 = sst [smem:[#allocation3_spill]] %s9015_s9  ;;  %s8971_s15 = smov 10  }
   0x9   :  { %s9040_s29 = sld [smem:[%s10510_s0 + %s8967_s26]]   ;;  %s8972_s20 = smov 11  }
   0xa   :  { %s9045_s3 = sld [smem:[%s10510_s0 + %s8968_s30]]   ;;  %s8973_s26 = smov 12  }
   0xb   :  { %s9050_s8 = sld [smem:[%s10510_s0 + %s8969_s4]]   ;;  %s8974_s1 = smov 13  }
   0xc   :  { %s9055_s14 = sld [smem:[%s10510_s0 + %s8970_s10]]   ;;  %s8975_s7 = smov 14  }
   0xd   :  { %s9060_s19 = sld [smem:[%s10510_s0 + %s8971_s15]]   ;;  %s8976_s15 = smov 15  }
   0xe   :  { %s9065_s24 = sld [smem:[%s10510_s0 + %s8972_s20]]   ;;  %s8977_s22 = smov 16  }
   0xf   :  { %s9070_s30 = sld [smem:[%s10510_s0 + %s8973_s26]]   ;;  %s8978_s28 = smov 17  }
  0x10   :  { %10533 = sst [smem:[#allocation4_spill]] %s9045_s3 }
  0x11   :  { %s9075_s6 = sld [smem:[%s10510_s0 + %s8974_s1]]  }
  0x12   :  { %s9080_s12 = sld [smem:[%s10510_s0 + %s8975_s7]]   ;;  %s8979_s7 = smov 18  }
  0x13   :  { %s9085_s20 = sld [smem:[%s10510_s0 + %s8976_s15]]   ;;  %s8980_s15 = smov 19  }
  0x14   :  { %s9090_s27 = sld [smem:[%s10510_s0 + %s8977_s22]]   ;;  %s8981_s22 = smov 20  }
  0x15   :  { %s9095_s4 = sld [smem:[%s10510_s0 + %s8978_s28]]   ;;  %s8982_s28 = smov 21  }
  0x18   :  { %10534 = sst [smem:[#allocation5_spill]] %s9080_s12 }
  0x19   :  { %10535 = sst [smem:[#allocation6_spill]] %s9085_s20 }
  0x1a   :  { %10536 = sst [smem:[#allocation7_spill]] %s9090_s27 }
  0x1b   :  { %10537 = sst [smem:[#allocation8_spill]] %s9095_s4 }
  0x1c   :  { %s9100_s12 = sld [smem:[%s10510_s0 + %s8979_s7]]   ;;  %s8983_s7 = smov 22  }
  0x1d   :  { %s9105_s20 = sld [smem:[%s10510_s0 + %s8980_s15]]   ;;  %s8984_s15 = smov 23  }
  0x1e   :  { %s9110_s27 = sld [smem:[%s10510_s0 + %s8981_s22]]   ;;  %s8985_s22 = smov 24  }
  0x1f   :  { %s9115_s4 = sld [smem:[%s10510_s0 + %s8982_s28]]   ;;  %s8986_s28 = smov 25  }
  0x22   :  { %10538 = sst [smem:[#allocation9_spill]] %s9100_s12 }
  0x23   :  { %10539 = sst [smem:[#allocation10_spill]] %s9105_s20 }
  0x24   :  { %10540 = sst [smem:[#allocation11_spill]] %s9110_s27 }
  0x25   :  { %10541 = sst [smem:[#allocation12_spill]] %s9115_s4 }
  0x26   :  { %s9120_s12 = sld [smem:[%s10510_s0 + %s8983_s7]]   ;;  %s8987_s7 = smov 26  }
  0x27   :  { %s9125_s20 = sld [smem:[%s10510_s0 + %s8984_s15]]   ;;  %s8988_s15 = smov 27  }
  0x28   :  { %s9130_s27 = sld [smem:[%s10510_s0 + %s8985_s22]]   ;;  %s8989_s22 = smov 28  }
  0x29   :  { %s9135_s4 = sld [smem:[%s10510_s0 + %s8986_s28]]   ;;  %s8990_s28 = smov 29  }
  0x2c   :  { %10542 = sst [smem:[#allocation13_spill]] %s9120_s12 }
  0x2d   :  { %10543 = sst [smem:[#allocation14_spill]] %s9125_s20 }
  0x2e   :  { %10544 = sst [smem:[#allocation15_spill]] %s9130_s27 }
  0x2f   :  { %10545 = sst [smem:[#allocation16_spill]] %s9135_s4 }
  0x30   :  { %s9140_s12 = sld [smem:[%s10510_s0 + %s8987_s7]]   ;;  %s8991_s7 = smov 30  }
  0x31   :  { %s9145_s20 = sld [smem:[%s10510_s0 + %s8988_s15]]   ;;  %s8992_s15 = smov 31  }
  0x32   :  { %s9150_s27 = sld [smem:[%s10510_s0 + %s8989_s22]]   ;;  %s8993_s22 = smov 32  }
  0x33   :  { %s9155_s4 = sld [smem:[%s10510_s0 + %s8990_s28]]   ;;  %s9172_s28 = smov 0  }
  0x36   :  { %10546 = sst [smem:[#allocation17_spill]] %s9140_s12 }
  0x37   :  { %10547 = sst [smem:[#allocation18_spill]] %s9145_s20 }
  0x38   :  { %10548 = sst [smem:[#allocation19_spill]] %s9150_s27 }
  0x39   :  { %s9160_s12 = sld [smem:[%s10510_s0 + %s8991_s7]]  }
  0x3a   :  { %s9165_s20 = sld [smem:[%s10510_s0 + %s8992_s15]]  }
  0x3b   :  { %s9170_s27 = sld [smem:[%s10510_s0 + %s8993_s22]]  }
  0x3c LB: > { %s6893_s1 = sadd.s32 4294967295, %s8944_s28   ;;  %p6897_p0 = scmp.ge.s32.totalorder %s8944_s28, 1  ;;  %s8944_s28 = sphi %s9172_s28, %s75_s28  }
  0x3d   : > { %p962_p1 = scmp.lt.s32.totalorder %s8944_s28, 3 }
  0x3f   : > { %p963_p2 = pnand %p6897_p0, %p962_p1 }
  0x41   : > { %966 = sbr.rel (%p963_p2) target bundleno = 16763 (0x417b), region = 148 }
  0x48   : > { %p1070_p3 = scmp.lt.s32.totalorder %s6893_s1, 1  ;;  %s10549_s9 = sld [smem:[#allocation3_spill]] }
  0x49   : > { %s10550_s5 = sld [smem:[#allocation2_spill]]  ;;  %s10551_s3 = sld [smem:[#allocation4_spill]] }
  0x4a   : > { %s10579_s1 = smov (!%p1070_p3, %s6893_s1), 1 }
  0x4b   : > { %s6898_s0 = sshll.u32 %s10579_s1, 1  ;;  %s1079_s10 = scalar_lea.vmem %s9020_s13, %s10579_s1 }
  0x4c   : > { %s1083_s11 = scalar_lea.vmem %s9025_s17, %s6898_s0  ;;  %s1086_s15 = scalar_lea.vmem %s9030_s21, %s10579_s1  ;;  %v1113_v2 = vld [vmem:[%s1079_s10] sm:$0x1]  }
  0x4d   : > { %s1089_s16 = scalar_lea.vmem %s9035_s25, %s10579_s1  ;;  %s6900_s18 = sshll.u32 %s10579_s1, 2  ;;  %v9186_v3 = vld [vmem:[%s1083_s11] sm:$0x3] }
  0x4e   : > { %s1076_s2 = scalar_lea.vmem %s10549_s9, %s10579_s1  ;;  %v9188_v4 = vld [vmem:[%s1086_s15] sm:$0x1]  ;;  %s1093_s22 = scalar_lea.vmem %s9040_s29, %s6900_s18 }
  0x4f   : > { %s1073_s7 = scalar_lea.vmem %s10550_s5, %s6898_s0  ;;  %v1108_v0 = vld [vmem:[%s1076_s2] sm:$0x1]   ;;  %10552 = vst [vmem:[#allocation20_spill] sm:$0xff] %v9188_v4  ;;  %s1097_s23 = scalar_lea.vmem %s10551_s3, %s6898_s0 }
  0x50   : > { %v1107_v1 = vld [vmem:[%s1073_s7] sm:$0x3]   ;;  %s1101_s26 = scalar_lea.vmem %s9050_s8, %s6898_s0  ;;  %s9196_s9 = scalar_lea.vmem %s9170_s27, %s6900_s18 }
  0x51   : > { %v9192_v5 = vld [vmem:[%s1089_s16] sm:$0x1]  ;;  %s9210_s1 = smov 0  }
  0x52   : > { %v9198_v6 = vld [vmem:[%s1093_s22] sm:$0xf] }
  0x53   : > { %v9200_v7 = vld [vmem:[%s1097_s23] sm:$0x3] }
  0x54   : > { %10553 = vst [vmem:[#allocation21_spill] sm:$0xff] %v9200_v7  ;;  %v9202_v8 = vld [vmem:[%s1101_s26] sm:$0x3] }
  0x55 LB: >> { %v8562_v9 = vld [vmem:[%s9060_s19] sm:$0xff]   ;;  %v10522_v10 = vmov 0.0   ;;  %v8563_v11 = vld [vmem:[%s9060_s19 + $0x8] sm:$0xff]   ;;  %vm8995_vm0 = vmmov 0   ;;  %v8565_v14 = vld [vmem:[%s9060_s19 + $0x10] sm:$0xff]   ;;  %vm1157_vm1 = vcmask 523264   ;;  %v8952_v2 = vphi %v1113_v2, %v10576_v2   ;;  %v8948_v1 = vphi %v1107_v1, %v10575_v1   ;;  %s8960_s1 = sphi %s9210_s1, %s1121_s1   ;;  %v8956_v0 = vphi %v1108_v0, %v10577_v0  }
  0x56   : >> { %v10555_v4 = vld [vmem:[#allocation20_spill] sm:$0xff]  ;;  %7702 = vmatprep.subr.bf16.mxu1 %v10522_v10  ;;  %7690 = vmatprep.subr.bf16.mxu0 %v10522_v10  ;;  %v8566_v13 = vld [vmem:[%s9055_s14 + $0x8] sm:$0xff]   ;;  %v8568_v15 = vld [vmem:[%s9055_s14 + $0x10] sm:$0xff]   ;;  %vm1347_vm2 = vcmask 261120   ;;  %vm1414_vm3 = vcmask 1040384   ;;  %vm1396_vm4 = vcmask 9216  }
  0x57   : >> { %7703 = vmatpush3.bf16.msra.mxu1 %v8562_v9  ;;  %v8564_v12 = vld [vmem:[%s9055_s14] sm:$0xff]   ;;  %7710 = vmatprep.mubr.msk.bf16.mxu1 %vm8995_vm0, %v10522_v10  ;;  %v8567_v16 = vld [vmem:[%s9060_s19 + $0x18] sm:$0xff]   ;;  %v8571_v19 = vld [vmem:[%s9065_s24 + $0x8] sm:$0xff]   ;;  %vm1410_vm5 = vcmask 15360   ;;  %s8996_s0 = smov 64   ;;  %vm1898_vm6 = vcmask 254976  }
  0x58   : >> { %7704 = vmatprep.subr.bf16.mxu1 %v10522_v10  ;;  %7698 = vmatprep.mubr.msk.bf16.mxu0 %vm8995_vm0, %v10522_v10  ;;  %v8569_v17 = vld [vmem:[%s9055_s14 + $0x18] sm:$0xff]   ;;  %v8570_v18 = vld [vmem:[%s9065_s24] sm:$0xff]   ;;  %v8572_v20 = vld [vmem:[%s9065_s24 + $0x10] sm:$0xff]   ;;  %s10529_s2 = smov 96   ;;  %s10526_s7 = smov 32   ;;  %vm4563_vm7 = vcmask 27648  }
  0x59   : >> { %7691 = vmatpush3.bf16.msra.mxu0 %v8564_v12  ;;  %v8573_v21 = vld [vmem:[%s9065_s24 + $0x18] sm:$0xff]   ;;  %v9277_v51 = vld [vmem:[%s9055_s14 + $0x20] sm:$0xff]   ;;  %v9282_v52 = vld [vmem:[%s9055_s14 + $0x28] sm:$0xff]   ;;  %s10556_s10 = sld [smem:[#allocation5_spill]]  ;;  %s10557_s11 = sld [smem:[#allocation7_spill]]  ;;  %vm4581_vm8 = vcmask 1041408  }
  0x5a   : >> { %7692 = vmatprep.subr.bf16.mxu0 %v10522_v10  ;;  %v9287_v53 = vld [vmem:[%s9055_s14 + $0x30] sm:$0xff]   ;;  %v9292_v54 = vld [vmem:[%s9055_s14 + $0x38] sm:$0xff]   ;;  %v8574_v58 = vld [vmem:[%s9060_s19 + $0x20] sm:$0xff]   ;;  %s10558_s15 = sld [smem:[#allocation6_spill]]  ;;  %s10559_s16 = sld [smem:[#allocation8_spill]]  ;;  %vm4577_vm9 = vcmask 31744  }
  0x5b   : >> { %v10554_v7 = vld [vmem:[#allocation21_spill] sm:$0xff]  ;;  %7705 = vmatpush3.bf16.msra.mxu1 %v8563_v11  ;;  %v8577_v61 = vld [vmem:[%s9060_s19 + $0x30] sm:$0xff]   ;;  %v8579_v62 = vld [vmem:[%s9060_s19 + $0x38] sm:$0xff]   ;;  %s10561_s18 = sld [smem:[#allocation10_spill]]  ;;  %s10562_s22 = sld [smem:[#allocation11_spill]]  ;;  %vm5065_vm10 = vcmask 257024  }
  0x5c   : >> { %7706 = vmatprep.subr.bf16.mxu1 %v10522_v10  ;;  %v8575_v60 = vld [vmem:[%s9060_s19 + $0x28] sm:$0xff]   ;;  %s10563_s23 = sld [smem:[#allocation12_spill]]  ;;  %s10564_s26 = sld [smem:[#allocation13_spill]] }
  0x5d   : >> { %7693 = vmatpush3.bf16.msra.mxu0 %v8566_v13  ;;  %s10570_s3 = sld [smem:[#allocation16_spill]]  ;;  %s10572_s5 = smov 96  }
  0x5e   : >> { %7694 = vmatprep.subr.bf16.mxu0 %v10522_v10  ;;  %s1121_s1 = sadd.s32 1, %s8960_s1  }
  0x5f   : >> { %7707 = vmatpush3.bf16.msra.mxu1 %v8565_v14  ;;  %p1118_p4 = scmp.ge.s32.totalorder %s1121_s1, 2  }
  0x60   : >> { %7708 = vmatprep.subr.bf16.mxu1 %v10522_v10  ;;  %vm6246_vm11 = vcmask (%p1118_p4), 1042432   ;;  %s9000_s1 = smov (%p1118_p4), 32   ;;  %vm6708_vm12 = vcmask (%p1118_p4), 519168  }
  0x61   : >> { %7695 = vmatpush3.bf16.msra.mxu0 %v8568_v15 }
  0x62   : >> { %7696 = vmatprep.subr.bf16.mxu0 %v10522_v10 }
  0x63   : >> { %7709 = vmatpush3.bf16.msra.mxu1 %v8567_v16 }
  0x64   : >> { %7732 = vmatprep.subr.bf16.mxu1 %v10522_v10 }
  0x65   : >> { %7697 = vmatpush3.bf16.msra.mxu0 %v8569_v17 }
  0x66   : >> { %7711 = vmatmul.mubr.msk.bf16.vlgmr.msra.gmra.mrb[0].mxu1 %vm1157_vm1, %v8956_v0  ;;  %7714 = vmatprep.subr.bf16.mxu0 %v10522_v10 }
  0x67   : >> { %7734 = vmatprep.mubr.msk.bf16.mxu1 %vm8995_vm0, %v10522_v10 }
  0x68   : >> { %7699 = vmatmul.mubr.msk.bf16.vlgmr.msra.gmra.mrb[0].mxu0 %vm1157_vm1, %v8956_v0 }
  0x69   : >> { %7715 = vmatpush3.bf16.msra.mxu0 %v8570_v18  ;;  %7722 = vmatprep.mubr.msk.bf16.mxu0 %vm8995_vm0, %v10522_v10 }
  0x6a   : >> { %7716 = vmatprep.subr.bf16.mxu0 %v10522_v10 }
  0x6d   : >> { %7717 = vmatpush3.bf16.msra.mxu0 %v8571_v19 }
  0x6e   : >> { %7718 = vmatprep.subr.bf16.mxu0 %v10522_v10 }
  0x71   : >> { %7719 = vmatpush3.bf16.msra.mxu0 %v8572_v20 }
  0x72   : >> { %7720 = vmatprep.subr.bf16.mxu0 %v10522_v10 }
  0x75   : >> { %7721 = vmatpush3.bf16.msra.mxu0 %v8573_v21 }
  0x76   : >> { %7726 = vmatprep.subr.bf16.mxu0 %v10522_v10 }
  0x78   : >> { %7723 = vmatmul.mubr.msk.bf16.vlgmr.msra.gmra.mrb[4].mxu0 %vm1157_vm1, %v8956_v0 }
  0x79   : >> { %7728 = vmatprep.mubr.msk.bf16.mxu0 %vm8995_vm0, %v10522_v10 }
 0x139   : >> { %v1267_v22 = vpop.f32.mrb[0].mxu1 }
 0x13a   : >> { %v1346_v23 = vpack.c.bf16 %v1267_v22, %v1267_v22  ;;  %v7712_v24 = vpop.f32.mrb[1].mxu1 }
 0x13b   : >> { %v1270_v25 = vpop.f32.mrb[2].mxu1  ;;  %v1195_v26 = vpop.f32.mrb[0].mxu0  ;;  %v9323_v24 = vld [vmem:[%s9065_s24 + $0x20] sm:$0xff]  }
 0x13c   : >> { %v1352_v27 = vsel %vm1347_vm2, %v1346_v23, 0  ;;  %v7713_v28 = vpop.f32.mrb[3].mxu1  ;;  %v7700_v29 = vpop.f32.mrb[1].mxu0  ;;  %v1345_v32 = vpack.c.bf16 %v1195_v26, %v1195_v26  ;;  %v9327_v25 = vld [vmem:[%s9065_s24 + $0x28] sm:$0xff]   ;;  %v9332_v26 = vld [vmem:[%s9065_s24 + $0x30] sm:$0xff]  }
 0x13d   : >> { %7727 = vmatpush3.bf16.xpose.msra.mxu0 %v1352_v27  ;;  %v1198_v30 = vpop.f32.mrb[2].mxu0  ;;  %v9337_v27 = vld [vmem:[%s9065_s24 + $0x38] sm:$0xff]  }
 0x13e   : >> { %v7701_v31 = vpop.f32.mrb[3].mxu0  ;;  %7738 = vmatprep.subr.bf16.mxu0 %v10522_v10 }
 0x144   : >> { %7729 = vmatmul.mubr.msk.bf16.vlgmr.msra.gmra.mrb[8].mxu0 %vm1347_vm2, %v1345_v32 }
 0x145   : >> { %7746 = vmatprep.mubr.msk.bf16.mxu0 %vm8995_vm0, %v10522_v10  ;;  %7739 = vmatpush3.bf16.msra.mxu0 %v9277_v51 }
 0x146   : >> { %7740 = vmatprep.subr.bf16.mxu0 %v10522_v10 }
 0x149   : >> { %7741 = vmatpush3.bf16.msra.mxu0 %v9282_v52 }
 0x14a   : >> { %7742 = vmatprep.subr.bf16.mxu0 %v10522_v10 }
 0x14b   : >> { %v1339_v33 = vpop.f32.mrb[4].mxu0 }
 0x14c   : >> { %v1409_v34 = vpack.c.bf16 %v1339_v33, %v1339_v33  ;;  %v7724_v35 = vpop.f32.mrb[5].mxu0 }
 0x14d   : >> { %v1342_v36 = vpop.f32.mrb[6].mxu0  ;;  %7743 = vmatpush3.bf16.msra.mxu0 %v9287_v53 }
 0x14e   : >> { %v1416_v37 = vsel %vm1414_vm3, %v1409_v34, 0  ;;  %v7725_v38 = vpop.f32.mrb[7].mxu0  ;;  %7744 = vmatprep.subr.bf16.mxu0 %v10522_v10 }
 0x14f   : >> { %7733 = vmatpush3.bf16.msra.mxu1 %v1416_v37 }
 0x150   : >> { %7750 = vmatprep.subr.bf16.mxu1 %v10522_v10 }
 0x151   : >> { %7745 = vmatpush3.bf16.msra.mxu0 %v9292_v54 }
 0x152   : >> { %7762 = vmatprep.subr.bf16.mxu0 %v10522_v10 }
 0x154   : >> { %7747 = vmatmul.mubr.msk.bf16.vlgmr.msra.gmra.mrb[12].mxu0 %vm1157_vm1, %v8956_v0 }
 0x155   : >> { %7770 = vmatprep.mubr.msk.bf16.mxu0 %vm8995_vm0, %v10522_v10  ;;  %7763 = vmatpush3.bf16.msra.mxu0 %v9323_v24 }
 0x156   : >> { %7764 = vmatprep.subr.bf16.mxu0 %v10522_v10 }
 0x159   : >> { %7765 = vmatpush3.bf16.msra.mxu0 %v9327_v25 }
 0x15a   : >> { %7766 = vmatprep.subr.bf16.mxu0 %v10522_v10 }
 0x15d   : >> { %7767 = vmatpush3.bf16.msra.mxu0 %v9332_v26 }
 0x15e   : >> { %7768 = vmatprep.subr.bf16.mxu0 %v10522_v10 }
 0x161   : >> { %7769 = vmatpush3.bf16.msra.mxu0 %v9337_v27 }
 0x162   : >> { %7786 = vmatprep.subr.bf16.mxu0 %v10522_v10 }
 0x164   : >> { %7771 = vmatmul.mubr.msk.bf16.vlgmr.msra.gmra.mrb[16].mxu0 %vm1157_vm1, %v8956_v0 }
 0x165   : >> { %7802 = vmatprep.mubr.msk.bf16.mxu0 %vm8995_vm0, %v10522_v10 }
 0x217   : >> { %v1388_v39 = vpop.f32.mrb[8].mxu0 }
 0x218   : >> { %v1394_v40 = vmul.f32 0.088388346, %v1388_v39  ;;  %v7730_v41 = vpop.f32.mrb[9].mxu0 }
 0x219   : >> { %v1391_v42 = vpop.f32.mrb[10].mxu0 }
 0x21a   : >> { %v1395_v43 = vadd.f32 %v1394_v40, %v10554_v7  ;;  %v7731_v44 = vpop.f32.mrb[11].mxu0 }
 0x21c   : >> { %v1397_v45 = vsel %vm1396_vm4, %v1395_v43, -inf }
 0x21d   : >> { %1398 = vmax.xlane.f32.xlu0 %v1397_v45 }
 0x227   : >> { %v1525_v63 = vpop.f32.mrb[12].mxu0 }
 0x228   : >> { %v7748_v9 = vpop.f32.mrb[13].mxu0  ;;  %v1677_v23 = vpack.c.bf16 %v1525_v63, %v1525_v63 }
 0x229   : >> { %v1528_v11 = vpop.f32.mrb[14].mxu0 }
 0x22a   : >> { %v7749_v12 = vpop.f32.mrb[15].mxu0 }
 0x237   : >> { %v1671_v40 = vpop.f32.mrb[16].mxu0 }
 0x238   : >> { %v7772_v41 = vpop.f32.mrb[17].mxu0  ;;  %v1739_v44 = vpack.c.bf16 %v1671_v40, %v1671_v40 }
 0x239   : >> { %v1674_v42 = vpop.f32.mrb[18].mxu0  ;;  %v8594_v41 = vld [vmem:[%s9065_s24 + $0x40] sm:$0xff]  }
 0x23a   : >> { %v1744_v45 = vsel %vm1414_vm3, %v1739_v44, 0  ;;  %v8595_v42 = vld [vmem:[%s9065_s24 + $0x48] sm:$0xff]  }
 0x2aa   : >> { %v1399_v46 = vpop.xlane.xlu0 %1398 }
 0x2ab   : >> { %v1400_v47 = vsub.f32 %v1395_v43, %v1399_v46  ;;  %v7773_v43 = vpop.f32.mrb[19].mxu0 }
 0x2ad   : >> { %v1401_v48 = vmul.f32 1.442695, %v1400_v47 }
 0x2af   : >> { %8714 = vpow2.f32 %v1401_v48 }
 0x2b9   : >> { %v8715_v49 = vpop.eup %8714 }
 0x2ba   : >> { %v1403_v50 = vsel %vm1396_vm4, %v8715_v49, 0.0 }
 0x2bb   : >> { %1404 = vadd.xlane.f32.xlu0 %v1403_v50  ;;  %v9355_v50 = vld [vmem:[%s9070_s30] sm:$0xff]  }
 0x2bc   : >> { %7787 = vmatpush3.bf16.msra.mxu0 %v9355_v50 }
 0x2bd   : >> { %7788 = vmatprep.subr.bf16.mxu0 %v10522_v10 }
 0x348   : >> { %v1405_v55 = vpop.xlane.xlu0 %1404 }
 0x349   : >> { %8716 = vrcp.f32 %v1405_v55  ;;  %v9359_v55 = vld [vmem:[%s9070_s30 + $0x8] sm:$0xff]  }
 0x34a   : >> { %7789 = vmatpush3.bf16.msra.mxu0 %v9359_v55 }
 0x34b   : >> { %7790 = vmatprep.subr.bf16.mxu0 %v10522_v10 }
 0x353   : >> { %v8717_v56 = vpop.eup %8716 }
 0x354   : >> { %v1407_v57 = vmul.f32 %v8717_v56, %v8715_v49  ;;  %v9364_v56 = vld [vmem:[%s9070_s30 + $0x10] sm:$0xff]  }
 0x355   : >> { %7791 = vmatpush3.bf16.msra.mxu0 %v9364_v56 }
 0x356   : >> { %v1408_v59 = vpack.c.bf16 %v1407_v57, %v1407_v57  ;;  %v9369_v57 = vld [vmem:[%s9070_s30 + $0x18] sm:$0xff]   ;;  %7792 = vmatprep.subr.bf16.mxu0 %v10522_v10 }
 0x358   : >> { %7735 = vmatmul.mubr.msk.bf16.vlgmr.msra.gmra.mrb[4].mxu1 %vm1410_vm5, %v1408_v59  ;;  %v9379_v59 = vld [vmem:[%s9070_s30 + $0x28] sm:$0xff]  }
 0x359   : >> { %7751 = vmatpush3.bf16.msra.mxu1 %v8574_v58  ;;  %7758 = vmatprep.mubr.msk.bf16.mxu1 %vm8995_vm0, %v10522_v10  ;;  %v9374_v58 = vld [vmem:[%s9070_s30 + $0x20] sm:$0xff]  }
 0x35a   : >> { %7752 = vmatprep.subr.bf16.mxu1 %v10522_v10  ;;  %7793 = vmatpush3.bf16.msra.mxu0 %v9369_v57 }
 0x35b   : >> { %7794 = vmatprep.subr.bf16.mxu0 %v10522_v10 }
 0x35d   : >> { %7753 = vmatpush3.bf16.msra.mxu1 %v8575_v60  ;;  %v9384_v60 = vld [vmem:[%s9070_s30 + $0x30] sm:$0xff]  }
 0x35e   : >> { %7754 = vmatprep.subr.bf16.mxu1 %v10522_v10  ;;  %7795 = vmatpush3.bf16.msra.mxu0 %v9374_v58 }
 0x35f   : >> { %7796 = vmatprep.subr.bf16.mxu0 %v10522_v10 }
 0x361   : >> { %7755 = vmatpush3.bf16.msra.mxu1 %v8577_v61  ;;  %v9390_v61 = vld [vmem:[%s9070_s30 + $0x38] sm:$0xff]  }
 0x362   : >> { %7756 = vmatprep.subr.bf16.mxu1 %v10522_v10  ;;  %7797 = vmatpush3.bf16.msra.mxu0 %v9379_v59 }
 0x363   : >> { %7798 = vmatprep.subr.bf16.mxu0 %v10522_v10 }
 0x365   : >> { %7757 = vmatpush3.bf16.msra.mxu1 %v8579_v62 }
 0x366   : >> { %7774 = vmatprep.subr.bf16.mxu1 %v10522_v10  ;;  %7799 = vmatpush3.bf16.msra.mxu0 %v9384_v60 }
 0x367   : >> { %7800 = vmatprep.subr.bf16.mxu0 %v10522_v10 }
 0x368   : >> { %7759 = vmatmul.mubr.msk.bf16.vlgmr.msra.gmra.mrb[8].mxu1 %vm1157_vm1, %v8956_v0 }
 0x369   : >> { %7776 = vmatprep.mubr.msk.bf16.mxu1 %vm8995_vm0, %v10522_v10 }
 0x36a   : >> { %7801 = vmatpush3.bf16.msra.mxu0 %v9390_v61 }
 0x36b   : >> { %7830 = vmatprep.subr.bf16.mxu0 %v10522_v10 }
 0x42b   : >> { %v9315_v13 = vpop.f32.mrb[4].mxu1 }
 0x42c   : >> { %v7736_v14 = vpop.f32.mrb[5].mxu1 }
 0x42d   : >> { %v1455_v15 = vpop.f32.mrb[6].mxu1 }
 0x42e   : >> { %v7737_v16 = vpop.f32.mrb[7].mxu1 }
 0x42f   : >> { %v1808_v16 = vunpack.c.l.bf16 %v8956_v0 }
 0x43b   : >> { %v1598_v17 = vpop.f32.mrb[8].mxu1 }
 0x43c   : >> { %v1678_v18 = vpack.c.bf16 %v1598_v17, %v1598_v17  ;;  %v7760_v19 = vpop.f32.mrb[9].mxu1 }
 0x43d   : >> { %v1601_v20 = vpop.f32.mrb[10].mxu1 }
 0x43e   : >> { %v1683_v21 = vsel %vm1347_vm2, %v1678_v18, 0  ;;  %v7761_v22 = vpop.f32.mrb[11].mxu1 }
 0x43f   : >> { %7775 = vmatpush3.bf16.xpose.msra.mxu1 %v1683_v21 }
 0x440   : >> { %7780 = vmatprep.subr.bf16.mxu1 %v10522_v10 }
 0x446   : >> { %7777 = vmatmul.mubr.msk.bf16.vlgmr.msra.gmra.mrb[12].mxu1 %vm1347_vm2, %v1677_v23 }
 0x447   : >> { %7782 = vmatprep.mubr.msk.bf16.mxu1 %vm8995_vm0, %v10522_v10  ;;  %7781 = vmatpush3.bf16.msra.mxu1 %v1744_v45 }
 0x448   : >> { %7806 = vmatprep.subr.bf16.mxu1 %v10522_v10 }
 0x519   : >> { %v1719_v28 = vpop.f32.mrb[12].mxu1 }
 0x51a   : >> { %v1725_v29 = vmul.f32 0.088388346, %v1719_v28  ;;  %v7778_v30 = vpop.f32.mrb[13].mxu1 }
 0x51b   : >> { %v1722_v31 = vpop.f32.mrb[14].mxu1 }
 0x51c   : >> { %v1726_v32 = vadd.f32 %v1725_v29, %v10554_v7  ;;  %v7779_v33 = vpop.f32.mrb[15].mxu1 }
 0x51e   : >> { %v1727_v34 = vsel %vm1396_vm4, %v1726_v32, -inf }
 0x51f   : >> { %1728 = vmax.xlane.f32.xlu1 %v1727_v34 }
 0x5ac   : >> { %v1729_v35 = vpop.xlane.xlu1 %1728 }
 0x5ad   : >> { %v1730_v36 = vsub.f32 %v1726_v32, %v1729_v35  ;;  %v1913_v35 = vlaneseq }
 0x5af   : >> { %v1731_v37 = vmul.f32 1.442695, %v1730_v36 }
 0x5b1   : >> { %8718 = vpow2.f32 %v1731_v37  ;;  %v1914_v37 = vshrl.u32 %v1913_v35, 7 }
 0x5b3   : >> { %v9423_v45 = vsub.s32 0, %v1914_v37 }
 0x5bb   : >> { %v8719_v38 = vpop.eup %8718 }
 0x5bc   : >> { %v1733_v39 = vsel %vm1396_vm4, %v8719_v38, 0.0 }
 0x5bd   : >> { %1734 = vadd.xlane.f32.xlu1 %v1733_v39  ;;  %v6970_v39 = vld [vmem:[%s9075_s6 + $0x2] sm:$0x3] }
 0x64a   : >> { %v1735_v46 = vpop.xlane.xlu1 %1734 }
 0x64b   : >> { %8720 = vrcp.f32 %v1735_v46  ;;  %v1949_v46 = vrot.slane %v6970_v39, %v9423_v45 }
 0x655   : >> { %v8721_v47 = vpop.eup %8720 }
 0x656   : >> { %v1737_v48 = vmul.f32 %v8721_v47, %v8719_v38  ;;  %v9413_v38 = vsub.s32 1, %v1914_v37  ;;  %v8596_v47 = vld [vmem:[%s9065_s24 + $0x50] sm:$0xff]  }
 0x658   : >> { %v1738_v49 = vpack.c.bf16 %v1737_v48, %v1737_v48  ;;  %v1958_v40 = vrot.slane %v6970_v39, %v9413_v38  ;;  %v8597_v48 = vld [vmem:[%s9065_s24 + $0x58] sm:$0xff]  }
 0x65a   : >> { %7783 = vmatmul.mubr.msk.bf16.vlgmr.msra.gmra.mrb[16].mxu1 %vm1410_vm5, %v1738_v49  ;;  %v9431_v49 = vld [vmem:[%s9055_s14 + $0x40] sm:$0xff]  }
 0x65b   : >> { %7814 = vmatprep.mubr.msk.bf16.mxu1 %vm8995_vm0, %v10522_v10  ;;  %7807 = vmatpush3.bf16.msra.mxu1 %v9431_v49 }
 0x65c   : >> { %7808 = vmatprep.subr.bf16.mxu1 %v10522_v10 }
 0x72d   : >> { %v1780_v62 = vpop.f32.mrb[16].mxu1 }
 0x72e   : >> { %1787 = vrot.lane.b32.xlu0 %v1780_v62, %s8996_s0  ;;  %v7784_v63 = vpop.f32.mrb[17].mxu1  ;;  %v8599_v62 = vld [vmem:[%s9055_s14 + $0x60] sm:$0xff]  }
 0x72f   : >> { %v1783_v9 = vpop.f32.mrb[18].mxu1  ;;  %v9437_v63 = vld [vmem:[%s9055_s14 + $0x48] sm:$0xff]  }
 0x730   : >> { %v7785_v11 = vpop.f32.mrb[19].mxu1  ;;  %v8601_v9 = vld [vmem:[%s9055_s14 + $0x68] sm:$0xff]   ;;  %7809 = vmatpush3.bf16.msra.mxu1 %v9437_v63 }
 0x731   : >> { %v9448_v11 = vld [vmem:[%s9055_s14 + $0x50] sm:$0xff]   ;;  %7810 = vmatprep.subr.bf16.mxu1 %v10522_v10 }
 0x734   : >> { %7811 = vmatpush3.bf16.msra.mxu1 %v9448_v11 }
 0x735   : >> { %7812 = vmatprep.subr.bf16.mxu1 %v10522_v10 }
 0x7a0   : >> { %v1788_v12 = vpop.permute.xlu0 %1787 }
 0x7a1   : >> { %v1790_v14 = vsel %vm1157_vm1, %v9315_v13, %v1788_v12  ;;  %v8603_v12 = vld [vmem:[%s9055_s14 + $0x70] sm:$0xff]  }
 0x7a2   : >> { %v1791_v15 = vpack.c.bf16 %v1790_v14, %v1790_v14  ;;  %v9456_v14 = vld [vmem:[%s9055_s14 + $0x58] sm:$0xff]  }
 0x7a3   : >> { %7813 = vmatpush3.bf16.msra.mxu1 %v9456_v14 }
 0x7a4   : >> { %7803 = vmatmul.mubr.bf16.vlgmr.msra.gmra.mrb[20].mxu0 %v1791_v15  ;;  %v8605_v15 = vld [vmem:[%s9055_s14 + $0x78] sm:$0xff]   ;;  %7818 = vmatprep.subr.bf16.mxu1 %v10522_v10 }
 0x7a5   : >> { %7838 = vmatprep.mubr.msk.bf16.mxu0 %vm8995_vm0, %v10522_v10  ;;  %7831 = vmatpush3.bf16.msra.mxu0 %v8594_v41 }
 0x7a6   : >> { %7832 = vmatprep.subr.bf16.mxu0 %v10522_v10 }
 0x7a9   : >> { %7833 = vmatpush3.bf16.msra.mxu0 %v8595_v42  ;;  %v8608_v42 = vld [vmem:[%s9060_s19 + $0x50] sm:$0xff]  }
 0x7aa   : >> { %7834 = vmatprep.subr.bf16.mxu0 %v10522_v10 }
 0x7ad   : >> { %7835 = vmatpush3.bf16.msra.mxu0 %v8596_v47 }
 0x7ae   : >> { %7836 = vmatprep.subr.bf16.mxu0 %v10522_v10 }
 0x7b1   : >> { %7837 = vmatpush3.bf16.msra.mxu0 %v8597_v48 }
 0x7b2   : >> { %7854 = vmatprep.subr.bf16.mxu0 %v10522_v10 }
 0x7b4   : >> { %7839 = vmatmul.mubr.msk.bf16.vlgmr.msra.gmra.mrb[24].mxu0 %vm1157_vm1, %v10555_v4 }
 0x7b5   : >> { %7855 = vmatpush3.bf16.msra.mxu0 %v8599_v62  ;;  %7862 = vmatprep.mubr.msk.bf16.mxu0 %vm8995_vm0, %v10522_v10 }
 0x7b6   : >> { %7856 = vmatprep.subr.bf16.mxu0 %v10522_v10 }
 0x7b9   : >> { %7857 = vmatpush3.bf16.msra.mxu0 %v8601_v9 }
 0x7ba   : >> { %7858 = vmatprep.subr.bf16.mxu0 %v10522_v10 }
 0x7bd   : >> { %7859 = vmatpush3.bf16.msra.mxu0 %v8603_v12 }
 0x7be   : >> { %7860 = vmatprep.subr.bf16.mxu0 %v10522_v10 }
 0x7c1   : >> { %7861 = vmatpush3.bf16.msra.mxu0 %v8605_v15 }
 0x7c2   : >> { %7878 = vmatprep.subr.bf16.mxu0 %v10522_v10 }
 0x877   : >> { %v1891_v17 = vpop.f32.mrb[20].mxu0 }
 0x878   : >> { %v1892_v18 = vadd.f32 %v1891_v17, %v1808_v16  ;;  %v7804_v19 = vpop.f32.mrb[21].mxu0 }
 0x879   : >> { %v1894_v20 = vpop.f32.mrb[22].mxu0 }
 0x87a   : >> { %1926 = vrot.lane.b32.xlu1 %v1892_v18, %s10529_s2  ;;  %v7805_v21 = vpop.f32.mrb[23].mxu0  ;;  %v1899_v22 = vsel %vm1898_vm6, %v1892_v18, 0.0 }
 0x87b   : >> { %1900 = vadd.xlane.f32.xlu0 %v1899_v22 }
 0x8ec   : >> { %v1927_v13 = vpop.permute.xlu1 %1926 }
 0x8ed   : >> { %v1929_v23 = vsel %vm1898_vm6, %v1927_v13, 0.0  ;;  %v1897_v13 = vld [vmem:[%s9075_s6] sm:$0x3] }
 0x8ee   : >> { %1930 = vadd.xlane.f32.xlu1 %v1929_v23 }
 0x908   : >> { %v1901_v28 = vpop.xlane.xlu0 %1900 }
 0x909   : >> { %v1903_v0 = vmul.f32 0.03125, %v1901_v28  ;;  %v9466_v28 = vrot.slane %v1897_v13, %v9423_v45 }
 0x90b   : >> { %v9403_v29 = vsub.f32 %v1892_v18, %v1903_v0 }
 0x90d   : >> { %v1905_v30 = vmul.f32 %v9403_v29, %v9403_v29 }
 0x90f   : >> { %v1906_v31 = vsel %vm1898_vm6, %v1905_v30, 0.0 }
 0x910   : >> { %1907 = vadd.xlane.f32.xlu1 %v1906_v31 }
 0x97b   : >> { %v1931_v32 = vpop.xlane.xlu1 %1930 }
 0x97c   : >> { %v1932_v33 = vmul.f32 0.03125, %v1931_v32 }
 0x97e   : >> { %v9408_v34 = vsub.f32 %v1892_v18, %v1932_v33  ;;  %v9473_v33 = vrot.slane %v1897_v13, %v9413_v38 }
 0x980   : >> { %v1934_v36 = vmul.f32 %v9408_v34, %v9408_v34 }
 0x982   : >> { %1936 = vrot.lane.b32.xlu0 %v1934_v36, %s10529_s2 }
 0x986   : >> { %1960 = vrot.lane.b32.xlu0 %v1958_v40, %s10526_s7  ;;  %v8606_v40 = vld [vmem:[%s9060_s19 + $0x40] sm:$0xff]  }
 0x99d   : >> { %v1908_v16 = vpop.xlane.xlu1 %1907 }
 0x99e   : >> { %v1909_v17 = vmul.f32 0.03125, %v1908_v16 }
 0x9a0   : >> { %v1910_v18 = vadd.f32 1e-06, %v1909_v17 }
 0x9a2   : >> { %8722 = vrsqrt.f32 %v1910_v18 }
 0x9ac   : >> { %v8723_v22 = vpop.eup %8722 }
 0x9ad   : >> { %v1912_v23 = vmul.f32 %v8723_v22, %v9403_v29 }
 0x9af   : >> { %v1917_v32 = vmul.f32 %v9466_v28, %v1912_v23 }
 0x9b1   : >> { %v1922_v29 = vadd.f32 %v9473_v33, %v1917_v32 }
 0x9f4   : >> { %v1937_v43 = vpop.permute.xlu0 %1936 }
 0x9f5   : >> { %v1939_v44 = vsel %vm1898_vm6, %v1937_v43, 0.0  ;;  %v8609_v43 = vld [vmem:[%s9060_s19 + $0x58] sm:$0xff]  }
 0x9f6   : >> { %1940 = vadd.xlane.f32.xlu1 %v1939_v44  ;;  %v2185_v44 = vpop.f32.mrb[24].mxu0 }
 0x9f8   : >> { %v9475_v35 = vpop.permute.xlu0 %1960 }
 0xa07   : >> { %1951 = vrot.lane.b32.xlu1 %v1949_v46, %s10526_s7  ;;  %v7840_v46 = vpop.f32.mrb[25].mxu0 }
 0xa08   : >> { %v2188_v47 = vpop.f32.mrb[26].mxu0 }
 0xa09   : >> { %v7841_v48 = vpop.f32.mrb[27].mxu0 }
 0xa83   : >> { %v1941_v19 = vpop.xlane.xlu1 %1940 }
 0xa84   : >> { %v1942_v20 = vmul.f32 0.03125, %v1941_v19 }
 0xa86   : >> { %v1943_v21 = vadd.f32 1e-06, %v1942_v20 }
 0xa87   : >> { %v9468_v30 = vpop.permute.xlu1 %1951 }
 0xa88   : >> { %8724 = vrsqrt.f32 %v1943_v21 }
 0xa92   : >> { %v8725_v0 = vpop.eup %8724 }
 0xa93   : >> { %v1945_v31 = vmul.f32 %v8725_v0, %v9408_v34  ;;  %v8607_v34 = vld [vmem:[%s9060_s19 + $0x48] sm:$0xff]  }
 0xa95   : >> { %v1954_v36 = vmul.f32 %v9468_v30, %v1945_v31  ;;  %v2252_v31 = vpack.c.bf16 %v2185_v44, %v2185_v44 }
 0xa97   : >> { %v1963_v37 = vadd.f32 %v9475_v35, %v1954_v36  ;;  %v2257_v32 = vsel %vm1414_vm3, %v2252_v31, 0 }
 0xa99   : >> { %v1964_v39 = vsel %vm1347_vm2, %v1922_v29, %v1963_v37 }
 0xa9a   : >> { %v9482_v41 = vpack.c.bf16 %v1964_v39, %v1964_v39 }
 0xa9c   : >> { %7815 = vmatmul.mubr.msk.bf16.vlgmr.msra.gmra.mrb[20].mxu1 %vm1157_vm1, %v9482_v41  ;;  %7863 = vmatmul.mubr.msk.bf16.vlgmr.msra.gmra.mrb[28].mxu0 %vm1157_vm1, %v9482_v41 }
 0xa9d   : >> { %7819 = vmatpush3.bf16.msra.mxu1 %v8606_v40  ;;  %7826 = vmatprep.mubr.msk.bf16.mxu1 %vm8995_vm0, %v10522_v10 }
 0xa9e   : >> { %7820 = vmatprep.subr.bf16.mxu1 %v10522_v10  ;;  %7886 = vmatprep.mubr.msk.bf16.mxu0 %vm8995_vm0, %v10522_v10 }
 0xaa1   : >> { %7821 = vmatpush3.bf16.msra.mxu1 %v8607_v34 }
 0xaa2   : >> { %7822 = vmatprep.subr.bf16.mxu1 %v10522_v10 }
 0xaa5   : >> { %7823 = vmatpush3.bf16.msra.mxu1 %v8608_v42 }
 0xaa6   : >> { %7824 = vmatprep.subr.bf16.mxu1 %v10522_v10 }
 0xaa9   : >> { %7825 = vmatpush3.bf16.msra.mxu1 %v8609_v43 }
 0xaaa   : >> { %7842 = vmatprep.subr.bf16.mxu1 %v10522_v10 }
 0xaac   : >> { %7827 = vmatmul.mubr.msk.bf16.vlgmr.msra.gmra.mrb[24].mxu1 %vm1157_vm1, %v10555_v4 }
 0xaad   : >> { %7844 = vmatprep.mubr.msk.bf16.mxu1 %vm8995_vm0, %v10522_v10 }
 0xb6f   : >> { %v2036_v62 = vpop.f32.mrb[20].mxu1  ;;  %v9503_v9 = vpop.f32.mrb[28].mxu0 }
 0xb70   : >> { %v7816_v12 = vpop.f32.mrb[21].mxu1  ;;  %v7864_v15 = vpop.f32.mrb[29].mxu0  ;;  %v2191_v36 = vpack.c.bf16 %v2036_v62, %v2036_v62 }
 0xb71   : >> { %v2039_v16 = vpop.f32.mrb[22].mxu1  ;;  %v2369_v17 = vpop.f32.mrb[30].mxu0 }
 0xb72   : >> { %v7817_v18 = vpop.f32.mrb[23].mxu1  ;;  %v7865_v19 = vpop.f32.mrb[31].mxu0  ;;  %v8610_v16 = vld [vmem:[%s9060_s19 + $0x60] sm:$0xff]  }
 0xb73   : >> { %v8611_v18 = vld [vmem:[%s9060_s19 + $0x68] sm:$0xff]   ;;  %v8612_v19 = vld [vmem:[%s9060_s19 + $0x70] sm:$0xff]  }
 0xb7f   : >> { %v2112_v20 = vpop.f32.mrb[24].mxu1 }
 0xb80   : >> { %v2192_v21 = vpack.c.bf16 %v2112_v20, %v2112_v20  ;;  %v7828_v22 = vpop.f32.mrb[25].mxu1  ;;  %v8613_v20 = vld [vmem:[%s9060_s19 + $0x78] sm:$0xff]  }
 0xb81   : >> { %v2115_v13 = vpop.f32.mrb[26].mxu1 }
 0xb82   : >> { %v2197_v23 = vsel %vm1347_vm2, %v2192_v21, 0  ;;  %v7829_v0 = vpop.f32.mrb[27].mxu1 }
 0xb83   : >> { %7843 = vmatpush3.bf16.xpose.msra.mxu1 %v2197_v23 }
 0xb84   : >> { %7848 = vmatprep.subr.bf16.mxu1 %v10522_v10 }
 0xb8a   : >> { %7845 = vmatmul.mubr.msk.bf16.vlgmr.msra.gmra.mrb[28].mxu1 %vm1347_vm2, %v2191_v36 }
 0xb8b   : >> { %7849 = vmatpush3.bf16.msra.mxu1 %v2257_v32  ;;  %7850 = vmatprep.mubr.msk.bf16.mxu1 %vm8995_vm0, %v10522_v10 }
 0xb8c   : >> { %7866 = vmatprep.subr.bf16.mxu1 %v10522_v10 }
 0xc5d   : >> { %v2233_v29 = vpop.f32.mrb[28].mxu1 }
 0xc5e   : >> { %v2239_v37 = vmul.f32 0.088388346, %v2233_v29  ;;  %v7846_v39 = vpop.f32.mrb[29].mxu1 }
 0xc5f   : >> { %v2236_v40 = vpop.f32.mrb[30].mxu1  ;;  %v2518_v39 = vpack.c.bf16 %v9503_v9, %v9503_v9  ;;  %v9553_v9 = vld [vmem:[%s9065_s24 + $0x78] sm:$0xff]  }
 0xc60   : >> { %v7847_v34 = vpop.f32.mrb[31].mxu1  ;;  %v2240_v42 = vsel %vm1396_vm4, %v2239_v37, -inf  ;;  %v9539_v40 = vld [vmem:[%s9065_s24 + $0x60] sm:$0xff]  }
 0xc61   : >> { %2241 = vmax.xlane.f32.xlu1 %v2240_v42  ;;  %7879 = vmatpush3.bf16.msra.mxu0 %v9539_v40  ;;  %v9543_v34 = vld [vmem:[%s9065_s24 + $0x68] sm:$0xff]   ;;  %v9548_v42 = vld [vmem:[%s9065_s24 + $0x70] sm:$0xff]  }
 0xc62   : >> { %7880 = vmatprep.subr.bf16.mxu0 %v10522_v10 }
 0xc65   : >> { %7881 = vmatpush3.bf16.msra.mxu0 %v9543_v34 }
 0xc66   : >> { %7882 = vmatprep.subr.bf16.mxu0 %v10522_v10 }
 0xc69   : >> { %7883 = vmatpush3.bf16.msra.mxu0 %v9548_v42 }
 0xc6a   : >> { %7884 = vmatprep.subr.bf16.mxu0 %v10522_v10 }
 0xc6d   : >> { %7885 = vmatpush3.bf16.msra.mxu0 %v9553_v9 }
 0xc6e   : >> { %7902 = vmatprep.subr.bf16.mxu0 %v10522_v10 }
 0xc70   : >> { %7887 = vmatmul.mubr.msk.bf16.vlgmr.msra.gmra.mrb[32].mxu0 %vm1157_vm1, %v10555_v4 }
 0xc71   : >> { %7918 = vmatprep.mubr.msk.bf16.mxu0 %vm8995_vm0, %v10522_v10 }
 0xcee   : >> { %v2242_v43 = vpop.xlane.xlu1 %2241 }
 0xcef   : >> { %v2243_v44 = vsub.f32 %v2239_v37, %v2242_v43 }
 0xcf1   : >> { %v2244_v46 = vmul.f32 1.442695, %v2243_v44 }
 0xcf3   : >> { %8726 = vpow2.f32 %v2244_v46 }
 0xcfd   : >> { %v8727_v47 = vpop.eup %8726 }
 0xcfe   : >> { %v2246_v48 = vsel %vm1396_vm4, %v8727_v47, 0.0 }
 0xcff   : >> { %2247 = vadd.xlane.f32.xlu0 %v2246_v48 }
 0xd8c   : >> { %v2248_v62 = vpop.xlane.xlu0 %2247 }
 0xd8d   : >> { %8728 = vrcp.f32 %v2248_v62 }
 0xd97   : >> { %v8729_v12 = vpop.eup %8728 }
 0xd98   : >> { %v2250_v15 = vmul.f32 %v8729_v12, %v8727_v47 }
 0xd9a   : >> { %v2251_v17 = vpack.c.bf16 %v2250_v15, %v2250_v15 }
 0xd9c   : >> { %7851 = vmatmul.mubr.msk.bf16.vlgmr.msra.gmra.mrb[32].mxu1 %vm1410_vm5, %v2251_v17 }
 0xd9d   : >> { %7867 = vmatpush3.bf16.msra.mxu1 %v8610_v16  ;;  %7874 = vmatprep.mubr.msk.bf16.mxu1 %vm8995_vm0, %v10522_v10 }
 0xd9e   : >> { %7868 = vmatprep.subr.bf16.mxu1 %v10522_v10 }
 0xda1   : >> { %7869 = vmatpush3.bf16.msra.mxu1 %v8611_v18 }
 0xda2   : >> { %7870 = vmatprep.subr.bf16.mxu1 %v10522_v10 }
 0xda5   : >> { %7871 = vmatpush3.bf16.msra.mxu1 %v8612_v19  ;;  %v2512_v19 = vpop.f32.mrb[32].mxu0 }
 0xda6   : >> { %7872 = vmatprep.subr.bf16.mxu1 %v10522_v10 }
 0xda9   : >> { %7873 = vmatpush3.bf16.msra.mxu1 %v8613_v20  ;;  %v7888_v20 = vpop.f32.mrb[33].mxu0 }
 0xdaa   : >> { %7890 = vmatprep.subr.bf16.mxu1 %v10522_v10 }
 0xdac   : >> { %7875 = vmatmul.mubr.msk.bf16.vlgmr.msra.gmra.mrb[36].mxu1 %vm1157_vm1, %v10555_v4 }
 0xdad   : >> { %7892 = vmatprep.mubr.msk.bf16.mxu1 %vm8995_vm0, %v10522_v10 }
 0xe6f   : >> { %v9529_v21 = vpop.f32.mrb[32].mxu1 }
 0xe70   : >> { %v7852_v22 = vpop.f32.mrb[33].mxu1 }
 0xe71   : >> { %v2296_v13 = vpop.f32.mrb[34].mxu1  ;;  %v2515_v22 = vpop.f32.mrb[34].mxu0 }
 0xe72   : >> { %v7853_v23 = vpop.f32.mrb[35].mxu1  ;;  %v7889_v13 = vpop.f32.mrb[35].mxu0  ;;  %v8798_v22 = vld [vmem:[%s9055_s14] sm:$0xff]  }
 0xe73   : >> { %v2579_v23 = vpack.c.bf16 %v2512_v19, %v2512_v19  ;;  %v8799_v13 = vld [vmem:[%s9055_s14 + $0x8] sm:$0xff]  }
 0xe7f   : >> { %v2439_v0 = vpop.f32.mrb[36].mxu1 }
 0xe80   : >> { %v2519_v31 = vpack.c.bf16 %v2439_v0, %v2439_v0  ;;  %v7876_v32 = vpop.f32.mrb[37].mxu1  ;;  %v2584_v0 = vsel %vm1414_vm3, %v2579_v23, 0  ;;  %v8800_v23 = vld [vmem:[%s9055_s14 + $0x10] sm:$0xff]  }
 0xe81   : >> { %v2442_v36 = vpop.f32.mrb[38].mxu1 }
 0xe82   : >> { %v2524_v29 = vsel %vm1347_vm2, %v2519_v31, 0  ;;  %v7877_v37 = vpop.f32.mrb[39].mxu1 }
 0xe83   : >> { %7891 = vmatpush3.bf16.xpose.msra.mxu1 %v2524_v29  ;;  %v9570_v37 = vld [vmem:[%s9070_s30 + $0x40] sm:$0xff]  }
 0xe84   : >> { %7896 = vmatprep.subr.bf16.mxu1 %v10522_v10  ;;  %7903 = vmatpush3.bf16.msra.mxu0 %v9570_v37 }
 0xe85   : >> { %7904 = vmatprep.subr.bf16.mxu0 %v10522_v10 }
 0xe8a   : >> { %7893 = vmatmul.mubr.msk.bf16.vlgmr.msra.gmra.mrb[40].mxu1 %vm1347_vm2, %v2518_v39  ;;  %v9574_v39 = vld [vmem:[%s9070_s30 + $0x48] sm:$0xff]  }
 0xe8b   : >> { %7898 = vmatprep.mubr.msk.bf16.mxu1 %vm8995_vm0, %v10522_v10  ;;  %7897 = vmatpush3.bf16.msra.mxu1 %v2584_v0  ;;  %v8802_v0 = vld [vmem:[%s9060_s19] sm:$0xff]  }
 0xe8c   : >> { %7922 = vmatprep.subr.bf16.mxu1 %v10522_v10  ;;  %7905 = vmatpush3.bf16.msra.mxu0 %v9574_v39 }
 0xe8d   : >> { %7906 = vmatprep.subr.bf16.mxu0 %v10522_v10 }
 0xf5d   : >> { %v2560_v43 = vpop.f32.mrb[40].mxu1 }
 0xf5e   : >> { %v2566_v44 = vmul.f32 0.088388346, %v2560_v43  ;;  %v7894_v46 = vpop.f32.mrb[41].mxu1  ;;  %v9579_v43 = vld [vmem:[%s9070_s30 + $0x50] sm:$0xff]  }
 0xf5f   : >> { %v2563_v47 = vpop.f32.mrb[42].mxu1  ;;  %7907 = vmatpush3.bf16.msra.mxu0 %v9579_v43  ;;  %v9589_v46 = vld [vmem:[%s9070_s30 + $0x60] sm:$0xff]  }
 0xf60   : >> { %v7895_v48 = vpop.f32.mrb[43].mxu1  ;;  %v2567_v62 = vsel %vm1396_vm4, %v2566_v44, -inf  ;;  %7908 = vmatprep.subr.bf16.mxu0 %v10522_v10  ;;  %v9594_v47 = vld [vmem:[%s9070_s30 + $0x68] sm:$0xff]  }
 0xf61   : >> { %2568 = vmax.xlane.f32.xlu0 %v2567_v62  ;;  %v9599_v48 = vld [vmem:[%s9070_s30 + $0x70] sm:$0xff]   ;;  %v9605_v62 = vld [vmem:[%s9070_s30 + $0x78] sm:$0xff]  }
 0xfee   : >> { %v2569_v12 = vpop.xlane.xlu0 %2568 }
 0xfef   : >> { %v2570_v15 = vsub.f32 %v2566_v44, %v2569_v12  ;;  %v9584_v44 = vld [vmem:[%s9070_s30 + $0x58] sm:$0xff]  }
 0xff0   : >> { %7909 = vmatpush3.bf16.msra.mxu0 %v9584_v44 }
 0xff1   : >> { %v2571_v16 = vmul.f32 1.442695, %v2570_v15  ;;  %7910 = vmatprep.subr.bf16.mxu0 %v10522_v10 }
 0xff3   : >> { %8730 = vpow2.f32 %v2571_v16 }
 0xff4   : >> { %7911 = vmatpush3.bf16.msra.mxu0 %v9589_v46 }
 0xff5   : >> { %7912 = vmatprep.subr.bf16.mxu0 %v10522_v10 }
 0xff8   : >> { %7913 = vmatpush3.bf16.msra.mxu0 %v9594_v47 }
 0xff9   : >> { %7914 = vmatprep.subr.bf16.mxu0 %v10522_v10 }
 0xffc   : >> { %7915 = vmatpush3.bf16.msra.mxu0 %v9599_v48 }
 0xffd   : >> { %v8731_v17 = vpop.eup %8730  ;;  %7916 = vmatprep.subr.bf16.mxu0 %v10522_v10 }
 0xffe   : >> { %v2573_v18 = vsel %vm1396_vm4, %v8731_v17, 0.0 }
 0xfff   : >> { %2574 = vadd.xlane.f32.xlu0 %v2573_v18 }
0x1000   : >> { %7917 = vmatpush3.bf16.msra.mxu0 %v9605_v62 }
0x1001   : >> { %7954 = vmatprep.subr.bf16.mxu0 %v10522_v10 }
0x108c   : >> { %v2575_v31 = vpop.xlane.xlu0 %2574 }
0x108d   : >> { %8732 = vrcp.f32 %v2575_v31  ;;  %v8803_v31 = vld [vmem:[%s9060_s19 + $0x8] sm:$0xff]  }
0x1097   : >> { %v8733_v32 = vpop.eup %8732 }
0x1098   : >> { %v2577_v36 = vmul.f32 %v8733_v32, %v8731_v17  ;;  %v8804_v32 = vld [vmem:[%s9060_s19 + $0x10] sm:$0xff]  }
0x109a   : >> { %v2578_v29 = vpack.c.bf16 %v2577_v36, %v2577_v36  ;;  %v8805_v36 = vld [vmem:[%s9060_s19 + $0x18] sm:$0xff]  }
0x109c   : >> { %7899 = vmatmul.mubr.msk.bf16.vlgmr.msra.gmra.mrb[44].mxu1 %vm1410_vm5, %v2578_v29  ;;  %v2649_v29 = vunpack.c.l.bf16 %v9482_v41 }
0x109d   : >> { %7930 = vmatprep.mubr.msk.bf16.mxu1 %vm8995_vm0, %v10522_v10 }
0x116f   : >> { %v2620_v12 = vpop.f32.mrb[44].mxu1 }
0x1170   : >> { %2627 = vrot.lane.b32.xlu1 %v2620_v12, %s8996_s0  ;;  %v7900_v15 = vpop.f32.mrb[45].mxu1 }
0x1171   : >> { %v2623_v16 = vpop.f32.mrb[46].mxu1 }
0x1172   : >> { %v7901_v17 = vpop.f32.mrb[47].mxu1 }
0x11e2   : >> { %v2628_v18 = vpop.permute.xlu1 %2627 }
0x11e3   : >> { %v2630_v19 = vsel %vm1157_vm1, %v9529_v21, %v2628_v18  ;;  %v8801_v21 = vld [vmem:[%s9055_s14 + $0x18] sm:$0xff]  }
0x11e4   : >> { %v2631_v20 = vpack.c.bf16 %v2630_v19, %v2630_v19 }
0x11e6   : >> { %7919 = vmatmul.mubr.bf16.vlgmr.msra.gmra.mrb[36].mxu0 %v2631_v20 }
0x11e7   : >> { %7955 = vmatpush3.bf16.msra.mxu0 %v8798_v22  ;;  %7962 = vmatprep.mubr.msk.bf16.mxu0 %vm8995_vm0, %v10522_v10 }
0x11e8   : >> { %7956 = vmatprep.subr.bf16.mxu0 %v10522_v10 }
0x11eb   : >> { %7957 = vmatpush3.bf16.msra.mxu0 %v8799_v13 }
0x11ec   : >> { %7958 = vmatprep.subr.bf16.mxu0 %v10522_v10 }
0x11ef   : >> { %7959 = vmatpush3.bf16.msra.mxu0 %v8800_v23 }
0x11f0   : >> { %7960 = vmatprep.subr.bf16.mxu0 %v10522_v10 }
0x11f3   : >> { %7961 = vmatpush3.bf16.msra.mxu0 %v8801_v21 }
0x11f4   : >> { %7966 = vmatprep.subr.bf16.mxu0 %v10522_v10 }
0x11f6   : >> { %7963 = vmatmul.mubr.msk.bf16.vlgmr.msra.gmra.mrb[40].mxu0 %vm1157_vm1, %v8952_v2 }
0x11f7   : >> { %7967 = vmatpush3.bf16.msra.mxu0 %v8802_v0  ;;  %7974 = vmatprep.mubr.msk.bf16.mxu0 %vm8995_vm0, %v10522_v10 }
0x11f8   : >> { %7968 = vmatprep.subr.bf16.mxu0 %v10522_v10 }
0x11fb   : >> { %7969 = vmatpush3.bf16.msra.mxu0 %v8803_v31 }
0x11fc   : >> { %7970 = vmatprep.subr.bf16.mxu0 %v10522_v10 }
0x11ff   : >> { %7971 = vmatpush3.bf16.msra.mxu0 %v8804_v32 }
0x1200   : >> { %7972 = vmatprep.subr.bf16.mxu0 %v10522_v10 }
0x1203   : >> { %7973 = vmatpush3.bf16.msra.mxu0 %v8805_v36 }
0x1204   : >> { %7990 = vmatprep.subr.bf16.mxu0 %v10522_v10 }
0x1206   : >> { %7975 = vmatmul.mubr.msk.bf16.vlgmr.msra.gmra.mrb[44].mxu0 %vm1157_vm1, %v8952_v2 }
0x1207   : >> { %7992 = vmatprep.mubr.msk.bf16.mxu0 %vm8995_vm0, %v10522_v10 }
0x12b9   : >> { %v2732_v12 = vpop.f32.mrb[36].mxu0 }
0x12ba   : >> { %v9639_v15 = vadd.f32 %v2732_v12, %v2649_v29  ;;  %v7920_v16 = vpop.f32.mrb[37].mxu0 }
0x12bb   : >> { %v2735_v17 = vpop.f32.mrb[38].mxu0 }
0x12bc   : >> { %2766 = vrot.lane.b32.xlu0 %v9639_v15, %s10529_s2  ;;  %v7921_v18 = vpop.f32.mrb[39].mxu0  ;;  %v2740_v21 = vsel %vm1898_vm6, %v9639_v15, 0.0 }
0x12c9   : >> { %v3107_v19 = vpop.f32.mrb[40].mxu0 }
0x12ca   : >> { %v7964_v20 = vpop.f32.mrb[41].mxu0  ;;  %v3193_v29 = vpack.c.bf16 %v3107_v19, %v3107_v19 }
0x12cb   : >> { %v3110_v22 = vpop.f32.mrb[42].mxu0 }
0x12cc   : >> { %v7965_v13 = vpop.f32.mrb[43].mxu0  ;;  %v9703_v22 = vld [vmem:[%s10556_s10] sm:$0xff]  }
0x12cd   : >> { %7923 = vmatpush3.bf16.msra.mxu1 %v9703_v22  ;;  %v9707_v13 = vld [vmem:[%s10556_s10 + $0x8] sm:$0xff]  }
0x12ce   : >> { %7924 = vmatprep.subr.bf16.mxu1 %v10522_v10 }
0x12d1   : >> { %7925 = vmatpush3.bf16.msra.mxu1 %v9707_v13 }
0x12d2   : >> { %7926 = vmatprep.subr.bf16.mxu1 %v10522_v10 }
0x12d9   : >> { %v3147_v23 = vpop.f32.mrb[44].mxu0 }
0x12da   : >> { %v3194_v0 = vpack.c.bf16 %v3147_v23, %v3147_v23  ;;  %v7976_v31 = vpop.f32.mrb[45].mxu0  ;;  %v9714_v23 = vld [vmem:[%s10556_s10 + $0x10] sm:$0xff]  }
0x12db   : >> { %2741 = vadd.xlane.f32.xlu0 %v2740_v21  ;;  %v3150_v41 = vpop.f32.mrb[46].mxu0  ;;  %7927 = vmatpush3.bf16.msra.mxu1 %v9714_v23  ;;  %v9719_v21 = vld [vmem:[%s10556_s10 + $0x18] sm:$0xff]  }
0x12dc   : >> { %v3199_v32 = vsel %vm1347_vm2, %v3194_v0, 0  ;;  %v7977_v36 = vpop.f32.mrb[47].mxu0  ;;  %7928 = vmatprep.subr.bf16.mxu1 %v10522_v10 }
0x12dd   : >> { %7991 = vmatpush3.bf16.xpose.msra.mxu0 %v3199_v32 }
0x12de   : >> { %8002 = vmatprep.subr.bf16.mxu0 %v10522_v10 }
0x12df   : >> { %7929 = vmatpush3.bf16.msra.mxu1 %v9719_v21 }
0x12e0   : >> { %7934 = vmatprep.subr.bf16.mxu1 %v10522_v10 }
0x12e4   : >> { %7993 = vmatmul.mubr.msk.bf16.vlgmr.msra.gmra.mrb[48].mxu0 %vm1347_vm2, %v3193_v29 }
0x12e5   : >> { %8003 = vmatpush3.bf16.msra.mxu0 %v9277_v51  ;;  %8010 = vmatprep.mubr.msk.bf16.mxu0 %vm8995_vm0, %v10522_v10 }
0x12e6   : >> { %8004 = vmatprep.subr.bf16.mxu0 %v10522_v10 }
0x12e9   : >> { %8005 = vmatpush3.bf16.msra.mxu0 %v9282_v52 }
0x12ea   : >> { %8006 = vmatprep.subr.bf16.mxu0 %v10522_v10 }
0x12ed   : >> { %8007 = vmatpush3.bf16.msra.mxu0 %v9287_v53 }
0x12ee   : >> { %8008 = vmatprep.subr.bf16.mxu0 %v10522_v10 }
0x12f1   : >> { %8009 = vmatpush3.bf16.msra.mxu0 %v9292_v54 }
0x12f2   : >> { %8026 = vmatprep.subr.bf16.mxu0 %v10522_v10 }
0x12f4   : >> { %8011 = vmatmul.mubr.msk.bf16.vlgmr.msra.gmra.mrb[52].mxu0 %vm1157_vm1, %v8952_v2 }
0x12f5   : >> { %8027 = vmatpush3.bf16.msra.mxu0 %v9323_v24  ;;  %8034 = vmatprep.mubr.msk.bf16.mxu0 %vm8995_vm0, %v10522_v10 }
0x12f6   : >> { %8028 = vmatprep.subr.bf16.mxu0 %v10522_v10 }
0x12f9   : >> { %8029 = vmatpush3.bf16.msra.mxu0 %v9327_v25 }
0x12fa   : >> { %8030 = vmatprep.subr.bf16.mxu0 %v10522_v10 }
0x12fd   : >> { %8031 = vmatpush3.bf16.msra.mxu0 %v9332_v26 }
0x12fe   : >> { %8032 = vmatprep.subr.bf16.mxu0 %v10522_v10 }
0x1301   : >> { %8033 = vmatpush3.bf16.msra.mxu0 %v9337_v27 }
0x1302   : >> { %8050 = vmatprep.subr.bf16.mxu0 %v10522_v10 }
0x1304   : >> { %8035 = vmatmul.mubr.msk.bf16.vlgmr.msra.gmra.mrb[56].mxu0 %vm1157_vm1, %v8952_v2 }
0x1305   : >> { %8051 = vmatpush3.bf16.msra.mxu0 %v9355_v50  ;;  %8066 = vmatprep.mubr.msk.bf16.mxu0 %vm8995_vm0, %v10522_v10 }
0x1306   : >> { %8052 = vmatprep.subr.bf16.mxu0 %v10522_v10 }
0x1309   : >> { %8053 = vmatpush3.bf16.msra.mxu0 %v9359_v55 }
0x130a   : >> { %8054 = vmatprep.subr.bf16.mxu0 %v10522_v10 }
0x130d   : >> { %8055 = vmatpush3.bf16.msra.mxu0 %v9364_v56 }
0x130e   : >> { %8056 = vmatprep.subr.bf16.mxu0 %v10522_v10 }
0x1311   : >> { %8057 = vmatpush3.bf16.msra.mxu0 %v9369_v57 }
0x1312   : >> { %8058 = vmatprep.subr.bf16.mxu0 %v10522_v10 }
0x1315   : >> { %8059 = vmatpush3.bf16.msra.mxu0 %v9374_v58 }
0x1316   : >> { %8060 = vmatprep.subr.bf16.mxu0 %v10522_v10 }
0x1319   : >> { %8061 = vmatpush3.bf16.msra.mxu0 %v9379_v59 }
0x131a   : >> { %8062 = vmatprep.subr.bf16.mxu0 %v10522_v10 }
0x131d   : >> { %8063 = vmatpush3.bf16.msra.mxu0 %v9384_v60  ;;  %v7078_v60 = vld [vmem:[%s9075_s6 + $0x6] sm:$0x3] }
0x131e   : >> { %8064 = vmatprep.subr.bf16.mxu0 %v10522_v10  ;;  %v2798_v12 = vrot.slane %v7078_v60, %v9413_v38  ;;  %v2789_v20 = vrot.slane %v7078_v60, %v9423_v45 }
0x1321   : >> { %8065 = vmatpush3.bf16.msra.mxu0 %v9390_v61 }
0x1322   : >> { %8094 = vmatprep.subr.bf16.mxu0 %v10522_v10 }
0x132e   : >> { %v2767_v51 = vpop.permute.xlu0 %2766 }
0x132f   : >> { %v2769_v52 = vsel %vm1898_vm6, %v2767_v51, 0.0 }
0x1330   : >> { %2770 = vadd.xlane.f32.xlu1 %v2769_v52 }
0x1368   : >> { %v2742_v53 = vpop.xlane.xlu0 %2741 }
0x1369   : >> { %v2743_v54 = vmul.f32 0.03125, %v2742_v53 }
0x136b   : >> { %v2744_v24 = vsub.f32 %v9639_v15, %v2743_v54 }
0x136d   : >> { %v2745_v25 = vmul.f32 %v2744_v24, %v2744_v24 }
0x136f   : >> { %v2746_v26 = vsel %vm1898_vm6, %v2745_v25, 0.0 }
0x1370   : >> { %2747 = vadd.xlane.f32.xlu0 %v2746_v26 }
0x13b7   : >> { %v3235_v27 = vpop.f32.mrb[48].mxu0 }
0x13b8   : >> { %v7994_v50 = vpop.f32.mrb[49].mxu0  ;;  %v3241_v16 = vmul.f32 0.088388346, %v3235_v27 }
0x13b9   : >> { %v3238_v55 = vpop.f32.mrb[50].mxu0  ;;  %v7077_v50 = vld [vmem:[%s9075_s6 + $0x4] sm:$0x3] }
0x13ba   : >> { %v7995_v56 = vpop.f32.mrb[51].mxu0  ;;  %v3242_v17 = vadd.f32 %v3241_v16, %v9202_v8  ;;  %v9731_v55 = vrot.slane %v7077_v50, %v9423_v45 }
0x13bc   : >> { %v3243_v18 = vsel %vm1396_vm4, %v3242_v17, -inf }
0x13bd   : >> { %v2771_v57 = vpop.xlane.xlu1 %2770 }
0x13be   : >> { %v2772_v58 = vmul.f32 0.03125, %v2771_v57 }
0x13c0   : >> { %v2773_v59 = vsub.f32 %v9639_v15, %v2772_v58 }
0x13c2   : >> { %v2774_v61 = vmul.f32 %v2773_v59, %v2773_v59 }
0x13c4   : >> { %2776 = vrot.lane.b32.xlu1 %v2774_v61, %s10529_s2  ;;  %v9737_v61 = vrot.slane %v7077_v50, %v9413_v38 }
0x13c8   : >> { %2800 = vrot.lane.b32.xlu1 %v2798_v12, %s10526_s7 }
0x13ec   : >> { %3244 = vmax.xlane.f32.xlu1 %v3243_v18 }
0x13fd   : >> { %v2748_v51 = vpop.xlane.xlu0 %2747 }
0x13fe   : >> { %v2749_v52 = vmul.f32 0.03125, %v2748_v51  ;;  %v9782_v51 = vld [vmem:[%s10557_s11 + $0x38] sm:$0xff]  }
0x1400   : >> { %v2750_v53 = vadd.f32 1e-06, %v2749_v52  ;;  %v9787_v52 = vld [vmem:[%s10558_s15] ss:$0 sm:$0xff]  ;;  %s10565_s15 = sld [smem:[#allocation14_spill]] }
0x1436   : >> { %v2777_v19 = vpop.permute.xlu1 %2776 }
0x1437   : >> { %v2779_v15 = vsel %vm1898_vm6, %v2777_v19, 0.0  ;;  %v9744_v19 = vld [vmem:[%s10557_s11] sm:$0xff]  }
0x1438   : >> { %2780 = vadd.xlane.f32.xlu0 %v2779_v15 }
0x143a   : >> { %v9723_v0 = vpop.permute.xlu1 %2800 }
0x144e   : >> { %2791 = vrot.lane.b32.xlu0 %v2789_v20, %s10526_s7  ;;  %v9749_v20 = vld [vmem:[%s10557_s11 + $0x8] sm:$0xff]  }
0x1479   : >> { %v3245_v31 = vpop.xlane.xlu1 %3244 }
0x147a   : >> { %v3246_v41 = vsub.f32 %v3242_v17, %v3245_v31  ;;  %v9761_v31 = vld [vmem:[%s10557_s11 + $0x18] sm:$0xff]  }
0x147c   : >> { %v3247_v32 = vmul.f32 1.442695, %v3246_v41  ;;  %v9766_v41 = vld [vmem:[%s10557_s11 + $0x20] sm:$0xff]  }
0x147e   : >> { %8734 = vpow2.f32 %v3247_v32  ;;  %v9771_v32 = vld [vmem:[%s10557_s11 + $0x28] sm:$0xff]  }
0x147f   : >> { %8736 = vrsqrt.f32 %v2750_v53 }
0x1488   : >> { %v9725_v36 = vpop.eup %8734 }
0x1489   : >> { %v3249_v29 = vsel %vm1396_vm4, %v9725_v36, 0.0  ;;  %v8737_v27 = vpop.eup %8736 }
0x148a   : >> { %3250 = vadd.xlane.f32.xlu0 %v3249_v29  ;;  %v2752_v56 = vmul.f32 %v8737_v27, %v2744_v24  ;;  %v9776_v29 = vld [vmem:[%s10557_s11 + $0x30] sm:$0xff]  }
0x148c   : >> { %v2757_v60 = vmul.f32 %v9731_v55, %v2752_v56 }
0x148e   : >> { %v2762_v17 = vadd.f32 %v9737_v61, %v2757_v60  ;;  %v8807_v60 = vld [vmem:[%s9065_s24 + $0x8] sm:$0xff]  }
0x14c5   : >> { %v2781_v54 = vpop.xlane.xlu0 %2780 }
0x14c6   : >> { %v2782_v25 = vmul.f32 0.03125, %v2781_v54 }
0x14c8   : >> { %v2783_v26 = vadd.f32 1e-06, %v2782_v25 }
0x14c9   : >> { %v9733_v58 = vpop.permute.xlu0 %2791 }
0x14ca   : >> { %8738 = vrsqrt.f32 %v2783_v26 }
0x14d4   : >> { %v8739_v57 = vpop.eup %8738 }
0x14d5   : >> { %v2785_v12 = vmul.f32 %v8739_v57, %v2773_v59  ;;  %v9756_v59 = vld [vmem:[%s10557_s11 + $0x10] sm:$0xff]   ;;  %v8806_v57 = vld [vmem:[%s9065_s24] sm:$0xff]  }
0x14d7   : >> { %v2794_v16 = vmul.f32 %v9733_v58, %v2785_v12  ;;  %v8808_v12 = vld [vmem:[%s9065_s24 + $0x10] sm:$0xff]  }
0x14d9   : >> { %v2803_v18 = vadd.f32 %v9723_v0, %v2794_v16  ;;  %v8809_v16 = vld [vmem:[%s9065_s24 + $0x18] sm:$0xff]  }
0x14db   : >> { %v2804_v24 = vsel %vm1347_vm2, %v2762_v17, %v2803_v18  ;;  %v9805_v17 = vld [vmem:[%s10559_s16] ss:$0 sm:$0xff]  ;;  %s10567_s16 = sld [smem:[#allocation17_spill]] }
0x14dc   : >> { %v2805_v15 = vpack.c.bf16 %v2804_v24, %v2804_v24 }
0x14de   : >> { %7931 = vmatmul.mubr.msk.bf16.vlgmr.msra.gmra.mrb[48].mxu1 %vm1157_vm1, %v2805_v15 }
0x14df   : >> { %7935 = vmatpush3.bf16.msra.mxu1 %v9744_v19  ;;  %7950 = vmatprep.mubr.msk.bf16.mxu1 %vm8995_vm0, %v10522_v10 }
0x14e0   : >> { %7936 = vmatprep.subr.bf16.mxu1 %v10522_v10 }
0x14e3   : >> { %7937 = vmatpush3.bf16.msra.mxu1 %v9749_v20 }
0x14e4   : >> { %7938 = vmatprep.subr.bf16.mxu1 %v10522_v10 }
0x14e7   : >> { %7939 = vmatpush3.bf16.msra.mxu1 %v9756_v59 }
0x14e8   : >> { %7940 = vmatprep.subr.bf16.mxu1 %v10522_v10 }
0x14eb   : >> { %7941 = vmatpush3.bf16.msra.mxu1 %v9761_v31 }
0x14ec   : >> { %7942 = vmatprep.subr.bf16.mxu1 %v10522_v10 }
0x14ef   : >> { %7943 = vmatpush3.bf16.msra.mxu1 %v9766_v41 }
0x14f0   : >> { %7944 = vmatprep.subr.bf16.mxu1 %v10522_v10 }
0x14f3   : >> { %7945 = vmatpush3.bf16.msra.mxu1 %v9771_v32 }
0x14f4   : >> { %7946 = vmatprep.subr.bf16.mxu1 %v10522_v10 }
0x14f7   : >> { %7947 = vmatpush3.bf16.msra.mxu1 %v9776_v29 }
0x14f8   : >> { %7948 = vmatprep.subr.bf16.mxu1 %v10522_v10 }
0x14fb   : >> { %7949 = vmatpush3.bf16.msra.mxu1 %v9782_v51 }
0x14fc   : >> { %7978 = vmatprep.subr.bf16.mxu1 %v10522_v10 }
0x1517   : >> { %v3251_v24 = vpop.xlane.xlu0 %3250 }
0x1518   : >> { %8740 = vrcp.f32 %v3251_v24  ;;  %v8810_v24 = vld [vmem:[%s9060_s19 + $0x20] sm:$0xff]  }
0x15b1   : >> { %v2882_v53 = vpop.f32.mrb[48].mxu1 }
0x15b2   : >> { %v2883_v54 = vadd.f32 %v9787_v52, %v2882_v53  ;;  %v7932_v25 = vpop.f32.mrb[49].mxu1 }
0x15b3   : >> { %v2885_v26 = vpop.f32.mrb[50].mxu1 }
0x15b4   : >> { %v2888_v27 = vmax.f32 %v2883_v54, 0.0  ;;  %v7933_v50 = vpop.f32.mrb[51].mxu1  ;;  %v3001_v54 = vunpack.c.l.bf16 %v2805_v15 }
0x15b6   : >> { %v2889_v56 = vpack.c.bf16 %v2888_v27, %v2888_v27 }
0x15b8   : >> { %7951 = vmatmul.mubr.bf16.vlgmr.msra.gmra.mrb[52].mxu1 %v2889_v56  ;;  %v8741_v56 = vpop.eup %8740 }
0x15b9   : >> { %7979 = vmatpush3.bf16.msra.mxu1 %v8806_v57  ;;  %7986 = vmatprep.mubr.msk.bf16.mxu1 %vm8995_vm0, %v10522_v10 }
0x15ba   : >> { %7980 = vmatprep.subr.bf16.mxu1 %v10522_v10 }
0x15bd   : >> { %7981 = vmatpush3.bf16.msra.mxu1 %v8807_v60  ;;  %v3253_v60 = vmul.f32 %v8741_v56, %v9725_v36  ;;  %v8811_v36 = vld [vmem:[%s9060_s19 + $0x28] sm:$0xff]  }
0x15be   : >> { %7982 = vmatprep.subr.bf16.mxu1 %v10522_v10 }
0x15c1   : >> { %7983 = vmatpush3.bf16.msra.mxu1 %v8808_v12 }
0x15c2   : >> { %7984 = vmatprep.subr.bf16.mxu1 %v10522_v10 }
0x15c5   : >> { %7985 = vmatpush3.bf16.msra.mxu1 %v8809_v16 }
0x15c6   : >> { %7996 = vmatprep.subr.bf16.mxu1 %v10522_v10 }
0x15c8   : >> { %7987 = vmatmul.mubr.msk.bf16.vlgmr.msra.gmra.mrb[56].mxu1 %vm1157_vm1, %v8952_v2 }
0x15c9   : >> { %7998 = vmatprep.mubr.msk.bf16.mxu1 %vm8995_vm0, %v10522_v10 }
0x168b   : >> { %v2995_v18 = vpop.f32.mrb[52].mxu1 }
0x168c   : >> { %v2996_v53 = vadd.f32 %v9805_v17, %v2995_v18  ;;  %v7952_v25 = vpop.f32.mrb[53].mxu1  ;;  %v3254_v18 = vpack.c.bf16 %v3253_v60, %v3253_v60 }
0x168d   : >> { %v2998_v26 = vpop.f32.mrb[54].mxu1  ;;  %v10560_v25 = vmov 0.0  }
0x168e   : >> { %v9808_v27 = vadd.f32 %v3001_v54, %v2996_v53  ;;  %v7953_v50 = vpop.f32.mrb[55].mxu1  ;;  %v3336_v53 = vpop.f32.mrb[52].mxu0 }
0x168f   : >> { %v8012_v54 = vpop.f32.mrb[53].mxu0 }
0x1690   : >> { %v3339_v26 = vpop.f32.mrb[54].mxu0 }
0x1691   : >> { %v8013_v50 = vpop.f32.mrb[55].mxu0 }
0x169b   : >> { %v3187_v57 = vpop.f32.mrb[56].mxu1 }
0x169c   : >> { %v3255_v12 = vpack.c.bf16 %v3187_v57, %v3187_v57  ;;  %v7988_v16 = vpop.f32.mrb[57].mxu1 }
0x169d   : >> { %v3190_v10 = vpop.f32.mrb[58].mxu1 }
0x169e   : >> { %v3260_v4 = vsel %vm1414_vm3, %v3255_v12, 0  ;;  %v7989_v15 = vpop.f32.mrb[59].mxu1  ;;  %v8812_v10 = vld [vmem:[%s9060_s19 + $0x30] sm:$0xff]  }
0x169f   : >> { %7997 = vmatpush3.bf16.msra.mxu1 %v3260_v4  ;;  %v8813_v4 = vld [vmem:[%s9060_s19 + $0x38] sm:$0xff]  }
0x16a0   : >> { %8014 = vmatprep.subr.bf16.mxu1 %v10560_v25 }
0x16a2   : >> { %7999 = vmatmul.mubr.msk.bf16.vlgmr.msra.gmra.mrb[60].mxu1 %vm1410_vm5, %v3254_v18 }
0x16a3   : >> { %8015 = vmatpush3.bf16.msra.mxu1 %v8810_v24  ;;  %8022 = vmatprep.mubr.msk.bf16.mxu1 %vm8995_vm0, %v10560_v25 }
0x16a4   : >> { %8016 = vmatprep.subr.bf16.mxu1 %v10560_v25 }
0x16a7   : >> { %8017 = vmatpush3.bf16.msra.mxu1 %v8811_v36 }
0x16a8   : >> { %8018 = vmatprep.subr.bf16.mxu1 %v10560_v25 }
0x16ab   : >> { %8019 = vmatpush3.bf16.msra.mxu1 %v8812_v10 }
0x16ac   : >> { %8020 = vmatprep.subr.bf16.mxu1 %v10560_v25 }
0x16af   : >> { %8021 = vmatpush3.bf16.msra.mxu1 %v8813_v4  ;;  %v3422_v4 = vpack.c.bf16 %v3336_v53, %v3336_v53 }
0x16b0   : >> { %8038 = vmatprep.subr.bf16.mxu1 %v10560_v25 }
0x16b2   : >> { %8023 = vmatmul.mubr.msk.bf16.vlgmr.msra.gmra.mrb[64].mxu1 %vm1157_vm1, %v8952_v2 }
0x16b3   : >> { %8040 = vmatprep.mubr.msk.bf16.mxu1 %vm8995_vm0, %v10560_v25 }
0x1775   : >> { %v3296_v56 = vpop.f32.mrb[60].mxu1 }
0x1776   : >> { %v8000_v57 = vpop.f32.mrb[61].mxu1 }
0x1777   : >> { %v3299_v60 = vpop.f32.mrb[62].mxu1 }
0x1778   : >> { %v8001_v12 = vpop.f32.mrb[63].mxu1 }
0x1785   : >> { %v3376_v16 = vpop.f32.mrb[64].mxu1 }
0x1786   : >> { %v3423_v15 = vpack.c.bf16 %v3376_v16, %v3376_v16  ;;  %v8024_v18 = vpop.f32.mrb[65].mxu1 }
0x1787   : >> { %v3379_v24 = vpop.f32.mrb[66].mxu1 }
0x1788   : >> { %v3428_v36 = vsel %vm1347_vm2, %v3423_v15, 0  ;;  %v8025_v10 = vpop.f32.mrb[67].mxu1 }
0x1789   : >> { %8039 = vmatpush3.bf16.xpose.msra.mxu1 %v3428_v36  ;;  %v3416_v10 = vpop.f32.mrb[56].mxu0 }
0x178a   : >> { %8044 = vmatprep.subr.bf16.mxu1 %v10560_v25 }
0x1790   : >> { %8041 = vmatmul.mubr.msk.bf16.vlgmr.msra.gmra.mrb[68].mxu1 %vm1347_vm2, %v3422_v4  ;;  %v8036_v4 = vpop.f32.mrb[57].mxu0 }
0x1791   : >> { %8046 = vmatprep.mubr.msk.bf16.mxu1 %vm8995_vm0, %v10560_v25  ;;  %v3419_v7 = vpop.f32.mrb[58].mxu0  ;;  %v8819_v4 = vld [vmem:[%s9055_s14 + $0x68] sm:$0xff]  }
0x1863   : >> { %v3464_v54 = vpop.f32.mrb[68].mxu1 }
0x1864   : >> { %v3470_v26 = vmul.f32 0.088388346, %v3464_v54  ;;  %v8042_v50 = vpop.f32.mrb[69].mxu1  ;;  %v8037_v54 = vpop.f32.mrb[59].mxu0 }
0x1865   : >> { %v3467_v57 = vpop.f32.mrb[70].mxu1  ;;  %v3484_v50 = vpack.c.bf16 %v3416_v10, %v3416_v10  ;;  %v8818_v10 = vld [vmem:[%s9055_s14 + $0x60] sm:$0xff]   ;;  %v8820_v54 = vld [vmem:[%s9055_s14 + $0x70] sm:$0xff]  }
0x1866   : >> { %v3471_v60 = vadd.f32 %v3470_v26, %v9202_v8  ;;  %v8043_v12 = vpop.f32.mrb[71].mxu1  ;;  %v8838_v8 = vld [vmem:[%s9160_s12 + $0x14] ss:$8 sps:$4 sm:$0xff] (%p1118_p4)  }
0x1867   : >> { %v3489_v57 = vsel %vm1414_vm3, %v3484_v50, 0  ;;  %v8821_v50 = vld [vmem:[%s9055_s14 + $0x78] sm:$0xff]  }
0x1868   : >> { %v3472_v16 = vsel %vm1396_vm4, %v3471_v60, -inf  ;;  %8045 = vmatpush3.bf16.msra.mxu1 %v3489_v57  ;;  %v3537_v57 = vunpack.c.l.bf16 %v8952_v2 }
0x1869   : >> { %3473 = vmax.xlane.f32.xlu1 %v3472_v16  ;;  %8070 = vmatprep.subr.bf16.mxu1 %v10560_v25 }
0x18f6   : >> { %v3474_v15 = vpop.xlane.xlu1 %3473 }
0x18f7   : >> { %v3475_v18 = vsub.f32 %v3471_v60, %v3474_v15 }
0x18f9   : >> { %v3476_v24 = vmul.f32 1.442695, %v3475_v18 }
0x18fb   : >> { %8742 = vpow2.f32 %v3476_v24 }
0x1905   : >> { %v8743_v53 = vpop.eup %8742 }
0x1906   : >> { %v3478_v36 = vsel %vm1396_vm4, %v8743_v53, 0.0 }
0x1907   : >> { %3479 = vadd.xlane.f32.xlu1 %v3478_v36  ;;  %v8816_v36 = vld [vmem:[%s9065_s24 + $0x50] sm:$0xff]  }
0x1994   : >> { %v3480_v26 = vpop.xlane.xlu1 %3479 }
0x1995   : >> { %8744 = vrcp.f32 %v3480_v26 }
0x199f   : >> { %v8745_v12 = vpop.eup %8744 }
0x19a0   : >> { %v3482_v60 = vmul.f32 %v8745_v12, %v8743_v53 }
0x19a2   : >> { %v3483_v16 = vpack.c.bf16 %v3482_v60, %v3482_v60 }
0x19a4   : >> { %8047 = vmatmul.mubr.msk.bf16.vlgmr.msra.gmra.mrb[72].mxu1 %vm1410_vm5, %v3483_v16 }
0x19a5   : >> { %8071 = vmatpush3.bf16.msra.mxu1 %v9431_v49  ;;  %8078 = vmatprep.mubr.msk.bf16.mxu1 %vm8995_vm0, %v10560_v25 }
0x19a6   : >> { %8072 = vmatprep.subr.bf16.mxu1 %v10560_v25 }
0x19a9   : >> { %8073 = vmatpush3.bf16.msra.mxu1 %v9437_v63 }
0x19aa   : >> { %8074 = vmatprep.subr.bf16.mxu1 %v10560_v25 }
0x19ad   : >> { %8075 = vmatpush3.bf16.msra.mxu1 %v9448_v11  ;;  %v8814_v11 = vld [vmem:[%s9065_s24 + $0x40] sm:$0xff]  }
0x19ae   : >> { %8076 = vmatprep.subr.bf16.mxu1 %v10560_v25 }
0x19b1   : >> { %8077 = vmatpush3.bf16.msra.mxu1 %v9456_v14  ;;  %v8815_v14 = vld [vmem:[%s9065_s24 + $0x48] sm:$0xff]  }
0x19b2   : >> { %8082 = vmatprep.subr.bf16.mxu1 %v10560_v25 }
0x1a77   : >> { %v3525_v7 = vpop.f32.mrb[72].mxu1 }
0x1a78   : >> { %3532 = vrot.lane.b32.xlu0 %v3525_v7, %s8996_s0  ;;  %v8048_v49 = vpop.f32.mrb[73].mxu1 }
0x1a79   : >> { %v3528_v15 = vpop.f32.mrb[74].mxu1 }
0x1a7a   : >> { %v8049_v18 = vpop.f32.mrb[75].mxu1 }
0x1aea   : >> { %v3533_v63 = vpop.permute.xlu0 %3532 }
0x1aeb   : >> { %v3535_v24 = vsel %vm1157_vm1, %v3296_v56, %v3533_v63  ;;  %v8817_v56 = vld [vmem:[%s9065_s24 + $0x58] sm:$0xff]  }
0x1aec   : >> { %v3536_v53 = vpack.c.bf16 %v3535_v24, %v3535_v24 }
0x1aee   : >> { %8067 = vmatmul.mubr.bf16.vlgmr.msra.gmra.mrb[60].mxu0 %v3536_v53 }
0x1aef   : >> { %8095 = vmatpush3.bf16.msra.mxu0 %v8814_v11  ;;  %8102 = vmatprep.mubr.msk.bf16.mxu0 %vm8995_vm0, %v10560_v25 }
0x1af0   : >> { %8096 = vmatprep.subr.bf16.mxu0 %v10560_v25 }
0x1af3   : >> { %8097 = vmatpush3.bf16.msra.mxu0 %v8815_v14 }
0x1af4   : >> { %8098 = vmatprep.subr.bf16.mxu0 %v10560_v25 }
0x1af7   : >> { %8099 = vmatpush3.bf16.msra.mxu0 %v8816_v36 }
0x1af8   : >> { %8100 = vmatprep.subr.bf16.mxu0 %v10560_v25 }
0x1afb   : >> { %8101 = vmatpush3.bf16.msra.mxu0 %v8817_v56 }
0x1afc   : >> { %8118 = vmatprep.subr.bf16.mxu0 %v10560_v25 }
0x1afe   : >> { %8103 = vmatmul.mubr.msk.bf16.vlgmr.msra.gmra.mrb[64].mxu0 %vm1157_vm1, %v9192_v5 }
0x1aff   : >> { %8119 = vmatpush3.bf16.msra.mxu0 %v8818_v10  ;;  %8126 = vmatprep.mubr.msk.bf16.mxu0 %vm8995_vm0, %v10560_v25 }
0x1b00   : >> { %8120 = vmatprep.subr.bf16.mxu0 %v10560_v25 }
0x1b03   : >> { %8121 = vmatpush3.bf16.msra.mxu0 %v8819_v4 }
0x1b04   : >> { %8122 = vmatprep.subr.bf16.mxu0 %v10560_v25 }
0x1b07   : >> { %8123 = vmatpush3.bf16.msra.mxu0 %v8820_v54 }
0x1b08   : >> { %8124 = vmatprep.subr.bf16.mxu0 %v10560_v25 }
0x1b0b   : >> { %8125 = vmatpush3.bf16.msra.mxu0 %v8821_v50 }
0x1b0c   : >> { %8142 = vmatprep.subr.bf16.mxu0 %v10560_v25 }
0x1bc1   : >> { %v3572_v26 = vpop.f32.mrb[60].mxu0 }
0x1bc2   : >> { %v3573_v12 = vadd.f32 %v3572_v26, %v3537_v57  ;;  %v8068_v60 = vpop.f32.mrb[61].mxu0 }
0x1bc3   : >> { %v3575_v16 = vpop.f32.mrb[62].mxu0 }
0x1bc4   : >> { %3594 = vrot.lane.b32.xlu1 %v3573_v12, %s10529_s2  ;;  %v8069_v7 = vpop.f32.mrb[63].mxu0  ;;  %v3578_v49 = vsel %vm1898_vm6, %v3573_v12, 0.0 }
0x1bc5   : >> { %3579 = vadd.xlane.f32.xlu0 %v3578_v49 }
0x1bd1   : >> { %v9880_v50 = vpop.f32.mrb[64].mxu0 }
0x1bd2   : >> { %v8104_v57 = vpop.f32.mrb[65].mxu0 }
0x1bd3   : >> { %v3741_v26 = vpop.f32.mrb[66].mxu0 }
0x1bd4   : >> { %v8105_v60 = vpop.f32.mrb[67].mxu0 }
0x1c36   : >> { %v3595_v15 = vpop.permute.xlu1 %3594 }
0x1c37   : >> { %v3597_v18 = vsel %vm1898_vm6, %v3595_v15, 0.0 }
0x1c38   : >> { %3598 = vadd.xlane.f32.xlu1 %v3597_v18 }
0x1c52   : >> { %v3580_v63 = vpop.xlane.xlu0 %3579 }
0x1c53   : >> { %v3581_v24 = vmul.f32 0.03125, %v3580_v63 }
0x1c55   : >> { %v3582_v53 = vsub.f32 %v3573_v12, %v3581_v24 }
0x1c57   : >> { %v3583_v11 = vmul.f32 %v3582_v53, %v3582_v53 }
0x1c59   : >> { %v3584_v2 = vsel %vm1898_vm6, %v3583_v11, 0.0 }
0x1c5a   : >> { %3585 = vadd.xlane.f32.xlu1 %v3584_v2 }
0x1cc5   : >> { %v3599_v14 = vpop.xlane.xlu1 %3598 }
0x1cc6   : >> { %v3600_v36 = vmul.f32 0.03125, %v3599_v14 }
0x1cc8   : >> { %v3601_v56 = vsub.f32 %v3573_v12, %v3600_v36 }
0x1cca   : >> { %v3602_v10 = vmul.f32 %v3601_v56, %v3601_v56 }
0x1ccc   : >> { %3604 = vrot.lane.b32.xlu0 %v3602_v10, %s10529_s2 }
0x1ce7   : >> { %v3586_v16 = vpop.xlane.xlu1 %3585 }
0x1ce8   : >> { %v3587_v7 = vmul.f32 0.03125, %v3586_v16 }
0x1cea   : >> { %v3588_v49 = vadd.f32 1e-06, %v3587_v7 }
0x1cec   : >> { %8746 = vrsqrt.f32 %v3588_v49 }
0x1cf6   : >> { %v8747_v63 = vpop.eup %8746 }
0x1cf7   : >> { %v3590_v24 = vmul.f32 %v8747_v63, %v3582_v53 }
0x1cf9   : >> { %v3591_v2 = vmul.f32 %v3590_v24, %v9466_v28  ;;  %v8822_v28 = vld [vmem:[%s9060_s19 + $0x40] sm:$0xff]  }
0x1cfb   : >> { %v3592_v10 = vadd.f32 %v3591_v2, %v9473_v33  ;;  %v8824_v33 = vld [vmem:[%s9060_s19 + $0x50] sm:$0xff]  }
0x1d3e   : >> { %v3605_v4 = vpop.permute.xlu0 %3604 }
0x1d3f   : >> { %v3607_v54 = vsel %vm1898_vm6, %v3605_v4, 0.0 }
0x1d40   : >> { %3608 = vadd.xlane.f32.xlu1 %v3607_v54 }
0x1dcd   : >> { %v3609_v15 = vpop.xlane.xlu1 %3608 }
0x1dce   : >> { %v3610_v18 = vmul.f32 0.03125, %v3609_v15 }
0x1dd0   : >> { %v3611_v12 = vadd.f32 1e-06, %v3610_v18 }
0x1dd2   : >> { %8748 = vrsqrt.f32 %v3611_v12 }
0x1ddc   : >> { %v8749_v11 = vpop.eup %8748 }
0x1ddd   : >> { %v3613_v14 = vmul.f32 %v8749_v11, %v3601_v56 }
0x1ddf   : >> { %v3614_v36 = vmul.f32 %v3613_v14, %v9468_v30  ;;  %v8823_v30 = vld [vmem:[%s9060_s19 + $0x48] sm:$0xff]  }
0x1de1   : >> { %v3615_v4 = vadd.f32 %v3614_v36, %v9475_v35  ;;  %v8825_v35 = vld [vmem:[%s9060_s19 + $0x58] sm:$0xff]  }
0x1de3   : >> { %v3616_v54 = vsel %vm1347_vm2, %v3592_v10, %v3615_v4 }
0x1de4   : >> { %v9887_v57 = vpack.c.bf16 %v3616_v54, %v3616_v54 }
0x1de6   : >> { %8079 = vmatmul.mubr.msk.bf16.vlgmr.msra.gmra.mrb[76].mxu1 %vm1157_vm1, %v9887_v57  ;;  %8127 = vmatmul.mubr.msk.bf16.vlgmr.msra.gmra.mrb[68].mxu0 %vm1157_vm1, %v9887_v57 }
0x1de7   : >> { %8083 = vmatpush3.bf16.msra.mxu1 %v8822_v28  ;;  %8090 = vmatprep.mubr.msk.bf16.mxu1 %vm8995_vm0, %v10560_v25  ;;  %v8826_v28 = vld [vmem:[%s9060_s19 + $0x60] sm:$0xff]  }
0x1de8   : >> { %8084 = vmatprep.subr.bf16.mxu1 %v10560_v25  ;;  %8143 = vmatpush3.bf16.msra.mxu0 %v9539_v40 }
0x1de9   : >> { %8144 = vmatprep.subr.bf16.mxu0 %v10560_v25  ;;  %8150 = vmatprep.mubr.msk.bf16.mxu0 %vm8995_vm0, %v10560_v25 }
0x1deb   : >> { %8085 = vmatpush3.bf16.msra.mxu1 %v8823_v30  ;;  %v8827_v30 = vld [vmem:[%s9060_s19 + $0x68] sm:$0xff]  }
0x1dec   : >> { %8086 = vmatprep.subr.bf16.mxu1 %v10560_v25  ;;  %8145 = vmatpush3.bf16.msra.mxu0 %v9543_v34 }
0x1ded   : >> { %8146 = vmatprep.subr.bf16.mxu0 %v10560_v25 }
0x1def   : >> { %8087 = vmatpush3.bf16.msra.mxu1 %v8824_v33  ;;  %v8828_v33 = vld [vmem:[%s9060_s19 + $0x70] sm:$0xff]  }
0x1df0   : >> { %8088 = vmatprep.subr.bf16.mxu1 %v10560_v25  ;;  %8147 = vmatpush3.bf16.msra.mxu0 %v9548_v42 }
0x1df1   : >> { %8148 = vmatprep.subr.bf16.mxu0 %v10560_v25 }
0x1df3   : >> { %8089 = vmatpush3.bf16.msra.mxu1 %v8825_v35  ;;  %v8829_v35 = vld [vmem:[%s9060_s19 + $0x78] sm:$0xff]  }
0x1df4   : >> { %8106 = vmatprep.subr.bf16.mxu1 %v10560_v25  ;;  %8149 = vmatpush3.bf16.msra.mxu0 %v9553_v9 }
0x1df5   : >> { %8166 = vmatprep.subr.bf16.mxu0 %v10560_v25 }
0x1df6   : >> { %8091 = vmatmul.mubr.msk.bf16.vlgmr.msra.gmra.mrb[80].mxu1 %vm1157_vm1, %v9192_v5 }
0x1df7   : >> { %8108 = vmatprep.mubr.msk.bf16.mxu1 %vm8995_vm0, %v10560_v25  ;;  %8151 = vmatmul.mubr.msk.bf16.vlgmr.msra.gmra.mrb[72].mxu0 %vm1157_vm1, %v9192_v5 }
0x1df8   : >> { %8167 = vmatpush3.bf16.msra.mxu0 %v9570_v37  ;;  %8182 = vmatprep.mubr.msk.bf16.mxu0 %vm8995_vm0, %v10560_v25 }
0x1df9   : >> { %8168 = vmatprep.subr.bf16.mxu0 %v10560_v25 }
0x1dfc   : >> { %8169 = vmatpush3.bf16.msra.mxu0 %v9574_v39 }
0x1dfd   : >> { %8170 = vmatprep.subr.bf16.mxu0 %v10560_v25 }
0x1e00   : >> { %8171 = vmatpush3.bf16.msra.mxu0 %v9579_v43 }
0x1e01   : >> { %8172 = vmatprep.subr.bf16.mxu0 %v10560_v25 }
0x1e04   : >> { %8173 = vmatpush3.bf16.msra.mxu0 %v9584_v44 }
0x1e05   : >> { %8174 = vmatprep.subr.bf16.mxu0 %v10560_v25 }
0x1e08   : >> { %8175 = vmatpush3.bf16.msra.mxu0 %v9589_v46 }
0x1e09   : >> { %8176 = vmatprep.subr.bf16.mxu0 %v10560_v25 }
0x1e0c   : >> { %8177 = vmatpush3.bf16.msra.mxu0 %v9594_v47 }
0x1e0d   : >> { %8178 = vmatprep.subr.bf16.mxu0 %v10560_v25 }
0x1e10   : >> { %8179 = vmatpush3.bf16.msra.mxu0 %v9599_v48 }
0x1e11   : >> { %8180 = vmatprep.subr.bf16.mxu0 %v10560_v25 }
0x1e14   : >> { %8181 = vmatpush3.bf16.msra.mxu0 %v9605_v62  ;;  %v3805_v62 = vpack.c.bf16 %v9880_v50, %v9880_v50 }
0x1e15   : >> { %8218 = vmatprep.subr.bf16.mxu0 %v10560_v25 }
0x1e16   : >> { %v3810_v60 = vsel %vm1414_vm3, %v3805_v62, 0 }
0x1eb9   : >> { %v3655_v40 = vpop.f32.mrb[76].mxu1  ;;  %v9937_v34 = vpop.f32.mrb[68].mxu0 }
0x1eba   : >> { %v8080_v42 = vpop.f32.mrb[77].mxu1  ;;  %v8128_v9 = vpop.f32.mrb[69].mxu0  ;;  %v3744_v16 = vpack.c.bf16 %v3655_v40, %v3655_v40 }
0x1ebb   : >> { %v3658_v37 = vpop.f32.mrb[78].mxu1  ;;  %v3889_v39 = vpop.f32.mrb[70].mxu0 }
0x1ebc   : >> { %v8081_v43 = vpop.f32.mrb[79].mxu1  ;;  %v8129_v44 = vpop.f32.mrb[71].mxu0 }
0x1ec9   : >> { %v3698_v46 = vpop.f32.mrb[80].mxu1 }
0x1eca   : >> { %v3745_v47 = vpack.c.bf16 %v3698_v46, %v3698_v46  ;;  %v8092_v53 = vpop.f32.mrb[81].mxu1 }
0x1ecb   : >> { %v3701_v56 = vpop.f32.mrb[82].mxu1 }
0x1ecc   : >> { %v3750_v48 = vsel %vm1347_vm2, %v3745_v47, 0  ;;  %v8093_v26 = vpop.f32.mrb[83].mxu1  ;;  %v3972_v56 = vpack.c.bf16 %v9937_v34, %v9937_v34 }
0x1ecd   : >> { %8107 = vmatpush3.bf16.xpose.msra.mxu1 %v3750_v48 }
0x1ece   : >> { %8112 = vmatprep.subr.bf16.mxu1 %v10560_v25 }
0x1ed4   : >> { %8109 = vmatmul.mubr.msk.bf16.vlgmr.msra.gmra.mrb[84].mxu1 %vm1347_vm2, %v3744_v16 }
0x1ed5   : >> { %8113 = vmatpush3.bf16.msra.mxu1 %v3810_v60  ;;  %8114 = vmatprep.mubr.msk.bf16.mxu1 %vm8995_vm0, %v10560_v25 }
0x1ed6   : >> { %8130 = vmatprep.subr.bf16.mxu1 %v10560_v25 }
0x1fa7   : >> { %v3786_v7 = vpop.f32.mrb[84].mxu1 }
0x1fa8   : >> { %v3792_v49 = vmul.f32 0.088388346, %v3786_v7  ;;  %v8110_v15 = vpop.f32.mrb[85].mxu1 }
0x1fa9   : >> { %v3789_v18 = vpop.f32.mrb[86].mxu1 }
0x1faa   : >> { %v8111_v12 = vpop.f32.mrb[87].mxu1  ;;  %v3793_v50 = vsel %vm1396_vm4, %v3792_v49, -inf }
0x1fab   : >> { %3794 = vmax.xlane.f32.xlu1 %v3793_v50  ;;  %v3966_v50 = vpop.f32.mrb[72].mxu0 }
0x2038   : >> { %v3795_v63 = vpop.xlane.xlu1 %3794 }
0x2039   : >> { %v3796_v24 = vsub.f32 %v3792_v49, %v3795_v63  ;;  %v8152_v63 = vpop.f32.mrb[73].mxu0 }
0x203b   : >> { %v3797_v11 = vmul.f32 1.442695, %v3796_v24  ;;  %v3969_v24 = vpop.f32.mrb[74].mxu0 }
0x203d   : >> { %8750 = vpow2.f32 %v3797_v11  ;;  %v8153_v11 = vpop.f32.mrb[75].mxu0 }
0x2047   : >> { %v8751_v2 = vpop.eup %8750 }
0x2048   : >> { %v3799_v14 = vsel %vm1396_vm4, %v8751_v2, 0.0 }
0x2049   : >> { %3800 = vadd.xlane.f32.xlu1 %v3799_v14 }
0x20d6   : >> { %v3801_v36 = vpop.xlane.xlu1 %3800 }
0x20d7   : >> { %8752 = vrcp.f32 %v3801_v36 }
0x20e1   : >> { %v8753_v10 = vpop.eup %8752 }
0x20e2   : >> { %v3803_v4 = vmul.f32 %v8753_v10, %v8751_v2  ;;  %v4033_v2 = vpack.c.bf16 %v3966_v50, %v3966_v50 }
0x20e4   : >> { %v3804_v54 = vpack.c.bf16 %v3803_v4, %v3803_v4  ;;  %v4038_v14 = vsel %vm1414_vm3, %v4033_v2, 0 }
0x20e6   : >> { %8115 = vmatmul.mubr.msk.bf16.vlgmr.msra.gmra.mrb[88].mxu1 %vm1410_vm5, %v3804_v54 }
0x20e7   : >> { %8131 = vmatpush3.bf16.msra.mxu1 %v8826_v28  ;;  %8138 = vmatprep.mubr.msk.bf16.mxu1 %vm8995_vm0, %v10560_v25 }
0x20e8   : >> { %8132 = vmatprep.subr.bf16.mxu1 %v10560_v25 }
0x20eb   : >> { %8133 = vmatpush3.bf16.msra.mxu1 %v8827_v30 }
0x20ec   : >> { %8134 = vmatprep.subr.bf16.mxu1 %v10560_v25 }
0x20ef   : >> { %8135 = vmatpush3.bf16.msra.mxu1 %v8828_v33 }
0x20f0   : >> { %8136 = vmatprep.subr.bf16.mxu1 %v10560_v25 }
0x20f3   : >> { %8137 = vmatpush3.bf16.msra.mxu1 %v8829_v35 }
0x20f4   : >> { %8154 = vmatprep.subr.bf16.mxu1 %v10560_v25 }
0x20f6   : >> { %8139 = vmatmul.mubr.msk.bf16.vlgmr.msra.gmra.mrb[92].mxu1 %vm1157_vm1, %v9192_v5  ;;  %v8836_v5 = vld [vmem:[%s9155_s4 + $0x14] ss:$8 sps:$4 sm:$0xff] (%p1118_p4)  }
0x20f7   : >> { %8156 = vmatprep.mubr.msk.bf16.mxu1 %vm8995_vm0, %v10560_v25 }
0x21b9   : >> { %v3846_v40 = vpop.f32.mrb[88].mxu1 }
0x21ba   : >> { %v8116_v42 = vpop.f32.mrb[89].mxu1 }
0x21bb   : >> { %v3849_v9 = vpop.f32.mrb[90].mxu1  ;;  %v8638_v42 = vld [vmem:[%s10561_s18] sm:$0xff]  }
0x21bc   : >> { %v8117_v37 = vpop.f32.mrb[91].mxu1  ;;  %v8640_v9 = vld [vmem:[%s10561_s18 + $0x10] sm:$0xff]  }
0x21bd   : >> { %v8641_v37 = vld [vmem:[%s10561_s18 + $0x18] sm:$0xff]  }
0x21c9   : >> { %v3926_v39 = vpop.f32.mrb[92].mxu1 }
0x21ca   : >> { %v3973_v43 = vpack.c.bf16 %v3926_v39, %v3926_v39  ;;  %v8140_v44 = vpop.f32.mrb[93].mxu1  ;;  %v8643_v39 = vld [vmem:[%s10562_s22 + $0x8] sm:$0xff]  }
0x21cb   : >> { %v3929_v46 = vpop.f32.mrb[94].mxu1  ;;  %v8645_v44 = vld [vmem:[%s10562_s22 + $0x18] sm:$0xff]  }
0x21cc   : >> { %v3978_v47 = vsel %vm1347_vm2, %v3973_v43, 0  ;;  %v8141_v53 = vpop.f32.mrb[95].mxu1  ;;  %v8644_v43 = vld [vmem:[%s10562_s22 + $0x10] sm:$0xff]   ;;  %v4086_v46 = vunpack.c.l.bf16 %v9887_v57 }
0x21cd   : >> { %8155 = vmatpush3.bf16.xpose.msra.mxu1 %v3978_v47 }
0x21ce   : >> { %8160 = vmatprep.subr.bf16.mxu1 %v10560_v25 }
0x21d4   : >> { %8157 = vmatmul.mubr.msk.bf16.vlgmr.msra.gmra.mrb[96].mxu1 %vm1347_vm2, %v3972_v56 }
0x21d5   : >> { %8162 = vmatprep.mubr.msk.bf16.mxu1 %vm8995_vm0, %v10560_v25  ;;  %8161 = vmatpush3.bf16.msra.mxu1 %v4038_v14 }
0x21d6   : >> { %8186 = vmatprep.subr.bf16.mxu1 %v10560_v25 }
0x22a7   : >> { %v4014_v48 = vpop.f32.mrb[96].mxu1 }
0x22a8   : >> { %v4020_v26 = vmul.f32 0.088388346, %v4014_v48  ;;  %v8158_v62 = vpop.f32.mrb[97].mxu1 }
0x22a9   : >> { %v4017_v60 = vpop.f32.mrb[98].mxu1 }
0x22aa   : >> { %v8159_v16 = vpop.f32.mrb[99].mxu1  ;;  %v4021_v7 = vsel %vm1396_vm4, %v4020_v26, -inf }
0x22ab   : >> { %4022 = vmax.xlane.f32.xlu1 %v4021_v7 }
0x2338   : >> { %v4023_v49 = vpop.xlane.xlu1 %4022 }
0x2339   : >> { %v4024_v15 = vsub.f32 %v4020_v26, %v4023_v49 }
0x233b   : >> { %v4025_v18 = vmul.f32 1.442695, %v4024_v15 }
0x233d   : >> { %8754 = vpow2.f32 %v4025_v18 }
0x2347   : >> { %v8755_v12 = vpop.eup %8754 }
0x2348   : >> { %v4027_v34 = vsel %vm1396_vm4, %v8755_v12, 0.0 }
0x2349   : >> { %4028 = vadd.xlane.f32.xlu1 %v4027_v34 }
0x23d6   : >> { %v4029_v36 = vpop.xlane.xlu1 %4028 }
0x23d7   : >> { %8756 = vrcp.f32 %v4029_v36 }
0x23e1   : >> { %v8757_v10 = vpop.eup %8756 }
0x23e2   : >> { %v4031_v4 = vmul.f32 %v8757_v10, %v8755_v12 }
0x23e4   : >> { %v4032_v54 = vpack.c.bf16 %v4031_v4, %v4031_v4 }
0x23e6   : >> { %8163 = vmatmul.mubr.msk.bf16.vlgmr.msra.gmra.mrb[100].mxu1 %vm1410_vm5, %v4032_v54 }
0x23e7   : >> { %8187 = vmatpush3.bf16.msra.mxu1 %v9703_v22  ;;  %8194 = vmatprep.mubr.msk.bf16.mxu1 %vm8995_vm0, %v10560_v25 }
0x23e8   : >> { %8188 = vmatprep.subr.bf16.mxu1 %v10560_v25 }
0x23eb   : >> { %8189 = vmatpush3.bf16.msra.mxu1 %v9707_v13 }
0x23ec   : >> { %8190 = vmatprep.subr.bf16.mxu1 %v10560_v25 }
0x23ef   : >> { %8191 = vmatpush3.bf16.msra.mxu1 %v9714_v23 }
0x23f0   : >> { %8192 = vmatprep.subr.bf16.mxu1 %v10560_v25 }
0x23f3   : >> { %8193 = vmatpush3.bf16.msra.mxu1 %v9719_v21  ;;  %v8639_v21 = vld [vmem:[%s10561_s18 + $0x8] sm:$0xff]  }
0x23f4   : >> { %8198 = vmatprep.subr.bf16.mxu1 %v10560_v25 }
0x24b9   : >> { %v4074_v22 = vpop.f32.mrb[100].mxu1 }
0x24ba   : >> { %4081 = vrot.lane.b32.xlu0 %v4074_v22, %s8996_s0  ;;  %v8164_v28 = vpop.f32.mrb[101].mxu1 }
0x24bb   : >> { %v4077_v30 = vpop.f32.mrb[102].mxu1 }
0x24bc   : >> { %v8165_v33 = vpop.f32.mrb[103].mxu1 }
0x252c   : >> { %v4082_v13 = vpop.permute.xlu0 %4081 }
0x252d   : >> { %v4084_v35 = vsel %vm1157_vm1, %v3846_v40, %v4082_v13  ;;  %v8642_v40 = vld [vmem:[%s10562_s22] sm:$0xff]  }
0x252e   : >> { %v4085_v23 = vpack.c.bf16 %v4084_v35, %v4084_v35 }
0x2530   : >> { %8183 = vmatmul.mubr.bf16.vlgmr.msra.gmra.mrb[76].mxu0 %v4085_v23 }
0x2531   : >> { %8219 = vmatpush3.bf16.msra.mxu0 %v8638_v42  ;;  %8226 = vmatprep.mubr.msk.bf16.mxu0 %vm8995_vm0, %v10560_v25 }
0x2532   : >> { %8220 = vmatprep.subr.bf16.mxu0 %v10560_v25 }
0x2535   : >> { %8221 = vmatpush3.bf16.msra.mxu0 %v8639_v21 }
0x2536   : >> { %8222 = vmatprep.subr.bf16.mxu0 %v10560_v25 }
0x2539   : >> { %8223 = vmatpush3.bf16.msra.mxu0 %v8640_v9 }
0x253a   : >> { %8224 = vmatprep.subr.bf16.mxu0 %v10560_v25 }
0x253d   : >> { %8225 = vmatpush3.bf16.msra.mxu0 %v8641_v37 }
0x253e   : >> { %8230 = vmatprep.subr.bf16.mxu0 %v10560_v25 }
0x2540   : >> { %8227 = vmatmul.mubr.msk.bf16.vlgmr.msra.gmra.mrb[80].mxu0 %vm1157_vm1, %v8948_v1 }
0x2541   : >> { %8231 = vmatpush3.bf16.msra.mxu0 %v8642_v40  ;;  %8238 = vmatprep.mubr.msk.bf16.mxu0 %vm8995_vm0, %v10560_v25 }
0x2542   : >> { %8232 = vmatprep.subr.bf16.mxu0 %v10560_v25 }
0x2545   : >> { %8233 = vmatpush3.bf16.msra.mxu0 %v8643_v39 }
0x2546   : >> { %8234 = vmatprep.subr.bf16.mxu0 %v10560_v25 }
0x2549   : >> { %8235 = vmatpush3.bf16.msra.mxu0 %v8644_v43 }
0x254a   : >> { %8236 = vmatprep.subr.bf16.mxu0 %v10560_v25 }
0x254d   : >> { %8237 = vmatpush3.bf16.msra.mxu0 %v8645_v44 }
0x254e   : >> { %8254 = vmatprep.subr.bf16.mxu0 %v10560_v25 }
0x2550   : >> { %8239 = vmatmul.mubr.msk.bf16.vlgmr.msra.gmra.mrb[84].mxu0 %vm1157_vm1, %v8948_v1 }
0x2551   : >> { %8256 = vmatprep.mubr.msk.bf16.mxu0 %vm8995_vm0, %v10560_v25 }
0x2603   : >> { %v4121_v47 = vpop.f32.mrb[76].mxu0 }
0x2604   : >> { %v4122_v53 = vadd.f32 %v4121_v47, %v4086_v46  ;;  %v8184_v56 = vpop.f32.mrb[77].mxu0 }
0x2605   : >> { %v4124_v48 = vpop.f32.mrb[78].mxu0 }
0x2606   : >> { %4143 = vrot.lane.b32.xlu1 %v4122_v53, %s10529_s2  ;;  %v8185_v26 = vpop.f32.mrb[79].mxu0  ;;  %v4127_v57 = vsel %vm1898_vm6, %v4122_v53, 0.0 }
0x2613   : >> { %v4363_v62 = vpop.f32.mrb[80].mxu0 }
0x2614   : >> { %v8228_v60 = vpop.f32.mrb[81].mxu0  ;;  %v4513_v63 = vpack.c.bf16 %v4363_v62, %v4363_v62 }
0x2615   : >> { %v4366_v16 = vpop.f32.mrb[82].mxu0 }
0x2616   : >> { %v8229_v7 = vpop.f32.mrb[83].mxu0 }
0x2623   : >> { %v4435_v49 = vpop.f32.mrb[84].mxu0 }
0x2624   : >> { %v4514_v15 = vpack.c.bf16 %v4435_v49, %v4435_v49  ;;  %v8240_v18 = vpop.f32.mrb[85].mxu0 }
0x2625   : >> { %v4438_v12 = vpop.f32.mrb[86].mxu0 }
0x2626   : >> { %v4519_v34 = vsel %vm1347_vm2, %v4514_v15, 0  ;;  %v8241_v50 = vpop.f32.mrb[87].mxu0 }
0x2627   : >> { %8255 = vmatpush3.bf16.xpose.msra.mxu0 %v4519_v34 }
0x2628   : >> { %8266 = vmatprep.subr.bf16.mxu0 %v10560_v25 }
0x262a   : >> { %4128 = vadd.xlane.f32.xlu1 %v4127_v57 }
0x262e   : >> { %8257 = vmatmul.mubr.msk.bf16.vlgmr.msra.gmra.mrb[88].mxu0 %vm1347_vm2, %v4513_v63 }
0x262f   : >> { %8274 = vmatprep.mubr.msk.bf16.mxu0 %vm8995_vm0, %v10560_v25 }
0x2678   : >> { %v4144_v24 = vpop.permute.xlu1 %4143 }
0x2679   : >> { %v4146_v11 = vsel %vm1898_vm6, %v4144_v24, 0.0  ;;  %v8656_v24 = vld [vmem:[%s10561_s18 + $0x30] sm:$0xff]  }
0x267a   : >> { %4147 = vadd.xlane.f32.xlu0 %v4146_v11  ;;  %v8657_v11 = vld [vmem:[%s10561_s18 + $0x38] sm:$0xff]  }
0x26b7   : >> { %v4129_v2 = vpop.xlane.xlu1 %4128 }
0x26b8   : >> { %v4130_v14 = vmul.f32 0.03125, %v4129_v2 }
0x26ba   : >> { %v4131_v36 = vsub.f32 %v4122_v53, %v4130_v14 }
0x26bc   : >> { %v4132_v10 = vmul.f32 %v4131_v36, %v4131_v36 }
0x26be   : >> { %v4133_v4 = vsel %vm1898_vm6, %v4132_v10, 0.0 }
0x26bf   : >> { %4134 = vadd.xlane.f32.xlu1 %v4133_v4 }
0x2701   : >> { %v4555_v54 = vpop.f32.mrb[88].mxu0 }
0x2702   : >> { %v4561_v22 = vmul.f32 0.088388346, %v4555_v54  ;;  %v8258_v28 = vpop.f32.mrb[89].mxu0 }
0x2703   : >> { %v4558_v30 = vpop.f32.mrb[90].mxu0 }
0x2704   : >> { %v4562_v33 = vadd.f32 %v4561_v22, %v9198_v6  ;;  %v8259_v13 = vpop.f32.mrb[91].mxu0 }
0x2706   : >> { %v4564_v35 = vsel %vm4563_vm7, %v4562_v33, -inf }
0x2707   : >> { %v4148_v42 = vpop.xlane.xlu0 %4147  ;;  %4565 = vmax.xlane.f32.xlu1 %v4564_v35 }
0x2708   : >> { %v4149_v23 = vmul.f32 0.03125, %v4148_v42 }
0x270a   : >> { %v4150_v21 = vsub.f32 %v4122_v53, %v4149_v23 }
0x270c   : >> { %v4151_v9 = vmul.f32 %v4150_v21, %v4150_v21 }
0x270e   : >> { %4153 = vrot.lane.b32.xlu0 %v4151_v9, %s10529_s2  ;;  %v8650_v9 = vld [vmem:[%s10562_s22 + $0x20] sm:$0xff]  }
0x274c   : >> { %v4135_v39 = vpop.xlane.xlu1 %4134 }
0x274d   : >> { %v4136_v48 = vmul.f32 0.03125, %v4135_v39  ;;  %v8653_v39 = vld [vmem:[%s10562_s22 + $0x30] sm:$0xff]  }
0x274f   : >> { %v4137_v53 = vadd.f32 1e-06, %v4136_v48 }
0x2780   : >> { %v4154_v37 = vpop.permute.xlu0 %4153 }
0x2781   : >> { %v4156_v40 = vsel %vm1898_vm6, %v4154_v37, 0.0 }
0x2782   : >> { %4157 = vadd.xlane.f32.xlu0 %v4156_v40  ;;  %v8651_v40 = vld [vmem:[%s10562_s22 + $0x28] sm:$0xff]  }
0x2794   : >> { %v4566_v43 = vpop.xlane.xlu1 %4565 }
0x2795   : >> { %v4567_v44 = vsub.f32 %v4562_v33, %v4566_v43  ;;  %v8655_v43 = vld [vmem:[%s10562_s22 + $0x38] sm:$0xff]  }
0x2797   : >> { %v4568_v46 = vmul.f32 1.442695, %v4567_v44 }
0x2799   : >> { %8758 = vpow2.f32 %v4568_v46 }
0x279a   : >> { %8760 = vrsqrt.f32 %v4137_v53 }
0x27a3   : >> { %v10029_v47 = vpop.eup %8758 }
0x27a4   : >> { %v4570_v56 = vsel %vm4563_vm7, %v10029_v47, 0.0  ;;  %v8761_v16 = vpop.eup %8760 }
0x27a5   : >> { %4571 = vadd.xlane.f32.xlu1 %v4570_v56  ;;  %v4139_v7 = vmul.f32 %v8761_v16, %v4131_v36 }
0x27a7   : >> { %v4140_v15 = vmul.f32 %v4139_v7, %v9731_v55 }
0x27a9   : >> { %v4141_v34 = vadd.f32 %v4140_v15, %v9737_v61 }
0x280f   : >> { %v4158_v26 = vpop.xlane.xlu0 %4157 }
0x2810   : >> { %v4159_v62 = vmul.f32 0.03125, %v4158_v26 }
0x2812   : >> { %v4160_v60 = vadd.f32 1e-06, %v4159_v62 }
0x2814   : >> { %8762 = vrsqrt.f32 %v4160_v60 }
0x281e   : >> { %v8763_v49 = vpop.eup %8762 }
0x281f   : >> { %v4162_v18 = vmul.f32 %v8763_v49, %v4150_v21 }
0x2821   : >> { %v4163_v12 = vmul.f32 %v4162_v18, %v9733_v58 }
0x2823   : >> { %v4164_v50 = vadd.f32 %v4163_v12, %v9723_v0 }
0x2825   : >> { %v4165_v57 = vsel %vm1347_vm2, %v4141_v34, %v4164_v50  ;;  %v8658_v34 = vld [vmem:[%s10563_s23 + $0x20] sm:$0xff]   ;;  %v8659_v50 = vld [vmem:[%s10563_s23 + $0x28] sm:$0xff]  }
0x2826   : >> { %v10038_v63 = vpack.c.bf16 %v4165_v57, %v4165_v57  ;;  %v8660_v57 = vld [vmem:[%s10563_s23 + $0x30] sm:$0xff]  }
0x2828   : >> { %8195 = vmatmul.mubr.msk.bf16.vlgmr.msra.gmra.mrb[104].mxu1 %vm1157_vm1, %v10038_v63  ;;  %v4252_v10 = vunpack.c.l.bf16 %v10038_v63  ;;  %v8661_v63 = vld [vmem:[%s10563_s23 + $0x38] sm:$0xff]  }
0x2829   : >> { %8199 = vmatpush3.bf16.msra.mxu1 %v9744_v19  ;;  %8214 = vmatprep.mubr.msk.bf16.mxu1 %vm8995_vm0, %v10560_v25 }
0x282a   : >> { %8200 = vmatprep.subr.bf16.mxu1 %v10560_v25 }
0x282d   : >> { %8201 = vmatpush3.bf16.msra.mxu1 %v9749_v20 }
0x282e   : >> { %8202 = vmatprep.subr.bf16.mxu1 %v10560_v25 }
0x2831   : >> { %8203 = vmatpush3.bf16.msra.mxu1 %v9756_v59  ;;  %v8646_v59 = vld [vmem:[%s10563_s23] sm:$0xff]  }
0x2832   : >> { %8204 = vmatprep.subr.bf16.mxu1 %v10560_v25  ;;  %v4572_v14 = vpop.xlane.xlu1 %4571 }
0x2833   : >> { %8764 = vrcp.f32 %v4572_v14 }
0x2835   : >> { %8205 = vmatpush3.bf16.msra.mxu1 %v9761_v31 }
0x2836   : >> { %8206 = vmatprep.subr.bf16.mxu1 %v10560_v25 }
0x2839   : >> { %8207 = vmatpush3.bf16.msra.mxu1 %v9766_v41  ;;  %v8647_v41 = vld [vmem:[%s10563_s23 + $0x8] sm:$0xff]  }
0x283a   : >> { %8208 = vmatprep.subr.bf16.mxu1 %v10560_v25 }
0x283d   : >> { %8209 = vmatpush3.bf16.msra.mxu1 %v9771_v32  ;;  %v8648_v32 = vld [vmem:[%s10563_s23 + $0x10] sm:$0xff]   ;;  %v8765_v30 = vpop.eup %8764 }
0x283e   : >> { %8210 = vmatprep.subr.bf16.mxu1 %v10560_v25  ;;  %v4574_v13 = vmul.f32 %v8765_v30, %v10029_v47  ;;  %v8662_v30 = vld [vmem:[%s10564_s26] sm:$0xff]  }
0x2840   : >> { %v4575_v37 = vpack.c.bf16 %v4574_v13, %v4574_v13  ;;  %v8664_v13 = vld [vmem:[%s10564_s26 + $0x10] sm:$0xff]  }
0x2841   : >> { %8211 = vmatpush3.bf16.msra.mxu1 %v9776_v29  ;;  %v8649_v29 = vld [vmem:[%s10563_s23 + $0x18] sm:$0xff]  }
0x2842   : >> { %8212 = vmatprep.subr.bf16.mxu1 %v10560_v25 }
0x2845   : >> { %8213 = vmatpush3.bf16.msra.mxu1 %v9782_v51  ;;  %v8652_v51 = vld [vmem:[%s10561_s18 + $0x20] sm:$0xff]  }
0x2846   : >> { %8242 = vmatprep.subr.bf16.mxu1 %v10560_v25  ;;  %8267 = vmatpush3.bf16.msra.mxu0 %v8652_v51 }
0x2847   : >> { %8268 = vmatprep.subr.bf16.mxu0 %v10560_v25 }
0x28fb   : >> { %v4204_v0 = vpop.f32.mrb[104].mxu1 }
0x28fc   : >> { %v4205_v55 = vadd.f32 %v9787_v52, %v4204_v0  ;;  %v8196_v58 = vpop.f32.mrb[105].mxu1  ;;  %v8654_v52 = vld [vmem:[%s10561_s18 + $0x28] sm:$0xff]  }
0x28fd   : >> { %v4207_v61 = vpop.f32.mrb[106].mxu1  ;;  %8269 = vmatpush3.bf16.msra.mxu0 %v8654_v52 }
0x28fe   : >> { %v4210_v19 = vmax.f32 %v4205_v55, 0.0  ;;  %v8197_v20 = vpop.f32.mrb[107].mxu1  ;;  %8270 = vmatprep.subr.bf16.mxu0 %v10560_v25 }
0x2900   : >> { %v4211_v31 = vpack.c.bf16 %v4210_v19, %v4210_v19 }
0x2901   : >> { %8271 = vmatpush3.bf16.msra.mxu0 %v8656_v24 }
0x2902   : >> { %8215 = vmatmul.mubr.bf16.vlgmr.msra.gmra.mrb[108].mxu1 %v4211_v31  ;;  %8272 = vmatprep.subr.bf16.mxu0 %v10560_v25 }
0x2903   : >> { %8243 = vmatpush3.bf16.msra.mxu1 %v8646_v59  ;;  %8250 = vmatprep.mubr.msk.bf16.mxu1 %vm8995_vm0, %v10560_v25 }
0x2904   : >> { %8244 = vmatprep.subr.bf16.mxu1 %v10560_v25 }
0x2905   : >> { %8273 = vmatpush3.bf16.msra.mxu0 %v8657_v11 }
0x2906   : >> { %8290 = vmatprep.subr.bf16.mxu0 %v10560_v25 }
0x2907   : >> { %8245 = vmatpush3.bf16.msra.mxu1 %v8647_v41 }
0x2908   : >> { %8246 = vmatprep.subr.bf16.mxu1 %v10560_v25  ;;  %8275 = vmatmul.mubr.msk.bf16.vlgmr.msra.gmra.mrb[92].mxu0 %vm1157_vm1, %v8948_v1 }
0x2909   : >> { %8298 = vmatprep.mubr.msk.bf16.mxu0 %vm8995_vm0, %v10560_v25  ;;  %8291 = vmatpush3.bf16.msra.mxu0 %v8658_v34 }
0x290a   : >> { %8292 = vmatprep.subr.bf16.mxu0 %v10560_v25 }
0x290b   : >> { %8247 = vmatpush3.bf16.msra.mxu1 %v8648_v32 }
0x290c   : >> { %8248 = vmatprep.subr.bf16.mxu1 %v10560_v25 }
0x290d   : >> { %8293 = vmatpush3.bf16.msra.mxu0 %v8659_v50 }
0x290e   : >> { %8294 = vmatprep.subr.bf16.mxu0 %v10560_v25 }
0x290f   : >> { %8249 = vmatpush3.bf16.msra.mxu1 %v8649_v29 }
0x2910   : >> { %8260 = vmatprep.subr.bf16.mxu1 %v10560_v25 }
0x2911   : >> { %8295 = vmatpush3.bf16.msra.mxu0 %v8660_v57 }
0x2912   : >> { %8251 = vmatmul.mubr.msk.bf16.vlgmr.msra.gmra.mrb[112].mxu1 %vm1157_vm1, %v8948_v1  ;;  %8296 = vmatprep.subr.bf16.mxu0 %v10560_v25 }
0x2913   : >> { %8262 = vmatprep.mubr.msk.bf16.mxu1 %vm8995_vm0, %v10560_v25 }
0x2915   : >> { %8297 = vmatpush3.bf16.msra.mxu0 %v8661_v63  ;;  %v7182_v63 = vld [vmem:[%s10565_s15 + $0x2] sm:$0x3] }
0x2916   : >> { %8314 = vmatprep.subr.bf16.mxu0 %v10560_v25 }
0x2918   : >> { %8299 = vmatmul.mubr.msk.bf16.vlgmr.msra.gmra.mrb[96].mxu0 %vm1157_vm1, %v8948_v1 }
0x2919   : >> { %8330 = vmatprep.mubr.msk.bf16.mxu0 %vm8995_vm0, %v10560_v25  ;;  %8315 = vmatpush3.bf16.msra.mxu0 %v8662_v30 }
0x291a   : >> { %8316 = vmatprep.subr.bf16.mxu0 %v10560_v25 }
0x29d5   : >> { %v4246_v2 = vpop.f32.mrb[108].mxu1 }
0x29d6   : >> { %v4247_v36 = vadd.f32 %v9805_v17, %v4246_v2  ;;  %v8216_v4 = vpop.f32.mrb[109].mxu1 }
0x29d7   : >> { %v4249_v54 = vpop.f32.mrb[110].mxu1 }
0x29d8   : >> { %v10089_v22 = vadd.f32 %v4252_v10, %v4247_v36  ;;  %v8217_v28 = vpop.f32.mrb[111].mxu1 }
0x29db   : >> { %v4692_v44 = vpop.f32.mrb[92].mxu0 }
0x29dc   : >> { %v8276_v46 = vpop.f32.mrb[93].mxu0  ;;  %v4844_v12 = vpack.c.bf16 %v4692_v44, %v4692_v44 }
0x29dd   : >> { %v4695_v47 = vpop.f32.mrb[94].mxu0 }
0x29de   : >> { %v8277_v56 = vpop.f32.mrb[95].mxu0  ;;  %v4975_v47 = vunpack.c.l.bf16 %v8948_v1 }
0x29e5   : >> { %v4507_v33 = vpop.f32.mrb[112].mxu1 }
0x29e6   : >> { %v4576_v35 = vpack.c.bf16 %v4507_v33, %v4507_v33  ;;  %v8252_v42 = vpop.f32.mrb[113].mxu1  ;;  %v8663_v33 = vld [vmem:[%s10564_s26 + $0x8] sm:$0xff]  }
0x29e7   : >> { %v4510_v23 = vpop.f32.mrb[114].mxu1  ;;  %8317 = vmatpush3.bf16.msra.mxu0 %v8663_v33  ;;  %v8666_v42 = vld [vmem:[%s10564_s26 + $0x20] sm:$0xff]  }
0x29e8   : >> { %v4583_v17 = vsel %vm4581_vm8, %v4576_v35, 0  ;;  %v8253_v21 = vpop.f32.mrb[115].mxu1  ;;  %8318 = vmatprep.subr.bf16.mxu0 %v10560_v25  ;;  %v8665_v35 = vld [vmem:[%s10564_s26 + $0x18] sm:$0xff]   ;;  %v8667_v23 = vld [vmem:[%s10564_s26 + $0x28] sm:$0xff]  }
0x29e9   : >> { %8261 = vmatpush3.bf16.msra.mxu1 %v4583_v17  ;;  %v8668_v17 = vld [vmem:[%s10564_s26 + $0x30] sm:$0xff]   ;;  %v8669_v21 = vld [vmem:[%s10564_s26 + $0x38] sm:$0xff]  }
0x29ea   : >> { %8278 = vmatprep.subr.bf16.mxu1 %v10560_v25 }
0x29eb   : >> { %v4838_v52 = vpop.f32.mrb[96].mxu0  ;;  %8319 = vmatpush3.bf16.msra.mxu0 %v8664_v13  ;;  %v5064_v13 = vld [vmem:[%s10565_s15] sm:$0x3] }
0x29ec   : >> { %8263 = vmatmul.mubr.msk.bf16.vlgmr.msra.gmra.mrb[116].mxu1 %vm4577_vm9, %v4575_v37  ;;  %v8300_v24 = vpop.f32.mrb[97].mxu0  ;;  %v4906_v14 = vpack.c.bf16 %v4838_v52, %v4838_v52  ;;  %8320 = vmatprep.subr.bf16.mxu0 %v10560_v25  ;;  %v8677_v52 = vld [vmem:[%s10561_s18 + $0x68] sm:$0xff]  }
0x29ed   : >> { %8279 = vmatpush3.bf16.msra.mxu1 %v8650_v9  ;;  %8286 = vmatprep.mubr.msk.bf16.mxu1 %vm8995_vm0, %v10560_v25  ;;  %v4841_v11 = vpop.f32.mrb[98].mxu0  ;;  %v8678_v24 = vld [vmem:[%s10561_s18 + $0x50] sm:$0xff]  }
0x29ee   : >> { %8280 = vmatprep.subr.bf16.mxu1 %v10560_v25  ;;  %v8301_v2 = vpop.f32.mrb[99].mxu0  ;;  %v4911_v36 = vsel %vm4581_vm8, %v4906_v14, 0  ;;  %v8679_v11 = vld [vmem:[%s10561_s18 + $0x70] sm:$0xff]   ;;  %v8681_v14 = vld [vmem:[%s10561_s18 + $0x78] sm:$0xff]  }
0x29ef   : >> { %8321 = vmatpush3.bf16.msra.mxu0 %v8665_v35  ;;  %v8680_v2 = vld [vmem:[%s10561_s18 + $0x58] sm:$0xff]  }
0x29f0   : >> { %8322 = vmatprep.subr.bf16.mxu0 %v10560_v25 }
0x29f1   : >> { %8281 = vmatpush3.bf16.msra.mxu1 %v8651_v40 }
0x29f2   : >> { %8282 = vmatprep.subr.bf16.mxu1 %v10560_v25 }
0x29f3   : >> { %8323 = vmatpush3.bf16.msra.mxu0 %v8666_v42  ;;  %v5082_v42 = vrot.slane %v5064_v13, %v9423_v45 }
0x29f4   : >> { %8324 = vmatprep.subr.bf16.mxu0 %v10560_v25 }
0x29f5   : >> { %8283 = vmatpush3.bf16.msra.mxu1 %v8653_v39 }
0x29f6   : >> { %8284 = vmatprep.subr.bf16.mxu1 %v10560_v25 }
0x29f7   : >> { %8325 = vmatpush3.bf16.msra.mxu0 %v8667_v23 }
0x29f8   : >> { %8326 = vmatprep.subr.bf16.mxu0 %v10560_v25 }
0x29f9   : >> { %8285 = vmatpush3.bf16.msra.mxu1 %v8655_v43 }
0x29fa   : >> { %8302 = vmatprep.subr.bf16.mxu1 %v10560_v25 }
0x29fb   : >> { %8327 = vmatpush3.bf16.msra.mxu0 %v8668_v17 }
0x29fc   : >> { %8287 = vmatmul.mubr.msk.bf16.vlgmr.msra.gmra.mrb[120].mxu1 %vm1157_vm1, %v8948_v1  ;;  %8328 = vmatprep.subr.bf16.mxu0 %v10560_v25 }
0x29fd   : >> { %8304 = vmatprep.mubr.msk.bf16.mxu1 %vm8995_vm0, %v10560_v25 }
0x29ff   : >> { %8329 = vmatpush3.bf16.msra.mxu0 %v8669_v21 }
0x2a00   : >> { %8358 = vmatprep.subr.bf16.mxu0 %v10560_v25 }
0x2abf   : >> { %v10109_v48 = vpop.f32.mrb[116].mxu1 }
0x2ac0   : >> { %v8264_v53 = vpop.f32.mrb[117].mxu1 }
0x2ac1   : >> { %v4622_v26 = vpop.f32.mrb[118].mxu1 }
0x2ac2   : >> { %v8265_v62 = vpop.f32.mrb[119].mxu1 }
0x2acf   : >> { %v4765_v60 = vpop.f32.mrb[120].mxu1 }
0x2ad0   : >> { %v4845_v16 = vpack.c.bf16 %v4765_v60, %v4765_v60  ;;  %v8288_v7 = vpop.f32.mrb[121].mxu1 }
0x2ad1   : >> { %v4768_v49 = vpop.f32.mrb[122].mxu1 }
0x2ad2   : >> { %v4850_v15 = vsel %vm1347_vm2, %v4845_v16, 0  ;;  %v8289_v18 = vpop.f32.mrb[123].mxu1 }
0x2ad3   : >> { %8303 = vmatpush3.bf16.xpose.msra.mxu1 %v4850_v15 }
0x2ad4   : >> { %8308 = vmatprep.subr.bf16.mxu1 %v10560_v25 }
0x2ada   : >> { %8305 = vmatmul.mubr.msk.bf16.vlgmr.msra.gmra.mrb[124].mxu1 %vm1347_vm2, %v4844_v12 }
0x2adb   : >> { %8310 = vmatprep.mubr.msk.bf16.mxu1 %vm8995_vm0, %v10560_v25  ;;  %8309 = vmatpush3.bf16.msra.mxu1 %v4911_v36 }
0x2adc   : >> { %8334 = vmatprep.subr.bf16.mxu1 %v10560_v25 }
0x2bad   : >> { %v4886_v0 = vpop.f32.mrb[124].mxu1 }
0x2bae   : >> { %v4892_v55 = vmul.f32 0.088388346, %v4886_v0  ;;  %v8306_v58 = vpop.f32.mrb[125].mxu1 }
0x2baf   : >> { %v4889_v61 = vpop.f32.mrb[126].mxu1  ;;  %v8670_v58 = vld [vmem:[%s10563_s23 + $0x40] sm:$0xff]  }
0x2bb0   : >> { %v4893_v19 = vadd.f32 %v4892_v55, %v9198_v6  ;;  %v8307_v20 = vpop.f32.mrb[127].mxu1  ;;  %v5115_v55 = vrot.slane %v7182_v63, %v9423_v45  ;;  %v8671_v61 = vld [vmem:[%s10563_s23 + $0x48] sm:$0xff]  }
0x2bb2   : >> { %v4894_v59 = vsel %vm4563_vm7, %v4893_v19, -inf }
0x2bb3   : >> { %4895 = vmax.xlane.f32.xlu1 %v4894_v59  ;;  %v8672_v59 = vld [vmem:[%s10563_s23 + $0x50] sm:$0xff]  }
0x2c40   : >> { %v4896_v31 = vpop.xlane.xlu1 %4895 }
0x2c41   : >> { %v4897_v41 = vsub.f32 %v4893_v19, %v4896_v31  ;;  %v8673_v31 = vld [vmem:[%s10563_s23 + $0x58] sm:$0xff]  }
0x2c43   : >> { %v4898_v32 = vmul.f32 1.442695, %v4897_v41  ;;  %v5124_v41 = vrot.slane %v7182_v63, %v9413_v38 }
0x2c45   : >> { %8766 = vpow2.f32 %v4898_v32  ;;  %v8674_v32 = vld [vmem:[%s10561_s18 + $0x40] sm:$0xff]  }
0x2c4f   : >> { %v8767_v29 = vpop.eup %8766 }
0x2c50   : >> { %v4900_v51 = vsel %vm4563_vm7, %v8767_v29, 0.0 }
0x2c51   : >> { %4901 = vadd.xlane.f32.xlu1 %v4900_v51  ;;  %v8676_v51 = vld [vmem:[%s10561_s18 + $0x48] sm:$0xff]  }
0x2cde   : >> { %v4902_v10 = vpop.xlane.xlu1 %4901 }
0x2cdf   : >> { %8768 = vrcp.f32 %v4902_v10 }
0x2ce9   : >> { %v8769_v4 = vpop.eup %8768 }
0x2cea   : >> { %v4904_v54 = vmul.f32 %v8769_v4, %v8767_v29  ;;  %v8675_v29 = vld [vmem:[%s10561_s18 + $0x60] sm:$0xff]  }
0x2cec   : >> { %v4905_v28 = vpack.c.bf16 %v4904_v54, %v4904_v54 }
0x2cee   : >> { %8311 = vmatmul.mubr.msk.bf16.vlgmr.msra.gmra.mrb[128].mxu1 %vm4577_vm9, %v4905_v28 }
0x2cef   : >> { %8342 = vmatprep.mubr.msk.bf16.mxu1 %vm8995_vm0, %v10560_v25  ;;  %8335 = vmatpush3.bf16.msra.mxu1 %v8674_v32 }
0x2cf0   : >> { %8336 = vmatprep.subr.bf16.mxu1 %v10560_v25 }
0x2cf3   : >> { %8337 = vmatpush3.bf16.msra.mxu1 %v8676_v51 }
0x2cf4   : >> { %8338 = vmatprep.subr.bf16.mxu1 %v10560_v25 }
0x2cf7   : >> { %8339 = vmatpush3.bf16.msra.mxu1 %v8678_v24 }
0x2cf8   : >> { %8340 = vmatprep.subr.bf16.mxu1 %v10560_v25 }
0x2cfb   : >> { %8341 = vmatpush3.bf16.msra.mxu1 %v8680_v2 }
0x2cfc   : >> { %8346 = vmatprep.subr.bf16.mxu1 %v10560_v25 }
0x2dc1   : >> { %v4947_v9 = vpop.f32.mrb[128].mxu1 }
0x2dc2   : >> { %4954 = vrot.lane.b32.xlu1 %v4947_v9, %s8996_s0  ;;  %v8312_v37 = vpop.f32.mrb[129].mxu1 }
0x2dc3   : >> { %v4950_v40 = vpop.f32.mrb[130].mxu1  ;;  %v5087_v37 = vrot.slane %v5064_v13, %v9413_v38  ;;  %v8687_v13 = vld [vmem:[%s10562_s22 + $0x68] sm:$0xff]  }
0x2dc4   : >> { %v8313_v39 = vpop.f32.mrb[131].mxu1 }
0x2e34   : >> { %v4955_v43 = vpop.permute.xlu1 %4954 }
0x2e35   : >> { %v4957_v44 = vsel %vm1157_vm1, %v10109_v48, %v4955_v43 }
0x2e36   : >> { %v4958_v46 = vpack.c.bf16 %v4957_v44, %v4957_v44 }
0x2e38   : >> { %8331 = vmatmul.mubr.bf16.vlgmr.msra.gmra.mrb[100].mxu0 %v4958_v46 }
0x2e39   : >> { %8366 = vmatprep.mubr.msk.bf16.mxu0 %vm8995_vm0, %v10560_v25  ;;  %8359 = vmatpush3.bf16.msra.mxu0 %v8670_v58 }
0x2e3a   : >> { %8360 = vmatprep.subr.bf16.mxu0 %v10560_v25 }
0x2e3d   : >> { %8361 = vmatpush3.bf16.msra.mxu0 %v8671_v61 }
0x2e3e   : >> { %8362 = vmatprep.subr.bf16.mxu0 %v10560_v25 }
0x2e41   : >> { %8363 = vmatpush3.bf16.msra.mxu0 %v8672_v59 }
0x2e42   : >> { %8364 = vmatprep.subr.bf16.mxu0 %v10560_v25 }
0x2e45   : >> { %8365 = vmatpush3.bf16.msra.mxu0 %v8673_v31 }
0x2e46   : >> { %8382 = vmatprep.subr.bf16.mxu0 %v10560_v25 }
0x2e48   : >> { %8367 = vmatmul.mubr.msk.bf16.vlgmr.msra.gmra.mrb[104].mxu0 %vm1157_vm1, %v9186_v3 }
0x2e49   : >> { %8383 = vmatpush3.bf16.msra.mxu0 %v8675_v29  ;;  %8390 = vmatprep.mubr.msk.bf16.mxu0 %vm8995_vm0, %v10560_v25 }
0x2e4a   : >> { %8384 = vmatprep.subr.bf16.mxu0 %v10560_v25 }
0x2e4d   : >> { %8385 = vmatpush3.bf16.msra.mxu0 %v8677_v52 }
0x2e4e   : >> { %8386 = vmatprep.subr.bf16.mxu0 %v10560_v25 }
0x2e51   : >> { %8387 = vmatpush3.bf16.msra.mxu0 %v8679_v11 }
0x2e52   : >> { %8388 = vmatprep.subr.bf16.mxu0 %v10560_v25 }
0x2e55   : >> { %8389 = vmatpush3.bf16.msra.mxu0 %v8681_v14 }
0x2e56   : >> { %8406 = vmatprep.subr.bf16.mxu0 %v10560_v25 }
0x2f0b   : >> { %v5058_v56 = vpop.f32.mrb[100].mxu0 }
0x2f0c   : >> { %v5059_v53 = vadd.f32 %v5058_v56, %v4975_v47  ;;  %v8332_v26 = vpop.f32.mrb[101].mxu0  ;;  %v8682_v47 = vld [vmem:[%s10562_s22 + $0x40] sm:$0xff]  }
0x2f0d   : >> { %v5061_v62 = vpop.f32.mrb[102].mxu0  ;;  %v8684_v26 = vld [vmem:[%s10562_s22 + $0x50] sm:$0xff]  }
0x2f0e   : >> { %5092 = vrot.lane.b32.xlu0 %v5059_v53, %s10529_s2  ;;  %v8333_v60 = vpop.f32.mrb[103].mxu0  ;;  %v5066_v16 = vsel %vm5065_vm10, %v5059_v53, 0.0  ;;  %v8685_v62 = vld [vmem:[%s10562_s22 + $0x58] sm:$0xff]  }
0x2f1b   : >> { %v5351_v60 = vpop.f32.mrb[104].mxu0 }
0x2f2d   : >> { %5067 = vadd.xlane.f32.xlu0 %v5066_v16  ;;  %v8368_v16 = vpop.f32.mrb[105].mxu0 }
0x2f80   : >> { %v5093_v48 = vpop.permute.xlu0 %5092 }
0x2f81   : >> { %v5095_v7 = vsel %vm5065_vm10, %v5093_v48, 0.0  ;;  %v5354_v48 = vpop.f32.mrb[106].mxu0 }
0x2f82   : >> { %5096 = vadd.xlane.f32.xlu1 %v5095_v7  ;;  %v8369_v7 = vpop.f32.mrb[107].mxu0 }
0x2fba   : >> { %v5068_v49 = vpop.xlane.xlu0 %5067 }
0x2fbb   : >> { %v5069_v1 = vmul.f32 0.03125, %v5068_v49 }
0x2fbd   : >> { %v10161_v15 = vsub.f32 %v5059_v53, %v5069_v1 }
0x2fbf   : >> { %v5071_v18 = vmul.f32 %v10161_v15, %v10161_v15 }
0x2fc1   : >> { %v5072_v12 = vsel %vm5065_vm10, %v5071_v18, 0.0 }
0x2fc2   : >> { %5073 = vadd.xlane.f32.xlu0 %v5072_v12 }
0x300f   : >> { %v5097_v34 = vpop.xlane.xlu1 %5096 }
0x3010   : >> { %v5098_v50 = vmul.f32 0.03125, %v5097_v34 }
0x3012   : >> { %v10166_v57 = vsub.f32 %v5059_v53, %v5098_v50  ;;  %v8683_v53 = vld [vmem:[%s10562_s22 + $0x48] sm:$0xff]  }
0x3014   : >> { %v5100_v0 = vmul.f32 %v10166_v57, %v10166_v57 }
0x3016   : >> { %5102 = vrot.lane.b32.xlu1 %v5100_v0, %s10529_s2 }
0x301a   : >> { %5117 = vrot.lane.b32.xlu1 %v5115_v55, %s10526_s7 }
0x304f   : >> { %v5074_v36 = vpop.xlane.xlu0 %5073 }
0x3050   : >> { %v5075_v10 = vmul.f32 0.03125, %v5074_v36 }
0x3052   : >> { %v5076_v4 = vadd.f32 1e-06, %v5075_v10 }
0x3054   : >> { %8770 = vrsqrt.f32 %v5076_v4 }
0x305e   : >> { %v8771_v33 = vpop.eup %8770 }
0x305f   : >> { %v5078_v35 = vmul.f32 %v8771_v33, %v10161_v15 }
0x3061   : >> { %v5083_v9 = vmul.f32 %v5082_v42, %v5078_v35  ;;  %v8688_v35 = vld [vmem:[%s10562_s22 + $0x70] sm:$0xff]   ;;  %v8689_v42 = vld [vmem:[%s10562_s22 + $0x78] sm:$0xff]  }
0x3063   : >> { %v5088_v43 = vadd.f32 %v5087_v37, %v5083_v9 }
0x3088   : >> { %v5103_v19 = vpop.permute.xlu1 %5102 }
0x3089   : >> { %v5105_v20 = vsel %vm5065_vm10, %v5103_v19, 0.0 }
0x308a   : >> { %5106 = vadd.xlane.f32.xlu0 %v5105_v20  ;;  %v5418_v20 = vpack.c.bf16 %v5351_v60, %v5351_v60  ;;  %v8693_v60 = vld [vmem:[%s10563_s23 + $0x78] sm:$0xff]  }
0x308c   : >> { %v5118_v17 = vpop.permute.xlu1 %5117  ;;  %v5423_v59 = vsel %vm4581_vm8, %v5418_v20, 0 }
0x30a0   : >> { %5126 = vrot.lane.b32.xlu0 %v5124_v41, %s10526_s7 }
0x3117   : >> { %v5107_v54 = vpop.xlane.xlu0 %5106 }
0x3118   : >> { %v5108_v28 = vmul.f32 0.03125, %v5107_v54 }
0x311a   : >> { %v5109_v30 = vadd.f32 1e-06, %v5108_v28 }
0x311b   : >> { %v5127_v40 = vpop.permute.xlu0 %5126 }
0x311c   : >> { %8772 = vrsqrt.f32 %v5109_v30  ;;  %v8686_v30 = vld [vmem:[%s10562_s22 + $0x60] sm:$0xff]  }
0x3126   : >> { %v8773_v23 = vpop.eup %8772 }
0x3127   : >> { %v5111_v21 = vmul.f32 %v8773_v23, %v10166_v57 }
0x3129   : >> { %v5120_v39 = vmul.f32 %v5118_v17, %v5111_v21 }
0x312b   : >> { %v5129_v44 = vadd.f32 %v5127_v40, %v5120_v39 }
0x312d   : >> { %v5130_v46 = vsel %vm1347_vm2, %v5088_v43, %v5129_v44 }
0x312e   : >> { %v10212_v56 = vpack.c.bf16 %v5130_v46, %v5130_v46 }
0x3130   : >> { %8343 = vmatmul.mubr.msk.bf16.vlgmr.msra.gmra.mrb[132].mxu1 %vm1157_vm1, %v10212_v56  ;;  %8391 = vmatmul.mubr.msk.bf16.vlgmr.msra.gmra.mrb[108].mxu0 %vm1157_vm1, %v10212_v56 }
0x3131   : >> { %8347 = vmatpush3.bf16.msra.mxu1 %v8682_v47  ;;  %8354 = vmatprep.mubr.msk.bf16.mxu1 %vm8995_vm0, %v10560_v25 }
0x3132   : >> { %8348 = vmatprep.subr.bf16.mxu1 %v10560_v25  ;;  %8414 = vmatprep.mubr.msk.bf16.mxu0 %vm8995_vm0, %v10560_v25 }
0x3135   : >> { %8349 = vmatpush3.bf16.msra.mxu1 %v8683_v53  ;;  %v8690_v53 = vld [vmem:[%s10563_s23 + $0x60] sm:$0xff]  }
0x3136   : >> { %8350 = vmatprep.subr.bf16.mxu1 %v10560_v25  ;;  %8407 = vmatpush3.bf16.msra.mxu0 %v8690_v53 }
0x3137   : >> { %8408 = vmatprep.subr.bf16.mxu0 %v10560_v25 }
0x3139   : >> { %8351 = vmatpush3.bf16.msra.mxu1 %v8684_v26  ;;  %v8691_v26 = vld [vmem:[%s10563_s23 + $0x68] sm:$0xff]  }
0x313a   : >> { %8352 = vmatprep.subr.bf16.mxu1 %v10560_v25  ;;  %8409 = vmatpush3.bf16.msra.mxu0 %v8691_v26 }
0x313b   : >> { %8410 = vmatprep.subr.bf16.mxu0 %v10560_v25 }
0x313d   : >> { %8353 = vmatpush3.bf16.msra.mxu1 %v8685_v62  ;;  %v8692_v62 = vld [vmem:[%s10563_s23 + $0x70] sm:$0xff]  }
0x313e   : >> { %8370 = vmatprep.subr.bf16.mxu1 %v10560_v25  ;;  %8411 = vmatpush3.bf16.msra.mxu0 %v8692_v62  ;;  %v7290_v62 = vld [vmem:[%s10565_s15 + $0x6] sm:$0x3] }
0x313f   : >> { %8412 = vmatprep.subr.bf16.mxu0 %v10560_v25 }
0x3140   : >> { %8355 = vmatmul.mubr.msk.bf16.vlgmr.msra.gmra.mrb[136].mxu1 %vm1157_vm1, %v9186_v3 }
0x3141   : >> { %8372 = vmatprep.mubr.msk.bf16.mxu1 %vm8995_vm0, %v10560_v25 }
0x3142   : >> { %8413 = vmatpush3.bf16.msra.mxu0 %v8693_v60 }
0x3143   : >> { %8430 = vmatprep.subr.bf16.mxu0 %v10560_v25 }
0x3145   : >> { %8415 = vmatmul.mubr.msk.bf16.vlgmr.msra.gmra.mrb[112].mxu0 %vm1157_vm1, %v9186_v3 }
0x3146   : >> { %8446 = vmatprep.mubr.msk.bf16.mxu0 %vm8995_vm0, %v10560_v25 }
0x3203   : >> { %v5202_v49 = vpop.f32.mrb[132].mxu1  ;;  %v10233_v1 = vpop.f32.mrb[108].mxu0 }
0x3204   : >> { %v8344_v15 = vpop.f32.mrb[133].mxu1  ;;  %v8392_v18 = vpop.f32.mrb[109].mxu0  ;;  %v5357_v31 = vpack.c.bf16 %v5202_v49, %v5202_v49  ;;  %v5684_v47 = vpack.c.bf16 %v10233_v1, %v10233_v1 }
0x3205   : >> { %v5205_v12 = vpop.f32.mrb[134].mxu1  ;;  %v5535_v34 = vpop.f32.mrb[110].mxu0 }
0x3206   : >> { %v8345_v50 = vpop.f32.mrb[135].mxu1  ;;  %v8393_v57 = vpop.f32.mrb[111].mxu0 }
0x3213   : >> { %v5278_v63 = vpop.f32.mrb[136].mxu1 }
0x3214   : >> { %v5358_v0 = vpack.c.bf16 %v5278_v63, %v5278_v63  ;;  %v8356_v55 = vpop.f32.mrb[137].mxu1 }
0x3215   : >> { %v5281_v58 = vpop.f32.mrb[138].mxu1 }
0x3216   : >> { %v5363_v61 = vsel %vm1347_vm2, %v5358_v0, 0  ;;  %v8357_v19 = vpop.f32.mrb[139].mxu1 }
0x3217   : >> { %8371 = vmatpush3.bf16.xpose.msra.mxu1 %v5363_v61 }
0x3218   : >> { %8376 = vmatprep.subr.bf16.mxu1 %v10560_v25  ;;  %v5678_v63 = vpop.f32.mrb[112].mxu0 }
0x3219   : >> { %v8416_v0 = vpop.f32.mrb[113].mxu0  ;;  %v5745_v61 = vpack.c.bf16 %v5678_v63, %v5678_v63 }
0x321a   : >> { %v5681_v55 = vpop.f32.mrb[114].mxu0 }
0x321b   : >> { %v8417_v58 = vpop.f32.mrb[115].mxu0  ;;  %v5750_v19 = vsel %vm4581_vm8, %v5745_v61, 0 }
0x321e   : >> { %8373 = vmatmul.mubr.msk.bf16.vlgmr.msra.gmra.mrb[140].mxu1 %vm1347_vm2, %v5357_v31 }
0x321f   : >> { %8377 = vmatpush3.bf16.msra.mxu1 %v5423_v59  ;;  %8378 = vmatprep.mubr.msk.bf16.mxu1 %vm8995_vm0, %v10560_v25 }
0x3220   : >> { %8394 = vmatprep.subr.bf16.mxu1 %v10560_v25 }
0x32f1   : >> { %v5399_v41 = vpop.f32.mrb[140].mxu1 }
0x32f2   : >> { %v5405_v32 = vmul.f32 0.088388346, %v5399_v41  ;;  %v8374_v29 = vpop.f32.mrb[141].mxu1 }
0x32f3   : >> { %v5402_v51 = vpop.f32.mrb[142].mxu1  ;;  %v8695_v29 = vld [vmem:[%s10564_s26 + $0x48] sm:$0xff]  }
0x32f4   : >> { %v8375_v52 = vpop.f32.mrb[143].mxu1  ;;  %v5406_v24 = vsel %vm4563_vm7, %v5405_v32, -inf  ;;  %v8696_v51 = vld [vmem:[%s10564_s26 + $0x50] sm:$0xff]  }
0x32f5   : >> { %5407 = vmax.xlane.f32.xlu1 %v5406_v24  ;;  %v8697_v52 = vld [vmem:[%s10564_s26 + $0x58] sm:$0xff]   ;;  %v8698_v24 = vld [vmem:[%s10564_s26 + $0x60] sm:$0xff]  }
0x3382   : >> { %v5408_v11 = vpop.xlane.xlu1 %5407 }
0x3383   : >> { %v5409_v2 = vsub.f32 %v5405_v32, %v5408_v11  ;;  %v8694_v32 = vld [vmem:[%s10564_s26 + $0x40] sm:$0xff]   ;;  %v8699_v11 = vld [vmem:[%s10564_s26 + $0x68] sm:$0xff]  }
0x3384   : >> { %8431 = vmatpush3.bf16.msra.mxu0 %v8694_v32 }
0x3385   : >> { %v5410_v14 = vmul.f32 1.442695, %v5409_v2  ;;  %8432 = vmatprep.subr.bf16.mxu0 %v10560_v25  ;;  %v8700_v2 = vld [vmem:[%s10564_s26 + $0x70] sm:$0xff]  }
0x3387   : >> { %8774 = vpow2.f32 %v5410_v14  ;;  %v8701_v14 = vld [vmem:[%s10564_s26 + $0x78] sm:$0xff]  }
0x3388   : >> { %8433 = vmatpush3.bf16.msra.mxu0 %v8695_v29 }
0x3389   : >> { %8434 = vmatprep.subr.bf16.mxu0 %v10560_v25 }
0x338c   : >> { %8435 = vmatpush3.bf16.msra.mxu0 %v8696_v51 }
0x338d   : >> { %8436 = vmatprep.subr.bf16.mxu0 %v10560_v25 }
0x3390   : >> { %8437 = vmatpush3.bf16.msra.mxu0 %v8697_v52  ;;  %v7289_v52 = vld [vmem:[%s10565_s15 + $0x4] sm:$0x3] }
0x3391   : >> { %v8775_v36 = vpop.eup %8774  ;;  %8438 = vmatprep.subr.bf16.mxu0 %v10560_v25 }
0x3392   : >> { %v5412_v10 = vsel %vm4563_vm7, %v8775_v36, 0.0 }
0x3393   : >> { %5413 = vadd.xlane.f32.xlu0 %v5412_v10 }
0x3394   : >> { %8439 = vmatpush3.bf16.msra.mxu0 %v8698_v24 }
0x3395   : >> { %8440 = vmatprep.subr.bf16.mxu0 %v10560_v25 }
0x3398   : >> { %8441 = vmatpush3.bf16.msra.mxu0 %v8699_v11  ;;  %v5922_v11 = vrot.slane %v7289_v52, %v9423_v45 }
0x3399   : >> { %8442 = vmatprep.subr.bf16.mxu0 %v10560_v25 }
0x339c   : >> { %8443 = vmatpush3.bf16.msra.mxu0 %v8700_v2 }
0x339d   : >> { %8444 = vmatprep.subr.bf16.mxu0 %v10560_v25 }
0x33a0   : >> { %8445 = vmatpush3.bf16.msra.mxu0 %v8701_v14 }
0x3420   : >> { %v5414_v4 = vpop.xlane.xlu0 %5413 }
0x3421   : >> { %8776 = vrcp.f32 %v5414_v4 }
0x342b   : >> { %v8777_v54 = vpop.eup %8776 }
0x342c   : >> { %v5416_v28 = vmul.f32 %v8777_v54, %v8775_v36 }
0x342e   : >> { %v5417_v33 = vpack.c.bf16 %v5416_v28, %v5416_v28 }
0x3430   : >> { %8379 = vmatmul.mubr.msk.bf16.vlgmr.msra.gmra.mrb[144].mxu1 %vm4577_vm9, %v5417_v33 }
0x3431   : >> { %8395 = vmatpush3.bf16.msra.mxu1 %v8686_v30  ;;  %8402 = vmatprep.mubr.msk.bf16.mxu1 %vm8995_vm0, %v10560_v25 }
0x3432   : >> { %8396 = vmatprep.subr.bf16.mxu1 %v10560_v25 }
0x3435   : >> { %8397 = vmatpush3.bf16.msra.mxu1 %v8687_v13  ;;  %v5815_v13 = vunpack.c.l.bf16 %v10212_v56 }
0x3436   : >> { %8398 = vmatprep.subr.bf16.mxu1 %v10560_v25 }
0x3439   : >> { %8399 = vmatpush3.bf16.msra.mxu1 %v8688_v35 }
0x343a   : >> { %8400 = vmatprep.subr.bf16.mxu1 %v10560_v25 }
0x343d   : >> { %8401 = vmatpush3.bf16.msra.mxu1 %v8689_v42 }
0x343e   : >> { %8418 = vmatprep.subr.bf16.mxu1 %v10560_v25 }
0x3440   : >> { %8403 = vmatmul.mubr.msk.bf16.vlgmr.msra.gmra.mrb[148].mxu1 %vm1157_vm1, %v9186_v3  ;;  %v8835_v3 = vld [vmem:[%s9160_s12] ss:$8 sps:$4 sm:$0xff] (%p1118_p4)  }
0x3441   : >> { %8420 = vmatprep.mubr.msk.bf16.mxu1 %vm8995_vm0, %v10560_v25 }
0x3503   : >> { %v10259_v23 = vpop.f32.mrb[144].mxu1 }
0x3504   : >> { %v8380_v17 = vpop.f32.mrb[145].mxu1 }
0x3505   : >> { %v5462_v21 = vpop.f32.mrb[146].mxu1 }
0x3506   : >> { %v8381_v9 = vpop.f32.mrb[147].mxu1 }
0x3513   : >> { %v5605_v37 = vpop.f32.mrb[148].mxu1 }
0x3514   : >> { %v5685_v40 = vpack.c.bf16 %v5605_v37, %v5605_v37  ;;  %v8404_v39 = vpop.f32.mrb[149].mxu1 }
0x3515   : >> { %v5608_v43 = vpop.f32.mrb[150].mxu1 }
0x3516   : >> { %v5690_v44 = vsel %vm1347_vm2, %v5685_v40, 0  ;;  %v8405_v46 = vpop.f32.mrb[151].mxu1 }
0x3517   : >> { %8419 = vmatpush3.bf16.xpose.msra.mxu1 %v5690_v44 }
0x3518   : >> { %8424 = vmatprep.subr.bf16.mxu1 %v10560_v25 }
0x351e   : >> { %8421 = vmatmul.mubr.msk.bf16.vlgmr.msra.gmra.mrb[152].mxu1 %vm1347_vm2, %v5684_v47 }
0x351f   : >> { %8426 = vmatprep.mubr.msk.bf16.mxu1 %vm8995_vm0, %v10560_v25  ;;  %8425 = vmatpush3.bf16.msra.mxu1 %v5750_v19 }
0x3520   : >> { %8450 = vmatprep.subr.bf16.mxu1 %v10560_v25 }
0x35f1   : >> { %v5726_v16 = vpop.f32.mrb[152].mxu1 }
0x35f2   : >> { %v5732_v48 = vmul.f32 0.088388346, %v5726_v16  ;;  %v8422_v7 = vpop.f32.mrb[153].mxu1  ;;  %v5964_v16 = vrot.slane %v7290_v62, %v9413_v38 }
0x35f3   : >> { %v5729_v49 = vpop.f32.mrb[154].mxu1 }
0x35f4   : >> { %v8423_v1 = vpop.f32.mrb[155].mxu1  ;;  %v5733_v15 = vsel %vm4563_vm7, %v5732_v48, -inf }
0x35f5   : >> { %5734 = vmax.xlane.f32.xlu1 %v5733_v15  ;;  %v5955_v1 = vrot.slane %v7290_v62, %v9423_v45 }
0x3682   : >> { %v5735_v18 = vpop.xlane.xlu1 %5734 }
0x3683   : >> { %v5736_v12 = vsub.f32 %v5732_v48, %v5735_v18  ;;  %v3004_v48 = vsel %vm1898_vm6, %v9808_v27, 0.0 }
0x3685   : >> { %v5737_v34 = vmul.f32 1.442695, %v5736_v12 }
0x3687   : >> { %8778 = vpow2.f32 %v5737_v34 }
0x3691   : >> { %v8779_v50 = vpop.eup %8778 }
0x3692   : >> { %v5739_v57 = vsel %vm4563_vm7, %v8779_v50, 0.0 }
0x3693   : >> { %5740 = vadd.xlane.f32.xlu1 %v5739_v57 }
0x3720   : >> { %v5741_v20 = vpop.xlane.xlu1 %5740 }
0x3721   : >> { %8780 = vrcp.f32 %v5741_v20 }
0x372b   : >> { %v8781_v59 = vpop.eup %8780 }
0x372c   : >> { %v5743_v31 = vmul.f32 %v8781_v59, %v8779_v50 }
0x372e   : >> { %v5744_v41 = vpack.c.bf16 %v5743_v31, %v5743_v31 }
0x3730   : >> { %8427 = vmatmul.mubr.msk.bf16.vlgmr.msra.gmra.mrb[156].mxu1 %vm4577_vm9, %v5744_v41 }
0x3731   : >> { %8458 = vmatprep.mubr.msk.bf16.mxu1 %vm8995_vm0, %v10560_v25 }
0x3803   : >> { %v5786_v36 = vpop.f32.mrb[156].mxu1 }
0x3804   : >> { %5793 = vrot.lane.b32.xlu1 %v5786_v36, %s8996_s0  ;;  %v8428_v10 = vpop.f32.mrb[157].mxu1  ;;  %s10566_s0 = sld [smem:[#allocation15_spill]] }
0x3805   : >> { %v5789_v4 = vpop.f32.mrb[158].mxu1  ;;  %v5927_v10 = vrot.slane %v7289_v52, %v9413_v38 }
0x3806   : >> { %v8429_v54 = vpop.f32.mrb[159].mxu1 }
0x380a   : >> { %v8702_v15 = vld [vmem:[%s10566_s0] sm:$0xff]   ;;  %v8703_v18 = vld [vmem:[%s10566_s0 + $0x8] sm:$0xff]   ;;  %v8704_v12 = vld [vmem:[%s10566_s0 + $0x10] sm:$0xff]  }
0x380b   : >> { %8451 = vmatpush3.bf16.msra.mxu1 %v8702_v15  ;;  %v8705_v34 = vld [vmem:[%s10566_s0 + $0x18] sm:$0xff]   ;;  %s10569_s0 = smov 32  }
0x380c   : >> { %8452 = vmatprep.subr.bf16.mxu1 %v10560_v25 }
0x380f   : >> { %8453 = vmatpush3.bf16.msra.mxu1 %v8703_v18 }
0x3810   : >> { %8454 = vmatprep.subr.bf16.mxu1 %v10560_v25 }
0x3813   : >> { %8455 = vmatpush3.bf16.msra.mxu1 %v8704_v12 }
0x3814   : >> { %8456 = vmatprep.subr.bf16.mxu1 %v10560_v25 }
0x3817   : >> { %8457 = vmatpush3.bf16.msra.mxu1 %v8705_v34 }
0x3818   : >> { %8462 = vmatprep.subr.bf16.mxu1 %v10560_v25 }
0x3876   : >> { %v5794_v28 = vpop.permute.xlu1 %5793 }
0x3877   : >> { %v5796_v30 = vsel %vm1157_vm1, %v10259_v23, %v5794_v28 }
0x3878   : >> { %v5797_v33 = vpack.c.bf16 %v5796_v30, %v5796_v30 }
0x387a   : >> { %8447 = vmatmul.mubr.bf16.vlgmr.msra.gmra.mrb[116].mxu0 %v5797_v33 }
0x394d   : >> { %v5898_v35 = vpop.f32.mrb[116].mxu0 }
0x394e   : >> { %v5899_v42 = vadd.f32 %v5898_v35, %v5815_v13  ;;  %v8448_v17 = vpop.f32.mrb[117].mxu0 }
0x394f   : >> { %v5901_v21 = vpop.f32.mrb[118].mxu0 }
0x3950   : >> { %5932 = vrot.lane.b32.xlu0 %v5899_v42, %s10529_s2  ;;  %v8449_v9 = vpop.f32.mrb[119].mxu0  ;;  %v5906_v37 = vsel %vm5065_vm10, %v5899_v42, 0.0 }
0x3951   : >> { %v8706_v9 = vld [vmem:[%s10567_s16] sm:$0xff]  }
0x396f   : >> { %5907 = vadd.xlane.f32.xlu0 %v5906_v37 }
0x39c2   : >> { %v5933_v40 = vpop.permute.xlu0 %5932 }
0x39c3   : >> { %v5935_v39 = vsel %vm5065_vm10, %v5933_v40, 0.0 }
0x39c4   : >> { %5936 = vadd.xlane.f32.xlu1 %v5935_v39  ;;  %v8707_v39 = vld [vmem:[%s10567_s16 + $0x8] sm:$0xff]  }
0x39fc   : >> { %v5908_v23 = vpop.xlane.xlu0 %5907 }
0x39fd   : >> { %v5909_v43 = vmul.f32 0.03125, %v5908_v23 }
0x39ff   : >> { %v5910_v44 = vsub.f32 %v5899_v42, %v5909_v43  ;;  %v8709_v43 = vld [vmem:[%s10567_s16 + $0x18] sm:$0xff]  }
0x3a01   : >> { %v5911_v46 = vmul.f32 %v5910_v44, %v5910_v44 }
0x3a03   : >> { %v5912_v56 = vsel %vm5065_vm10, %v5911_v46, 0.0  ;;  %v8711_v46 = vld [vmem:[%s10567_s16 + $0x28] sm:$0xff]  }
0x3a04   : >> { %5913 = vadd.xlane.f32.xlu0 %v5912_v56  ;;  %v8712_v56 = vld [vmem:[%s10567_s16 + $0x30] sm:$0xff]  }
0x3a51   : >> { %v5937_v47 = vpop.xlane.xlu1 %5936 }
0x3a52   : >> { %v5938_v53 = vmul.f32 0.03125, %v5937_v47  ;;  %v8713_v47 = vld [vmem:[%s10567_s16 + $0x38] sm:$0xff]  }
0x3a54   : >> { %v5939_v26 = vsub.f32 %v5899_v42, %v5938_v53 }
0x3a56   : >> { %v5940_v60 = vmul.f32 %v5939_v26, %v5939_v26 }
0x3a58   : >> { %5942 = vrot.lane.b32.xlu1 %v5940_v60, %s10529_s2  ;;  %v4254_v60 = vsel %vm1898_vm6, %v10089_v22, 0.0 }
0x3a5c   : >> { %5966 = vrot.lane.b32.xlu1 %v5964_v16, %s10526_s7 }
0x3a80   : >> { %3005 = vadd.xlane.f32.xlu1 %v3004_v48 }
0x3a91   : >> { %3030 = vrot.lane.b32.xlu1 %v9808_v27, %s10529_s2  ;;  %v5914_v20 = vpop.xlane.xlu0 %5913 }
0x3a92   : >> { %v5915_v59 = vmul.f32 0.03125, %v5914_v20 }
0x3a94   : >> { %v5916_v31 = vadd.f32 1e-06, %v5915_v59 }
0x3a96   : >> { %8782 = vrsqrt.f32 %v5916_v31 }
0x3aa0   : >> { %v8783_v51 = vpop.eup %8782 }
0x3aa1   : >> { %v5918_v24 = vmul.f32 %v8783_v51, %v5910_v44  ;;  %v8710_v44 = vld [vmem:[%s10567_s16 + $0x20] sm:$0xff]  }
0x3aa3   : >> { %v5923_v36 = vmul.f32 %v5922_v11, %v5918_v24 }
0x3aa5   : >> { %v5928_v28 = vadd.f32 %v5927_v10, %v5923_v36 }
0x3aca   : >> { %v5943_v7 = vpop.permute.xlu1 %5942 }
0x3acb   : >> { %v5945_v49 = vsel %vm5065_vm10, %v5943_v7, 0.0  ;;  %v7291_v7 = vld [vmem:[%s10570_s3] ss:$0 sm:$0xff]  ;;  %s10574_s3 = sld [smem:[#allocation19_spill]] }
0x3acc   : >> { %5946 = vadd.xlane.f32.xlu0 %v5945_v49 }
0x3ace   : >> { %v5967_v50 = vpop.permute.xlu1 %5966 }
0x3ae2   : >> { %5957 = vrot.lane.b32.xlu0 %v5955_v1, %s10526_s7  ;;  %s10568_s7 = sld [smem:[#allocation9_spill]] }
0x3ae8   : >> { %v10353_v37 = vld [vmem:[%s10568_s7 + $0x2] sm:$0x3] }
0x3ae9   : >> { %v3053_v23 = vrot.slane %v10353_v37, %v9423_v45  ;;  %v3062_v52 = vrot.slane %v10353_v37, %v9413_v38 }
0x3b0d   : >> { %v3006_v57 = vpop.xlane.xlu1 %3005 }
0x3b0e   : >> { %v3007_v63 = vmul.f32 0.03125, %v3006_v57 }
0x3b10   : >> { %v10330_v0 = vsub.f32 %v9808_v27, %v3007_v63 }
0x3b11   : >> { %v3031_v61 = vpop.permute.xlu1 %3030 }
0x3b12   : >> { %v3009_v55 = vmul.f32 %v10330_v0, %v10330_v0  ;;  %v3033_v19 = vsel %vm1898_vm6, %v3031_v61, 0.0 }
0x3b14   : >> { %v3010_v58 = vsel %vm1898_vm6, %v3009_v55, 0.0 }
0x3b15   : >> { %3011 = vadd.xlane.f32.xlu0 %v3010_v58 }
0x3b19   : >> { %3034 = vadd.xlane.f32.xlu0 %v3033_v19 }
0x3b59   : >> { %v5947_v41 = vpop.xlane.xlu0 %5946 }
0x3b5a   : >> { %v5948_v32 = vmul.f32 0.03125, %v5947_v41 }
0x3b5c   : >> { %v5949_v29 = vadd.f32 1e-06, %v5948_v32 }
0x3b5d   : >> { %v5958_v14 = vpop.permute.xlu0 %5957 }
0x3b5e   : >> { %8784 = vrsqrt.f32 %v5949_v29 }
0x3b68   : >> { %v8785_v2 = vpop.eup %8784 }
0x3b69   : >> { %v5951_v4 = vmul.f32 %v8785_v2, %v5939_v26 }
0x3b6b   : >> { %v5960_v54 = vmul.f32 %v5958_v14, %v5951_v4 }
0x3b6d   : >> { %v5969_v30 = vadd.f32 %v5967_v50, %v5960_v54 }
0x3b6f   : >> { %v5970_v33 = vsel %vm1347_vm2, %v5928_v28, %v5969_v30 }
0x3b70   : >> { %v10340_v13 = vpack.c.bf16 %v5970_v33, %v5970_v33 }
0x3b72   : >> { %8459 = vmatmul.mubr.msk.bf16.vlgmr.msra.gmra.mrb[160].mxu1 %vm1157_vm1, %v10340_v13  ;;  %v6167_v31 = vunpack.c.l.bf16 %v10340_v13  ;;  %v3003_v13 = vld [vmem:[%s10568_s7] sm:$0x3] }
0x3b73   : >> { %8478 = vmatprep.mubr.msk.bf16.mxu1 %vm8995_vm0, %v10560_v25  ;;  %8463 = vmatpush3.bf16.msra.mxu1 %v8706_v9  ;;  %v3020_v9 = vrot.slane %v3003_v13, %v9423_v45 }
0x3b74   : >> { %8464 = vmatprep.subr.bf16.mxu1 %v10560_v25 }
0x3b77   : >> { %8465 = vmatpush3.bf16.msra.mxu1 %v8707_v39 }
0x3b78   : >> { %8466 = vmatprep.subr.bf16.mxu1 %v10560_v25 }
0x3ba2   : >> { %v10346_v35 = vpop.xlane.xlu0 %3011 }
0x3ba3   : >> { %v3013_v4 = vmul.f32 0.03125, %v10346_v35  ;;  %v3025_v35 = vrot.slane %v3003_v13, %v9413_v38 }
0x3ba5   : >> { %v3014_v28 = vadd.f32 1e-06, %v3013_v4  ;;  %v6169_v4 = vld [vmem:[%s10574_s3] sm:$0x3] }
0x3ba6   : >> { %v3035_v42 = vpop.xlane.xlu0 %3034 }
0x3ba7   : >> { %v3036_v17 = vmul.f32 0.03125, %v3035_v42  ;;  %8786 = vrsqrt.f32 %v3014_v28  ;;  %v6186_v28 = vrot.slane %v6169_v4, %v9423_v45 }
0x3ba9   : >> { %v10349_v21 = vsub.f32 %v9808_v27, %v3036_v17  ;;  %v8708_v27 = vld [vmem:[%s10567_s16 + $0x10] sm:$0xff]  }
0x3baa   : >> { %8467 = vmatpush3.bf16.msra.mxu1 %v8708_v27 }
0x3bab   : >> { %v3038_v40 = vmul.f32 %v10349_v21, %v10349_v21  ;;  %8468 = vmatprep.subr.bf16.mxu1 %v10560_v25 }
0x3bad   : >> { %3040 = vrot.lane.b32.xlu0 %v3038_v40, %s10529_s2 }
0x3bae   : >> { %8469 = vmatpush3.bf16.msra.mxu1 %v8709_v43 }
0x3baf   : >> { %8470 = vmatprep.subr.bf16.mxu1 %v10560_v25 }
0x3bb1   : >> { %3055 = vrot.lane.b32.xlu0 %v3053_v23, %s10569_s0  ;;  %v8787_v33 = vpop.eup %8786 }
0x3bb2   : >> { %8471 = vmatpush3.bf16.msra.mxu1 %v8710_v44  ;;  %v3016_v17 = vmul.f32 %v8787_v33, %v10330_v0 }
0x3bb3   : >> { %8472 = vmatprep.subr.bf16.mxu1 %v10560_v25 }
0x3bb4   : >> { %v3021_v39 = vmul.f32 %v3020_v9, %v3016_v17  ;;  %v6191_v17 = vrot.slane %v6169_v4, %v9413_v38  ;;  %v8895_v4 = vld [vmem:[%s9160_s12 + $0xa0] ss:$8 sps:$4 sm:$0xff] (%p1118_p4)  }
0x3bb5   : >> { %4270 = vrot.lane.b32.xlu0 %v10089_v22, %s10529_s2  ;;  %s10571_s2 = sld [smem:[#allocation18_spill]] }
0x3bb6   : >> { %8473 = vmatpush3.bf16.msra.mxu1 %v8711_v46  ;;  %v3026_v43 = vadd.f32 %v3025_v35, %v3021_v39 }
0x3bb7   : >> { %8474 = vmatprep.subr.bf16.mxu1 %v10560_v25 }
0x3bba   : >> { %8475 = vmatpush3.bf16.msra.mxu1 %v8712_v56 }
0x3bbb   : >> { %8476 = vmatprep.subr.bf16.mxu1 %v10560_v25  ;;  %v7297_v19 = vld [vmem:[%s10571_s2] ss:$0 sm:$0xff]  ;;  %s9001_s2 = smov (%p1118_p4), 96  }
0x3bbe   : >> { %8477 = vmatpush3.bf16.msra.mxu1 %v8713_v47 }
0x3c1f   : >> { %v3041_v53 = vpop.permute.xlu0 %3040 }
0x3c20   : >> { %v3043_v26 = vsel %vm1898_vm6, %v3041_v53, 0.0 }
0x3c21   : >> { %3044 = vadd.xlane.f32.xlu1 %v3043_v26 }
0x3c23   : >> { %v10378_v62 = vpop.permute.xlu0 %3055 }
0x3c25   : >> { %4255 = vadd.xlane.f32.xlu1 %v4254_v60 }
0x3c27   : >> { %v4271_v16 = vpop.permute.xlu0 %4270 }
0x3c28   : >> { %v4273_v48 = vsel %vm1898_vm6, %v4271_v16, 0.0 }
0x3c29   : >> { %4274 = vadd.xlane.f32.xlu1 %v4273_v48 }
0x3c45   : >> { %v6048_v49 = vpop.f32.mrb[160].mxu1 }
0x3c46   : >> { %v6049_v25 = vadd.f32 %v7291_v7, %v6048_v49  ;;  %v8460_v1 = vpop.f32.mrb[161].mxu1 }
0x3c47   : >> { %v6051_v15 = vpop.f32.mrb[162].mxu1 }
0x3c48   : >> { %v6054_v18 = vmax.f32 %v6049_v25, 0.0  ;;  %v8461_v12 = vpop.f32.mrb[163].mxu1 }
0x3c4a   : >> { %v6055_v34 = vpack.c.bf16 %v6054_v18, %v6054_v18 }
0x3c4c   : >> { %8479 = vmatmul.mubr.bf16.vlgmr.msra.gmra.mrb[164].mxu1 %v6055_v34 }
0x3cae   : >> { %v3045_v50 = vpop.xlane.xlu1 %3044 }
0x3caf   : >> { %v3046_v54 = vmul.f32 0.03125, %v3045_v50 }
0x3cb1   : >> { %v3047_v30 = vadd.f32 1e-06, %v3046_v54 }
0x3cb2   : >> { %v4256_v57 = vpop.xlane.xlu1 %4255 }
0x3cb3   : >> { %v4257_v2 = vmul.f32 0.03125, %v4256_v57  ;;  %8788 = vrsqrt.f32 %v3047_v30 }
0x3cb5   : >> { %v4258_v14 = vsub.f32 %v10089_v22, %v4257_v2 }
0x3cb6   : >> { %v4275_v63 = vpop.xlane.xlu1 %4274 }
0x3cb7   : >> { %v4276_v55 = vmul.f32 0.03125, %v4275_v63  ;;  %v4259_v36 = vmul.f32 %v4258_v14, %v4258_v14 }
0x3cb9   : >> { %v4277_v58 = vsub.f32 %v10089_v22, %v4276_v55  ;;  %v4260_v10 = vsel %vm1898_vm6, %v4259_v36, 0.0 }
0x3cbb   : >> { %v4278_v61 = vmul.f32 %v4277_v58, %v4277_v58 }
0x3cbd   : >> { %4280 = vrot.lane.b32.xlu1 %v4278_v61, %s10572_s5  ;;  %v8789_v42 = vpop.eup %8788 }
0x3cbe   : >> { %v3049_v22 = vmul.f32 %v8789_v42, %v10349_v21 }
0x3cc0   : >> { %v3058_v23 = vmul.f32 %v10378_v62, %v3049_v22 }
0x3d1f   : >> { %v6161_v20 = vpop.f32.mrb[164].mxu1 }
0x3d20   : >> { %v6162_v59 = vadd.f32 %v7297_v19, %v6161_v20  ;;  %v8480_v41 = vpop.f32.mrb[165].mxu1 }
0x3d21   : >> { %v6164_v32 = vpop.f32.mrb[166].mxu1 }
0x3d22   : >> { %v10388_v29 = vadd.f32 %v6167_v31, %v6162_v59  ;;  %v8481_v51 = vpop.f32.mrb[167].mxu1  ;;  %v7306_v31 = vld [vmem:[%s10574_s3 + $0x2] sm:$0x3] }
0x3d23   : >> { %v6228_v41 = vrot.slane %v7306_v31, %v9413_v38 }
0x3d24   : >> { %6196 = vrot.lane.b32.xlu0 %v10388_v29, %s10572_s5  ;;  %v6170_v46 = vsel %vm5065_vm10, %v10388_v29, 0.0 }
0x3d28   : >> { %3064 = vrot.lane.b32.xlu0 %v3062_v52, %s10569_s0 }
0x3d2f   : >> { %v4281_v24 = vpop.permute.xlu1 %4280 }
0x3d30   : >> { %v4283_v11 = vsel %vm1898_vm6, %v4281_v24, 0.0  ;;  %v6219_v24 = vrot.slane %v7306_v31, %v9423_v45  ;;  %v8830_v45 = vld [vmem:[%s9155_s4 + $0x4] ss:$8 sps:$4 sm:$0xff] (%p1118_p4)   ;;  %v8877_v31 = vld [vmem:[%s9160_s12 + $0x70] ss:$8 sps:$4 sm:$0xff] (%p1118_p4)  }
0x3d31   : >> { %4284 = vadd.xlane.f32.xlu1 %v4283_v11  ;;  %6413 = vmatprep.subr.bf16.mxu0 (%p1118_p4), %v8830_v45 }
0x3d47   : >> { %4261 = vadd.xlane.f32.xlu0 %v4260_v10 }
0x3d96   : >> { %v6197_v37 = vpop.permute.xlu0 %6196 }
0x3d97   : >> { %v6199_v40 = vsel %vm5065_vm10, %v6197_v37, 0.0 }
0x3d98   : >> { %6200 = vadd.xlane.f32.xlu0 %v6199_v40 }
0x3d9a   : >> { %v3065_v27 = vpop.permute.xlu0 %3064 }
0x3d9b   : >> { %v3067_v44 = vadd.f32 %v3065_v27, %v3058_v23  ;;  %v8832_v23 = vld [vmem:[%s9160_s12 + $0x4] ss:$8 sps:$4 sm:$0xff] (%p1118_p4)  }
0x3d9c   : >> { %6171 = vadd.xlane.f32.xlu0 %v6170_v46  ;;  %6598 = vmatprep.subr.bf16.mxu1 (%p1118_p4), %v8832_v23 }
0x3d9d   : >> { %v3068_v0 = vsel %vm1347_vm2, %v3026_v43, %v3067_v44  ;;  %v8834_v44 = vld [vmem:[%s9155_s4] ss:$8 sps:$4 sm:$0xff] (%p1118_p4)   ;;  %6599 = vmatpush1.bf16.msra.mxu1 (%p1118_p4), %v8835_v3 }
0x3d9e   : >> { %v10409_v0 = vpack.c.bf16 %v3068_v0, %v3068_v0   ;;  %6414 = vmatpush1.bf16.msra.mxu0 (%p1118_p4), %v8834_v44  ;;  %6600 = vmatprep.subr.bf16.mxu1 (%p1118_p4), %v8838_v8 }
0x3d9f   : > { %6415 = vmatprep.subr.bf16.mxu0 (%p1118_p4), %v8836_v5 }
0x3da0   : >> { %v10573_v21 = vmov %v10409_v0 }
0x3da1   : >> { %v10577_v0 = vmov %v10573_v21 }
0x3da2   : > { %v8840_v0 = vld [vmem:[%s9155_s4 + $0x10] ss:$8 sps:$4 sm:$0xff] (%p1118_p4)  }
0x3da3   : > { %6416 = vmatpush1.bf16.msra.mxu0 (%p1118_p4), %v8840_v0 }
0x3dbe   : >> { %v4285_v56 = vpop.xlane.xlu1 %4284 }
0x3dbf   : >> { %v4286_v47 = vmul.f32 0.03125, %v4285_v56  ;;  %v8841_v56 = vld [vmem:[%s9160_s12 + $0x10] ss:$8 sps:$4 sm:$0xff] (%p1118_p4)  }
0x3dc0   : > { %6601 = vmatpush1.bf16.msra.mxu1 (%p1118_p4), %v8841_v56 }
0x3dc1   : >> { %v4287_v53 = vadd.f32 1e-06, %v4286_v47 }
0x3dc3   : >> { %8790 = vrsqrt.f32 %v4287_v53  ;;  %v8842_v53 = vld [vmem:[%s9155_s4 + $0x24] ss:$8 sps:$4 sm:$0xff] (%p1118_p4)  }
0x3dc4   : > { %6417 = vmatprep.subr.bf16.mxu0 (%p1118_p4), %v8842_v53 }
0x3dcd   : >> { %v8791_v48 = vpop.eup %8790 }
0x3dce   : >> { %v4289_v7 = vmul.f32 %v8791_v48, %v4277_v58  ;;  %v8848_v48 = vld [vmem:[%s9155_s4 + $0x34] ss:$8 sps:$4 sm:$0xff] (%p1118_p4)  }
0x3dd0   : >> { %v4290_v25 = vmul.f32 %v4289_v7, %v10378_v62  ;;  %v8850_v7 = vld [vmem:[%s9160_s12 + $0x34] ss:$8 sps:$4 sm:$0xff] (%p1118_p4)  }
0x3dd2   : >> { %v4291_v18 = vadd.f32 %v4290_v25, %v3065_v27  ;;  %v8853_v25 = vld [vmem:[%s9160_s12 + $0x30] ss:$8 sps:$4 sm:$0xff] (%p1118_p4)  }
0x3dd4   : >> { %v4262_v26 = vpop.xlane.xlu0 %4261 }
0x3dd5   : >> { %v4263_v60 = vmul.f32 0.03125, %v4262_v26  ;;  %v8844_v26 = vld [vmem:[%s9160_s12 + $0x24] ss:$8 sps:$4 sm:$0xff] (%p1118_p4)  }
0x3dd6   : > { %6602 = vmatprep.subr.bf16.mxu1 (%p1118_p4), %v8844_v26 }
0x3dd7   : >> { %v4264_v16 = vadd.f32 1e-06, %v4263_v60  ;;  %v8846_v60 = vld [vmem:[%s9155_s4 + $0x20] ss:$8 sps:$4 sm:$0xff] (%p1118_p4)  }
0x3dd8   : > { %6418 = vmatpush1.bf16.msra.mxu0 (%p1118_p4), %v8846_v60 }
0x3dd9   : >> { %8792 = vrsqrt.f32 %v4264_v16  ;;  %v8847_v16 = vld [vmem:[%s9160_s12 + $0x20] ss:$8 sps:$4 sm:$0xff] (%p1118_p4)   ;;  %6419 = vmatprep.subr.bf16.mxu0 (%p1118_p4), %v8848_v48 }
0x3dda   : > { %6603 = vmatpush1.bf16.msra.mxu1 (%p1118_p4), %v8847_v16 }
0x3ddb   : > { %6604 = vmatprep.subr.bf16.mxu1 (%p1118_p4), %v8850_v7 }
0x3dde   : > { %6605 = vmatpush1.bf16.msra.mxu1 (%p1118_p4), %v8853_v25  ;;  %v7361_v25 = vld [vmem:[%s9165_s20 + $0xc] sm:$0xf] (%p1118_p4) }
0x3de3   : >> { %v8793_v49 = vpop.eup %8792 }
0x3de4   : >> { %v4266_v1 = vmul.f32 %v8793_v49, %v4258_v14  ;;  %v8852_v49 = vld [vmem:[%s9155_s4 + $0x30] ss:$8 sps:$4 sm:$0xff] (%p1118_p4)  }
0x3de5   : > { %6420 = vmatpush1.bf16.msra.mxu0 (%p1118_p4), %v8852_v49 }
0x3de6   : >> { %v4267_v15 = vmul.f32 %v4266_v1, %v3020_v9 }
0x3de8   : >> { %v4268_v12 = vadd.f32 %v4267_v15, %v3025_v35  ;;  %v8856_v15 = vld [vmem:[%s9160_s12 + $0x44] ss:$8 sps:$4 sm:$0xff] (%p1118_p4)  }
0x3de9   : > { %6606 = vmatprep.subr.bf16.mxu1 (%p1118_p4), %v8856_v15 }
0x3dea   : >> { %v4292_v34 = vsel %vm1347_vm2, %v4268_v12, %v4291_v18  ;;  %v8858_v18 = vld [vmem:[%s9155_s4 + $0x40] ss:$8 sps:$4 sm:$0xff] (%p1118_p4)  }
0x3deb   : >> { %v4293_v50 = vpack.c.bf16 %v4292_v34, %v4292_v34   ;;  %v8859_v12 = vld [vmem:[%s9160_s12 + $0x40] ss:$8 sps:$4 sm:$0xff] (%p1118_p4)   ;;  %v8860_v34 = vld [vmem:[%s9155_s4 + $0x54] ss:$8 sps:$4 sm:$0xff] (%p1118_p4)  }
0x3dec   : > { %6607 = vmatpush1.bf16.msra.mxu1 (%p1118_p4), %v8859_v12 }
0x3ded   : > { %v6236_v38 = vunpack.c.l.bf16 (%p1118_p4), %v4293_v50 }
0x3def   : > { %v6238_v27 = vrot.slane (%p1118_p4), %v6236_v38, 7  ;;  %v6240_v43 = vrot.slane (%p1118_p4), %v6236_v38, 6 }
0x3df1   : > { %v6243_v6 = vsel (%p1118_p4), %vm1414_vm3, 0.0, %v6238_v27 }
0x3df2   : > { %v6245_v46 = vsel (%p1118_p4), %vm4581_vm8, %v6243_v6, %v6240_v43 }
0x3df3   : > { %v6247_v47 = vsel (%p1118_p4), %vm6246_vm11, %v6245_v46, %v6240_v43 }
0x3e25   : >> { %v6201_v57 = vpop.xlane.xlu0 %6200 }
0x3e26   : >> { %v6202_v58 = vmul.f32 0.03125, %v6201_v57  ;;  %v8864_v57 = vld [vmem:[%s9155_s4 + $0x50] ss:$8 sps:$4 sm:$0xff] (%p1118_p4)  }
0x3e28   : >> { %v6203_v62 = vsub.f32 %v10388_v29, %v6202_v58  ;;  %v8872_v58 = vld [vmem:[%s9155_s4 + $0x74] ss:$8 sps:$4 sm:$0xff] (%p1118_p4)  }
0x3e29   : >> { %v6172_v63 = vpop.xlane.xlu0 %6171 }
0x3e2a   : >> { %v6173_v55 = vmul.f32 0.03125, %v6172_v63  ;;  %v6204_v59 = vmul.f32 %v6203_v62, %v6203_v62  ;;  %v8865_v63 = vld [vmem:[%s9160_s12 + $0x50] ss:$8 sps:$4 sm:$0xff] (%p1118_p4)  }
0x3e2c   : >> { %v6174_v61 = vsub.f32 %v10388_v29, %v6173_v55  ;;  %v8866_v55 = vld [vmem:[%s9155_s4 + $0x64] ss:$8 sps:$4 sm:$0xff] (%p1118_p4)  }
0x3e2e   : >> { %v6175_v19 = vmul.f32 %v6174_v61, %v6174_v61 }
0x3e30   : >> { %v6176_v20 = vsel %vm5065_vm10, %v6175_v19, 0.0  ;;  %v8870_v19 = vld [vmem:[%s9155_s4 + $0x60] ss:$8 sps:$4 sm:$0xff] (%p1118_p4)  }
0x3e31   : >> { %6177 = vadd.xlane.f32.xlu0 %v6176_v20  ;;  %v8871_v20 = vld [vmem:[%s9160_s12 + $0x60] ss:$8 sps:$4 sm:$0xff] (%p1118_p4)  }
0x3e47   : >> { %6206 = vrot.lane.b32.xlu0 %v6204_v59, %s10572_s5  ;;  %s8999_s5 = smov (%p1118_p4), 64   ;;  %v8876_v59 = vld [vmem:[%s9155_s4 + $0x70] ss:$8 sps:$4 sm:$0xff] (%p1118_p4)  }
0x3e4b   : >> { %6230 = vrot.lane.b32.xlu0 %v6228_v41, %s10569_s0  ;;  %v8878_v41 = vld [vmem:[%s9155_s4 + $0x84] ss:$8 sps:$4 sm:$0xff] (%p1118_p4)  }
0x3e4f   : > { %6259 = vrot.lane.b32.xlu0 (%p1118_p4), %v6247_v47, %s8999_s5 }
0x3ebe   : >> { %v6178_v32 = vpop.xlane.xlu0 %6177 }
0x3ebf   : >> { %v6179_v11 = vmul.f32 0.03125, %v6178_v32  ;;  %v8880_v32 = vld [vmem:[%s9160_s12 + $0x84] ss:$8 sps:$4 sm:$0xff] (%p1118_p4)  }
0x3ec1   : >> { %v6180_v29 = vadd.f32 1e-06, %v6179_v11  ;;  %v8886_v11 = vld [vmem:[%s9160_s12 + $0x94] ss:$8 sps:$4 sm:$0xff] (%p1118_p4)  }
0x3ec2   : >> { %v6207_v51 = vpop.permute.xlu0 %6206 }
0x3ec3   : >> { %v6209_v52 = vsel %vm5065_vm10, %v6207_v51, 0.0  ;;  %8794 = vrsqrt.f32 %v6180_v29  ;;  %v8882_v51 = vld [vmem:[%s9155_s4 + $0x80] ss:$8 sps:$4 sm:$0xff] (%p1118_p4)   ;;  %v8888_v29 = vld [vmem:[%s9155_s4 + $0x90] ss:$8 sps:$4 sm:$0xff] (%p1118_p4)  }
0x3ec4   : >> { %6210 = vadd.xlane.f32.xlu1 %v6209_v52  ;;  %v8883_v52 = vld [vmem:[%s9160_s12 + $0x80] ss:$8 sps:$4 sm:$0xff] (%p1118_p4)  }
0x3ec6   : >> { %v6231_v9 = vpop.permute.xlu0 %6230 }
0x3ecd   : >> { %v8795_v10 = vpop.eup %8794 }
0x3ece   : >> { %v6182_v54 = vmul.f32 %v8795_v10, %v6174_v61  ;;  %v8868_v61 = vld [vmem:[%s9160_s12 + $0x64] ss:$8 sps:$4 sm:$0xff] (%p1118_p4)   ;;  %v8894_v10 = vld [vmem:[%s9155_s4 + $0xa0] ss:$8 sps:$4 sm:$0xff] (%p1118_p4)  }
0x3ed0   : >> { %v6187_v42 = vmul.f32 %v6186_v28, %v6182_v54  ;;  %v8896_v54 = vld [vmem:[%s9155_s4 + $0xb4] ss:$8 sps:$4 sm:$0xff] (%p1118_p4)  }
0x3ed1   : > { %v8898_v28 = vld [vmem:[%s9160_s12 + $0xb4] ss:$8 sps:$4 sm:$0xff] (%p1118_p4)  }
0x3ed2   : >> { %v6192_v37 = vadd.f32 %v6191_v17, %v6187_v42 }
0x3ed5   : >> { %6221 = vrot.lane.b32.xlu1 %v6219_v24, %s10569_s0  ;;  %v8884_v24 = vld [vmem:[%s9155_s4 + $0x94] ss:$8 sps:$4 sm:$0xff] (%p1118_p4)  }
0x3f51   : >> { %v6211_v2 = vpop.xlane.xlu1 %6210 }
0x3f52   : >> { %v6212_v14 = vmul.f32 0.03125, %v6211_v2  ;;  %v10576_v2 = vmov %v4293_v50  ;;  %v8862_v50 = vld [vmem:[%s9160_s12 + $0x54] ss:$8 sps:$4 sm:$0xff] (%p1118_p4)  }
0x3f53   : > { %6608 = vmatprep.subr.bf16.mxu1 (%p1118_p4), %v8862_v50  ;;  %v8889_v2 = vld [vmem:[%s9160_s12 + $0x90] ss:$8 sps:$4 sm:$0xff] (%p1118_p4)   ;;  %v6655_v50 = vld [vmem:[%s9165_s20] sm:$0xf] (%p1118_p4) }
0x3f54   : >> { %v6213_v36 = vadd.f32 1e-06, %v6212_v14  ;;  %6609 = vmatpush1.bf16.msra.mxu1 (%p1118_p4), %v8865_v63  ;;  %v8890_v14 = vld [vmem:[%s9155_s4 + $0xa4] ss:$8 sps:$4 sm:$0xff] (%p1118_p4)   ;;  %v7362_v63 = vld [vmem:[%s9165_s20 + $0x14] sm:$0xf] (%p1118_p4) }
0x3f55   : >> { %v6222_v33 = vpop.permute.xlu1 %6221  ;;  %6610 = vmatprep.subr.bf16.mxu1 (%p1118_p4), %v8868_v61 }
0x3f56   : >> { %8796 = vrsqrt.f32 %v6213_v36  ;;  %v8892_v36 = vld [vmem:[%s9160_s12 + $0xa4] ss:$8 sps:$4 sm:$0xff] (%p1118_p4)  }
0x3f58   : > { %6611 = vmatpush1.bf16.msra.mxu1 (%p1118_p4), %v8871_v20 }
0x3f60   : >> { %v8797_v30 = vpop.eup %8796 }
0x3f61   : >> { %v6215_v13 = vmul.f32 %v8797_v30, %v6203_v62  ;;  %v8874_v62 = vld [vmem:[%s9160_s12 + $0x74] ss:$8 sps:$4 sm:$0xff] (%p1118_p4)   ;;  %v8900_v30 = vld [vmem:[%s9155_s4 + $0xb0] ss:$8 sps:$4 sm:$0xff] (%p1118_p4)  }
0x3f62   : > { %6612 = vmatprep.subr.bf16.mxu1 (%p1118_p4), %v8874_v62 }
0x3f63   : >> { %v6224_v22 = vmul.f32 %v6222_v33, %v6215_v13  ;;  %6613 = vmatpush1.bf16.msra.mxu1 (%p1118_p4), %v8877_v31  ;;  %v8901_v33 = vld [vmem:[%s9160_s12 + $0xb0] ss:$8 sps:$4 sm:$0xff] (%p1118_p4)   ;;  %v6248_v13 = vunpack.c.l.bf16 (%p1118_p4), %v10573_v21 }
0x3f64   : > { %1120 = sbr.rel (!%p1118_p4) target bundleno = 85 (0x55), region = 274  ;;  %6614 = vmatprep.subr.bf16.mxu1 (%p1118_p4), %v8880_v32 }
0x3f65   : >> { %v6233_v40 = vadd.f32 %v6231_v9, %v6224_v22  ;;  %v6250_v42 = vrot.slane (%p1118_p4), %v6248_v13, 7  ;;  %v6252_v9 = vrot.slane (%p1118_p4), %v6248_v13, 6 }
0x3f67   : >> { %v6234_v39 = vsel %vm1347_vm2, %v6192_v37, %v6233_v40  ;;  %6615 = vmatpush1.bf16.msra.mxu1 (%p1118_p4), %v8883_v52  ;;  %v6254_v17 = vsel (%p1118_p4), %vm1414_vm3, %v6248_v13, %v6250_v42  ;;  %v6260_v40 = vpop.permute.xlu0 (%p1118_p4), %6259 }
0x3f68   : >> { %v6235_v35 = vpack.c.bf16 %v6234_v39, %v6234_v39   ;;  %6616 = vmatprep.subr.bf16.mxu1 (%p1118_p4), %v8886_v11  ;;  %v6255_v22 = vsel (%p1118_p4), %vm4581_vm8, %v6254_v17, %v6250_v42 }
0x3f69   : > { %v6256_v37 = vsel (%p1118_p4), %vm6246_vm11, %v6255_v22, %v6252_v9 }
0x3f6a   : >> { %v10575_v1 = vmov %v6235_v35  ;;  %7332 = vmatprep.mubr.msk.bf16.mxu0 (%p1118_p4), %vm1157_vm1, %v6235_v35  ;;  %7357 = vmatprep.mubr.msk.bf16.mxu1 (%p1118_p4), %vm1157_vm1, %v6235_v35  ;;  %v6263_v39 = vsel (%p1118_p4), %vm1157_vm1, %v6256_v37, %v6260_v40 }
0x3f6b   : > { %v8854_v1 = vld [vmem:[%s9155_s4 + $0x44] ss:$8 sps:$4 sm:$0xff]   ;;  %6617 = vmatpush1.bf16.msra.mxu1 %v8889_v2  ;;  %v6264_v35 = vpack.c.bf16 %v6263_v39, %v6263_v39 }
0x3f6c   : > { %6421 = vmatprep.subr.bf16.mxu0 %v8854_v1  ;;  %6618 = vmatprep.subr.bf16.mxu1 %v8892_v36  ;;  %v7360_v1 = vld [vmem:[%s9165_s20 + $0x4] sm:$0xf] }
0x3f6d   : > { %6422 = vmatpush1.bf16.msra.mxu0 %v8858_v18 }
0x3f6e   : > { %6423 = vmatprep.subr.bf16.mxu0 %v8860_v34 }
0x3f6f   : > { %6619 = vmatpush1.bf16.msra.mxu1 %v8895_v4 }
0x3f70   : > { %6620 = vmatprep.subr.bf16.mxu1 %v8898_v28 }
0x3f71   : > { %6424 = vmatpush1.bf16.msra.mxu0 %v8864_v57  ;;  %v7358_v57 = vld [vmem:[%s9165_s20 + $0x8] sm:$0xf] }
0x3f72   : > { %6425 = vmatprep.subr.bf16.mxu0 %v8866_v55  ;;  %v7359_v55 = vld [vmem:[%s9165_s20 + $0x10] sm:$0xf] }
0x3f73   : > { %6621 = vmatpush1.bf16.msra.mxu1 %v8901_v33 }
0x3f75   : > { %6426 = vmatpush1.bf16.msra.mxu0 %v8870_v19 }
0x3f76   : > { %6427 = vmatprep.subr.bf16.mxu0 %v8872_v58  ;;  %6631 = vmatmul.mubr.bf16.vlgmr.msra.gmra.mrb[0].mxu1 %v6264_v35 }
0x3f79   : > { %6428 = vmatpush1.bf16.msra.mxu0 %v8876_v59 }
0x3f7a   : > { %6429 = vmatprep.subr.bf16.mxu0 %v8878_v41 }
0x3f7d   : > { %6430 = vmatpush1.bf16.msra.mxu0 %v8882_v51 }
0x3f7e   : > { %6431 = vmatprep.subr.bf16.mxu0 %v8884_v24 }
0x3f81   : > { %6432 = vmatpush1.bf16.msra.mxu0 %v8888_v29 }
0x3f82   : > { %6433 = vmatprep.subr.bf16.mxu0 %v8890_v14 }
0x3f85   : > { %6434 = vmatpush1.bf16.msra.mxu0 %v8894_v10 }
0x3f86   : > { %6435 = vmatprep.subr.bf16.mxu0 %v8896_v54 }
0x3f89   : > { %6436 = vmatpush1.bf16.msra.mxu0 %v8900_v30 }
0x3f8c   : > { %6446 = vmatmul.mubr.bf16.vlgmr.msra.gmra.mrb[0].mxu0 %v6264_v35 }
0x4049   : > { %v6632_v45 = vpop.f32.mrb[0].mxu1 }
0x404a   : > { %v6639_v23 = vsub.f32 0.0, %v6632_v45  ;;  %v6634_v43 = vpop.f32.mrb[1].mxu1 }
0x404b   : > { %v6640_v21 = vsub.f32 0.0, %v6634_v43  ;;  %v6636_v3 = vpop.f32.mrb[2].mxu1 }
0x404c   : > { %v6641_v5 = vmul.f32 1.442695, %v6639_v23  ;;  %v6637_v8 = vpop.f32.mrb[3].mxu1 }
0x404d   : > { %v6643_v46 = vmul.f32 1.442695, %v6640_v21 }
0x404e   : > { %8902 = vpow2.f32 %v6641_v5 }
0x404f   : > { %8904 = vpow2.f32 %v6643_v46 }
0x4058   : > { %v8903_v0 = vpop.eup %8902 }
0x4059   : > { %v8905_v56 = vpop.eup %8904  ;;  %v6645_v47 = vadd.f32 1.0, %v8903_v0 }
0x405a   : > { %v6646_v53 = vadd.f32 1.0, %v8905_v56 }
0x405f   : > { %v6447_v38 = vpop.f32.mrb[0].mxu0 }
0x4060   : > { %v6449_v27 = vpop.f32.mrb[1].mxu0  ;;  %8906 = vtanh.f32 %v6447_v38 }
0x4061   : > { %v6451_v44 = vpop.f32.mrb[2].mxu0  ;;  %8908 = vtanh.f32 %v6449_v27 }
0x4062   : > { %v6452_v6 = vpop.f32.mrb[3].mxu0  ;;  %8910 = vrcp.f32 %v6645_v47 }
0x4063   : > { %8912 = vrcp.f32 %v6646_v53 }
0x406a   : > { %v8907_v26 = vpop.eup %8906 }
0x406b   : > { %v8909_v60 = vpop.eup %8908 }
0x406c   : > { %v8911_v16 = vpop.eup %8910 }
0x406d   : > { %v8913_v48 = vpop.eup %8912  ;;  %v6653_v7 = vmul.f32 %v8911_v16, %v8907_v26 }
0x406e   : > { %v6654_v49 = vmul.f32 %v8913_v48, %v8909_v60 }
0x406f   : > { %6683 = vrot.lane.b32.xlu1 %v6653_v7, %s9000_s1  ;;  %6677 = vrot.lane.b32.xlu0 %v6653_v7, %s9001_s2  ;;  %v6656_v58 = vmul.f32 %v6655_v50, %v6653_v7 }
0x4070   : > { %v6667_v31 = vmul.f32 %v7359_v55, %v6654_v49 }
0x4073   : > { %6660 = vrot.lane.b32.xlu0 %v6653_v7, %s8999_s5  ;;  %6691 = vrot.lane.b32.xlu1 %v6654_v49, %s9001_s2 }
0x40e1   : > { %v6684_v15 = vpop.permute.xlu1 %6683  ;;  %v6678_v18 = vpop.permute.xlu0 %6677 }
0x40e2   : > { %v6686_v12 = vmul.f32 %v7361_v25, %v6684_v15  ;;  %v6680_v34 = vmul.f32 %v7360_v1, %v6678_v18 }
0x40e4   : > { %v6687_v20 = vadd.f32 %v6686_v12, %v6680_v34 }
0x40e5   : > { %v6661_v61 = vpop.permute.xlu0 %6660  ;;  %v6692_v19 = vpop.permute.xlu1 %6691 }
0x40e6   : > { %v6663_v62 = vmul.f32 %v7358_v57, %v6661_v61  ;;  %v6694_v59 = vmul.f32 %v7362_v63, %v6692_v19 }
0x40e8   : > { %v6664_v41 = vadd.f32 %v6663_v62, %v6656_v58  ;;  %v6695_v32 = vadd.f32 %v6694_v59, %v6687_v20 }
0x40ea   : > { %v6668_v51 = vadd.f32 %v6667_v31, %v6664_v41  ;;  %v6696_v52 = vsub.f32 0.0, %v6695_v32 }
0x40ec   : > { %v6697_v24 = vmul.f32 1.442695, %v6696_v52  ;;  %v6669_v14 = vsub.f32 0.0, %v6668_v51 }
0x40ee   : > { %8914 = vpow2.f32 %v6697_v24  ;;  %v6670_v36 = vmul.f32 1.442695, %v6669_v14 }
0x40f8   : > { %v8915_v11 = vpop.eup %8914 }
0x40f9   : > { %v6699_v29 = vadd.f32 1.0, %v8915_v11 }
0x40fb   : > { %8916 = vrcp.f32 %v6699_v29 }
0x40fc   : > { %8918 = vpow2.f32 %v6670_v36 }
0x4105   : > { %v8917_v2 = vpop.eup %8916 }
0x4106   : > { %6703 = vrot.lane.b32.xlu1 %v8917_v2, %s9000_s1  ;;  %v8919_v10 = vpop.eup %8918 }
0x4107   : > { %v6672_v4 = vadd.f32 1.0, %v8919_v10 }
0x4109   : > { %8920 = vrcp.f32 %v6672_v4 }
0x4113   : > { %v8921_v54 = vpop.eup %8920 }
0x4178   : > { %v6704_v28 = vpop.permute.xlu1 %6703 }
0x4179   : > { %v6707_v30 = vsel %vm1347_vm2, %v8921_v54, %v6704_v28 }
0x417a   : > { %6709 = vst.msk [vmem:[%s9196_s9] sm:$0xf] %vm6708_vm12, %v6707_v30 }
0x417b PF: > { %s75_s28 = sadd.s32 1, %s8944_s28  }
0x417c   : > { %p72_p5 = scmp.ge.s32.totalorder %s75_s28, 4  }
0x417e   :  { %74 = sbr.rel (!%p72_p5) target bundleno = 60 (0x3c), region = 285 }

</bundles_post_ra>
